<compile_context>
chip_gen: v5e
topology: v5e:2x2
jax: 0.10.0
libtpu: 0.0.40
codegen_flags: <defaults>
</compile_context>

<pallas_src>
import functools
import math

import numpy as np

import jax
import jax.numpy as jnp
from jax.experimental import pallas as pl
from jax.experimental.pallas import tpu as pltpu

LANE = 128
_BN_EPS = 1e-5


def _round_up_lane(c):
    return ((c + LANE - 1) // LANE) * LANE


def _vmem_limit_bytes(*bufs):
    """Per-step VMEM budget: double-buffered blocks + scratch + headroom, v7x-safe cap."""
    n = sum(math.prod(shape) * np.dtype(dtype).itemsize for shape, dtype in bufs)
    return int(min(max(2 * n + (8 << 20), 16 << 20), 64 << 20))


# ----------------------------- Pallas kernels -------------------------------

def _edge_masks(HW, Wo):
    """Column-wrap masks for the row-padded conv scratch (only x-boundary needs masking)."""
    xo = jax.lax.broadcasted_iota(jnp.int32, (HW, 1), 0) % Wo
    return xo != 0, xo != (Wo - 1)


def _tap_conv(act_ref, w_ref, not_left, not_right, HW, Wo, C_in, C_out_pad):
    """3x3 'same' conv as 9 accumulated per-tap MXU matmuls.

    act_ref : (HW + 2*Wo + 2, C_in) f32 scratch; rows [Wo+1, Wo+1+HW) hold the activation
              in row-major (y*Wo + x) order, the Wo+1 rows above/below are zero halo.
    w_ref   : (9*C_in, C_out_pad) bf16, tap-major rows ordered (dy, dx, ci).
    For output position p and tap (dy, dx), the input pixel lives at scratch row
    p + dy*Wo + dx; reads that wrap across a row boundary (x-1 at x==0, x+1 at x==Wo-1)
    are zeroed with a lane-broadcast mask, every other out-of-range read lands in the
    zero halo rows.
    """
    acc = jnp.zeros((HW, C_out_pad), jnp.float32)
    for dy in range(3):
        for dx in range(3):
            t = dy * 3 + dx
            win = act_ref[pl.ds(dy * Wo + dx, HW), :]          # (HW, C_in) f32
            if dx == 0:
                win = jnp.where(not_left, win, 0.0)
            elif dx == 2:
                win = jnp.where(not_right, win, 0.0)
            acc += jnp.dot(win.astype(jnp.bfloat16),
                           w_ref[pl.ds(t * C_in, C_in), :],
                           preferred_element_type=jnp.float32)
    return acc


def _bn_stats_epilogue(z, st_ref):
    # Per-channel sum / sum-of-squares partials (reduced over images outside the kernel).
    # TODO(synk): E[x^2]-E[x]^2 in f32 can cancel for large-magnitude activations; a
    # shifted/two-pass accumulation would be numerically safer.
    st_ref[0, 0:1, :] = jnp.sum(z, axis=0, keepdims=True)
    st_ref[0, 1:2, :] = jnp.sum(z * z, axis=0, keepdims=True)


def _up_conv1_kernel(x_ref, ah_ref, aw_ref, w_ref, z_ref, st_ref, act_ref,
                     *, Win, Ho, Wo, C_in):
    """Fused: separable 2x bilinear upsample -> 3x3 conv1 (per-tap matmuls) -> BN1 stats."""
    HW = Ho * Wo
    pad = Wo + 1
    # Zero only the halo bands every step (interior is fully overwritten below; zeroing
    # each step keeps the kernel correct if the 'parallel' grid is split across cores).
    act_ref[0:pad, :] = jnp.zeros((pad, C_in), act_ref.dtype)
    act_ref[pad + HW:, :] = jnp.zeros((pad, C_in), act_ref.dtype)

    # Separable 2x bilinear upsample (align_corners=True), bf16 operands, f32 accumulate:
    #   H pass: one matmul;  W pass: batched matmul over the Ho rows.
    x = x_ref[0]                                                     # (Hin, Win*C_in) bf16
    up_h = jnp.dot(ah_ref[...], x, preferred_element_type=jnp.float32)   # (Ho, Win*C_in)
    up_h = up_h.reshape(Ho, Win, C_in).astype(jnp.bfloat16)
    aw_b = jnp.broadcast_to(aw_ref[...][None], (Ho, Wo, Win))
    up = jax.lax.dot_general(aw_b, up_h, (((2,), (1,)), ((0,), (0,))),
                             preferred_element_type=jnp.float32)     # (Ho, Wo, C_in) f32
    act_ref[pad:pad + HW, :] = up.reshape(HW, C_in)

    not_left, not_right = _edge_masks(HW, Wo)
    acc = _tap_conv(act_ref, w_ref, not_left, not_right, HW, Wo, C_in, z_ref.shape[-1])
    z_ref[0] = acc.astype(z_ref.dtype)
    _bn_stats_epilogue(acc, st_ref)


def _conv2_kernel(z1_ref, s_ref, b_ref, w_ref, z_ref, st_ref, act_ref, *, Ho, Wo, C_in):
    """Fused: BN1 affine + ReLU on the input read -> 3x3 conv2 (per-tap) -> BN2 stats."""
    HW = Ho * Wo
    pad = Wo + 1
    act_ref[0:pad, :] = jnp.zeros((pad, C_in), act_ref.dtype)
    act_ref[pad + HW:, :] = jnp.zeros((pad, C_in), act_ref.dtype)

    # y1 never touches HBM: affine+ReLU fused into the conv2 input path.
    y = jnp.maximum(z1_ref[0].astype(jnp.float32) * s_ref[...] + b_ref[...], 0.0)
    act_ref[pad:pad + HW, :] = y

    not_left, not_right = _edge_masks(HW, Wo)
    acc = _tap_conv(act_ref, w_ref, not_left, not_right, HW, Wo, C_in, z_ref.shape[-1])
    z_ref[0] = acc.astype(z_ref.dtype)
    _bn_stats_epilogue(acc, st_ref)


def _bn_relu_nchw_kernel(z_ref, s_ref, b_ref, o_ref, *, C_out):
    """BN2 affine + ReLU + channel slice + NHWC->NCHW fused into one lane-dense pass."""
    # z_ref: (1, HW, C_pad) bf16 ; s/b: (1, C_pad) f32 ; o_ref: (1, C_out, HW) f32
    y = jnp.maximum(z_ref[0].astype(jnp.float32) * s_ref[...] + b_ref[...], 0.0)
    o_ref[0] = jnp.transpose(y, (1, 0))[:C_out, :]


# ----------------------------- kernel wrappers -------------------------------

def upsample_conv1(x3, ah, aw, w1_packed, Hin, Win, C_in, c_mid_pad):
    """Fused upsample + conv1 + BN1 stat partials. Returns (z1 bf16, stats1 f32)."""
    N = x3.shape[0]
    Ho, Wo = 2 * Hin, 2 * Win
    HW = Ho * Wo
    scratch_rows = HW + 2 * Wo + 2
    kernel = functools.partial(_up_conv1_kernel, Win=Win, Ho=Ho, Wo=Wo, C_in=C_in)
    vmem = _vmem_limit_bytes(
        ((Hin, Win * C_in), jnp.bfloat16), ((Ho, Hin), jnp.bfloat16),
        ((Wo, Win), jnp.bfloat16), ((9 * C_in, c_mid_pad), jnp.bfloat16),
        ((HW, c_mid_pad), jnp.bfloat16), ((2, c_mid_pad), jnp.float32),
        ((scratch_rows, C_in), jnp.float32), ((HW, c_mid_pad), jnp.float32))
    return pl.pallas_call(
        kernel,
        out_shape=(jax.ShapeDtypeStruct((N, HW, c_mid_pad), jnp.bfloat16),
                   jax.ShapeDtypeStruct((N, 2, c_mid_pad), jnp.float32)),
        grid=(N,),
        in_specs=[
            pl.BlockSpec((1, Hin, Win * C_in), lambda n: (n, 0, 0)),
            pl.BlockSpec((Ho, Hin), lambda n: (0, 0)),
            pl.BlockSpec((Wo, Win), lambda n: (0, 0)),
            pl.BlockSpec((9 * C_in, c_mid_pad), lambda n: (0, 0)),
        ],
        out_specs=(
            pl.BlockSpec((1, HW, c_mid_pad), lambda n: (n, 0, 0)),
            pl.BlockSpec((1, 2, c_mid_pad), lambda n: (n, 0, 0)),
        ),
        scratch_shapes=[pltpu.VMEM((scratch_rows, C_in), jnp.float32)],
        compiler_params=pltpu.CompilerParams(
            dimension_semantics=("parallel",), vmem_limit_bytes=vmem),
    )(x3, ah, aw, w1_packed)


def conv2_with_fused_bn1(z1, scale1, bias1, w2_packed, Ho, Wo, c_out_pad):
    """Fused BN1-affine+ReLU + conv2 + BN2 stat partials. Returns (z2 bf16, stats2)."""
    N, HW, C_in = z1.shape
    scratch_rows = HW + 2 * Wo + 2
    kernel = functools.partial(_conv2_kernel, Ho=Ho, Wo=Wo, C_in=C_in)
    vmem = _vmem_limit_bytes(
        ((HW, C_in), jnp.bfloat16), ((1, C_in), jnp.float32), ((1, C_in), jnp.float32),
        ((9 * C_in, c_out_pad), jnp.bfloat16), ((HW, c_out_pad), jnp.bfloat16),
        ((2, c_out_pad), jnp.float32), ((scratch_rows, C_in), jnp.float32),
        ((HW, c_out_pad), jnp.float32))
    return pl.pallas_call(
        kernel,
        out_shape=(jax.ShapeDtypeStruct((N, HW, c_out_pad), jnp.bfloat16),
                   jax.ShapeDtypeStruct((N, 2, c_out_pad), jnp.float32)),
        grid=(N,),
        in_specs=[
            pl.BlockSpec((1, HW, C_in), lambda n: (n, 0, 0)),
            pl.BlockSpec((1, C_in), lambda n: (0, 0)),
            pl.BlockSpec((1, C_in), lambda n: (0, 0)),
            pl.BlockSpec((9 * C_in, c_out_pad), lambda n: (0, 0)),
        ],
        out_specs=(
            pl.BlockSpec((1, HW, c_out_pad), lambda n: (n, 0, 0)),
            pl.BlockSpec((1, 2, c_out_pad), lambda n: (n, 0, 0)),
        ),
        scratch_shapes=[pltpu.VMEM((scratch_rows, C_in), jnp.float32)],
        compiler_params=pltpu.CompilerParams(
            dimension_semantics=("parallel",), vmem_limit_bytes=vmem),
    )(z1, scale1.reshape(1, C_in), bias1.reshape(1, C_in), w2_packed)


def bn_relu_to_nchw(z2, scale, bias, c_out):
    """Final BN2 affine + ReLU, channel un-padding and NHWC->NCHW fused in one pass."""
    N, HW, C = z2.shape
    kernel = functools.partial(_bn_relu_nchw_kernel, C_out=c_out)
    vmem = _vmem_limit_bytes(((HW, C), jnp.bfloat16), ((1, C), jnp.float32),
                             ((1, C), jnp.float32), ((c_out, HW), jnp.float32),
                             ((HW, C), jnp.float32))
    return pl.pallas_call(
        kernel,
        out_shape=jax.ShapeDtypeStruct((N, c_out, HW), jnp.float32),
        grid=(N,),
        in_specs=[
            pl.BlockSpec((1, HW, C), lambda n: (n, 0, 0)),
            pl.BlockSpec((1, C), lambda n: (0, 0)),
            pl.BlockSpec((1, C), lambda n: (0, 0)),
        ],
        out_specs=pl.BlockSpec((1, c_out, HW), lambda n: (n, 0, 0)),
        compiler_params=pltpu.CompilerParams(
            dimension_semantics=("parallel",), vmem_limit_bytes=vmem),
    )(z2, scale.reshape(1, C), bias.reshape(1, C))


# ----------------------------- plain-JAX glue --------------------------------

def upsample_matrices(h_in, w_in):
    """Separable 2x bilinear (align_corners=True) factors: Ah (Ho,Hin), Aw (Wo,Win)."""
    def axis_matrix(n_in, n_out):
        src = jnp.arange(n_out, dtype=jnp.float32) * (n_in - 1) / max(n_out - 1, 1)
        i0 = jnp.clip(jnp.floor(src).astype(jnp.int32), 0, n_in - 1)
        i1 = jnp.clip(i0 + 1, 0, n_in - 1)
        f = src - i0.astype(jnp.float32)
        rows = jnp.arange(n_out)
        return (jnp.zeros((n_out, n_in), jnp.float32)
                .at[rows, i0].add(1.0 - f)
                .at[rows, i1].add(f))

    return axis_matrix(h_in, 2 * h_in), axis_matrix(w_in, 2 * w_in)


def _pack_conv_weight(w_hwio, c_in_pad, c_out_pad):
    """(3,3,Cin,Cout) f32 -> (9*Cin_pad, Cout_pad) bf16, rows ordered (dy, dx, ci)."""
    kh, kw, c_in, c_out = w_hwio.shape
    w = jnp.pad(w_hwio, ((0, 0), (0, 0),
                         (0, c_in_pad - c_in), (0, c_out_pad - c_out)))
    return w.reshape(kh * kw * c_in_pad, c_out_pad).astype(jnp.bfloat16)


def _pad_channels(v, c_pad):
    return jnp.pad(v, (0, c_pad - v.shape[0]))


def fold_batchnorm(stats, gamma_pad, beta_pad, count, eps=_BN_EPS):
    """Fold training-mode BatchNorm2d (biased batch variance) into scale/bias."""
    # TODO(synk): running-mean/var (momentum) buffer updates are a training side-effect
    # and are not materialized; the forward output does not depend on them.
    total = jnp.sum(stats[:, 0, :], axis=0)
    total_sq = jnp.sum(stats[:, 1, :], axis=0)
    mean = total / count
    var = jnp.maximum(total_sq / count - mean * mean, 0.0)
    scale = gamma_pad * jax.lax.rsqrt(var + eps)
    bias = beta_pad - mean * scale
    return scale, bias


# ----------------------------- Up module forward -----------------------------

def init_up_params(key, in_channels, out_channels):
    """Deterministic parameter init for Up(in_channels, out_channels, bilinear=True)."""
    mid_channels = in_channels // 2
    k1, k2 = jax.random.split(key)
    return {
        "w1": 0.1 * jax.random.normal(k1, (3, 3, in_channels, mid_channels), jnp.float32),
        "w2": 0.1 * jax.random.normal(k2, (3, 3, mid_channels, out_channels), jnp.float32),
        "gamma1": 1.0 + 0.05 * jnp.arange(mid_channels, dtype=jnp.float32),
        "beta1": 0.02 * jnp.arange(mid_channels, dtype=jnp.float32),
        "gamma2": 1.0 + 0.05 * jnp.arange(out_channels, dtype=jnp.float32),
        "beta2": 0.02 * jnp.arange(out_channels, dtype=jnp.float32),
    }


@jax.jit
def up_forward(x_nchw, params):
    """Up.forward with bilinear=True (the module's default constructor path)."""
    # TODO(synk): the bilinear=False branch (ConvTranspose2d) is not exercised by the
    # default constructor and is not implemented.
    n, c_in, h_in, w_in = x_nchw.shape
    ho, wo = 2 * h_in, 2 * w_in
    c_mid = params["w1"].shape[-1]
    c_out = params["w2"].shape[-1]
    c_mid_pad = _round_up_lane(c_mid)
    c_out_pad = _round_up_lane(c_out)
    count = n * ho * wo

    # NCHW -> (N, Hin, Win*Cin) NHWC layout (Win*Cin on the lane axis), bf16 MXU operands.
    x = (jnp.transpose(x_nchw, (0, 2, 3, 1))
         .reshape(n, h_in, w_in * c_in).astype(jnp.bfloat16))
    ah, aw = upsample_matrices(h_in, w_in)
    ah, aw = ah.astype(jnp.bfloat16), aw.astype(jnp.bfloat16)
    w1p = _pack_conv_weight(params["w1"], c_in, c_mid_pad)
    w2p = _pack_conv_weight(params["w2"], c_mid_pad, c_out_pad)
    g1 = _pad_channels(params["gamma1"], c_mid_pad)
    b1 = _pad_channels(params["beta1"], c_mid_pad)
    g2 = _pad_channels(params["gamma2"], c_out_pad)
    b2 = _pad_channels(params["beta2"], c_out_pad)

    z1, st1 = upsample_conv1(x, ah, aw, w1p, h_in, w_in, c_in, c_mid_pad)
    s1, sb1 = fold_batchnorm(st1, g1, b1, count)
    z2, st2 = conv2_with_fused_bn1(z1, s1, sb1, w2p, ho, wo, c_out_pad)
    s2, sb2 = fold_batchnorm(st2, g2, b2, count)
    y = bn_relu_to_nchw(z2, s2, sb2, c_out)          # (N, Cout, Ho*Wo) f32, already NCHW
    return y.reshape(n, c_out, ho, wo)


# ----------------------------- pure-JAX references ----------------------------

def _upsample_reference(x_nhwc, ah, aw, up_dtype):
    up_h = jnp.einsum("oh,nhwc->nowc", ah.astype(up_dtype), x_nhwc.astype(up_dtype),
                      preferred_element_type=jnp.float32)
    return jnp.einsum("ow,nhwc->nhoc", aw.astype(up_dtype), up_h.astype(up_dtype),
                      preferred_element_type=jnp.float32)


def up_forward_reference_bf16(x_nchw, params, eps=_BN_EPS):
    """XLA reference mirroring the kernels' numerics (bf16 MXU operands, f32 accumulate)."""
    x = jnp.transpose(x_nchw, (0, 2, 3, 1)).astype(jnp.float32)
    ah, aw = upsample_matrices(x.shape[1], x.shape[2])
    up = _upsample_reference(x, ah, aw, jnp.bfloat16)

    def conv(h, w):
        return jax.lax.conv_general_dilated(
            h.astype(jnp.bfloat16), w.astype(jnp.bfloat16),
            window_strides=(1, 1), padding="SAME",
            dimension_numbers=("NHWC", "HWIO", "NHWC"),
            preferred_element_type=jnp.float32)

    def bn_fold(z, gamma, beta):
        m = z.mean(axis=(0, 1, 2))
        v = z.var(axis=(0, 1, 2))
        scale = gamma * jax.lax.rsqrt(v + eps)
        return scale, beta - m * scale

    z1 = conv(up, params["w1"])
    s1, b1 = bn_fold(z1, params["gamma1"], params["beta1"])
    y1 = jnp.maximum(z1.astype(jnp.bfloat16).astype(jnp.float32) * s1 + b1, 0.0)
    z2 = conv(y1, params["w2"])
    s2, b2 = bn_fold(z2, params["gamma2"], params["beta2"])
    y2 = jnp.maximum(z2.astype(jnp.bfloat16).astype(jnp.float32) * s2 + b2, 0.0)
    return jnp.transpose(y2, (0, 3, 1, 2))


def up_forward_reference_f32(x_nchw, params, eps=_BN_EPS):
    """Full-precision reference matching the PyTorch module (f32 throughout)."""
    x = jnp.transpose(x_nchw, (0, 2, 3, 1)).astype(jnp.float32)
    ah, aw = upsample_matrices(x.shape[1], x.shape[2])
    hi = jax.lax.Precision.HIGHEST
    up_h = jnp.einsum("oh,nhwc->nowc", ah, x, precision=hi)
    up = jnp.einsum("ow,nhwc->nhoc", aw, up_h, precision=hi)

    def block(h, w, gamma, beta):
        z = jax.lax.conv_general_dilated(
            h, w, window_strides=(1, 1), padding="SAME",
            dimension_numbers=("NHWC", "HWIO", "NHWC"), precision=hi)
        m = z.mean(axis=(0, 1, 2))
        v = z.var(axis=(0, 1, 2))
        zn = (z - m) * jax.lax.rsqrt(v + eps) * gamma + beta
        return jnp.maximum(zn, 0.0)

    y = block(up, params["w1"], params["gamma1"], params["beta1"])
    y = block(y, params["w2"], params["gamma2"], params["beta2"])
    return jnp.transpose(y, (0, 3, 1, 2))


# ----------------------------------- main -------------------------------------

if __name__ == "__main__":
    key = jax.random.PRNGKey(0)
    k_x, k_p = jax.random.split(key)

    in_channels, out_channels = 8, 4          # mid_channels = in_channels // 2 = 4
    N, H, W = 2, 8, 8                         # output spatial after 2x upsample: 16 x 16

    x = jax.random.normal(k_x, (N, in_channels, H, W), jnp.float32)   # NCHW like PyTorch
    params = init_up_params(k_p, in_channels, out_channels)

    out = jax.block_until_ready(up_forward(x, params))
    assert out.shape == (N, out_channels, 2 * H, 2 * W), out.shape

    # check vs an XLA reference using matched numerics (bf16 MXU operands, f32 accumulate)
    ref = jax.block_until_ready(up_forward_reference_bf16(x, params))
    err = float(jnp.max(jnp.abs(out - ref)))
    assert err < 2e-2, f"mismatch vs bf16-matched reference: max abs err = {err}"

    # sanity bound vs the full-f32 PyTorch-equivalent reference (bf16 rounding only)
    ref32 = jax.block_until_ready(up_forward_reference_f32(x, params))
    err32 = float(jnp.max(jnp.abs(out - ref32)))
    assert err32 < 1.5e-1, f"mismatch vs f32 reference: max abs err = {err32}"

    print("KERNEL_OK")
</pallas_src>

<mosaic_0001>
module attributes {stable_mosaic.version = 11 : i64} {
  func.func @_bn_relu_nchw_kernel(%arg0: i32, %arg1: memref<1x256x128xbf16, #tpu.memory_space<vmem>>, %arg2: memref<1x128xf32, #tpu.memory_space<vmem>>, %arg3: memref<1x128xf32, #tpu.memory_space<vmem>>, %arg4: memref<1x4x256xf32, #tpu.memory_space<vmem>>) attributes {dimension_semantics = [#tpu.dimension_semantics<parallel>], iteration_bounds = array<i64: 2>, scalar_prefetch = 0 : i64, scratch_operands = 0 : i64, tpu.core_type = #tpu.core_type<tc>, window_params = [{transform_indices = @transform_0, window_bounds = array<i64: 1, 256, 128>}, {pipeline_mode = #tpu.pipeline_mode<synchronous>, transform_indices = @transform_1, window_bounds = array<i64: 1, 128>}, {pipeline_mode = #tpu.pipeline_mode<synchronous>, transform_indices = @transform_2, window_bounds = array<i64: 1, 128>}, {transform_indices = @transform_3, window_bounds = array<i64: 1, 4, 256>}]} {
    %c0 = arith.constant 0 : index
    %c0_0 = arith.constant 0 : index
    %c0_1 = arith.constant 0 : index
    %0 = vector.load %arg1[%c0, %c0_0, %c0_1] : memref<1x256x128xbf16, #tpu.memory_space<vmem>>, vector<1x256x128xbf16>
    %1 = vector.shape_cast %0 : vector<1x256x128xbf16> to vector<256x128xbf16>
    %2 = arith.extf %1 : vector<256x128xbf16> to vector<256x128xf32>
    %c0_2 = arith.constant 0 : index
    %c0_3 = arith.constant 0 : index
    %3 = vector.load %arg2[%c0_2, %c0_3] : memref<1x128xf32, #tpu.memory_space<vmem>>, vector<1x128xf32>
    %4 = vector.broadcast %3 : vector<1x128xf32> to vector<256x128xf32>
    %5 = arith.mulf %2, %4 : vector<256x128xf32>
    %c0_4 = arith.constant 0 : index
    %c0_5 = arith.constant 0 : index
    %6 = vector.load %arg3[%c0_4, %c0_5] : memref<1x128xf32, #tpu.memory_space<vmem>>, vector<1x128xf32>
    %7 = vector.broadcast %6 : vector<1x128xf32> to vector<256x128xf32>
    %8 = arith.addf %5, %7 : vector<256x128xf32>
    %cst = arith.constant 0.000000e+00 : f32
    %9 = vector.broadcast %cst : f32 to vector<256x128xf32>
    %10 = arith.maximumf %8, %9 : vector<256x128xf32>
    %11 = tpu.transpose %10, [1, 0] : vector<256x128xf32> -> vector<128x256xf32>
    %12 = vector.extract_strided_slice %11 {offsets = [0, 0], sizes = [4, 256], strides = [1, 1]} : vector<128x256xf32> to vector<4x256xf32>
    %c0_6 = arith.constant 0 : index
    %c0_7 = arith.constant 0 : index
    %c0_8 = arith.constant 0 : index
    %13 = vector.load %arg4[%c0_6, %c0_7, %c0_8] : memref<1x4x256xf32, #tpu.memory_space<vmem>>, vector<1x4x256xf32>
    %14 = vector.shape_cast %13 : vector<1x4x256xf32> to vector<4x256xf32>
    %15 = vector.shape_cast %12 : vector<4x256xf32> to vector<1x4x256xf32>
    tpu.vector_store %arg4[%c0_6, %c0_7, %c0_8], %15 {strides = array<i32>} : memref<1x4x256xf32, #tpu.memory_space<vmem>>, vector<1x4x256xf32>,
    return
  }
  func.func @transform_0(%arg0: i32) -> (i32, i32, i32) {
    %c0_i32 = arith.constant 0 : i32
    %c0_i32_0 = arith.constant 0 : i32
    %c0_i32_1 = arith.constant 0 : i32
    return %arg0, %c0_i32, %c0_i32_0 : i32, i32, i32
  }
  func.func @transform_1(%arg0: i32) -> (i32, i32) {
    %c0_i32 = arith.constant 0 : i32
    %c0_i32_0 = arith.constant 0 : i32
    %c0_i32_1 = arith.constant 0 : i32
    return %c0_i32, %c0_i32_0 : i32, i32
  }
  func.func @transform_2(%arg0: i32) -> (i32, i32) {
    %c0_i32 = arith.constant 0 : i32
    %c0_i32_0 = arith.constant 0 : i32
    %c0_i32_1 = arith.constant 0 : i32
    return %c0_i32, %c0_i32_0 : i32, i32
  }
  func.func @transform_3(%arg0: i32) -> (i32, i32, i32) {
    %c0_i32 = arith.constant 0 : i32
    %c0_i32_0 = arith.constant 0 : i32
    %c0_i32_1 = arith.constant 0 : i32
    return %arg0, %c0_i32, %c0_i32_0 : i32, i32, i32
  }
}

module attributes {stable_mosaic.version = 11 : i64} {
  func.func @_up_conv1_kernel(%arg0: i32, %arg1: memref<1x8x64xbf16, #tpu.memory_space<vmem>>, %arg2: memref<16x8xbf16, #tpu.memory_space<vmem>>, %arg3: memref<16x8xbf16, #tpu.memory_space<vmem>>, %arg4: memref<72x128xbf16, #tpu.memory_space<vmem>>, %arg5: memref<1x256x128xbf16, #tpu.memory_space<vmem>>, %arg6: memref<1x2x128xf32, #tpu.memory_space<vmem>>, %arg7: memref<290x8xf32, #tpu.memory_space<vmem>>) attributes {dimension_semantics = [#tpu.dimension_semantics<parallel>], iteration_bounds = array<i64: 2>, scalar_prefetch = 0 : i64, scratch_operands = 1 : i64, tpu.core_type = #tpu.core_type<tc>, window_params = [{transform_indices = @transform_0, window_bounds = array<i64: 1, 8, 64>}, {pipeline_mode = #tpu.pipeline_mode<synchronous>, transform_indices = @transform_1, window_bounds = array<i64: 16, 8>}, {pipeline_mode = #tpu.pipeline_mode<synchronous>, transform_indices = @transform_2, window_bounds = array<i64: 16, 8>}, {pipeline_mode = #tpu.pipeline_mode<synchronous>, transform_indices = @transform_3, window_bounds = array<i64: 72, 128>}, {transform_indices = @transform_4, window_bounds = array<i64: 1, 256, 128>}, {transform_indices = @transform_5, window_bounds = array<i64: 1, 2, 128>}]} {
    %cst = arith.constant 0.000000e+00 : f32
    %0 = vector.broadcast %cst : f32 to vector<17x8xf32>
    %c0 = arith.constant 0 : index
    %c0_0 = arith.constant 0 : index
    %1 = vector.load %arg7[%c0, %c0_0] : memref<290x8xf32, #tpu.memory_space<vmem>>, vector<17x8xf32>
    tpu.vector_store %arg7[%c0, %c0_0], %0 {strides = array<i32>} : memref<290x8xf32, #tpu.memory_space<vmem>>, vector<17x8xf32>,
    %cst_1 = arith.constant 0.000000e+00 : f32
    %2 = vector.broadcast %cst_1 : f32 to vector<17x8xf32>
    %c273 = arith.constant 273 : index
    %c0_2 = arith.constant 0 : index
    %3 = vector.load %arg7[%c273, %c0_2] : memref<290x8xf32, #tpu.memory_space<vmem>>, vector<17x8xf32>
    tpu.vector_store %arg7[%c273, %c0_2], %2 {strides = array<i32>} : memref<290x8xf32, #tpu.memory_space<vmem>>, vector<17x8xf32>,
    %c0_3 = arith.constant 0 : index
    %c0_4 = arith.constant 0 : index
    %c0_5 = arith.constant 0 : index
    %4 = vector.load %arg1[%c0_3, %c0_4, %c0_5] : memref<1x8x64xbf16, #tpu.memory_space<vmem>>, vector<1x8x64xbf16>
    %5 = vector.shape_cast %4 : vector<1x8x64xbf16> to vector<8x64xbf16>
    %c0_6 = arith.constant 0 : index
    %c0_7 = arith.constant 0 : index
    %6 = vector.load %arg2[%c0_6, %c0_7] : memref<16x8xbf16, #tpu.memory_space<vmem>>, vector<16x8xbf16>
    %cst_8 = arith.constant dense<0.000000e+00> : vector<16x64xf32>
    %7 = tpu.matmul %6, %5, %cst_8 {dimension_numbers = #tpu.dot_dimension_numbers<[1], [0], [0], [1], [0, 0, 1, 1], [], []>} : vector<16x8xbf16>, vector<8x64xbf16>, vector<16x64xf32> -> vector<16x64xf32>
    %8 = vector.shape_cast %7 : vector<16x64xf32> to vector<16x8x8xf32>
    %9 = arith.truncf %8 : vector<16x8x8xf32> to vector<16x8x8xbf16>
    %c0_9 = arith.constant 0 : index
    %c0_10 = arith.constant 0 : index
    %10 = vector.load %arg3[%c0_9, %c0_10] : memref<16x8xbf16, #tpu.memory_space<vmem>>, vector<16x8xbf16>
    %11 = vector.shape_cast %10 : vector<16x8xbf16> to vector<1x16x8xbf16>
    %12 = vector.shape_cast %11 : vector<1x16x8xbf16> to vector<1x16x8xbf16>
    %13 = vector.broadcast %12 : vector<1x16x8xbf16> to vector<16x16x8xbf16>
    %cst_11 = arith.constant dense<0.000000e+00> : vector<16x16x8xf32>
    %14 = tpu.matmul %13, %9, %cst_11 {dimension_numbers = #tpu.dot_dimension_numbers<[2], [1], [1], [2], [0, 0, 0, 1, 1, 2], [0], [0]>} : vector<16x16x8xbf16>, vector<16x8x8xbf16>, vector<16x16x8xf32> -> vector<16x16x8xf32>
    %15 = vector.shape_cast %14 : vector<16x16x8xf32> to vector<256x8xf32>
    %c17 = arith.constant 17 : index
    %c0_12 = arith.constant 0 : index
    %16 = vector.load %arg7[%c17, %c0_12] : memref<290x8xf32, #tpu.memory_space<vmem>>, vector<256x8xf32>
    tpu.vector_store %arg7[%c17, %c0_12], %15 {strides = array<i32>} : memref<290x8xf32, #tpu.memory_space<vmem>>, vector<256x8xf32>,
    %17 = tpu.iota {dimensions = array<i32: 0>} : vector<256x1xi32>
    %c16_i32 = arith.constant 16 : i32
    %c0_i32 = arith.constant 0 : i32
    %18 = arith.cmpi eq, %c16_i32, %c0_i32 : i32
    %c1_i32 = arith.constant 1 : i32
    %19 = arith.select %18, %c1_i32, %c16_i32 : i32
    %20 = vector.broadcast %19 : i32 to vector<256x1xi32>
    %21 = arith.remsi %17, %20 : vector<256x1xi32>
    %c0_i32_13 = arith.constant 0 : i32
    %22 = vector.broadcast %c0_i32_13 : i32 to vector<256x1xi32>
    %23 = arith.cmpi ne, %21, %22 : vector<256x1xi32>
    %c0_i32_14 = arith.constant 0 : i32
    %24 = vector.broadcast %c0_i32_14 : i32 to vector<256x1xi32>
    %25 = arith.cmpi slt, %21, %24 : vector<256x1xi32>
    %c0_i32_15 = arith.constant 0 : i32
    %26 = arith.cmpi slt, %19, %c0_i32_15 : i32
    %27 = vector.broadcast %26 : i1 to vector<256x1xi1>
    %28 = vector.broadcast %27 : vector<256x1xi1> to vector<256x1xi1>
    %29 = arith.xori %25, %28 : vector<256x1xi1>
    %30 = arith.andi %29, %23 : vector<256x1xi1>
    %31 = vector.broadcast %19 : i32 to vector<256x1xi32>
    %32 = arith.addi %21, %31 : vector<256x1xi32>
    %33 = arith.select %30, %32, %21 : vector<256x1xi1>, vector<256x1xi32>
    %c0_i32_16 = arith.constant 0 : i32
    %34 = vector.broadcast %c0_i32_16 : i32 to vector<256x1xi32>
    %35 = arith.cmpi ne, %33, %34 : vector<256x1xi32>
    %c15_i32 = arith.constant 15 : i32
    %36 = vector.broadcast %c15_i32 : i32 to vector<256x1xi32>
    %37 = arith.cmpi ne, %33, %36 : vector<256x1xi32>
    %cst_17 = arith.constant 0.000000e+00 : f32
    %38 = vector.broadcast %cst_17 : f32 to vector<256x128xf32>
    %c0_18 = arith.constant 0 : index
    %c0_19 = arith.constant 0 : index
    %39 = vector.load %arg7[%c0_18, %c0_19] : memref<290x8xf32, #tpu.memory_space<vmem>>, vector<256x8xf32>
    %cst_20 = arith.constant 0.000000e+00 : f32
    %40 = vector.shape_cast %35 : vector<256x1xi1> to vector<256x1xi1>
    %41 = vector.broadcast %40 : vector<256x1xi1> to vector<256x8xi1>
    %42 = vector.broadcast %cst_20 : f32 to vector<256x8xf32>
    %43 = arith.select %41, %39, %42 : vector<256x8xi1>, vector<256x8xf32>
    %44 = arith.truncf %43 : vector<256x8xf32> to vector<256x8xbf16>
    %c0_21 = arith.constant 0 : index
    %c0_22 = arith.constant 0 : index
    %45 = vector.load %arg4[%c0_21, %c0_22] : memref<72x128xbf16, #tpu.memory_space<vmem>>, vector<8x128xbf16>
    %cst_23 = arith.constant dense<0.000000e+00> : vector<256x128xf32>
    %46 = tpu.matmul %44, %45, %cst_23 {dimension_numbers = #tpu.dot_dimension_numbers<[1], [0], [0], [1], [0, 0, 1, 1], [], []>} : vector<256x8xbf16>, vector<8x128xbf16>, vector<256x128xf32> -> vector<256x128xf32>
    %47 = arith.addf %38, %46 : vector<256x128xf32>
    %c1 = arith.constant 1 : index
    %c0_24 = arith.constant 0 : index
    %48 = vector.load %arg7[%c1, %c0_24] : memref<290x8xf32, #tpu.memory_space<vmem>>, vector<256x8xf32>
    %49 = arith.truncf %48 : vector<256x8xf32> to vector<256x8xbf16>
    %c8 = arith.constant 8 : index
    %c0_25 = arith.constant 0 : index
    %50 = vector.load %arg4[%c8, %c0_25] : memref<72x128xbf16, #tpu.memory_space<vmem>>, vector<8x128xbf16>
    %cst_26 = arith.constant dense<0.000000e+00> : vector<256x128xf32>
    %51 = tpu.matmul %49, %50, %cst_26 {dimension_numbers = #tpu.dot_dimension_numbers<[1], [0], [0], [1], [0, 0, 1, 1], [], []>} : vector<256x8xbf16>, vector<8x128xbf16>, vector<256x128xf32> -> vector<256x128xf32>
    %52 = arith.addf %47, %51 : vector<256x128xf32>
    %c2 = arith.constant 2 : index
    %c0_27 = arith.constant 0 : index
    %53 = vector.load %arg7[%c2, %c0_27] : memref<290x8xf32, #tpu.memory_space<vmem>>, vector<256x8xf32>
    %cst_28 = arith.constant 0.000000e+00 : f32
    %54 = vector.shape_cast %37 : vector<256x1xi1> to vector<256x1xi1>
    %55 = vector.broadcast %54 : vector<256x1xi1> to vector<256x8xi1>
    %56 = vector.broadcast %cst_28 : f32 to vector<256x8xf32>
    %57 = arith.select %55, %53, %56 : vector<256x8xi1>, vector<256x8xf32>
    %58 = arith.truncf %57 : vector<256x8xf32> to vector<256x8xbf16>
    %c16 = arith.constant 16 : index
    %c0_29 = arith.constant 0 : index
    %59 = vector.load %arg4[%c16, %c0_29] : memref<72x128xbf16, #tpu.memory_space<vmem>>, vector<8x128xbf16>
    %cst_30 = arith.constant dense<0.000000e+00> : vector<256x128xf32>
    %60 = tpu.matmul %58, %59, %cst_30 {dimension_numbers = #tpu.dot_dimension_numbers<[1], [0], [0], [1], [0, 0, 1, 1], [], []>} : vector<256x8xbf16>, vector<8x128xbf16>, vector<256x128xf32> -> vector<256x128xf32>
    %61 = arith.addf %52, %60 : vector<256x128xf32>
    %c16_31 = arith.constant 16 : index
    %c0_32 = arith.constant 0 : index
    %62 = vector.load %arg7[%c16_31, %c0_32] : memref<290x8xf32, #tpu.memory_space<vmem>>, vector<256x8xf32>
    %cst_33 = arith.constant 0.000000e+00 : f32
    %63 = vector.shape_cast %35 : vector<256x1xi1> to vector<256x1xi1>
    %64 = vector.broadcast %63 : vector<256x1xi1> to vector<256x8xi1>
    %65 = vector.broadcast %cst_33 : f32 to vector<256x8xf32>
    %66 = arith.select %64, %62, %65 : vector<256x8xi1>, vector<256x8xf32>
    %67 = arith.truncf %66 : vector<256x8xf32> to vector<256x8xbf16>
    %c24 = arith.constant 24 : index
    %c0_34 = arith.constant 0 : index
    %68 = vector.load %arg4[%c24, %c0_34] : memref<72x128xbf16, #tpu.memory_space<vmem>>, vector<8x128xbf16>
    %cst_35 = arith.constant dense<0.000000e+00> : vector<256x128xf32>
    %69 = tpu.matmul %67, %68, %cst_35 {dimension_numbers = #tpu.dot_dimension_numbers<[1], [0], [0], [1], [0, 0, 1, 1], [], []>} : vector<256x8xbf16>, vector<8x128xbf16>, vector<256x128xf32> -> vector<256x128xf32>
    %70 = arith.addf %61, %69 : vector<256x128xf32>
    %c17_36 = arith.constant 17 : index
    %c0_37 = arith.constant 0 : index
    %71 = vector.load %arg7[%c17_36, %c0_37] : memref<290x8xf32, #tpu.memory_space<vmem>>, vector<256x8xf32>
    %72 = arith.truncf %71 : vector<256x8xf32> to vector<256x8xbf16>
    %c32 = arith.constant 32 : index
    %c0_38 = arith.constant 0 : index
    %73 = vector.load %arg4[%c32, %c0_38] : memref<72x128xbf16, #tpu.memory_space<vmem>>, vector<8x128xbf16>
    %cst_39 = arith.constant dense<0.000000e+00> : vector<256x128xf32>
    %74 = tpu.matmul %72, %73, %cst_39 {dimension_numbers = #tpu.dot_dimension_numbers<[1], [0], [0], [1], [0, 0, 1, 1], [], []>} : vector<256x8xbf16>, vector<8x128xbf16>, vector<256x128xf32> -> vector<256x128xf32>
    %75 = arith.addf %70, %74 : vector<256x128xf32>
    %c18 = arith.constant 18 : index
    %c0_40 = arith.constant 0 : index
    %76 = vector.load %arg7[%c18, %c0_40] : memref<290x8xf32, #tpu.memory_space<vmem>>, vector<256x8xf32>
    %cst_41 = arith.constant 0.000000e+00 : f32
    %77 = vector.shape_cast %37 : vector<256x1xi1> to vector<256x1xi1>
    %78 = vector.broadcast %77 : vector<256x1xi1> to vector<256x8xi1>
    %79 = vector.broadcast %cst_41 : f32 to vector<256x8xf32>
    %80 = arith.select %78, %76, %79 : vector<256x8xi1>, vector<256x8xf32>
    %81 = arith.truncf %80 : vector<256x8xf32> to vector<256x8xbf16>
    %c40 = arith.constant 40 : index
    %c0_42 = arith.constant 0 : index
    %82 = vector.load %arg4[%c40, %c0_42] : memref<72x128xbf16, #tpu.memory_space<vmem>>, vector<8x128xbf16>
    %cst_43 = arith.constant dense<0.000000e+00> : vector<256x128xf32>
    %83 = tpu.matmul %81, %82, %cst_43 {dimension_numbers = #tpu.dot_dimension_numbers<[1], [0], [0], [1], [0, 0, 1, 1], [], []>} : vector<256x8xbf16>, vector<8x128xbf16>, vector<256x128xf32> -> vector<256x128xf32>
    %84 = arith.addf %75, %83 : vector<256x128xf32>
    %c32_44 = arith.constant 32 : index
    %c0_45 = arith.constant 0 : index
    %85 = vector.load %arg7[%c32_44, %c0_45] : memref<290x8xf32, #tpu.memory_space<vmem>>, vector<256x8xf32>
    %cst_46 = arith.constant 0.000000e+00 : f32
    %86 = vector.shape_cast %35 : vector<256x1xi1> to vector<256x1xi1>
    %87 = vector.broadcast %86 : vector<256x1xi1> to vector<256x8xi1>
    %88 = vector.broadcast %cst_46 : f32 to vector<256x8xf32>
    %89 = arith.select %87, %85, %88 : vector<256x8xi1>, vector<256x8xf32>
    %90 = arith.truncf %89 : vector<256x8xf32> to vector<256x8xbf16>
    %c48 = arith.constant 48 : index
    %c0_47 = arith.constant 0 : index
    %91 = vector.load %arg4[%c48, %c0_47] : memref<72x128xbf16, #tpu.memory_space<vmem>>, vector<8x128xbf16>
    %cst_48 = arith.constant dense<0.000000e+00> : vector<256x128xf32>
    %92 = tpu.matmul %90, %91, %cst_48 {dimension_numbers = #tpu.dot_dimension_numbers<[1], [0], [0], [1], [0, 0, 1, 1], [], []>} : vector<256x8xbf16>, vector<8x128xbf16>, vector<256x128xf32> -> vector<256x128xf32>
    %93 = arith.addf %84, %92 : vector<256x128xf32>
    %c33 = arith.constant 33 : index
    %c0_49 = arith.constant 0 : index
    %94 = vector.load %arg7[%c33, %c0_49] : memref<290x8xf32, #tpu.memory_space<vmem>>, vector<256x8xf32>
    %95 = arith.truncf %94 : vector<256x8xf32> to vector<256x8xbf16>
    %c56 = arith.constant 56 : index
    %c0_50 = arith.constant 0 : index
    %96 = vector.load %arg4[%c56, %c0_50] : memref<72x128xbf16, #tpu.memory_space<vmem>>, vector<8x128xbf16>
    %cst_51 = arith.constant dense<0.000000e+00> : vector<256x128xf32>
    %97 = tpu.matmul %95, %96, %cst_51 {dimension_numbers = #tpu.dot_dimension_numbers<[1], [0], [0], [1], [0, 0, 1, 1], [], []>} : vector<256x8xbf16>, vector<8x128xbf16>, vector<256x128xf32> -> vector<256x128xf32>
    %98 = arith.addf %93, %97 : vector<256x128xf32>
    %c34 = arith.constant 34 : index
    %c0_52 = arith.constant 0 : index
    %99 = vector.load %arg7[%c34, %c0_52] : memref<290x8xf32, #tpu.memory_space<vmem>>, vector<256x8xf32>
    %cst_53 = arith.constant 0.000000e+00 : f32
    %100 = vector.shape_cast %37 : vector<256x1xi1> to vector<256x1xi1>
    %101 = vector.broadcast %100 : vector<256x1xi1> to vector<256x8xi1>
    %102 = vector.broadcast %cst_53 : f32 to vector<256x8xf32>
    %103 = arith.select %101, %99, %102 : vector<256x8xi1>, vector<256x8xf32>
    %104 = arith.truncf %103 : vector<256x8xf32> to vector<256x8xbf16>
    %c64 = arith.constant 64 : index
    %c0_54 = arith.constant 0 : index
    %105 = vector.load %arg4[%c64, %c0_54] : memref<72x128xbf16, #tpu.memory_space<vmem>>, vector<8x128xbf16>
    %cst_55 = arith.constant dense<0.000000e+00> : vector<256x128xf32>
    %106 = tpu.matmul %104, %105, %cst_55 {dimension_numbers = #tpu.dot_dimension_numbers<[1], [0], [0], [1], [0, 0, 1, 1], [], []>} : vector<256x8xbf16>, vector<8x128xbf16>, vector<256x128xf32> -> vector<256x128xf32>
    %107 = arith.addf %98, %106 : vector<256x128xf32>
    %108 = arith.truncf %107 : vector<256x128xf32> to vector<256x128xbf16>
    %c0_56 = arith.constant 0 : index
    %c0_57 = arith.constant 0 : index
    %c0_58 = arith.constant 0 : index
    %109 = vector.load %arg5[%c0_56, %c0_57, %c0_58] : memref<1x256x128xbf16, #tpu.memory_space<vmem>>, vector<1x256x128xbf16>
    %110 = vector.shape_cast %109 : vector<1x256x128xbf16> to vector<256x128xbf16>
    %111 = vector.shape_cast %108 : vector<256x128xbf16> to vector<1x256x128xbf16>
    tpu.vector_store %arg5[%c0_56, %c0_57, %c0_58], %111 {strides = array<i32>} : memref<1x256x128xbf16, #tpu.memory_space<vmem>>, vector<1x256x128xbf16>,
    %cst_59 = arith.constant dense<0.000000e+00> : vector<128xf32>
    %112 = vector.multi_reduction <add>, %107, %cst_59 [0] : vector<256x128xf32> to vector<128xf32>
    %113 = vector.shape_cast %112 : vector<128xf32> to vector<1x128xf32>
    %c0_60 = arith.constant 0 : index
    %c0_61 = arith.constant 0 : index
    %c0_62 = arith.constant 0 : index
    %114 = vector.load %arg6[%c0_60, %c0_61, %c0_62] : memref<1x2x128xf32, #tpu.memory_space<vmem>>, vector<1x1x128xf32>
    %115 = vector.shape_cast %114 : vector<1x1x128xf32> to vector<1x128xf32>
    %116 = vector.shape_cast %113 : vector<1x128xf32> to vector<1x1x128xf32>
    tpu.vector_store %arg6[%c0_60, %c0_61, %c0_62], %116 {strides = array<i32>} : memref<1x2x128xf32, #tpu.memory_space<vmem>>, vector<1x1x128xf32>,
    %117 = arith.mulf %107, %107 : vector<256x128xf32>
    %cst_63 = arith.constant dense<0.000000e+00> : vector<128xf32>
    %118 = vector.multi_reduction <add>, %117, %cst_63 [0] : vector<256x128xf32> to vector<128xf32>
    %119 = vector.shape_cast %118 : vector<128xf32> to vector<1x128xf32>
    %c0_64 = arith.constant 0 : index
    %c1_65 = arith.constant 1 : index
    %c0_66 = arith.constant 0 : index
    %120 = vector.load %arg6[%c0_64, %c1_65, %c0_66] : memref<1x2x128xf32, #tpu.memory_space<vmem>>, vector<1x1x128xf32>
    %121 = vector.shape_cast %120 : vector<1x1x128xf32> to vector<1x128xf32>
    %122 = vector.shape_cast %119 : vector<1x128xf32> to vector<1x1x128xf32>
    tpu.vector_store %arg6[%c0_64, %c1_65, %c0_66], %122 {strides = array<i32>} : memref<1x2x128xf32, #tpu.memory_space<vmem>>, vector<1x1x128xf32>,
    return
  }
  func.func @transform_0(%arg0: i32) -> (i32, i32, i32) {
    %c0_i32 = arith.constant 0 : i32
    %c0_i32_0 = arith.constant 0 : i32
    %c0_i32_1 = arith.constant 0 : i32
    return %arg0, %c0_i32, %c0_i32_0 : i32, i32, i32
  }
  func.func @transform_1(%arg0: i32) -> (i32, i32) {
    %c0_i32 = arith.constant 0 : i32
    %c0_i32_0 = arith.constant 0 : i32
    %c0_i32_1 = arith.constant 0 : i32
    return %c0_i32, %c0_i32_0 : i32, i32
  }
  func.func @transform_2(%arg0: i32) -> (i32, i32) {
    %c0_i32 = arith.constant 0 : i32
    %c0_i32_0 = arith.constant 0 : i32
    %c0_i32_1 = arith.constant 0 : i32
    return %c0_i32, %c0_i32_0 : i32, i32
  }
  func.func @transform_3(%arg0: i32) -> (i32, i32) {
    %c0_i32 = arith.constant 0 : i32
    %c0_i32_0 = arith.constant 0 : i32
    %c0_i32_1 = arith.constant 0 : i32
    return %c0_i32, %c0_i32_0 : i32, i32
  }
  func.func @transform_4(%arg0: i32) -> (i32, i32, i32) {
    %c0_i32 = arith.constant 0 : i32
    %c0_i32_0 = arith.constant 0 : i32
    %c0_i32_1 = arith.constant 0 : i32
    return %arg0, %c0_i32, %c0_i32_0 : i32, i32, i32
  }
  func.func @transform_5(%arg0: i32) -> (i32, i32, i32) {
    %c0_i32 = arith.constant 0 : i32
    %c0_i32_0 = arith.constant 0 : i32
    %c0_i32_1 = arith.constant 0 : i32
    return %arg0, %c0_i32, %c0_i32_0 : i32, i32, i32
  }
}

module attributes {stable_mosaic.version = 11 : i64} {
  func.func @_conv2_kernel(%arg0: i32, %arg1: memref<1x256x128xbf16, #tpu.memory_space<vmem>>, %arg2: memref<1x128xf32, #tpu.memory_space<vmem>>, %arg3: memref<1x128xf32, #tpu.memory_space<vmem>>, %arg4: memref<1152x128xbf16, #tpu.memory_space<vmem>>, %arg5: memref<1x256x128xbf16, #tpu.memory_space<vmem>>, %arg6: memref<1x2x128xf32, #tpu.memory_space<vmem>>, %arg7: memref<290x128xf32, #tpu.memory_space<vmem>>) attributes {dimension_semantics = [#tpu.dimension_semantics<parallel>], iteration_bounds = array<i64: 2>, scalar_prefetch = 0 : i64, scratch_operands = 1 : i64, tpu.core_type = #tpu.core_type<tc>, window_params = [{transform_indices = @transform_0, window_bounds = array<i64: 1, 256, 128>}, {pipeline_mode = #tpu.pipeline_mode<synchronous>, transform_indices = @transform_1, window_bounds = array<i64: 1, 128>}, {pipeline_mode = #tpu.pipeline_mode<synchronous>, transform_indices = @transform_2, window_bounds = array<i64: 1, 128>}, {pipeline_mode = #tpu.pipeline_mode<synchronous>, transform_indices = @transform_3, window_bounds = array<i64: 1152, 128>}, {transform_indices = @transform_4, window_bounds = array<i64: 1, 256, 128>}, {transform_indices = @transform_5, window_bounds = array<i64: 1, 2, 128>}]} {
    %cst = arith.constant 0.000000e+00 : f32
    %0 = vector.broadcast %cst : f32 to vector<17x128xf32>
    %c0 = arith.constant 0 : index
    %c0_0 = arith.constant 0 : index
    %1 = vector.load %arg7[%c0, %c0_0] : memref<290x128xf32, #tpu.memory_space<vmem>>, vector<17x128xf32>
    tpu.vector_store %arg7[%c0, %c0_0], %0 {strides = array<i32>} : memref<290x128xf32, #tpu.memory_space<vmem>>, vector<17x128xf32>,
    %cst_1 = arith.constant 0.000000e+00 : f32
    %2 = vector.broadcast %cst_1 : f32 to vector<17x128xf32>
    %c273 = arith.constant 273 : index
    %c0_2 = arith.constant 0 : index
    %3 = vector.load %arg7[%c273, %c0_2] : memref<290x128xf32, #tpu.memory_space<vmem>>, vector<17x128xf32>
    tpu.vector_store %arg7[%c273, %c0_2], %2 {strides = array<i32>} : memref<290x128xf32, #tpu.memory_space<vmem>>, vector<17x128xf32>,
    %c0_3 = arith.constant 0 : index
    %c0_4 = arith.constant 0 : index
    %c0_5 = arith.constant 0 : index
    %4 = vector.load %arg1[%c0_3, %c0_4, %c0_5] : memref<1x256x128xbf16, #tpu.memory_space<vmem>>, vector<1x256x128xbf16>
    %5 = vector.shape_cast %4 : vector<1x256x128xbf16> to vector<256x128xbf16>
    %6 = arith.extf %5 : vector<256x128xbf16> to vector<256x128xf32>
    %c0_6 = arith.constant 0 : index
    %c0_7 = arith.constant 0 : index
    %7 = vector.load %arg2[%c0_6, %c0_7] : memref<1x128xf32, #tpu.memory_space<vmem>>, vector<1x128xf32>
    %8 = vector.broadcast %7 : vector<1x128xf32> to vector<256x128xf32>
    %9 = arith.mulf %6, %8 : vector<256x128xf32>
    %c0_8 = arith.constant 0 : index
    %c0_9 = arith.constant 0 : index
    %10 = vector.load %arg3[%c0_8, %c0_9] : memref<1x128xf32, #tpu.memory_space<vmem>>, vector<1x128xf32>
    %11 = vector.broadcast %10 : vector<1x128xf32> to vector<256x128xf32>
    %12 = arith.addf %9, %11 : vector<256x128xf32>
    %cst_10 = arith.constant 0.000000e+00 : f32
    %13 = vector.broadcast %cst_10 : f32 to vector<256x128xf32>
    %14 = arith.maximumf %12, %13 : vector<256x128xf32>
    %c17 = arith.constant 17 : index
    %c0_11 = arith.constant 0 : index
    %15 = vector.load %arg7[%c17, %c0_11] : memref<290x128xf32, #tpu.memory_space<vmem>>, vector<256x128xf32>
    tpu.vector_store %arg7[%c17, %c0_11], %14 {strides = array<i32>} : memref<290x128xf32, #tpu.memory_space<vmem>>, vector<256x128xf32>,
    %16 = tpu.iota {dimensions = array<i32: 0>} : vector<256x1xi32>
    %c16_i32 = arith.constant 16 : i32
    %c0_i32 = arith.constant 0 : i32
    %17 = arith.cmpi eq, %c16_i32, %c0_i32 : i32
    %c1_i32 = arith.constant 1 : i32
    %18 = arith.select %17, %c1_i32, %c16_i32 : i32
    %19 = vector.broadcast %18 : i32 to vector<256x1xi32>
    %20 = arith.remsi %16, %19 : vector<256x1xi32>
    %c0_i32_12 = arith.constant 0 : i32
    %21 = vector.broadcast %c0_i32_12 : i32 to vector<256x1xi32>
    %22 = arith.cmpi ne, %20, %21 : vector<256x1xi32>
    %c0_i32_13 = arith.constant 0 : i32
    %23 = vector.broadcast %c0_i32_13 : i32 to vector<256x1xi32>
    %24 = arith.cmpi slt, %20, %23 : vector<256x1xi32>
    %c0_i32_14 = arith.constant 0 : i32
    %25 = arith.cmpi slt, %18, %c0_i32_14 : i32
    %26 = vector.broadcast %25 : i1 to vector<256x1xi1>
    %27 = vector.broadcast %26 : vector<256x1xi1> to vector<256x1xi1>
    %28 = arith.xori %24, %27 : vector<256x1xi1>
    %29 = arith.andi %28, %22 : vector<256x1xi1>
    %30 = vector.broadcast %18 : i32 to vector<256x1xi32>
    %31 = arith.addi %20, %30 : vector<256x1xi32>
    %32 = arith.select %29, %31, %20 : vector<256x1xi1>, vector<256x1xi32>
    %c0_i32_15 = arith.constant 0 : i32
    %33 = vector.broadcast %c0_i32_15 : i32 to vector<256x1xi32>
    %34 = arith.cmpi ne, %32, %33 : vector<256x1xi32>
    %c15_i32 = arith.constant 15 : i32
    %35 = vector.broadcast %c15_i32 : i32 to vector<256x1xi32>
    %36 = arith.cmpi ne, %32, %35 : vector<256x1xi32>
    %cst_16 = arith.constant 0.000000e+00 : f32
    %37 = vector.broadcast %cst_16 : f32 to vector<256x128xf32>
    %c0_17 = arith.constant 0 : index
    %c0_18 = arith.constant 0 : index
    %38 = vector.load %arg7[%c0_17, %c0_18] : memref<290x128xf32, #tpu.memory_space<vmem>>, vector<256x128xf32>
    %cst_19 = arith.constant 0.000000e+00 : f32
    %39 = vector.shape_cast %34 : vector<256x1xi1> to vector<256x1xi1>
    %40 = vector.broadcast %39 : vector<256x1xi1> to vector<256x128xi1>
    %41 = vector.broadcast %cst_19 : f32 to vector<256x128xf32>
    %42 = arith.select %40, %38, %41 : vector<256x128xi1>, vector<256x128xf32>
    %43 = arith.truncf %42 : vector<256x128xf32> to vector<256x128xbf16>
    %c0_20 = arith.constant 0 : index
    %c0_21 = arith.constant 0 : index
    %44 = vector.load %arg4[%c0_20, %c0_21] : memref<1152x128xbf16, #tpu.memory_space<vmem>>, vector<128x128xbf16>
    %cst_22 = arith.constant dense<0.000000e+00> : vector<256x128xf32>
    %45 = tpu.matmul %43, %44, %cst_22 {dimension_numbers = #tpu.dot_dimension_numbers<[1], [0], [0], [1], [0, 0, 1, 1], [], []>} : vector<256x128xbf16>, vector<128x128xbf16>, vector<256x128xf32> -> vector<256x128xf32>
    %46 = arith.addf %37, %45 : vector<256x128xf32>
    %c1 = arith.constant 1 : index
    %c0_23 = arith.constant 0 : index
    %47 = vector.load %arg7[%c1, %c0_23] : memref<290x128xf32, #tpu.memory_space<vmem>>, vector<256x128xf32>
    %48 = arith.truncf %47 : vector<256x128xf32> to vector<256x128xbf16>
    %c128 = arith.constant 128 : index
    %c0_24 = arith.constant 0 : index
    %49 = vector.load %arg4[%c128, %c0_24] : memref<1152x128xbf16, #tpu.memory_space<vmem>>, vector<128x128xbf16>
    %cst_25 = arith.constant dense<0.000000e+00> : vector<256x128xf32>
    %50 = tpu.matmul %48, %49, %cst_25 {dimension_numbers = #tpu.dot_dimension_numbers<[1], [0], [0], [1], [0, 0, 1, 1], [], []>} : vector<256x128xbf16>, vector<128x128xbf16>, vector<256x128xf32> -> vector<256x128xf32>
    %51 = arith.addf %46, %50 : vector<256x128xf32>
    %c2 = arith.constant 2 : index
    %c0_26 = arith.constant 0 : index
    %52 = vector.load %arg7[%c2, %c0_26] : memref<290x128xf32, #tpu.memory_space<vmem>>, vector<256x128xf32>
    %cst_27 = arith.constant 0.000000e+00 : f32
    %53 = vector.shape_cast %36 : vector<256x1xi1> to vector<256x1xi1>
    %54 = vector.broadcast %53 : vector<256x1xi1> to vector<256x128xi1>
    %55 = vector.broadcast %cst_27 : f32 to vector<256x128xf32>
    %56 = arith.select %54, %52, %55 : vector<256x128xi1>, vector<256x128xf32>
    %57 = arith.truncf %56 : vector<256x128xf32> to vector<256x128xbf16>
    %c256 = arith.constant 256 : index
    %c0_28 = arith.constant 0 : index
    %58 = vector.load %arg4[%c256, %c0_28] : memref<1152x128xbf16, #tpu.memory_space<vmem>>, vector<128x128xbf16>
    %cst_29 = arith.constant dense<0.000000e+00> : vector<256x128xf32>
    %59 = tpu.matmul %57, %58, %cst_29 {dimension_numbers = #tpu.dot_dimension_numbers<[1], [0], [0], [1], [0, 0, 1, 1], [], []>} : vector<256x128xbf16>, vector<128x128xbf16>, vector<256x128xf32> -> vector<256x128xf32>
    %60 = arith.addf %51, %59 : vector<256x128xf32>
    %c16 = arith.constant 16 : index
    %c0_30 = arith.constant 0 : index
    %61 = vector.load %arg7[%c16, %c0_30] : memref<290x128xf32, #tpu.memory_space<vmem>>, vector<256x128xf32>
    %cst_31 = arith.constant 0.000000e+00 : f32
    %62 = vector.shape_cast %34 : vector<256x1xi1> to vector<256x1xi1>
    %63 = vector.broadcast %62 : vector<256x1xi1> to vector<256x128xi1>
    %64 = vector.broadcast %cst_31 : f32 to vector<256x128xf32>
    %65 = arith.select %63, %61, %64 : vector<256x128xi1>, vector<256x128xf32>
    %66 = arith.truncf %65 : vector<256x128xf32> to vector<256x128xbf16>
    %c384 = arith.constant 384 : index
    %c0_32 = arith.constant 0 : index
    %67 = vector.load %arg4[%c384, %c0_32] : memref<1152x128xbf16, #tpu.memory_space<vmem>>, vector<128x128xbf16>
    %cst_33 = arith.constant dense<0.000000e+00> : vector<256x128xf32>
    %68 = tpu.matmul %66, %67, %cst_33 {dimension_numbers = #tpu.dot_dimension_numbers<[1], [0], [0], [1], [0, 0, 1, 1], [], []>} : vector<256x128xbf16>, vector<128x128xbf16>, vector<256x128xf32> -> vector<256x128xf32>
    %69 = arith.addf %60, %68 : vector<256x128xf32>
    %c17_34 = arith.constant 17 : index
    %c0_35 = arith.constant 0 : index
    %70 = vector.load %arg7[%c17_34, %c0_35] : memref<290x128xf32, #tpu.memory_space<vmem>>, vector<256x128xf32>
    %71 = arith.truncf %70 : vector<256x128xf32> to vector<256x128xbf16>
    %c512 = arith.constant 512 : index
    %c0_36 = arith.constant 0 : index
    %72 = vector.load %arg4[%c512, %c0_36] : memref<1152x128xbf16, #tpu.memory_space<vmem>>, vector<128x128xbf16>
    %cst_37 = arith.constant dense<0.000000e+00> : vector<256x128xf32>
    %73 = tpu.matmul %71, %72, %cst_37 {dimension_numbers = #tpu.dot_dimension_numbers<[1], [0], [0], [1], [0, 0, 1, 1], [], []>} : vector<256x128xbf16>, vector<128x128xbf16>, vector<256x128xf32> -> vector<256x128xf32>
    %74 = arith.addf %69, %73 : vector<256x128xf32>
    %c18 = arith.constant 18 : index
    %c0_38 = arith.constant 0 : index
    %75 = vector.load %arg7[%c18, %c0_38] : memref<290x128xf32, #tpu.memory_space<vmem>>, vector<256x128xf32>
    %cst_39 = arith.constant 0.000000e+00 : f32
    %76 = vector.shape_cast %36 : vector<256x1xi1> to vector<256x1xi1>
    %77 = vector.broadcast %76 : vector<256x1xi1> to vector<256x128xi1>
    %78 = vector.broadcast %cst_39 : f32 to vector<256x128xf32>
    %79 = arith.select %77, %75, %78 : vector<256x128xi1>, vector<256x128xf32>
    %80 = arith.truncf %79 : vector<256x128xf32> to vector<256x128xbf16>
    %c640 = arith.constant 640 : index
    %c0_40 = arith.constant 0 : index
    %81 = vector.load %arg4[%c640, %c0_40] : memref<1152x128xbf16, #tpu.memory_space<vmem>>, vector<128x128xbf16>
    %cst_41 = arith.constant dense<0.000000e+00> : vector<256x128xf32>
    %82 = tpu.matmul %80, %81, %cst_41 {dimension_numbers = #tpu.dot_dimension_numbers<[1], [0], [0], [1], [0, 0, 1, 1], [], []>} : vector<256x128xbf16>, vector<128x128xbf16>, vector<256x128xf32> -> vector<256x128xf32>
    %83 = arith.addf %74, %82 : vector<256x128xf32>
    %c32 = arith.constant 32 : index
    %c0_42 = arith.constant 0 : index
    %84 = vector.load %arg7[%c32, %c0_42] : memref<290x128xf32, #tpu.memory_space<vmem>>, vector<256x128xf32>
    %cst_43 = arith.constant 0.000000e+00 : f32
    %85 = vector.shape_cast %34 : vector<256x1xi1> to vector<256x1xi1>
    %86 = vector.broadcast %85 : vector<256x1xi1> to vector<256x128xi1>
    %87 = vector.broadcast %cst_43 : f32 to vector<256x128xf32>
    %88 = arith.select %86, %84, %87 : vector<256x128xi1>, vector<256x128xf32>
    %89 = arith.truncf %88 : vector<256x128xf32> to vector<256x128xbf16>
    %c768 = arith.constant 768 : index
    %c0_44 = arith.constant 0 : index
    %90 = vector.load %arg4[%c768, %c0_44] : memref<1152x128xbf16, #tpu.memory_space<vmem>>, vector<128x128xbf16>
    %cst_45 = arith.constant dense<0.000000e+00> : vector<256x128xf32>
    %91 = tpu.matmul %89, %90, %cst_45 {dimension_numbers = #tpu.dot_dimension_numbers<[1], [0], [0], [1], [0, 0, 1, 1], [], []>} : vector<256x128xbf16>, vector<128x128xbf16>, vector<256x128xf32> -> vector<256x128xf32>
    %92 = arith.addf %83, %91 : vector<256x128xf32>
    %c33 = arith.constant 33 : index
    %c0_46 = arith.constant 0 : index
    %93 = vector.load %arg7[%c33, %c0_46] : memref<290x128xf32, #tpu.memory_space<vmem>>, vector<256x128xf32>
    %94 = arith.truncf %93 : vector<256x128xf32> to vector<256x128xbf16>
    %c896 = arith.constant 896 : index
    %c0_47 = arith.constant 0 : index
    %95 = vector.load %arg4[%c896, %c0_47] : memref<1152x128xbf16, #tpu.memory_space<vmem>>, vector<128x128xbf16>
    %cst_48 = arith.constant dense<0.000000e+00> : vector<256x128xf32>
    %96 = tpu.matmul %94, %95, %cst_48 {dimension_numbers = #tpu.dot_dimension_numbers<[1], [0], [0], [1], [0, 0, 1, 1], [], []>} : vector<256x128xbf16>, vector<128x128xbf16>, vector<256x128xf32> -> vector<256x128xf32>
    %97 = arith.addf %92, %96 : vector<256x128xf32>
    %c34 = arith.constant 34 : index
    %c0_49 = arith.constant 0 : index
    %98 = vector.load %arg7[%c34, %c0_49] : memref<290x128xf32, #tpu.memory_space<vmem>>, vector<256x128xf32>
    %cst_50 = arith.constant 0.000000e+00 : f32
    %99 = vector.shape_cast %36 : vector<256x1xi1> to vector<256x1xi1>
    %100 = vector.broadcast %99 : vector<256x1xi1> to vector<256x128xi1>
    %101 = vector.broadcast %cst_50 : f32 to vector<256x128xf32>
    %102 = arith.select %100, %98, %101 : vector<256x128xi1>, vector<256x128xf32>
    %103 = arith.truncf %102 : vector<256x128xf32> to vector<256x128xbf16>
    %c1024 = arith.constant 1024 : index
    %c0_51 = arith.constant 0 : index
    %104 = vector.load %arg4[%c1024, %c0_51] : memref<1152x128xbf16, #tpu.memory_space<vmem>>, vector<128x128xbf16>
    %cst_52 = arith.constant dense<0.000000e+00> : vector<256x128xf32>
    %105 = tpu.matmul %103, %104, %cst_52 {dimension_numbers = #tpu.dot_dimension_numbers<[1], [0], [0], [1], [0, 0, 1, 1], [], []>} : vector<256x128xbf16>, vector<128x128xbf16>, vector<256x128xf32> -> vector<256x128xf32>
    %106 = arith.addf %97, %105 : vector<256x128xf32>
    %107 = arith.truncf %106 : vector<256x128xf32> to vector<256x128xbf16>
    %c0_53 = arith.constant 0 : index
    %c0_54 = arith.constant 0 : index
    %c0_55 = arith.constant 0 : index
    %108 = vector.load %arg5[%c0_53, %c0_54, %c0_55] : memref<1x256x128xbf16, #tpu.memory_space<vmem>>, vector<1x256x128xbf16>
    %109 = vector.shape_cast %108 : vector<1x256x128xbf16> to vector<256x128xbf16>
    %110 = vector.shape_cast %107 : vector<256x128xbf16> to vector<1x256x128xbf16>
    tpu.vector_store %arg5[%c0_53, %c0_54, %c0_55], %110 {strides = array<i32>} : memref<1x256x128xbf16, #tpu.memory_space<vmem>>, vector<1x256x128xbf16>,
    %cst_56 = arith.constant dense<0.000000e+00> : vector<128xf32>
    %111 = vector.multi_reduction <add>, %106, %cst_56 [0] : vector<256x128xf32> to vector<128xf32>
    %112 = vector.shape_cast %111 : vector<128xf32> to vector<1x128xf32>
    %c0_57 = arith.constant 0 : index
    %c0_58 = arith.constant 0 : index
    %c0_59 = arith.constant 0 : index
    %113 = vector.load %arg6[%c0_57, %c0_58, %c0_59] : memref<1x2x128xf32, #tpu.memory_space<vmem>>, vector<1x1x128xf32>
    %114 = vector.shape_cast %113 : vector<1x1x128xf32> to vector<1x128xf32>
    %115 = vector.shape_cast %112 : vector<1x128xf32> to vector<1x1x128xf32>
    tpu.vector_store %arg6[%c0_57, %c0_58, %c0_59], %115 {strides = array<i32>} : memref<1x2x128xf32, #tpu.memory_space<vmem>>, vector<1x1x128xf32>,
    %116 = arith.mulf %106, %106 : vector<256x128xf32>
    %cst_60 = arith.constant dense<0.000000e+00> : vector<128xf32>
    %117 = vector.multi_reduction <add>, %116, %cst_60 [0] : vector<256x128xf32> to vector<128xf32>
    %118 = vector.shape_cast %117 : vector<128xf32> to vector<1x128xf32>
    %c0_61 = arith.constant 0 : index
    %c1_62 = arith.constant 1 : index
    %c0_63 = arith.constant 0 : index
    %119 = vector.load %arg6[%c0_61, %c1_62, %c0_63] : memref<1x2x128xf32, #tpu.memory_space<vmem>>, vector<1x1x128xf32>
    %120 = vector.shape_cast %119 : vector<1x1x128xf32> to vector<1x128xf32>
    %121 = vector.shape_cast %118 : vector<1x128xf32> to vector<1x1x128xf32>
    tpu.vector_store %arg6[%c0_61, %c1_62, %c0_63], %121 {strides = array<i32>} : memref<1x2x128xf32, #tpu.memory_space<vmem>>, vector<1x1x128xf32>,
    return
  }
  func.func @transform_0(%arg0: i32) -> (i32, i32, i32) {
    %c0_i32 = arith.constant 0 : i32
    %c0_i32_0 = arith.constant 0 : i32
    %c0_i32_1 = arith.constant 0 : i32
    return %arg0, %c0_i32, %c0_i32_0 : i32, i32, i32
  }
  func.func @transform_1(%arg0: i32) -> (i32, i32) {
    %c0_i32 = arith.constant 0 : i32
    %c0_i32_0 = arith.constant 0 : i32
    %c0_i32_1 = arith.constant 0 : i32
    return %c0_i32, %c0_i32_0 : i32, i32
  }
  func.func @transform_2(%arg0: i32) -> (i32, i32) {
    %c0_i32 = arith.constant 0 : i32
    %c0_i32_0 = arith.constant 0 : i32
    %c0_i32_1 = arith.constant 0 : i32
    return %c0_i32, %c0_i32_0 : i32, i32
  }
  func.func @transform_3(%arg0: i32) -> (i32, i32) {
    %c0_i32 = arith.constant 0 : i32
    %c0_i32_0 = arith.constant 0 : i32
    %c0_i32_1 = arith.constant 0 : i32
    return %c0_i32, %c0_i32_0 : i32, i32
  }
  func.func @transform_4(%arg0: i32) -> (i32, i32, i32) {
    %c0_i32 = arith.constant 0 : i32
    %c0_i32_0 = arith.constant 0 : i32
    %c0_i32_1 = arith.constant 0 : i32
    return %arg0, %c0_i32, %c0_i32_0 : i32, i32, i32
  }
  func.func @transform_5(%arg0: i32) -> (i32, i32, i32) {
    %c0_i32 = arith.constant 0 : i32
    %c0_i32_0 = arith.constant 0 : i32
    %c0_i32_1 = arith.constant 0 : i32
    return %arg0, %c0_i32, %c0_i32_0 : i32, i32, i32
  }
}

</mosaic_0001>

<bundles_post_ra>
// kernel: up_forward.5
= control target key start
LH: loop header
LB: loop body
LE: loop exit
PB: predicated region body
PF: predicated region fallthrough
CT: control target
= control target key end

     0   :  { %s595_s12 = smov 0   ;;  %s708_s0 = inlined_call_operand.vmem [shape: bf16[2,256,128], index: 0, kind: input, shape index: {}]   ;;  %s709_s1 = inlined_call_operand.vmem [shape: f32[1,128], index: 1, kind: input, shape index: {}]   ;;  %s710_s2 = inlined_call_operand.vmem [shape: f32[1,128], index: 2, kind: input, shape index: {}]   ;;  %s711_s3 = inlined_call_operand.vmem [shape: f32[2,4,256], index: 3, kind: output, shape index: {}]  }
   0x1 LB: > { %s465_s13 = sadd.s32 4294967295, %s573_s12   ;;  %p469_p0 = scmp.ge.s32.totalorder %s573_s12, 1  ;;  %s573_s12 = sphi %s595_s12, %s13_s12  }
   0x2   : > { %p137_p1 = scmp.lt.s32.totalorder %s573_s12, 3 }
   0x4   : > { %p138_p2 = pnand %p469_p0, %p137_p1 }
   0x5   : > { %p161_p3 = scmp.lt.s32.totalorder (!%p138_p2), %s465_s13, 1 }
   0x6   : > { %141 = sbr.rel (%p138_p2) target bundleno = 192 (0xc0), region = 32 }
   0xb   : > { %s713_s13 = smov (!%p161_p3, %s465_s13), 1  ;;  %v614_v0 = vld [vmem:[%s709_s1] ss:$0 sm:$0xff]  ;;  %vm406_vm0 = vcmask 1043456  }
   0xc   : > { %s476_s14 = sshll.u32 %s713_s13, 7  ;;  %v621_v4 = vld [vmem:[%s710_s2] ss:$0 sm:$0xff]  ;;  %s477_s22 = sshll.u32 %s713_s13, 3 }
   0xd   : > { %s609_s17 = scalar_lea.vmem %s708_s0, %s476_s14  ;;  %s170_s25 = scalar_lea.vmem %s711_s3, %s477_s22 }
   0xe   : > { %v549_v1 = vld [vmem:[%s609_s17 + $0x40] sm:$0xff]   ;;  %v550_v14 = vld [vmem:[%s609_s17 + $0x48] sm:$0xff]   ;;  %v551_v34 = vld [vmem:[%s609_s17 + $0x50] sm:$0xff]  }
   0xf   : > { %v479_v2 = vld [vmem:[%s609_s17] sm:$0xff]   ;;  %v512_v3 = vunpack.c.l.bf16 %v549_v1  ;;  %v513_v6 = vunpack.c.h.bf16 %v549_v1  ;;  %v542_v15 = vld [vmem:[%s609_s17 + $0x8] sm:$0xff]   ;;  %v516_v20 = vunpack.c.l.bf16 %v550_v14  ;;  %v517_v28 = vunpack.c.h.bf16 %v550_v14  ;;  %v543_v35 = vld [vmem:[%s609_s17 + $0x10] sm:$0xff]  }
  0x10   : > { %v480_v5 = vunpack.c.l.bf16 %v479_v2  ;;  %v481_v7 = vunpack.c.h.bf16 %v479_v2  ;;  %v484_v21 = vunpack.c.l.bf16 %v542_v15  ;;  %v485_v29 = vunpack.c.h.bf16 %v542_v15  ;;  %v552_v52 = vld [vmem:[%s609_s17 + $0x58] sm:$0xff]  }
  0x11   : > { %v255_v8 = vmul.f32 %v614_v0, %v512_v3  ;;  %v256_v12 = vmul.f32 %v614_v0, %v513_v6  ;;  %v257_v24 = vmul.f32 %v614_v0, %v516_v20  ;;  %v258_v32 = vmul.f32 %v614_v0, %v517_v28  ;;  %v544_v53 = vld [vmem:[%s609_s17 + $0x18] sm:$0xff]  }
  0x12   : > { %v239_v9 = vmul.f32 %v614_v0, %v480_v5  ;;  %v240_v13 = vmul.f32 %v614_v0, %v481_v7  ;;  %v241_v25 = vmul.f32 %v614_v0, %v484_v21  ;;  %v242_v33 = vmul.f32 %v614_v0, %v485_v29 }
  0x13   : > { %v291_v10 = vadd.f32 %v621_v4, %v255_v8  ;;  %v292_v18 = vadd.f32 %v621_v4, %v256_v12  ;;  %v293_v26 = vadd.f32 %v621_v4, %v257_v24  ;;  %v294_v36 = vadd.f32 %v621_v4, %v258_v32  ;;  %v553_v8 = vld [vmem:[%s609_s17 + $0x60] sm:$0xff]  }
  0x14   : > { %v275_v11 = vadd.f32 %v621_v4, %v239_v9  ;;  %v276_v19 = vadd.f32 %v621_v4, %v240_v13  ;;  %v277_v27 = vadd.f32 %v621_v4, %v241_v25  ;;  %v278_v37 = vadd.f32 %v621_v4, %v242_v33  ;;  %v545_v9 = vld [vmem:[%s609_s17 + $0x20] sm:$0xff]  }
  0x15   : > { %v323_v16 = vmax.f32 %v291_v10, 0.0  ;;  %v324_v22 = vmax.f32 %v292_v18, 0.0  ;;  %v325_v30 = vmax.f32 %v293_v26, 0.0  ;;  %v520_v38 = vunpack.c.l.bf16 %v551_v34  ;;  %v554_v26 = vld [vmem:[%s609_s17 + $0x68] sm:$0xff]  }
  0x16   : > { %v307_v17 = vmax.f32 %v275_v11, 0.0  ;;  %v308_v23 = vmax.f32 %v276_v19, 0.0  ;;  %v309_v31 = vmax.f32 %v277_v27, 0.0  ;;  %v488_v39 = vunpack.c.l.bf16 %v543_v35  ;;  %v546_v27 = vld [vmem:[%s609_s17 + $0x28] sm:$0xff]  }
  0x17   : > { %371 = vxpose.xlu1.b32.start [1/16] (narrow) %v323_v16, 8  ;;  %v326_v40 = vmax.f32 %v294_v36, 0.0  ;;  %v310_v41 = vmax.f32 %v278_v37, 0.0  ;;  %v259_v42 = vmul.f32 %v614_v0, %v520_v38  ;;  %v521_v46 = vunpack.c.h.bf16 %v551_v34 }
  0x18   : > { %339 = vxpose.xlu0.b32.start [1/16] (narrow) %v307_v17, 8  ;;  %v243_v43 = vmul.f32 %v614_v0, %v488_v39  ;;  %v489_v47 = vunpack.c.h.bf16 %v543_v35  ;;  %v524_v56 = vunpack.c.l.bf16 %v552_v52  ;;  %v492_v57 = vunpack.c.l.bf16 %v544_v53 }
  0x19   : > { %v295_v44 = vadd.f32 %v621_v4, %v259_v42  ;;  %v260_v50 = vmul.f32 %v614_v0, %v521_v46  ;;  %v525_v1 = vunpack.c.h.bf16 %v552_v52  ;;  %v493_v2 = vunpack.c.h.bf16 %v544_v53 }
  0x1a   : > { %v279_v45 = vadd.f32 %v621_v4, %v243_v43  ;;  %v244_v51 = vmul.f32 %v614_v0, %v489_v47  ;;  %v261_v60 = vmul.f32 %v614_v0, %v524_v56  ;;  %v245_v61 = vmul.f32 %v614_v0, %v492_v57 }
  0x1b   : > { %v327_v48 = vmax.f32 %v295_v44, 0.0  ;;  %v296_v54 = vadd.f32 %v621_v4, %v260_v50  ;;  %v262_v6 = vmul.f32 %v614_v0, %v525_v1  ;;  %v246_v7 = vmul.f32 %v614_v0, %v493_v2  ;;  %v555_v44 = vld [vmem:[%s609_s17 + $0x70] sm:$0xff]  }
  0x1c   : > { %v311_v49 = vmax.f32 %v279_v45, 0.0  ;;  %v280_v55 = vadd.f32 %v621_v4, %v244_v51  ;;  %v297_v62 = vadd.f32 %v621_v4, %v261_v60  ;;  %v281_v63 = vadd.f32 %v621_v4, %v245_v61  ;;  %v547_v45 = vld [vmem:[%s609_s17 + $0x30] sm:$0xff]  }
  0x1d   : > { %v328_v58 = vmax.f32 %v296_v54, 0.0  ;;  %v298_v10 = vadd.f32 %v621_v4, %v262_v6  ;;  %v282_v11 = vadd.f32 %v621_v4, %v246_v7  ;;  %v528_v12 = vunpack.c.l.bf16 %v553_v8 }
  0x1e   : > { %v312_v59 = vmax.f32 %v280_v55, 0.0  ;;  %v329_v3 = vmax.f32 %v297_v62, 0.0  ;;  %v313_v5 = vmax.f32 %v281_v63, 0.0  ;;  %v496_v13 = vunpack.c.l.bf16 %v545_v9  ;;  %v556_v62 = vld [vmem:[%s609_s17 + $0x78] sm:$0xff]  }
  0x1f   : > { %372 = vxpose.xlu1.b32.cont [2/16] (narrow) %v324_v22, 8  ;;  %v330_v14 = vmax.f32 %v298_v10, 0.0  ;;  %v314_v15 = vmax.f32 %v282_v11, 0.0  ;;  %v263_v16 = vmul.f32 %v614_v0, %v528_v12  ;;  %v529_v20 = vunpack.c.h.bf16 %v553_v8  ;;  %v548_v63 = vld [vmem:[%s609_s17 + $0x38] sm:$0xff]  }
  0x20   : > { %340 = vxpose.xlu0.b32.cont [2/16] (narrow) %v308_v23, 8  ;;  %v247_v17 = vmul.f32 %v614_v0, %v496_v13  ;;  %v497_v21 = vunpack.c.h.bf16 %v545_v9  ;;  %v533_v38 = vunpack.c.h.bf16 %v554_v26  ;;  %v501_v39 = vunpack.c.h.bf16 %v546_v27 }
  0x21   : > { %v299_v18 = vadd.f32 %v621_v4, %v263_v16  ;;  %v264_v24 = vmul.f32 %v614_v0, %v529_v20  ;;  %v537_v56 = vunpack.c.h.bf16 %v555_v44  ;;  %v505_v57 = vunpack.c.h.bf16 %v547_v45 }
  0x22   : > { %v283_v19 = vadd.f32 %v621_v4, %v247_v17  ;;  %v248_v25 = vmul.f32 %v614_v0, %v497_v21  ;;  %v266_v42 = vmul.f32 %v614_v0, %v533_v38  ;;  %v250_v43 = vmul.f32 %v614_v0, %v501_v39 }
  0x23   : > { %v331_v22 = vmax.f32 %v299_v18, 0.0  ;;  %v300_v28 = vadd.f32 %v621_v4, %v264_v24  ;;  %v268_v60 = vmul.f32 %v614_v0, %v537_v56  ;;  %v252_v61 = vmul.f32 %v614_v0, %v505_v57 }
  0x24   : > { %v315_v23 = vmax.f32 %v283_v19, 0.0  ;;  %v284_v29 = vadd.f32 %v621_v4, %v248_v25  ;;  %v302_v46 = vadd.f32 %v621_v4, %v266_v42  ;;  %v286_v47 = vadd.f32 %v621_v4, %v250_v43 }
  0x25   : > { %v332_v32 = vmax.f32 %v300_v28, 0.0  ;;  %v304_v1 = vadd.f32 %v621_v4, %v268_v60  ;;  %v288_v2 = vadd.f32 %v621_v4, %v252_v61  ;;  %v541_v12 = vunpack.c.h.bf16 %v556_v62 }
  0x26   : > { %v316_v33 = vmax.f32 %v284_v29, 0.0  ;;  %v334_v50 = vmax.f32 %v302_v46, 0.0  ;;  %v318_v51 = vmax.f32 %v286_v47, 0.0  ;;  %v509_v13 = vunpack.c.h.bf16 %v548_v63 }
  0x27   : > { %373 = vxpose.xlu1.b32.cont [3/16] (narrow) %v325_v30, 8  ;;  %v532_v30 = vunpack.c.l.bf16 %v554_v26  ;;  %v336_v6 = vmax.f32 %v304_v1, 0.0  ;;  %v320_v7 = vmax.f32 %v288_v2, 0.0  ;;  %v270_v16 = vmul.f32 %v614_v0, %v541_v12 }
  0x28   : > { %341 = vxpose.xlu0.b32.cont [3/16] (narrow) %v309_v31, 8  ;;  %v500_v31 = vunpack.c.l.bf16 %v546_v27  ;;  %v254_v17 = vmul.f32 %v614_v0, %v509_v13 }
  0x29   : > { %v265_v34 = vmul.f32 %v614_v0, %v532_v30  ;;  %v306_v18 = vadd.f32 %v621_v4, %v270_v16 }
  0x2a   : > { %v249_v35 = vmul.f32 %v614_v0, %v500_v31  ;;  %v290_v19 = vadd.f32 %v621_v4, %v254_v17 }
  0x2b   : > { %v301_v36 = vadd.f32 %v621_v4, %v265_v34  ;;  %v338_v20 = vmax.f32 %v306_v18, 0.0 }
  0x2c   : > { %v285_v37 = vadd.f32 %v621_v4, %v249_v35  ;;  %v322_v21 = vmax.f32 %v290_v19, 0.0 }
  0x2f   : > { %374 = vxpose.xlu1.b32.cont [4/16] (narrow) %v326_v40, 8  ;;  %v333_v40 = vmax.f32 %v301_v36, 0.0 }
  0x30   : > { %342 = vxpose.xlu0.b32.cont [4/16] (narrow) %v310_v41, 8  ;;  %v317_v41 = vmax.f32 %v285_v37, 0.0 }
  0x37   : > { %375 = vxpose.xlu1.b32.cont [5/16] (narrow) %v327_v48, 8  ;;  %v536_v48 = vunpack.c.l.bf16 %v555_v44 }
  0x38   : > { %343 = vxpose.xlu0.b32.cont [5/16] (narrow) %v311_v49, 8  ;;  %v504_v49 = vunpack.c.l.bf16 %v547_v45 }
  0x39   : > { %v267_v52 = vmul.f32 %v614_v0, %v536_v48 }
  0x3a   : > { %v251_v53 = vmul.f32 %v614_v0, %v504_v49 }
  0x3b   : > { %v303_v54 = vadd.f32 %v621_v4, %v267_v52 }
  0x3c   : > { %v287_v55 = vadd.f32 %v621_v4, %v251_v53 }
  0x3f   : > { %376 = vxpose.xlu1.b32.cont [6/16] (narrow) %v328_v58, 8  ;;  %v335_v58 = vmax.f32 %v303_v54, 0.0 }
  0x40   : > { %344 = vxpose.xlu0.b32.cont [6/16] (narrow) %v312_v59, 8  ;;  %v319_v59 = vmax.f32 %v287_v55, 0.0 }
  0x47   : > { %377 = vxpose.xlu1.b32.cont [7/16] (narrow) %v329_v3, 8  ;;  %v540_v3 = vunpack.c.l.bf16 %v556_v62 }
  0x48   : > { %345 = vxpose.xlu0.b32.cont [7/16] (narrow) %v313_v5, 8  ;;  %v508_v5 = vunpack.c.l.bf16 %v548_v63 }
  0x49   : > { %v269_v8 = vmul.f32 %v614_v0, %v540_v3 }
  0x4a   : > { %v253_v9 = vmul.f32 %v614_v0, %v508_v5 }
  0x4b   : > { %v305_v10 = vadd.f32 %v621_v4, %v269_v8 }
  0x4c   : > { %v289_v11 = vadd.f32 %v621_v4, %v253_v9 }
  0x4f   : > { %378 = vxpose.xlu1.b32.cont [8/16] (narrow) %v330_v14, 8  ;;  %v337_v14 = vmax.f32 %v305_v10, 0.0 }
  0x50   : > { %346 = vxpose.xlu0.b32.cont [8/16] (narrow) %v314_v15, 8  ;;  %v321_v15 = vmax.f32 %v289_v11, 0.0 }
  0x57   : > { %379 = vxpose.xlu1.b32.cont [9/16] (narrow) %v331_v22, 8 }
  0x58   : > { %347 = vxpose.xlu0.b32.cont [9/16] (narrow) %v315_v23, 8 }
  0x5f   : > { %380 = vxpose.xlu1.b32.cont [10/16] (narrow) %v332_v32, 8 }
  0x60   : > { %348 = vxpose.xlu0.b32.cont [10/16] (narrow) %v316_v33, 8 }
  0x67   : > { %381 = vxpose.xlu1.b32.cont [11/16] (narrow) %v333_v40, 8 }
  0x68   : > { %349 = vxpose.xlu0.b32.cont [11/16] (narrow) %v317_v41, 8 }
  0x6f   : > { %382 = vxpose.xlu1.b32.cont [12/16] (narrow) %v334_v50, 8 }
  0x70   : > { %350 = vxpose.xlu0.b32.cont [12/16] (narrow) %v318_v51, 8 }
  0x77   : > { %383 = vxpose.xlu1.b32.cont [13/16] (narrow) %v335_v58, 8 }
  0x78   : > { %351 = vxpose.xlu0.b32.cont [13/16] (narrow) %v319_v59, 8 }
  0x7f   : > { %384 = vxpose.xlu1.b32.cont [14/16] (narrow) %v336_v6, 8 }
  0x80   : > { %352 = vxpose.xlu0.b32.cont [14/16] (narrow) %v320_v7, 8 }
  0x87   : > { %385 = vxpose.xlu1.b32.cont [15/16] (narrow) %v337_v14, 8 }
  0x88   : > { %353 = vxpose.xlu0.b32.cont [15/16] (narrow) %v321_v15, 8 }
  0x8f   : > { %386 = vxpose.xlu1.b32.end [16/16] (narrow) %v338_v20, 8 }
  0x90   : > { %354 = vxpose.xlu0.b32.end [16/16] (narrow) %v322_v21, 8 }
  0xbb   : > { %v387_v22 = vpop.trf.xlu1 }
  0xbc   : > { %v355_v23 = vpop.trf.xlu0  ;;  %v405_v24 = vrot.slane %v387_v22, 4 }
  0xbe   : > { %v407_v0 = vsel %vm406_vm0, %v355_v23, %v405_v24 }
  0xbf   : > { %409 = vst [vmem:[%s170_s25] sm:$0xff] %v407_v0 }
  0xc0 PF: > { %s13_s12 = sadd.s32 1, %s573_s12  }
  0xc1   : > { %p10_p4 = scmp.ge.s32.totalorder %s13_s12, 4  }
  0xc3   :  { %12 = sbr.rel (!%p10_p4) target bundleno = 1 (0x1), region = 62 }

// kernel: up_forward.4
= control target key start
LH: loop header
LB: loop body
LE: loop exit
PB: predicated region body
PF: predicated region fallthrough
CT: control target
= control target key end

     0   :  { %s4450_s18 = smov 0   ;;  %s5642_s0 = inlined_call_operand.vmem [shape: bf16[2,256,128], index: 0, kind: input, shape index: {}]   ;;  %s5643_s1 = inlined_call_operand.vmem [shape: f32[1,128], index: 1, kind: input, shape index: {}]   ;;  %s5644_s2 = inlined_call_operand.vmem [shape: f32[1,128], index: 2, kind: input, shape index: {}]   ;;  %s5645_s3 = inlined_call_operand.vmem [shape: bf16[1152,128], index: 3, kind: input, shape index: {}]   ;;  %s5646_s4 = inlined_call_operand.vmem [shape: bf16[2,256,128], index: 4, kind: output, shape index: {0}]   ;;  %s5647_s5 = inlined_call_operand.vmem [shape: f32[2,2,128], index: 5, kind: output, shape index: {1}]  }
   0x1 LB: > { %s3534_s19 = sadd.s32 4294967295, %s4415_s18   ;;  %p3538_p0 = scmp.ge.s32.totalorder %s4415_s18, 1  ;;  %s4415_s18 = sphi %s4450_s18, %s16_s18  }
   0x2   : > { %p190_p1 = scmp.lt.s32.totalorder %s4415_s18, 3 }
   0x4   : > { %p191_p2 = pnand %p3538_p0, %p190_p1 }
   0x6   : > { %194 = sbr.rel (%p191_p2) target bundleno = 766 (0x2fe), region = 36 }
   0xb   : > { %v4139_v0 = vld [vmem:[%s5645_s3 + $0x78] sm:$0xff]  ;;  %p222_p3 = scmp.lt.s32.totalorder %s3534_s19, 1  ;;  %v4417_v1 = vmov 0.0   ;;  %v4138_v2 = vld [vmem:[%s5645_s3 + $0x70] sm:$0xff]  ;;  %v4137_v3 = vld [vmem:[%s5645_s3 + $0x68] sm:$0xff]  ;;  %vm4418_vm2 = vmmov 1  }
   0xc   : > { %236 = vst [vmem:[#allocation2] sm:$0xff] %v4417_v1  ;;  %4370 = vmatpush.bf16.msra.mxu1 %v4139_v0  ;;  %4371 = vmatpush.bf16.msra.mxu2 %v4139_v0  ;;  %v4480_v4 = vld [vmem:[%s5643_s1] ss:$0 sm:$0xff]  ;;  %v4135_v36 = vld [vmem:[%s5645_s3 + $0x58] sm:$0xff]  ;;  %v4134_v51 = vld [vmem:[%s5645_s3 + $0x50] sm:$0xff] }
   0xd   : > { %s5840_s19 = smov (!%p222_p3, %s3534_s19), 1  ;;  %237 = vst [vmem:[#allocation2 + $0x8] sm:$0xff] %v4417_v1  ;;  %4372 = vmatpush.bf16.msra.mxu3 %v4139_v0  ;;  %1195 = vmatpush.bf16.msra.mxu0 %v4139_v0  ;;  %v4488_v10 = vld [vmem:[%s5644_s2] ss:$0 sm:$0xff] }
   0xe   : > { %s4122_s24 = sshll.u32 %s5840_s19, 7  ;;  %238 = vst [vmem:[#allocation2 + $0x10] sm:$0x1] %v4417_v1  ;;  %v4136_v23 = vld [vmem:[%s5645_s3 + $0x60] sm:$0xff] }
   0xf   : > { %s4475_s29 = scalar_lea.vmem %s5642_s0, %s4122_s24  ;;  %239 = vst [vmem:[#allocation2 + $0x111] sm:$0xff] %v4417_v1  ;;  %s5546_s30 = scalar_lea.vmem %s5646_s4, %s4122_s24 }
  0x10   : > { %4373 = vmatpush.bf16.msra.mxu1 %v4138_v2  ;;  %4374 = vmatpush.bf16.msra.mxu2 %v4138_v2  ;;  %v4342_v5 = vld [vmem:[%s4475_s29 + $0x18] sm:$0xff]   ;;  %240 = vst [vmem:[#allocation2 + $0x119] sm:$0xff] %v4417_v1  ;;  %v4343_v13 = vld [vmem:[%s4475_s29 + $0x20] sm:$0xff]   ;;  %v4344_v62 = vld [vmem:[%s4475_s29 + $0x28] sm:$0xff]   ;;  %s3543_s24 = sshll.u32 %s5840_s19, 1 }
  0x11   : > { %v4346_v6 = vld [vmem:[%s4475_s29 + $0x38] sm:$0xff]   ;;  %4375 = vmatpush.bf16.msra.mxu3 %v4138_v2  ;;  %1196 = vmatpush.bf16.msra.mxu0 %v4138_v2  ;;  %v4210_v8 = vunpack.c.l.bf16 %v4342_v5  ;;  %v4211_v9 = vunpack.c.h.bf16 %v4342_v5  ;;  %241 = vst [vmem:[#allocation2 + $0x121] sm:$0x1] %v4417_v1  ;;  %v4214_v16 = vunpack.c.l.bf16 %v4343_v13  ;;  %v4215_v17 = vunpack.c.h.bf16 %v4343_v13  ;;  %v4347_v18 = vld [vmem:[%s4475_s29 + $0x40] sm:$0xff]   ;;  %s235_s8 = scalar_lea.vmem %s5647_s5, %s3543_s24 }
  0x12   : > { %v4350_v7 = vld [vmem:[%s4475_s29 + $0x58] sm:$0xff]   ;;  %v4226_v11 = vunpack.c.l.bf16 %v4346_v6  ;;  %v4227_v12 = vunpack.c.h.bf16 %v4346_v6  ;;  %v4230_v30 = vunpack.c.l.bf16 %v4347_v18  ;;  %v4231_v32 = vunpack.c.h.bf16 %v4347_v18  ;;  %v4351_v39 = vld [vmem:[%s4475_s29 + $0x60] sm:$0xff]   ;;  %v4133_v6 = vld [vmem:[%s5645_s3 + $0x48] sm:$0xff] }
  0x13   : > { %v4242_v14 = vunpack.c.l.bf16 %v4350_v7  ;;  %v4243_v15 = vunpack.c.h.bf16 %v4350_v7  ;;  %v316_v19 = vmul.f32 %v4480_v4, %v4210_v8  ;;  %v317_v20 = vmul.f32 %v4480_v4, %v4211_v9  ;;  %v4197_v43 = vld [vmem:[%s4475_s29] sm:$0xff]  }
  0x14   : > { %v324_v21 = vmul.f32 %v4480_v4, %v4226_v11  ;;  %v325_v22 = vmul.f32 %v4480_v4, %v4227_v12  ;;  %4376 = vmatpush.bf16.msra.mxu1 %v4137_v3  ;;  %4377 = vmatpush.bf16.msra.mxu2 %v4137_v3  ;;  %v318_v26 = vmul.f32 %v4480_v4, %v4214_v16  ;;  %v4246_v49 = vunpack.c.l.bf16 %v4351_v39  ;;  %v4568_v63 = vld [vmem:[#allocation2 + $0x1] sm:$0xff] }
  0x15   : > { %v332_v24 = vmul.f32 %v4480_v4, %v4242_v14  ;;  %v333_v25 = vmul.f32 %v4480_v4, %v4243_v15  ;;  %4378 = vmatpush.bf16.msra.mxu3 %v4137_v3  ;;  %1197 = vmatpush.bf16.msra.mxu0 %v4137_v3  ;;  %v4503_v27 = vadd.f32 %v4488_v10, %v316_v19  ;;  %v4247_v50 = vunpack.c.h.bf16 %v4351_v39  ;;  %v4570_v0 = vld [vmem:[#allocation2 + $0x9] sm:$0xff] }
  0x16   : > { %v4506_v28 = vadd.f32 %v4488_v10, %v317_v20  ;;  %v4509_v29 = vadd.f32 %v4488_v10, %v324_v21  ;;  %v4512_v31 = vadd.f32 %v4488_v10, %v325_v22  ;;  %v319_v35 = vmul.f32 %v4480_v4, %v4215_v17  ;;  %v4348_v14 = vld [vmem:[%s4475_s29 + $0x48] sm:$0xff]  }
  0x17   : > { %v384_v33 = vmax.f32 %v4503_v27, 0.0  ;;  %v4516_v34 = vadd.f32 %v4488_v10, %v332_v24  ;;  %v4524_v38 = vadd.f32 %v4488_v10, %v333_v25  ;;  %v4531_v41 = vadd.f32 %v4488_v10, %v318_v26  ;;  %v4352_v15 = vld [vmem:[%s4475_s29 + $0x68] sm:$0xff]   ;;  %v4132_v25 = vld [vmem:[%s5645_s3 + $0x40] sm:$0xff]  ;;  %v4155_v27 = vld [vmem:[%s5645_s3 + $0xf8] sm:$0xff] }
  0x18   : > { %4379 = vmatpush.bf16.msra.mxu1 %v4136_v23  ;;  %4380 = vmatpush.bf16.msra.mxu2 %v4136_v23  ;;  %v385_v37 = vmax.f32 %v4506_v28, 0.0  ;;  %v392_v40 = vmax.f32 %v4509_v29, 0.0  ;;  %v326_v42 = vmul.f32 %v4480_v4, %v4230_v30  ;;  %v393_v44 = vmax.f32 %v4512_v31, 0.0  ;;  %v4340_v24 = vld [vmem:[%s4475_s29 + $0x8] sm:$0xff]  }
  0x19   : > { %4381 = vmatpush.bf16.msra.mxu3 %v4136_v23  ;;  %1198 = vmatpush.bf16.msra.mxu0 %v4136_v23  ;;  %416 = vst [vmem:[#allocation2 + $0x41] sm:$0xff] %v384_v33  ;;  %v4539_v45 = vadd.f32 %v4488_v10, %v319_v35  ;;  %v327_v46 = vmul.f32 %v4480_v4, %v4231_v32  ;;  %v400_v47 = vmax.f32 %v4516_v34, 0.0  ;;  %v401_v52 = vmax.f32 %v4524_v38, 0.0  ;;  %v4163_v34 = vld [vmem:[%s5645_s3 + $0x138] sm:$0xff] }
  0x1a   : > { %417 = vst [vmem:[#allocation2 + $0x49] sm:$0xff] %v385_v37  ;;  %v4546_v48 = vadd.f32 %v4488_v10, %v326_v42  ;;  %v4198_v54 = vunpack.c.l.bf16 %v4197_v43  ;;  %v4199_v55 = vunpack.c.h.bf16 %v4197_v43  ;;  %v386_v56 = vmax.f32 %v4531_v41, 0.0  ;;  %v4147_v43 = vld [vmem:[%s5645_s3 + $0xb8] sm:$0xff] }
  0x1b   : > { %424 = vst [vmem:[#allocation2 + $0x81] sm:$0xff] %v392_v40  ;;  %v4555_v53 = vadd.f32 %v4488_v10, %v327_v46  ;;  %v334_v57 = vmul.f32 %v4480_v4, %v4246_v49  ;;  %v387_v58 = vmax.f32 %v4539_v45, 0.0  ;;  %v335_v59 = vmul.f32 %v4480_v4, %v4247_v50  ;;  %v4143_v41 = vld [vmem:[%s5645_s3 + $0x98] sm:$0xff] }
  0x1c   : > { %4382 = vmatpush.bf16.msra.mxu1 %v4135_v36  ;;  %4383 = vmatpush.bf16.msra.mxu2 %v4135_v36  ;;  %425 = vst [vmem:[#allocation2 + $0x89] sm:$0xff] %v393_v44  ;;  %v310_v60 = vmul.f32 %v4480_v4, %v4198_v54  ;;  %v311_v61 = vmul.f32 %v4480_v4, %v4199_v55  ;;  %v394_v1 = vmax.f32 %v4546_v48, 0.0  ;;  %v4218_v3 = vunpack.c.l.bf16 %v4344_v62  ;;  %v4151_v45 = vld [vmem:[%s5645_s3 + $0xd8] sm:$0xff] }
  0x1d   : > { %4384 = vmatpush.bf16.msra.mxu3 %v4135_v36  ;;  %1199 = vmatpush.bf16.msra.mxu0 %v4135_v36  ;;  %432 = vst [vmem:[#allocation2 + $0xc1] sm:$0xff] %v400_v47  ;;  %v4576_v2 = vadd.f32 %v4488_v10, %v334_v57  ;;  %v4219_v5 = vunpack.c.h.bf16 %v4344_v62  ;;  %v395_v7 = vmax.f32 %v4555_v53, 0.0  ;;  %v4585_v8 = vadd.f32 %v4488_v10, %v335_v59  ;;  %v4146_v57 = vld [vmem:[%s5645_s3 + $0xb0] sm:$0xff] }
  0x1e   : > { %433 = vst [vmem:[#allocation2 + $0xc9] sm:$0xff] %v401_v52  ;;  %v4588_v9 = vadd.f32 %v4488_v10, %v310_v60  ;;  %v4594_v12 = vadd.f32 %v4488_v10, %v311_v61  ;;  %v320_v13 = vmul.f32 %v4480_v4, %v4218_v3  ;;  %v1115_v16 = vpack.c.bf16 %v4570_v0, %v4568_v63  ;;  %v4154_v59 = vld [vmem:[%s5645_s3 + $0xf0] sm:$0xff] }
  0x1f   : > { %418 = vst [vmem:[#allocation2 + $0x51] sm:$0xff] %v386_v56  ;;  %v402_v11 = vmax.f32 %v4576_v2, 0.0  ;;  %v403_v17 = vmax.f32 %v4585_v8, 0.0  ;;  %v321_v18 = vmul.f32 %v4480_v4, %v4219_v5  ;;  %v4234_v19 = vunpack.c.l.bf16 %v4348_v14  ;;  %v4130_v0 = vld [vmem:[%s5645_s3 + $0x30] sm:$0xff] }
  0x20   : > { %4385 = vmatpush.bf16.msra.mxu1 %v4134_v51  ;;  %4386 = vmatpush.bf16.msra.mxu2 %v4134_v51  ;;  %419 = vst [vmem:[#allocation2 + $0x59] sm:$0xff] %v387_v58  ;;  %v378_v20 = vmax.f32 %v4588_v9, 0.0  ;;  %v4609_v21 = vadd.f32 %v4488_v10, %v320_v13  ;;  %v4235_v22 = vunpack.c.h.bf16 %v4348_v14  ;;  %v4250_v23 = vunpack.c.l.bf16 %v4352_v15  ;;  %v4162_v3 = vld [vmem:[%s5645_s3 + $0x130] sm:$0xff]  ;;  %v4153_v13 = vld [vmem:[%s5645_s3 + $0xe8] sm:$0xff] }
  0x21   : > { %4387 = vmatpush.bf16.msra.mxu3 %v4134_v51  ;;  %1200 = vmatpush.bf16.msra.mxu0 %v4134_v51  ;;  %426 = vst [vmem:[#allocation2 + $0x91] sm:$0xff] %v394_v1  ;;  %v379_v26 = vmax.f32 %v4594_v12, 0.0  ;;  %v4619_v30 = vadd.f32 %v4488_v10, %v321_v18  ;;  %v328_v32 = vmul.f32 %v4480_v4, %v4234_v19  ;;  %v4251_v42 = vunpack.c.h.bf16 %v4352_v15  ;;  %v4345_v15 = vld [vmem:[%s4475_s29 + $0x30] sm:$0xff]   ;;  %v4129_v19 = vld [vmem:[%s5645_s3 + $0x28] sm:$0xff] }
  0x22   : > { %427 = vst [vmem:[#allocation2 + $0x99] sm:$0xff] %v395_v7  ;;  %v4626_v35 = vpack.c.bf16 %v385_v37, %v384_v33  ;;  %v388_v36 = vmax.f32 %v4609_v21, 0.0  ;;  %v329_v39 = vmul.f32 %v4480_v4, %v4235_v22  ;;  %v336_v37 = vmul.f32 %v4480_v4, %v4250_v23  ;;  %v4161_v22 = vld [vmem:[%s5645_s3 + $0x128] sm:$0xff]  ;;  %v4142_v9 = vld [vmem:[%s5645_s3 + $0x90] sm:$0xff]  ;;  %v4179_v21 = vld [vmem:[%s5645_s3 + $0x1b8] sm:$0xff] }
  0x23   : > { %434 = vst [vmem:[#allocation2 + $0xd1] sm:$0xff] %v402_v11  ;;  %v389_v28 = vmax.f32 %v4619_v30, 0.0  ;;  %v4642_v33 = vadd.f32 %v4488_v10, %v328_v32  ;;  %v4202_v46 = vunpack.c.l.bf16 %v4340_v24  ;;  %v1123_v49 = vpack.c.bf16 %v393_v44, %v392_v40  ;;  %v4131_v40 = vld [vmem:[%s5645_s3 + $0x38] sm:$0xff]  ;;  %v4353_v32 = vld [vmem:[%s4475_s29 + $0x70] sm:$0xff]  }
  0x24   : > { %4388 = vmatpush.bf16.msra.mxu1 %v4133_v6  ;;  %4389 = vmatpush.bf16.msra.mxu2 %v4133_v6  ;;  %435 = vst [vmem:[#allocation2 + $0xd9] sm:$0xff] %v403_v17  ;;  %v4652_v50 = vadd.f32 %v4488_v10, %v329_v39  ;;  %v337_v51 = vmul.f32 %v4480_v4, %v4251_v42  ;;  %v4203_v54 = vunpack.c.h.bf16 %v4340_v24  ;;  %v4223_v18 = vunpack.c.h.bf16 %v4345_v15  ;;  %v4144_v39 = vld [vmem:[%s5645_s3 + $0xa0] sm:$0xff]  ;;  %v4187_v30 = vld [vmem:[%s5645_s3 + $0x1f8] sm:$0xff] }
  0x25   : > { %4390 = vmatpush.bf16.msra.mxu3 %v4133_v6  ;;  %1201 = vmatpush.bf16.msra.mxu0 %v4133_v6  ;;  %410 = vst [vmem:[#allocation2 + $0x11] sm:$0xff] %v378_v20  ;;  %v1127_v55 = vpack.c.bf16 %v401_v52, %v400_v47  ;;  %v396_v29 = vmax.f32 %v4642_v33, 0.0  ;;  %v4663_v31 = vadd.f32 %v4488_v10, %v336_v37  ;;  %v4145_v6 = vld [vmem:[%s5645_s3 + $0xa8] sm:$0xff]  ;;  %v4152_v42 = vld [vmem:[%s5645_s3 + $0xe0] sm:$0xff]  ;;  %v4254_v37 = vunpack.c.l.bf16 %v4353_v32 }
  0x26   : > { %411 = vst [vmem:[#allocation2 + $0x19] sm:$0xff] %v379_v26  ;;  %v397_v38 = vmax.f32 %v4652_v50, 0.0  ;;  %v4673_v44 = vadd.f32 %v4488_v10, %v337_v51  ;;  %v312_v47 = vmul.f32 %v4480_v4, %v4202_v46  ;;  %v313_v52 = vmul.f32 %v4480_v4, %v4203_v54  ;;  %v4341_v54 = vld [vmem:[%s4475_s29 + $0x10] sm:$0xff]  }
  0x27   : > { %420 = vst [vmem:[#allocation2 + $0x61] sm:$0xff] %v388_v36  ;;  %v404_v60 = vmax.f32 %v4663_v31, 0.0  ;;  %v323_v24 = vmul.f32 %v4480_v4, %v4223_v18  ;;  %v4255_v46 = vunpack.c.h.bf16 %v4353_v32  ;;  %v4794_v48 = vpack.c.bf16 %v379_v26, %v378_v20  ;;  %v4126_v20 = vld [vmem:[%s5645_s3 + $0x10] sm:$0xff]  ;;  %v4149_v32 = vld [vmem:[%s5645_s3 + $0xc8] sm:$0xff] }
  0x28   : > { %4391 = vmatpush.bf16.msra.mxu1 %v4132_v25  ;;  %4392 = vmatpush.bf16.msra.mxu2 %v4132_v25  ;;  %421 = vst [vmem:[#allocation2 + $0x69] sm:$0xff] %v389_v28  ;;  %v405_v61 = vmax.f32 %v4673_v44, 0.0  ;;  %v4691_v62 = vadd.f32 %v4488_v10, %v312_v47  ;;  %v4696_v63 = vadd.f32 %v4488_v10, %v313_v52  ;;  %v442_v33 = vlaneseq }
  0x29   : > { %4393 = vmatpush.bf16.msra.mxu3 %v4132_v25  ;;  %1202 = vmatpush.bf16.msra.mxu0 %v4132_v25  ;;  %428 = vst [vmem:[#allocation2 + $0xa1] sm:$0xff] %v396_v29  ;;  %v4349_v25 = vld [vmem:[%s4475_s29 + $0x50] sm:$0xff]   ;;  %v4739_v51 = vadd.f32 %v4488_v10, %v323_v24  ;;  %v339_v47 = vmul.f32 %v4480_v4, %v4255_v46  ;;  %v4156_v46 = vld [vmem:[%s5645_s3 + $0x100] sm:$0xff] }
  0x2a   : > { %429 = vst [vmem:[#allocation2 + $0xa9] sm:$0xff] %v397_v38  ;;  %v380_v5 = vmax.f32 %v4691_v62, 0.0  ;;  %v381_v14 = vmax.f32 %v4696_v63, 0.0  ;;  %v4750_v52 = vpack.c.bf16 %v387_v58, %v386_v56  ;;  %v4158_v24 = vld [vmem:[%s5645_s3 + $0x110] sm:$0xff]  ;;  %v4906_v44 = vshrl.u32 %v442_v33, 7  ;;  %v1421_v63 = vld [vmem:[#allocation2 + $0x2] sm:$0xff] }
  0x2b   : > { %1223 = vmatmul.bf16.vlgmr.msra.gmra.mxu1 %v4626_v35  ;;  %1243 = vmatmul.bf16.vlgmr.msra.gmra.mxu2 %v1123_v49  ;;  %436 = vst [vmem:[#allocation2 + $0xe1] sm:$0xff] %v404_v60  ;;  %v391_v56 = vmax.f32 %v4739_v51, 0.0  ;;  %v4782_v18 = vadd.f32 %v4488_v10, %v339_v47 }
  0x2c   : > { %1629 = vmatpush.bf16.msrb.mxu2 %v4147_v43  ;;  %1263 = vmatmul.bf16.vlgmr.msra.gmra.mxu3 %v1127_v55  ;;  %437 = vst [vmem:[#allocation2 + $0xe9] sm:$0xff] %v405_v61  ;;  %v4238_v43 = vunpack.c.l.bf16 %v4349_v25 }
  0x2d   : > { %1894 = vmatpush.bf16.msrb.mxu3 %v4155_v27  ;;  %1203 = vmatmul.bf16.vlgmr.msra.gmra.mxu0 %v1115_v16  ;;  %412 = vst [vmem:[#allocation2 + $0x21] sm:$0xff] %v380_v5  ;;  %v4222_v16 = vunpack.c.l.bf16 %v4345_v15  ;;  %v4239_v27 = vunpack.c.h.bf16 %v4349_v25  ;;  %v4141_v25 = vld [vmem:[%s5645_s3 + $0x88] sm:$0xff] }
  0x2e   : > { %1332 = vmatpush.bf16.msrb.mxu1 %v4131_v40  ;;  %2127 = vmatpush.bf16.msrb.mxu0 %v4163_v34  ;;  %413 = vst [vmem:[#allocation2 + $0x29] sm:$0xff] %v381_v14  ;;  %v330_v55 = vmul.f32 %v4480_v4, %v4238_v43  ;;  %v338_v34 = vmul.f32 %v4480_v4, %v4254_v37  ;;  %v4140_v43 = vld [vmem:[%s5645_s3 + $0x80] sm:$0xff] }
  0x2f   : > { %v322_v23 = vmul.f32 %v4480_v4, %v4222_v16  ;;  %v331_v40 = vmul.f32 %v4480_v4, %v4239_v27  ;;  %v1124_v16 = vpack.c.bf16 %v395_v7, %v394_v1  ;;  %423 = vst [vmem:[#allocation2 + $0x79] sm:$0xff] %v391_v56  ;;  %v4159_v1 = vld [vmem:[%s5645_s3 + $0x118] sm:$0xff]  ;;  %v4148_v27 = vld [vmem:[%s5645_s3 + $0xc0] sm:$0xff] }
  0x30   : > { %1630 = vmatpush.bf16.msrb.mxu2 %v4146_v57  ;;  %v4128_v57 = vld [vmem:[%s5645_s3 + $0x20] sm:$0xff]  ;;  %v4767_v58 = vadd.f32 %v4488_v10, %v330_v55  ;;  %v4773_v15 = vadd.f32 %v4488_v10, %v338_v34  ;;  %v1125_v55 = vpack.c.bf16 %v397_v38, %v396_v29  ;;  %v4876_v34 = vpack.c.bf16 %v381_v14, %v380_v5  ;;  %v1422_v5 = vld [vmem:[#allocation2 + $0xa] sm:$0xff] }
  0x31   : > { %1895 = vmatpush.bf16.msrb.mxu3 %v4154_v59  ;;  %v4736_v49 = vadd.f32 %v4488_v10, %v322_v23  ;;  %v4160_v59 = vld [vmem:[%s5645_s3 + $0x120] sm:$0xff]  ;;  %v1128_v23 = vpack.c.bf16 %v403_v17, %v402_v11  ;;  %v4150_v11 = vld [vmem:[%s5645_s3 + $0xd0] sm:$0xff]  ;;  %v3689_v47 = vpack.c.bf16 %v1422_v5, %v1421_v63 }
  0x32   : > { %1333 = vmatpush.bf16.msrb.mxu1 %v4130_v0  ;;  %2128 = vmatpush.bf16.msrb.mxu0 %v4162_v3  ;;  %v4206_v3 = vunpack.c.l.bf16 %v4341_v54  ;;  %v398_v53 = vmax.f32 %v4767_v58, 0.0  ;;  %v406_v12 = vmax.f32 %v4773_v15, 0.0  ;;  %v4124_v37 = vld [vmem:[%s5645_s3] sm:$0xff]  ;;  %v1750_v14 = vld [vmem:[#allocation2 + $0x10] sm:$0xff] }
  0x33   : > { %v390_v0 = vmax.f32 %v4736_v49, 0.0  ;;  %v1751_v49 = vld [vmem:[#allocation2 + $0x18] sm:$0xff]  ;;  %v4194_v58 = vld [vmem:[%s5645_s3 + $0x230] sm:$0xff] }
  0x34   : > { %1631 = vmatpush.bf16.msrb.mxu2 %v4145_v6  ;;  %v4207_v6 = vunpack.c.h.bf16 %v4341_v54  ;;  %430 = vst [vmem:[#allocation2 + $0xb1] sm:$0xff] %v398_v53  ;;  %v4862_v54 = vpack.c.bf16 %v389_v28, %v388_v36  ;;  %v4171_v36 = vld [vmem:[%s5645_s3 + $0x178] sm:$0xff]  ;;  %v1430_v63 = vld [vmem:[#allocation2 + $0x4a] sm:$0xff] }
  0x35   : > { %1896 = vmatpush.bf16.msrb.mxu3 %v4153_v13  ;;  %v4770_v13 = vadd.f32 %v4488_v10, %v331_v40  ;;  %422 = vst [vmem:[#allocation2 + $0x71] sm:$0xff] %v390_v0  ;;  %v1129_v40 = vpack.c.bf16 %v405_v61, %v404_v60  ;;  %v4195_v28 = vld [vmem:[%s5645_s3 + $0x238] sm:$0xff]  ;;  %v4896_v50 = vpack.c.bf16 %v391_v56, %v390_v0  ;;  %v444_v60 = vadd.s32 8, %v4906_v44  ;;  %v1758_v5 = vld [vmem:[#allocation2 + $0x50] sm:$0xff] }
  0x36   : > { %1334 = vmatpush.bf16.msrb.mxu1 %v4129_v19  ;;  %2129 = vmatpush.bf16.msrb.mxu0 %v4161_v22  ;;  %v314_v19 = vmul.f32 %v4480_v4, %v4206_v3  ;;  %v315_v22 = vmul.f32 %v4480_v4, %v4207_v6  ;;  %v4127_v4 = vld [vmem:[%s5645_s3 + $0x18] sm:$0xff]  ;;  %438 = vst [vmem:[#allocation2 + $0xf1] sm:$0xff] %v406_v12  ;;  %v479_v61 = vand.u32 15, %v4906_v44  ;;  %v4419_v0 = vmov 0.0|0.0   ;;  %v4178_v6 = vld [vmem:[%s5645_s3 + $0x1b0] sm:$0xff] }
  0x37   : > { %v399_v2 = vmax.f32 %v4770_v13, 0.0  ;;  %v486_v62 = vand.u32 15, %v444_v60  ;;  %v445_v3 = vadd.s32 16, %v4906_v44  ;;  %v446_v56 = vadd.s32 24, %v4906_v44 }
  0x38   : > { %1632 = vmatpush.bf16.msrb.mxu2 %v4144_v39  ;;  %v4807_v7 = vadd.f32 %v4488_v10, %v314_v19  ;;  %v4810_v8 = vadd.f32 %v4488_v10, %v315_v22  ;;  %v407_v10 = vmax.f32 %v4782_v18, 0.0  ;;  %v4125_v39 = vld [vmem:[%s5645_s3 + $0x8] sm:$0xff]  ;;  %vm859_vm0 = vcmp.ne.s32.totalorder %v479_v61, 0  ;;  %v1424_v18 = vld [vmem:[#allocation2 + $0x1a] sm:$0xff] }
  0x39   : > { %1897 = vmatpush.bf16.msrb.mxu3 %v4152_v42  ;;  %431 = vst [vmem:[#allocation2 + $0xb9] sm:$0xff] %v399_v2  ;;  %v4157_v42 = vld [vmem:[%s5645_s3 + $0x108] sm:$0xff]  ;;  %v4902_v29 = vpack.c.bf16 %v399_v2, %v398_v53  ;;  %vm892_vm1 = vcmp.ne.s32.totalorder %v486_v62, 15  ;;  %vm4914_vm3 = vmpackc.low %vm4418_vm2, %vm859_vm0  ;;  %v493_v13 = vand.u32 15, %v445_v3  ;;  %v500_v15 = vand.u32 15, %v446_v56  ;;  %v1752_v19 = vld [vmem:[#allocation2 + $0x20] sm:$0xff] }
  0x3a   : > { %1335 = vmatpush.bf16.msrb.mxu1 %v4128_v57  ;;  %2130 = vmatpush.bf16.msrb.mxu0 %v4160_v59  ;;  %v382_v17 = vmax.f32 %v4807_v7, 0.0  ;;  %439 = vst [vmem:[#allocation2 + $0xf9] sm:$0xff] %v407_v10  ;;  %v383_v26 = vmax.f32 %v4810_v8, 0.0  ;;  %v1130_v31 = vpack.c.bf16 %v407_v10, %v406_v12  ;;  %vm4919_vm4 = vmpackc.low %vm892_vm1, %vm4418_vm2  ;;  %v3769_v59 = vpack.c.bf16 %v1751_v49, %v1750_v14  ;;  %v1753_v22 = vld [vmem:[#allocation2 + $0x28] sm:$0xff]  ;;  %v1759_v14 = vld [vmem:[#allocation2 + $0x58] sm:$0xff] }
  0x3b   : > { %1228 = vmatmul.bf16.gmra.mxu1 %v4750_v52  ;;  %1248 = vmatmul.bf16.gmra.mxu2 %v1124_v16  ;;  %vm861_vm5 = vcmp.ne.s32.totalorder %v493_v13, 0  ;;  %v1423_v16 = vld [vmem:[#allocation2 + $0x12] sm:$0xff]  ;;  %vm894_vm6 = vcmp.ne.s32.totalorder %v500_v15, 15  ;;  %v448_v2 = vadd.s32 40, %v4906_v44  ;;  %v1429_v62 = vld [vmem:[#allocation2 + $0x42] sm:$0xff]  ;;  %v454_v56 = vadd.s32 88, %v4906_v44 }
  0x3c   : > { %1633 = vmatpush.bf16.msrb.mxu2 %v4143_v41  ;;  %1268 = vmatmul.bf16.gmra.mxu3 %v1128_v23  ;;  %414 = vst [vmem:[#allocation2 + $0x31] sm:$0xff] %v382_v17  ;;  %v4904_v38 = vpack.c.bf16 %v383_v26, %v382_v17  ;;  %v4186_v41 = vld [vmem:[%s5645_s3 + $0x1f0] sm:$0xff]  ;;  %vm4945_vm7 = vmpackc.low %vm4418_vm2, %vm861_vm5  ;;  %v2782_v23 = vld [vmem:[#allocation2 + $0x41] sm:$0xff] }
  0x3d   : > { %1898 = vmatpush.bf16.msrb.mxu3 %v4151_v45  ;;  %1208 = vmatmul.bf16.gmra.mxu0 %v4794_v48  ;;  %415 = vst [vmem:[#allocation2 + $0x39] sm:$0xff] %v383_v26  ;;  %v4170_v45 = vld [vmem:[%s5645_s3 + $0x170] sm:$0xff]  ;;  %vm4950_vm8 = vmpackc.low %vm894_vm6, %vm4418_vm2  ;;  %v514_v8 = vand.u32 15, %v448_v2  ;;  %v1761_v2 = vld [vmem:[#allocation2 + $0x68] sm:$0xff] }
  0x3e   : > { %1336 = vmatpush.bf16.msrb.mxu1 %v4127_v4  ;;  %2131 = vmatpush.bf16.msrb.mxu0 %v4159_v1  ;;  %v3772_v4 = vpack.c.bf16 %v1753_v22, %v1752_v19  ;;  %v447_v1 = vadd.s32 32, %v4906_v44  ;;  %v556_v19 = vand.u32 15, %v454_v56  ;;  %v4192_v22 = vld [vmem:[%s5645_s3 + $0x220] sm:$0xff]  ;;  %v2784_v17 = vld [vmem:[#allocation2 + $0x51] sm:$0xff] }
  0x3f   : > { %vm896_vm10 = vcmp.ne.s32.totalorder %v514_v8, 15  ;;  %v2788_v49 = vld [vmem:[#allocation2 + $0x71] sm:$0xff] }
  0x40   : > { %1634 = vmatpush.bf16.msrb.mxu2 %v4142_v9  ;;  %v507_v7 = vand.u32 15, %v447_v1  ;;  %v1425_v9 = vld [vmem:[#allocation2 + $0x22] sm:$0xff]  ;;  %vm4969_vm12 = vmpackc.low %vm896_vm10, %vm4418_vm2 }
  0x41   : > { %1899 = vmatpush.bf16.msrb.mxu3 %v4150_v11  ;;  %v1760_v1 = vld [vmem:[#allocation2 + $0x60] sm:$0xff] }
  0x42   : > { %1337 = vmatpush.bf16.msrb.mxu1 %v4126_v20  ;;  %2132 = vmatpush.bf16.msrb.mxu0 %v4158_v24  ;;  %vm863_vm9 = vcmp.ne.s32.totalorder %v507_v7, 0 }
  0x43   : > { %v1426_v11 = vld [vmem:[#allocation2 + $0x2a] sm:$0xff]  ;;  %vm4964_vm11 = vmpackc.low %vm4418_vm2, %vm863_vm9 }
  0x44   : > { %1635 = vmatpush.bf16.msrb.mxu2 %v4141_v25  ;;  %v1754_v12 = vld [vmem:[#allocation2 + $0x30] sm:$0xff]  ;;  %v1755_v10 = vld [vmem:[#allocation2 + $0x38] sm:$0xff]  ;;  %v3695_v20 = vpack.c.bf16 %v1426_v11, %v1425_v9  ;;  %v449_v25 = vadd.s32 48, %v4906_v44  ;;  %v5722_v9 = vmov 0 }
  0x45   : > { %1900 = vmatpush.bf16.msrb.mxu3 %v4149_v32  ;;  %v3775_v24 = vpack.c.bf16 %v1755_v10, %v1754_v12  ;;  %v4177_v32 = vld [vmem:[%s5645_s3 + $0x1a8] sm:$0xff]  ;;  %v2780_v51 = vld [vmem:[#allocation2 + $0x31] sm:$0xff] }
  0x46   : > { %1338 = vmatpush.bf16.msrb.mxu1 %v4125_v39  ;;  %2133 = vmatpush.bf16.msrb.mxu0 %v4157_v42  ;;  %v4185_v39 = vld [vmem:[%s5645_s3 + $0x1e8] sm:$0xff]  ;;  %v450_v42 = vadd.s32 56, %v4906_v44 }
  0x48   : > { %1636 = vmatpush.bf16.msrb.mxu2 %v4140_v43  ;;  %v4169_v43 = vld [vmem:[%s5645_s3 + $0x168] sm:$0xff] }
  0x49   : > { %1901 = vmatpush.bf16.msrb.mxu3 %v4148_v27  ;;  %v521_v27 = vand.u32 15, %v449_v25  ;;  %v455_v25 = vadd.s32 96, %v4906_v44 }
  0x4a   : > { %1339 = vmatpush.bf16.msrb.mxu1 %v4124_v37  ;;  %2134 = vmatpush.bf16.msrb.mxu0 %v4156_v46  ;;  %v528_v37 = vand.u32 15, %v450_v42  ;;  %v4193_v46 = vld [vmem:[%s5645_s3 + $0x228] sm:$0xff] }
  0x4b   : > { %1233 = vmatmul.bf16.gmra.mxu1 %v4862_v54  ;;  %1253 = vmatmul.bf16.gmra.mxu2 %v1125_v55  ;;  %vm865_vm13 = vcmp.ne.s32.totalorder %v521_v27, 0  ;;  %v1427_v55 = vld [vmem:[#allocation2 + $0x32] sm:$0xff]  ;;  %v563_v27 = vand.u32 15, %v455_v25  ;;  %v5731_v25 = vmov 0 }
  0x4c   : > { %1273 = vmatmul.bf16.gmra.mxu3 %v1129_v40  ;;  %2657 = vmatpush.bf16.msra.mxu2 %v4179_v21  ;;  %v1428_v40 = vld [vmem:[#allocation2 + $0x3a] sm:$0xff]  ;;  %vm898_vm14 = vcmp.ne.s32.totalorder %v528_v37, 15  ;;  %v1757_v21 = vld [vmem:[#allocation2 + $0x48] sm:$0xff]  ;;  %vm4995_vm15 = vmpackc.low %vm4418_vm2, %vm865_vm13  ;;  %vm902_vm13 = vcmp.ne.s32.totalorder %v556_v19, 15 }
  0x4d   : > { %1213 = vmatmul.bf16.gmra.mxu0 %v4876_v34  ;;  %2890 = vmatpush.bf16.msra.mxu3 %v4187_v30  ;;  %vm5000_vm0 = vmpackc.low %vm898_vm14, %vm4418_vm2  ;;  %v1435_v19 = vld [vmem:[#allocation2 + $0x72] sm:$0xff]  ;;  %v2786_v30 = vld [vmem:[#allocation2 + $0x61] sm:$0xff] }
  0x4e   : > { %2392 = vmatpush.bf16.msra.mxu1 %v4171_v36  ;;  %3155 = vmatpush.bf16.msra.mxu0 %v4195_v28  ;;  %v3698_v36 = vpack.c.bf16 %v1428_v40, %v1427_v55  ;;  %v1433_v55 = vld [vmem:[#allocation2 + $0x62] sm:$0xff]  ;;  %v1434_v40 = vld [vmem:[#allocation2 + $0x6a] sm:$0xff] }
  0x50   : > { %2658 = vmatpush.bf16.msra.mxu2 %v4178_v6  ;;  %v453_v6 = vadd.s32 80, %v4906_v44 }
  0x51   : > { %2891 = vmatpush.bf16.msra.mxu3 %v4186_v41  ;;  %v4176_v41 = vld [vmem:[%s5645_s3 + $0x1a0] sm:$0xff] }
  0x52   : > { %2393 = vmatpush.bf16.msra.mxu1 %v4170_v45  ;;  %3156 = vmatpush.bf16.msra.mxu0 %v4194_v58  ;;  %v4184_v45 = vld [vmem:[%s5645_s3 + $0x1e0] sm:$0xff] }
  0x54   : > { %2659 = vmatpush.bf16.msra.mxu2 %v4177_v32  ;;  %v456_v32 = vadd.s32 104, %v4906_v44 }
  0x55   : > { %2892 = vmatpush.bf16.msra.mxu3 %v4185_v39 }
  0x56   : > { %2394 = vmatpush.bf16.msra.mxu1 %v4169_v43  ;;  %3157 = vmatpush.bf16.msra.mxu0 %v4193_v46  ;;  %v570_v46 = vand.u32 15, %v456_v32 }
  0x58   : > { %2660 = vmatpush.bf16.msra.mxu2 %v4176_v41 }
  0x59   : > { %2893 = vmatpush.bf16.msra.mxu3 %v4184_v45 }
  0x5a   : > { %3158 = vmatpush.bf16.msra.mxu0 %v4192_v22  ;;  %v1436_v22 = vld [vmem:[#allocation2 + $0x7a] sm:$0xff] }
  0x5b   : > { %1238 = vmatmul.bf16.gmra.mxu1 %v4896_v50  ;;  %1258 = vmatmul.bf16.gmra.mxu2 %v4902_v29  ;;  %v3710_v32 = vpack.c.bf16 %v1436_v22, %v1435_v19  ;;  %v1767_v19 = vld [vmem:[#allocation2 + $0x98] sm:$0xff] }
  0x5c   : > { %1278 = vmatmul.bf16.gmra.mxu3 %v1130_v31  ;;  %v451_v31 = vadd.s32 64, %v4906_v44  ;;  %v2031_v22 = vld [vmem:[#allocation2 + $0x91] sm:$0xff] }
  0x5d   : > { %1218 = vmatmul.bf16.gmra.mxu0 %v4904_v38 }
  0x5e   : > { %v535_v60 = vand.u32 15, %v451_v31  ;;  %v3707_v31 = vpack.c.bf16 %v1434_v40, %v1433_v55 }
  0x60   : > { %vm867_vm1 = vcmp.ne.s32.totalorder %v535_v60, 0  ;;  %v5728_v60 = vmov 0 }
  0x61   : > { %vm5014_vm6 = vmpackc.low %vm4418_vm2, %vm867_vm1 }
  0x62   : > { %vm5068_vm1 = vmpackc.low %vm902_vm13, %vm4418_vm2 }
  0x6b   : > { %3610 = vmatmul.msk.bf16.vlgmr.msrb.gmra.mxu1 %vm4914_vm3, %v4419_v0  ;;  %3690 = vmatmul.msk.bf16.vlgmr.msrb.gmra.mxu2 %vm4919_vm4, %v3689_v47  ;;  %v3701_v47 = vpack.c.bf16 %v1430_v63, %v1429_v62  ;;  %v3781_v0 = vpack.c.bf16 %v1759_v14, %v1758_v5  ;;  %v457_v63 = vadd.s32 112, %v4906_v44  ;;  %v4175_v5 = vld [vmem:[%s5645_s3 + $0x198] sm:$0xff] }
  0x6c   : > { %3770 = vmatmul.msk.bf16.vlgmr.msrb.gmra.mxu3 %vm4914_vm3, %v3769_v59  ;;  %v4183_v14 = vld [vmem:[%s5645_s3 + $0x1d8] sm:$0xff]  ;;  %2661 = vmatpush.bf16.msra.mxu2 %v4175_v5 }
  0x6d   : > { %2135 = vmatmul.bf16.vlgmr.msrb.gmra.mxu0 %v4794_v48  ;;  %v3692_v48 = vpack.c.bf16 %v1424_v18, %v1423_v16  ;;  %v549_v16 = vand.u32 15, %v453_v6  ;;  %2894 = vmatpush.bf16.msra.mxu3 %v4183_v14 }
  0x6f   : > { %vm869_vm10 = vcmp.ne.s32.totalorder %v549_v16, 0  ;;  %v4191_v16 = vld [vmem:[%s5645_s3 + $0x218] sm:$0xff] }
  0x70   : > { %vm5061_vm14 = vmpackc.low %vm4418_vm2, %vm869_vm10  ;;  %vm904_vm10 = vcmp.ne.s32.totalorder %v570_v46, 15  ;;  %3159 = vmatpush.bf16.msra.mxu0 %v4191_v16  ;;  %v5734_v46 = vmov 0  ;;  %v1766_v16 = vld [vmem:[#allocation2 + $0x90] sm:$0xff] }
  0x71   : > { %v5723_v9 = vsel %vm5061_vm14, 4294967295, %v5722_v9 }
  0x7b   : > { %3613 = vmatmul.msk.bf16.gmra.mxu1 %vm4945_vm7, %v3769_v59  ;;  %3693 = vmatmul.msk.bf16.gmra.mxu2 %vm4950_vm8, %v3692_v48  ;;  %v1431_v48 = vld [vmem:[#allocation2 + $0x52] sm:$0xff] }
  0x7c   : > { %3773 = vmatmul.msk.bf16.gmra.mxu3 %vm4945_vm7, %v3772_v4 }
  0x7d   : > { %2140 = vmatmul.bf16.gmra.mxu0 %v4876_v34  ;;  %v1756_v34 = vld [vmem:[#allocation2 + $0x40] sm:$0xff] }
  0x7e   : > { %v3778_v33 = vpack.c.bf16 %v1757_v21, %v1756_v34  ;;  %v1762_v34 = vld [vmem:[#allocation2 + $0x70] sm:$0xff] }
  0x8b   : > { %3616 = vmatmul.msk.bf16.gmra.mxu1 %vm4964_vm11, %v3772_v4  ;;  %3696 = vmatmul.msk.bf16.gmra.mxu2 %vm4969_vm12, %v3695_v20  ;;  %v1432_v4 = vld [vmem:[#allocation2 + $0x5a] sm:$0xff]  ;;  %v3784_v20 = vpack.c.bf16 %v1761_v2, %v1760_v1  ;;  %v2030_v2 = vld [vmem:[#allocation2 + $0x89] sm:$0xff] }
  0x8c   : > { %3776 = vmatmul.msk.bf16.gmra.mxu3 %vm4964_vm11, %v3775_v24  ;;  %v3704_v11 = vpack.c.bf16 %v1432_v4, %v1431_v48  ;;  %v1764_v48 = vld [vmem:[#allocation2 + $0x80] sm:$0xff]  ;;  %v1765_v4 = vld [vmem:[#allocation2 + $0x88] sm:$0xff] }
  0x8d   : > { %2145 = vmatmul.bf16.gmra.mxu0 %v4904_v38  ;;  %v452_v38 = vadd.s32 72, %v4906_v44  ;;  %v2029_v1 = vld [vmem:[#allocation2 + $0x81] sm:$0xff]  ;;  %v3790_v55 = vpack.c.bf16 %v1765_v4, %v1764_v48  ;;  %v2032_v48 = vld [vmem:[#allocation2 + $0x99] sm:$0xff] }
  0x8e   : > { %v2054_v40 = vpack.c.bf16 %v2030_v2, %v2029_v1  ;;  %v5739_v2 = vmov 0 }
  0x8f   : > { %v542_v61 = vand.u32 15, %v452_v38 }
  0x91   : > { %vm900_vm5 = vcmp.ne.s32.totalorder %v542_v61, 15 }
  0x92   : > { %vm5021_vm9 = vmpackc.low %vm900_vm5, %vm4418_vm2  ;;  %vm871_vm5 = vcmp.ne.s32.totalorder %v563_v27, 0 }
  0x93   : > { %vm5096_vm13 = vmpackc.low %vm4418_vm2, %vm871_vm5 }
  0x9b   : > { %3619 = vmatmul.msk.bf16.gmra.mxu1 %vm4995_vm15, %v3775_v24  ;;  %3699 = vmatmul.msk.bf16.gmra.mxu2 %vm5000_vm0, %v3698_v36 }
  0x9c   : > { %3779 = vmatmul.msk.bf16.gmra.mxu3 %vm4995_vm15, %v3778_v33 }
  0x9d   : > { %2150 = vmatmul.bf16.gmra.mxu0 %v4626_v35 }
  0xa8   : > { %v5018_v59 = vpop.f32.mrf.mxu1 }
  0xaa   : > { %v5025_v3 = vpop.f32.mrf.mxu0 }
  0xab   : > { %3622 = vmatmul.msk.bf16.gmra.mxu1 %vm5014_vm6, %v3778_v33  ;;  %3702 = vmatmul.msk.bf16.gmra.mxu2 %vm5021_vm9, %v3701_v47  ;;  %v5726_v33 = vmov 0  ;;  %v458_v47 = vadd.s32 120, %v4906_v44 }
  0xac   : > { %3782 = vmatmul.msk.bf16.gmra.mxu3 %vm5014_vm6, %v3781_v0  ;;  %v5727_v33 = vsel %vm5096_vm13, 4294967295, %v5726_v33 }
  0xad   : > { %2155 = vmatmul.bf16.gmra.mxu0 %v4750_v52  ;;  %v4168_v52 = vld [vmem:[%s5645_s3 + $0x160] sm:$0xff]  ;;  %v584_v56 = vand.u32 15, %v458_v47 }
  0xae   : > { %v5042_v58 = vpop.f32.mrf.mxu2  ;;  %2395 = vmatpush.bf16.msra.mxu1 %v4168_v52  ;;  %v4167_v52 = vld [vmem:[%s5645_s3 + $0x158] sm:$0xff] }
  0xaf   : > { %v5044_v13 = vpop.f32.mrf.mxu3 }
  0xb0   : > { %v5049_v15 = vpop.f32.mrf.mxu1 }
  0xb2   : > { %v5051_v18 = vpop.f32.mrf.mxu0  ;;  %2396 = vmatpush.bf16.msra.mxu1 %v4167_v52  ;;  %v1438_v52 = vld [vmem:[#allocation2 + $0x8a] sm:$0xff] }
  0xb6   : > { %v5056_v7 = vpop.f32.mrf.mxu2 }
  0xb7   : > { %v5058_v8 = vpop.f32.mrf.mxu3 }
  0xb8   : > { %v5065_v12 = vpop.f32.mrf.mxu1 }
  0xba   : > { %v5072_v24 = vpop.f32.mrf.mxu0 }
  0xbb   : > { %3625 = vmatmul.msk.bf16.gmra.mxu1 %vm5061_vm14, %v3781_v0  ;;  %3705 = vmatmul.msk.bf16.gmra.mxu2 %vm5068_vm1, %v3704_v11 }
  0xbc   : > { %3785 = vmatmul.msk.bf16.gmra.mxu3 %vm5061_vm14, %v3784_v20  ;;  %vm5103_vm14 = vmpackc.low %vm904_vm10, %vm4418_vm2  ;;  %vm906_vm10 = vcmp.ne.s32.totalorder %v584_v56, 15  ;;  %v1437_v56 = vld [vmem:[#allocation2 + $0x82] sm:$0xff] }
  0xbd   : > { %2160 = vmatmul.bf16.gmra.mxu0 %v4862_v54  ;;  %v1763_v54 = vld [vmem:[#allocation2 + $0x78] sm:$0xff]  ;;  %v5729_v60 = vsel %vm5103_vm14, 4294967295, %v5728_v60 }
  0xbe   : > { %v5083_v39 = vpop.f32.mrf.mxu2  ;;  %v3787_v61 = vpack.c.bf16 %v1763_v54, %v1762_v34  ;;  %v459_v54 = vadd.s32 128, %v4906_v44 }
  0xbf   : > { %v5085_v42 = vpop.f32.mrf.mxu3 }
  0xc0   : > { %v5087_v43 = vpop.f32.mrf.mxu1  ;;  %v591_v47 = vand.u32 15, %v459_v54  ;;  %v5742_v54 = vmov 0 }
  0xc2   : > { %v5089_v37 = vpop.f32.mrf.mxu0 }
  0xc6   : > { %v5091_v21 = vpop.f32.mrf.mxu2 }
  0xc7   : > { %v5093_v36 = vpop.f32.mrf.mxu3 }
  0xc8   : > { %v5100_v38 = vpop.f32.mrf.mxu1 }
  0xca   : > { %v5107_v62 = vpop.f32.mrf.mxu0 }
  0xcb   : > { %3628 = vmatmul.msk.bf16.gmra.mxu1 %vm5096_vm13, %v3784_v20  ;;  %3708 = vmatmul.msk.bf16.gmra.mxu2 %vm5103_vm14, %v3707_v31  ;;  %vm5150_vm14 = vmpackc.low %vm906_vm10, %vm4418_vm2  ;;  %v460_v31 = vadd.s32 136, %v4906_v44 }
  0xcc   : > { %3788 = vmatmul.msk.bf16.gmra.mxu3 %vm5096_vm13, %v3787_v61  ;;  %v5735_v46 = vsel %vm5150_vm14, 4294967295, %v5734_v46 }
  0xcd   : > { %2165 = vmatmul.bf16.gmra.mxu0 %v4896_v50  ;;  %v577_v50 = vand.u32 15, %v457_v63  ;;  %5736 = vst [vmem:[#allocation5_spill] sm:$0xff] %v5735_v46  ;;  %v5746_v46 = vmov 0 }
  0xce   : > { %v5124_v0 = vpop.f32.mrf.mxu2 }
  0xcf   : > { %v5126_v6 = vpop.f32.mrf.mxu3  ;;  %vm873_vm5 = vcmp.ne.s32.totalorder %v577_v50, 0 }
  0xd0   : > { %v5128_v41 = vpop.f32.mrf.mxu1  ;;  %vm5143_vm13 = vmpackc.low %vm4418_vm2, %vm873_vm5  ;;  %vm875_vm5 = vcmp.ne.s32.totalorder %v591_v47, 0  ;;  %v2055_v47 = vpack.c.bf16 %v2032_v48, %v2031_v22 }
  0xd1   : > { %v5732_v25 = vsel %vm5143_vm13, 4294967295, %v5731_v25 }
  0xd2   : > { %v5130_v45 = vpop.f32.mrf.mxu0  ;;  %5733 = vst [vmem:[#allocation4_spill] sm:$0xff] %v5732_v25  ;;  %v4190_v25 = vld [vmem:[%s5645_s3 + $0x210] sm:$0xff] }
  0xd3   : > { %3160 = vmatpush.bf16.msra.mxu0 %v4190_v25 }
  0xd6   : > { %v5138_v11 = vpop.f32.mrf.mxu2 }
  0xd7   : > { %v5140_v20 = vpop.f32.mrf.mxu3 }
  0xd8   : > { %5730 = vst [vmem:[#allocation3_spill] sm:$0xff] %v5140_v20  ;;  %v5147_v27 = vpop.f32.mrf.mxu1 }
  0xda   : > { %v5154_v34 = vpop.f32.mrf.mxu0 }
  0xdb   : > { %3631 = vmatmul.msk.bf16.gmra.mxu1 %vm5143_vm13, %v3787_v61  ;;  %3711 = vmatmul.msk.bf16.gmra.mxu2 %vm5150_vm14, %v3710_v32  ;;  %v598_v61 = vand.u32 15, %v460_v31  ;;  %v3713_v32 = vpack.c.bf16 %v1438_v52, %v1437_v56  ;;  %v3793_v31 = vpack.c.bf16 %v1767_v19, %v1766_v16  ;;  %v461_v56 = vadd.s32 144, %v4906_v44  ;;  %v4174_v52 = vld [vmem:[%s5645_s3 + $0x190] sm:$0xff] }
  0xdc   : > { %3791 = vmatmul.msk.bf16.gmra.mxu3 %vm5143_vm13, %v3790_v55  ;;  %vm5177_vm13 = vmpackc.low %vm4418_vm2, %vm875_vm5  ;;  %v462_v16 = vadd.s32 152, %v4906_v44  ;;  %2662 = vmatpush.bf16.msra.mxu2 %v4174_v52 }
  0xdd   : > { %2170 = vmatmul.bf16.gmra.mxu0 %v2054_v40  ;;  %vm908_vm10 = vcmp.ne.s32.totalorder %v598_v61, 15  ;;  %v5740_v2 = vsel %vm5177_vm13, 4294967295, %v5739_v2 }
  0xde   : > { %v5164_v63 = vpop.f32.mrf.mxu2  ;;  %5741 = vst [vmem:[#allocation8_spill] sm:$0xff] %v5740_v2  ;;  %vm5182_vm14 = vmpackc.low %vm908_vm10, %vm4418_vm2 }
  0xdf   : > { %v5166_v5 = vpop.f32.mrf.mxu3  ;;  %v5743_v54 = vsel %vm5182_vm14, 4294967295, %v5742_v54 }
  0xe0   : > { %5737 = vst [vmem:[#allocation6_spill] sm:$0xff] %v5166_v5  ;;  %v5168_v14 = vpop.f32.mrf.mxu1 }
  0xe1   : > { %5744 = vst [vmem:[#allocation9_spill] sm:$0xff] %v5743_v54  ;;  %v612_v54 = vand.u32 15, %v462_v16  ;;  %v2034_v16 = vld [vmem:[#allocation2 + $0xa9] sm:$0xff] }
  0xe2   : > { %v5170_v50 = vpop.f32.mrf.mxu0 }
  0xe3   : > { %vm910_vm10 = vcmp.ne.s32.totalorder %v612_v54, 15 }
  0xe6   : > { %v5172_v4 = vpop.f32.mrf.mxu2 }
  0xe7   : > { %v5174_v1 = vpop.f32.mrf.mxu3 }
  0xe8   : > { %5738 = vst [vmem:[#allocation7_spill] sm:$0xff] %v5174_v1  ;;  %v1341_v40 = vpop.f32.mrf.mxu1  ;;  %v4166_v1 = vld [vmem:[%s5645_s3 + $0x150] sm:$0xff] }
  0xe9   : > { %v1342_v61 = vadd.f32 %v1341_v40, %v5025_v3  ;;  %v4182_v3 = vld [vmem:[%s5645_s3 + $0x1d0] sm:$0xff]  ;;  %2397 = vmatpush.bf16.msra.mxu1 %v4166_v1 }
  0xea   : > { %v2136_v5 = vpop.f32.mrf.mxu0  ;;  %2895 = vmatpush.bf16.msra.mxu3 %v4182_v3  ;;  %v1768_v3 = vld [vmem:[#allocation2 + $0xa0] sm:$0xff] }
  0xeb   : > { %3634 = vmatmul.msk.bf16.gmra.mxu1 %vm5177_vm13, %v3790_v55  ;;  %3714 = vmatmul.msk.bf16.gmra.mxu2 %vm5182_vm14, %v3713_v32  ;;  %v605_v32 = vand.u32 15, %v461_v56  ;;  %v1440_v56 = vld [vmem:[#allocation2 + $0x9a] sm:$0xff]  ;;  %vm5216_vm14 = vmpackc.low %vm910_vm10, %vm4418_vm2 }
  0xec   : > { %3794 = vmatmul.msk.bf16.gmra.mxu3 %vm5177_vm13, %v3793_v31 }
  0xed   : > { %2175 = vmatmul.bf16.gmra.mxu0 %v2055_v47  ;;  %vm877_vm5 = vcmp.ne.s32.totalorder %v605_v32, 0 }
  0xee   : > { %v1638_v55 = vpop.f32.mrf.mxu2  ;;  %vm5211_vm13 = vmpackc.low %vm4418_vm2, %vm877_vm5 }
  0xef   : > { %v1718_v19 = vadd.f32 %v1638_v55, %v1342_v61  ;;  %v1903_v22 = vpop.f32.mrf.mxu3  ;;  %v1439_v61 = vld [vmem:[#allocation2 + $0x92] sm:$0xff]  ;;  %v2033_v55 = vld [vmem:[#allocation2 + $0xa1] sm:$0xff]  ;;  %v5747_v46 = vsel %vm5211_vm13, 4294967295, %v5746_v46 }
  0xf0   : > { %v1343_v48 = vpop.f32.mrf.mxu1  ;;  %5748 = vst [vmem:[#allocation11_spill] sm:$0xff] %v5747_v46  ;;  %v3716_v1 = vpack.c.bf16 %v1440_v56, %v1439_v61  ;;  %v2056_v54 = vpack.c.bf16 %v2034_v16, %v2033_v55  ;;  %v463_v61 = vadd.s32 160, %v4906_v44  ;;  %v464_v56 = vadd.s32 168, %v4906_v44 }
  0xf1   : > { %v1983_v40 = vadd.f32 %v1903_v22, %v1718_v19  ;;  %v1344_v47 = vadd.f32 %v1343_v48, %v5051_v18  ;;  %v1769_v18 = vld [vmem:[#allocation2 + $0xa8] sm:$0xff] }
  0xf2   : > { %v2138_v2 = vpop.f32.mrf.mxu0  ;;  %v3796_v32 = vpack.c.bf16 %v1769_v18, %v1768_v3  ;;  %v619_v16 = vand.u32 15, %v463_v61 }
  0xf3   : > { %v5208_v52 = vadd.f32 %v2136_v5, %v1983_v40  ;;  %v5749_v5 = vmov 0 }
  0xf4   : > { %v5750_v5 = vsel %vm5216_vm14, 4294967295, %v5749_v5  ;;  %vm879_vm5 = vcmp.ne.s32.totalorder %v619_v16, 0 }
  0xf5   : > { %5745 = vst [vmem:[#allocation10_spill] sm:$0xff] %v5208_v52 }
  0xf6   : > { %v1640_v19 = vpop.f32.mrf.mxu2  ;;  %5751 = vst [vmem:[#allocation12_spill] sm:$0xff] %v5750_v5 }
  0xf7   : > { %v1719_v22 = vadd.f32 %v1640_v19, %v1344_v47  ;;  %v1905_v48 = vpop.f32.mrf.mxu3 }
  0xf8   : > { %v1346_v25 = vpop.f32.mrf.mxu1 }
  0xf9   : > { %v1984_v40 = vadd.f32 %v1905_v48, %v1719_v22  ;;  %v1347_v52 = vadd.f32 %v1346_v25, %v5072_v24  ;;  %v626_v48 = vand.u32 15, %v464_v56  ;;  %v1442_v25 = vld [vmem:[#allocation2 + $0xaa] sm:$0xff] }
  0xfa   : > { %v2141_v20 = vpop.f32.mrf.mxu0 }
  0xfb   : > { %3637 = vmatmul.msk.bf16.gmra.mxu1 %vm5211_vm13, %v3793_v31  ;;  %3717 = vmatmul.msk.bf16.gmra.mxu2 %vm5216_vm14, %v3716_v1  ;;  %v5225_v47 = vadd.f32 %v2138_v2, %v1984_v40  ;;  %v1441_v1 = vld [vmem:[#allocation2 + $0xa2] sm:$0xff]  ;;  %vm912_vm10 = vcmp.ne.s32.totalorder %v626_v48, 15  ;;  %v1771_v40 = vld [vmem:[#allocation2 + $0xb8] sm:$0xff] }
  0xfc   : > { %3797 = vmatmul.msk.bf16.gmra.mxu3 %vm5211_vm13, %v3796_v32  ;;  %vm5235_vm13 = vmpackc.low %vm4418_vm2, %vm879_vm5  ;;  %v3719_v61 = vpack.c.bf16 %v1442_v25, %v1441_v1 }
  0xfd   : > { %5752 = vst [vmem:[#allocation13_spill] sm:$0xff] %v5225_v47  ;;  %2180 = vmatmul.bf16.gmra.mxu0 %v2056_v54  ;;  %v1770_v54 = vld [vmem:[#allocation2 + $0xb0] sm:$0xff]  ;;  %vm5240_vm14 = vmpackc.low %vm912_vm10, %vm4418_vm2 }
  0xfe   : > { %v1643_v3 = vpop.f32.mrf.mxu2  ;;  %v3799_v56 = vpack.c.bf16 %v1771_v40, %v1770_v54  ;;  %v4165_v54 = vld [vmem:[%s5645_s3 + $0x148] sm:$0xff] }
  0xff   : > { %v1720_v18 = vadd.f32 %v1643_v3, %v1347_v52  ;;  %v1908_v24 = vpop.f32.mrf.mxu3  ;;  %v5753_v52 = vmov 0  ;;  %v4189_v40 = vld [vmem:[%s5645_s3 + $0x208] sm:$0xff]  ;;  %2398 = vmatpush.bf16.msra.mxu1 %v4165_v54 }
 0x100   : > { %v1348_v55 = vpop.f32.mrf.mxu1  ;;  %v5754_v52 = vsel %vm5235_vm13, 4294967295, %v5753_v52  ;;  %3161 = vmatpush.bf16.msra.mxu0 %v4189_v40 }
 0x101   : > { %v1985_v19 = vadd.f32 %v1908_v24, %v1720_v18  ;;  %v1349_v31 = vadd.f32 %v1348_v55, %v5089_v37  ;;  %v465_v55 = vadd.s32 176, %v4906_v44 }
 0x102   : > { %v2143_v22 = vpop.f32.mrf.mxu0 }
 0x103   : > { %v5232_v2 = vadd.f32 %v2141_v20, %v1985_v19  ;;  %v5755_v20 = vmov 0 }
 0x104   : > { %v5756_v20 = vsel %vm5240_vm14, 4294967295, %v5755_v20 }
 0x106   : > { %v1645_v46 = vpop.f32.mrf.mxu2 }
 0x107   : > { %v1721_v5 = vadd.f32 %v1645_v46, %v1349_v31  ;;  %v1910_v47 = vpop.f32.mrf.mxu3 }
 0x108   : > { %v1351_v37 = vpop.f32.mrf.mxu1 }
 0x109   : > { %v1986_v3 = vadd.f32 %v1910_v47, %v1721_v5  ;;  %v1352_v18 = vadd.f32 %v1351_v37, %v5107_v62  ;;  %v4173_v62 = vld [vmem:[%s5645_s3 + $0x188] sm:$0xff]  ;;  %v1443_v37 = vld [vmem:[#allocation2 + $0xb2] sm:$0xff] }
 0x10a   : > { %v2146_v24 = vpop.f32.mrf.mxu0  ;;  %v4181_v5 = vld [vmem:[%s5645_s3 + $0x1c8] sm:$0xff]  ;;  %2663 = vmatpush.bf16.msra.mxu2 %v4173_v62 }
 0x10b   : > { %3640 = vmatmul.msk.bf16.gmra.mxu1 %vm5235_vm13, %v3796_v32  ;;  %3720 = vmatmul.msk.bf16.gmra.mxu2 %vm5240_vm14, %v3719_v61  ;;  %v5249_v46 = vadd.f32 %v2143_v22, %v1986_v3  ;;  %v466_v32 = vadd.s32 184, %v4906_v44  ;;  %v633_v22 = vand.u32 15, %v465_v55  ;;  %v1444_v3 = vld [vmem:[#allocation2 + $0xba] sm:$0xff]  ;;  %v2038_v62 = vld [vmem:[#allocation2 + $0xc9] sm:$0xff] }
 0x10c   : > { %3800 = vmatmul.msk.bf16.gmra.mxu3 %vm5235_vm13, %v3799_v56  ;;  %v2037_v55 = vld [vmem:[#allocation2 + $0xc1] sm:$0xff] }
 0x10d   : > { %2185 = vmatmul.bf16.gmra.mxu0 %v4902_v29  ;;  %2896 = vmatpush.bf16.msra.mxu3 %v4181_v5  ;;  %v640_v25 = vand.u32 15, %v466_v32  ;;  %vm881_vm5 = vcmp.ne.s32.totalorder %v633_v22, 0 }
 0x10e   : > { %v1648_v47 = vpop.f32.mrf.mxu2  ;;  %vm5272_vm13 = vmpackc.low %vm4418_vm2, %vm881_vm5 }
 0x10f   : > { %v1722_v16 = vadd.f32 %v1648_v47, %v1352_v18  ;;  %v1913_v19 = vpop.f32.mrf.mxu3  ;;  %v1772_v18 = vld [vmem:[#allocation2 + $0xc0] sm:$0xff]  ;;  %vm914_vm10 = vcmp.ne.s32.totalorder %v640_v25, 15 }
 0x110   : > { %v1353_v31 = vpop.f32.mrf.mxu1  ;;  %vm5277_vm14 = vmpackc.low %vm914_vm10, %vm4418_vm2 }
 0x111   : > { %v1987_v29 = vadd.f32 %v1913_v19, %v1722_v16  ;;  %v1354_v48 = vadd.f32 %v1353_v31, %v5130_v45  ;;  %v1773_v45 = vld [vmem:[#allocation2 + $0xc8] sm:$0xff]  ;;  %v5757_v16 = vmov 0  ;;  %v3722_v19 = vpack.c.bf16 %v1444_v3, %v1443_v37 }
 0x112   : > { %v2148_v1 = vpop.f32.mrf.mxu0  ;;  %v5758_v16 = vsel %vm5272_vm13, 4294967295, %v5757_v16  ;;  %v3802_v22 = vpack.c.bf16 %v1773_v45, %v1772_v18  ;;  %v467_v37 = vadd.s32 192, %v4906_v44  ;;  %v468_v3 = vadd.s32 200, %v4906_v44 }
 0x113   : > { %v5269_v61 = vadd.f32 %v2146_v24, %v1987_v29  ;;  %5759 = vst [vmem:[#allocation14_spill] sm:$0xff] %v5758_v16  ;;  %v5760_v24 = vmov 0  ;;  %v2058_v29 = vpack.c.bf16 %v2038_v62, %v2037_v55  ;;  %v2039_v16 = vld [vmem:[#allocation2 + $0xd1] sm:$0xff] }
 0x114   : > { %v5761_v24 = vsel %vm5277_vm14, 4294967295, %v5760_v24  ;;  %v647_v62 = vand.u32 15, %v467_v37  ;;  %v5764_v37 = vmov 0 }
 0x115   : > { %5762 = vst [vmem:[#allocation15_spill] sm:$0xff] %v5761_v24  ;;  %v2040_v24 = vld [vmem:[#allocation2 + $0xd9] sm:$0xff] }
 0x116   : > { %v1650_v5 = vpop.f32.mrf.mxu2  ;;  %vm883_vm5 = vcmp.ne.s32.totalorder %v647_v62, 0 }
 0x117   : > { %v1723_v32 = vadd.f32 %v1650_v5, %v1354_v48  ;;  %v1915_v47 = vpop.f32.mrf.mxu3 }
 0x118   : > { %v1356_v31 = vpop.f32.mrf.mxu1 }
 0x119   : > { %v1988_v25 = vadd.f32 %v1915_v47, %v1723_v32  ;;  %v1357_v54 = vadd.f32 %v1356_v31, %v5154_v34  ;;  %v654_v47 = vand.u32 15, %v468_v3  ;;  %v1446_v31 = vld [vmem:[#allocation2 + $0xca] sm:$0xff]  ;;  %v5767_v3 = vmov 0 }
 0x11a   : > { %v2151_v40 = vpop.f32.mrf.mxu0 }
 0x11b   : > { %3643 = vmatmul.msk.bf16.gmra.mxu1 %vm5272_vm13, %v3799_v56  ;;  %3723 = vmatmul.msk.bf16.gmra.mxu2 %vm5277_vm14, %v3722_v19  ;;  %v5286_v48 = vadd.f32 %v2148_v1, %v1988_v25  ;;  %v1445_v19 = vld [vmem:[#allocation2 + $0xc2] sm:$0xff]  ;;  %vm916_vm10 = vcmp.ne.s32.totalorder %v654_v47, 15  ;;  %v1775_v25 = vld [vmem:[#allocation2 + $0xd8] sm:$0xff] }
 0x11c   : > { %3803 = vmatmul.msk.bf16.gmra.mxu3 %vm5272_vm13, %v3802_v22  ;;  %vm5296_vm13 = vmpackc.low %vm4418_vm2, %vm883_vm5 }
 0x11d   : > { %5763 = vst [vmem:[#allocation16_spill] sm:$0xff] %v5286_v48  ;;  %2190 = vmatmul.bf16.gmra.mxu0 %v2058_v29  ;;  %v1774_v29 = vld [vmem:[#allocation2 + $0xd0] sm:$0xff]  ;;  %v5765_v37 = vsel %vm5296_vm13, 4294967295, %v5764_v37  ;;  %vm5301_vm14 = vmpackc.low %vm916_vm10, %vm4418_vm2 }
 0x11e   : > { %v1653_v18 = vpop.f32.mrf.mxu2  ;;  %5766 = vst [vmem:[#allocation17_spill] sm:$0xff] %v5765_v37  ;;  %v5768_v3 = vsel %vm5301_vm14, 4294967295, %v5767_v3 }
 0x11f   : > { %v1724_v45 = vadd.f32 %v1653_v18, %v1357_v54  ;;  %v1918_v34 = vpop.f32.mrf.mxu3  ;;  %5769 = vst [vmem:[#allocation18_spill] sm:$0xff] %v5768_v3 }
 0x120   : > { %v1358_v55 = vpop.f32.mrf.mxu1 }
 0x121   : > { %v1989_v5 = vadd.f32 %v1918_v34, %v1724_v45  ;;  %v1359_v56 = vadd.f32 %v1358_v55, %v5170_v50  ;;  %v3725_v50 = vpack.c.bf16 %v1446_v31, %v1445_v19  ;;  %v3805_v45 = vpack.c.bf16 %v1775_v25, %v1774_v29 }
 0x122   : > { %v2153_v32 = vpop.f32.mrf.mxu0  ;;  %v2059_v34 = vpack.c.bf16 %v2040_v24, %v2039_v16  ;;  %v469_v31 = vadd.s32 208, %v4906_v44  ;;  %v4172_v16 = vld [vmem:[%s5645_s3 + $0x180] sm:$0xff] }
 0x123   : > { %v5293_v1 = vadd.f32 %v2151_v40, %v1989_v5  ;;  %v4354_v5 = vld [vmem:[%s4475_s29 + $0x78] sm:$0xff]   ;;  %v4180_v24 = vld [vmem:[%s5645_s3 + $0x1c0] sm:$0xff]  ;;  %2664 = vmatpush.bf16.msra.mxu2 %v4172_v16 }
 0x124   : > { %v4259_v47 = vunpack.c.h.bf16 %v4354_v5  ;;  %2897 = vmatpush.bf16.msra.mxu3 %v4180_v24 }
 0x126   : > { %v1655_v54 = vpop.f32.mrf.mxu2 }
 0x127   : > { %v1725_v18 = vadd.f32 %v1655_v54, %v1359_v56  ;;  %v1920_v48 = vpop.f32.mrf.mxu3  ;;  %v4258_v56 = vunpack.c.l.bf16 %v4354_v5  ;;  %v661_v5 = vand.u32 15, %v469_v31 }
 0x128   : > { %v1361_v40 = vpop.f32.mrf.mxu1 }
 0x129   : > { %v1990_v55 = vadd.f32 %v1920_v48, %v1725_v18  ;;  %v470_v48 = vadd.s32 216, %v4906_v44  ;;  %vm885_vm5 = vcmp.ne.s32.totalorder %v661_v5, 0 }
 0x12a   : > { %v2156_v62 = vpop.f32.mrf.mxu0 }
 0x12b   : > { %3646 = vmatmul.msk.bf16.gmra.mxu1 %vm5296_vm13, %v3802_v22  ;;  %3726 = vmatmul.msk.bf16.gmra.mxu2 %vm5301_vm14, %v3725_v50  ;;  %v5310_v19 = vadd.f32 %v2153_v32, %v1990_v55  ;;  %v1362_v22 = vadd.f32 %v1361_v40, %v5018_v59  ;;  %v4406_v32 = vld [vmem:[%s5643_s1] ss:$0 sm:$0xff] }
 0x12c   : > { %3806 = vmatmul.msk.bf16.gmra.mxu3 %vm5296_vm13, %v3805_v45  ;;  %v340_v29 = vmul.f32 %v4406_v32, %v4258_v56  ;;  %v341_v25 = vmul.f32 %v4406_v32, %v4259_v47  ;;  %v4164_v56 = vld [vmem:[%s5645_s3 + $0x140] sm:$0xff]  ;;  %vm5349_vm13 = vmpackc.low %vm4418_vm2, %vm885_vm5 }
 0x12d   : > { %5770 = vst [vmem:[#allocation19_spill] sm:$0xff] %v5310_v19  ;;  %2195 = vmatmul.bf16.gmra.mxu0 %v2059_v34  ;;  %v4407_v34 = vld [vmem:[%s5644_s2] ss:$0 sm:$0xff]  ;;  %v668_v19 = vand.u32 15, %v470_v48  ;;  %2399 = vmatpush.bf16.msra.mxu1 %v4164_v56 }
 0x12e   : > { %v1658_v54 = vpop.f32.mrf.mxu2  ;;  %v5329_v55 = vadd.f32 %v4407_v34, %v340_v29  ;;  %v5331_v59 = vadd.f32 %v4407_v34, %v341_v25  ;;  %v4188_v47 = vld [vmem:[%s5645_s3 + $0x200] sm:$0xff]  ;;  %v1777_v25 = vld [vmem:[#allocation2 + $0xe8] sm:$0xff] }
 0x12f   : > { %v1726_v18 = vadd.f32 %v1658_v54, %v1362_v22  ;;  %v1923_v50 = vpop.f32.mrf.mxu3  ;;  %3162 = vmatpush.bf16.msra.mxu0 %v4188_v47  ;;  %v1447_v22 = vld [vmem:[#allocation2 + $0xd2] sm:$0xff]  ;;  %v1448_v48 = vld [vmem:[#allocation2 + $0xda] sm:$0xff]  ;;  %vm918_vm10 = vcmp.ne.s32.totalorder %v668_v19, 15  ;;  %v5775_v47 = vmov 0 }
 0x130   : > { %v1363_v40 = vpop.f32.mrf.mxu1  ;;  %v5686_v16 = vmax.f32 %v5329_v55, 0.0  ;;  %v5685_v24 = vmax.f32 %v5331_v59, 0.0  ;;  %v1776_v32 = vld [vmem:[#allocation2 + $0xe0] sm:$0xff]  ;;  %vm5356_vm14 = vmpackc.low %vm918_vm10, %vm4418_vm2 }
 0x131   : > { %v1991_v37 = vadd.f32 %v1923_v50, %v1726_v18  ;;  %v1364_v29 = vadd.f32 %v1363_v40, %v5049_v15  ;;  %v2041_v54 = vld [vmem:[#allocation2 + $0xe1] sm:$0xff]  ;;  %v2042_v18 = vld [vmem:[#allocation2 + $0xe9] sm:$0xff]  ;;  %v5776_v47 = vsel %vm5356_vm14, 4294967295, %v5775_v47  ;;  %v3808_v15 = vpack.c.bf16 %v1777_v25, %v1776_v32 }
 0x132   : > { %v2158_v3 = vpop.f32.mrf.mxu0  ;;  %440 = vst [vmem:[#allocation2 + $0x101] sm:$0xff] %v5686_v16  ;;  %v2060_v19 = vpack.c.bf16 %v2042_v18, %v2041_v54  ;;  %v472_v32 = vadd.s32 232, %v4906_v44 }
 0x133   : > { %v5343_v31 = vadd.f32 %v2156_v62, %v1991_v37  ;;  %441 = vst [vmem:[#allocation2 + $0x109] sm:$0xff] %v5685_v24  ;;  %v5772_v37 = vmov 0  ;;  %v5353_v62 = vpack.c.bf16 %v1448_v48, %v1447_v22  ;;  %v471_v22 = vadd.s32 224, %v4906_v44 }
 0x134   : > { %v5773_v37 = vsel %vm5349_vm13, 4294967295, %v5772_v37  ;;  %5777 = vst [vmem:[#allocation22_spill] sm:$0xff] %v5776_v47  ;;  %v682_v16 = vand.u32 15, %v472_v32 }
 0x135   : > { %5771 = vst [vmem:[#allocation20_spill] sm:$0xff] %v5343_v31 }
 0x136   : > { %v1660_v50 = vpop.f32.mrf.mxu2  ;;  %5774 = vst [vmem:[#allocation21_spill] sm:$0xff] %v5773_v37  ;;  %v1450_v37 = vld [vmem:[#allocation2 + $0xea] sm:$0xff]  ;;  %vm920_vm10 = vcmp.ne.s32.totalorder %v682_v16, 15 }
 0x137   : > { %v1727_v34 = vadd.f32 %v1660_v50, %v1364_v29  ;;  %v1925_v56 = vpop.f32.mrf.mxu3  ;;  %v675_v50 = vand.u32 15, %v471_v22  ;;  %v5779_v22 = vmov 0 }
 0x138   : > { %v1366_v5 = vpop.f32.mrf.mxu1 }
 0x139   : > { %v1992_v40 = vadd.f32 %v1925_v56, %v1727_v34  ;;  %v1367_v48 = vadd.f32 %v1366_v5, %v5065_v12  ;;  %vm887_vm5 = vcmp.ne.s32.totalorder %v675_v50, 0  ;;  %v1779_v12 = vld [vmem:[#allocation2 + $0xf8] sm:$0xff] }
 0x13a   : > { %v2161_v24 = vpop.f32.mrf.mxu0  ;;  %v2043_v5 = vld [vmem:[#allocation2 + $0xf1] sm:$0xff] }
 0x13b   : > { %3649 = vmatmul.msk.bf16.gmra.mxu1 %vm5349_vm13, %v3805_v45  ;;  %3729 = vmatmul.msk.bf16.gmra.mxu2 %vm5356_vm14, %v5353_v62  ;;  %v5365_v29 = vadd.f32 %v2158_v3, %v1992_v40  ;;  %v1449_v40 = vld [vmem:[#allocation2 + $0xe2] sm:$0xff]  ;;  %vm5383_vm14 = vmpackc.low %vm920_vm10, %vm4418_vm2 }
 0x13c   : > { %3809 = vmatmul.msk.bf16.gmra.mxu3 %vm5349_vm13, %v3808_v15  ;;  %vm5376_vm13 = vmpackc.low %vm4418_vm2, %vm887_vm5 }
 0x13d   : > { %5778 = vst [vmem:[#allocation23_spill] sm:$0xff] %v5365_v29  ;;  %2200 = vmatmul.bf16.gmra.mxu0 %v2060_v19  ;;  %v1778_v19 = vld [vmem:[#allocation2 + $0xf0] sm:$0xff]  ;;  %v2044_v29 = vld [vmem:[#allocation2 + $0xf9] sm:$0xff]  ;;  %v5780_v22 = vsel %vm5376_vm13, 4294967295, %v5779_v22 }
 0x13e   : > { %v1663_v25 = vpop.f32.mrf.mxu2  ;;  %5781 = vst [vmem:[#allocation24_spill] sm:$0xff] %v5780_v22  ;;  %v2061_v16 = vpack.c.bf16 %v2044_v29, %v2043_v5  ;;  %v474_v29 = vadd.s32 248, %v4906_v44  ;;  %v1780_v22 = vld [vmem:[#allocation2 + $0x100] sm:$0xff] }
 0x13f   : > { %v1728_v54 = vadd.f32 %v1663_v25, %v1367_v48  ;;  %v1928_v18 = vpop.f32.mrf.mxu3 }
 0x140   : > { %v1368_v45 = vpop.f32.mrf.mxu1 }
 0x141   : > { %v1993_v34 = vadd.f32 %v1928_v18, %v1728_v54  ;;  %v1369_v47 = vadd.f32 %v1368_v45, %v5087_v43  ;;  %v5782_v54 = vmov 0  ;;  %v3811_v43 = vpack.c.bf16 %v1779_v12, %v1778_v19 }
 0x142   : > { %v2163_v56 = vpop.f32.mrf.mxu0  ;;  %v5783_v54 = vsel %vm5383_vm14, 4294967295, %v5782_v54 }
 0x143   : > { %v5372_v3 = vadd.f32 %v2161_v24, %v1993_v34  ;;  %v5380_v24 = vpack.c.bf16 %v1450_v37, %v1449_v40  ;;  %5784 = vst [vmem:[#allocation25_spill] sm:$0xff] %v5783_v54  ;;  %v473_v37 = vadd.s32 240, %v4906_v44 }
 0x145   : > { %v689_v19 = vand.u32 15, %v473_v37 }
 0x146   : > { %v1665_v31 = vpop.f32.mrf.mxu2 }
 0x147   : > { %v1729_v48 = vadd.f32 %v1665_v31, %v1369_v47  ;;  %v1930_v25 = vpop.f32.mrf.mxu3  ;;  %vm889_vm5 = vcmp.ne.s32.totalorder %v689_v19, 0 }
 0x148   : > { %v1371_v32 = vpop.f32.mrf.mxu1 }
 0x149   : > { %v1994_v18 = vadd.f32 %v1930_v25, %v1729_v48  ;;  %v1372_v47 = vadd.f32 %v1371_v32, %v5100_v38  ;;  %v696_v48 = vand.u32 15, %v474_v29  ;;  %v1451_v25 = vld [vmem:[#allocation2 + $0xf2] sm:$0xff]  ;;  %v1781_v38 = vld [vmem:[#allocation2 + $0x108] sm:$0xff]  ;;  %v5788_v29 = vmov 0 }
 0x14a   : > { %v2166_v45 = vpop.f32.mrf.mxu0 }
 0x14b   : > { %3652 = vmatmul.msk.bf16.gmra.mxu1 %vm5376_vm13, %v3808_v15  ;;  %3732 = vmatmul.msk.bf16.gmra.mxu2 %vm5383_vm14, %v5380_v24  ;;  %v5392_v31 = vadd.f32 %v2163_v56, %v1994_v18  ;;  %v1452_v18 = vld [vmem:[#allocation2 + $0xfa] sm:$0xff]  ;;  %vm922_vm10 = vcmp.ne.s32.totalorder %v696_v48, 15 }
 0x14c   : > { %3812 = vmatmul.msk.bf16.gmra.mxu3 %vm5376_vm13, %v3811_v43  ;;  %vm5403_vm13 = vmpackc.low %vm4418_vm2, %vm889_vm5  ;;  %v5407_v37 = vpack.c.bf16 %v1452_v18, %v1451_v25 }
 0x14d   : > { %2205 = vmatmul.bf16.gmra.mxu0 %v2061_v16  ;;  %vm5410_vm14 = vmpackc.low %vm922_vm10, %vm4418_vm2  ;;  %vm5794_vm2 = vnez %v5723_v9  ;;  %v2790_v9 = vld [vmem:[#allocation2 + $0x81] sm:$0xff] }
 0x14e   : > { %v1668_v50 = vpop.f32.mrf.mxu2  ;;  %v5789_v29 = vsel %vm5410_vm14, 4294967295, %v5788_v29 }
 0x14f   : > { %v1730_v34 = vadd.f32 %v1668_v50, %v1372_v47  ;;  %v1933_v40 = vpop.f32.mrf.mxu3  ;;  %v5785_v47 = vmov 0  ;;  %5790 = vst [vmem:[#allocation27_spill] sm:$0xff] %v5789_v29  ;;  %v5791_v50 = vmax.f32 %v5329_v55, 0.0 }
 0x150   : > { %v1373_v15 = vpop.f32.mrf.mxu1  ;;  %v5786_v47 = vsel %vm5403_vm13, 4294967295, %v5785_v47 }
 0x151   : > { %v1995_v12 = vadd.f32 %v1933_v40, %v1730_v34  ;;  %v1374_v16 = vadd.f32 %v1373_v15, %v5128_v41  ;;  %5787 = vst [vmem:[#allocation26_spill] sm:$0xff] %v5786_v47  ;;  %v3814_v41 = vpack.c.bf16 %v1781_v38, %v1780_v22  ;;  %v5792_v34 = vmax.f32 %v5331_v59, 0.0 }
 0x152   : > { %v2168_v5 = vpop.f32.mrf.mxu0 }
 0x153   : > { %v5399_v56 = vadd.f32 %v2166_v45, %v1995_v12  ;;  %v2062_v40 = vpack.c.bf16 %v5792_v34, %v5791_v50  ;;  %v2779_v34 = vld [vmem:[#allocation2 + $0x29] sm:$0xff] }
 0x156   : > { %v1670_v32 = vpop.f32.mrf.mxu2 }
 0x157   : > { %v1731_v44 = vadd.f32 %v1670_v32, %v1374_v16  ;;  %v1935_v54 = vpop.f32.mrf.mxu3  ;;  %v2248_v16 = vld [vmem:[#allocation2 + $0x12] sm:$0xff]  ;;  %v2513_v32 = vld [vmem:[#allocation2 + $0x20] sm:$0xff] }
 0x158   : > { %v1376_v45 = vpop.f32.mrf.mxu1 }
 0x159   : > { %v1996_v15 = vadd.f32 %v1935_v54, %v1731_v44  ;;  %v1377_v55 = vadd.f32 %v1376_v45, %v5147_v27  ;;  %v2514_v44 = vld [vmem:[#allocation2 + $0x28] sm:$0xff] }
 0x15a   : > { %v2171_v19 = vpop.f32.mrf.mxu0 }
 0x15b   : > { %3655 = vmatmul.msk.bf16.gmra.mxu1 %vm5403_vm13, %v3811_v43  ;;  %3735 = vmatmul.msk.bf16.gmra.mxu2 %vm5410_vm14, %v5407_v37  ;;  %v5423_v12 = vadd.f32 %v2168_v5, %v1996_v15  ;;  %v2249_v43 = vld [vmem:[#allocation2 + $0x1a] sm:$0xff] }
 0x15c   : > { %3815 = vmatmul.msk.bf16.gmra.mxu3 %vm5403_vm13, %v3814_v41  ;;  %v2778_v5 = vld [vmem:[#allocation2 + $0x21] sm:$0xff] }
 0x15d   : > { %5793 = vst [vmem:[#allocation28_spill] sm:$0xff] %v5423_v12  ;;  %2210 = vmatmul.bf16.gmra.mxu0 %v2062_v40  ;;  %v3011_v41 = vld [vmem:[#allocation2 + $0x22] sm:$0xff]  ;;  %v3012_v40 = vld [vmem:[#allocation2 + $0x2a] sm:$0xff] }
 0x15e   : > { %v1673_v22 = vpop.f32.mrf.mxu2 }
 0x15f   : > { %v1732_v59 = vadd.f32 %v1673_v22, %v1377_v55  ;;  %v1938_v48 = vpop.f32.mrf.mxu3  ;;  %v3881_v55 = vpack.c.bf16 %v2249_v43, %v2248_v16  ;;  %v3961_v22 = vpack.c.bf16 %v2514_v44, %v2513_v32 }
 0x160   : > { %v1378_v54 = vpop.f32.mrf.mxu1 }
 0x161   : > { %v1997_v25 = vadd.f32 %v1938_v48, %v1732_v59  ;;  %v1379_v50 = vadd.f32 %v1378_v54, %v5168_v14  ;;  %v2810_v59 = vpack.c.bf16 %v2779_v34, %v2778_v5  ;;  %v4073_v48 = vpack.c.bf16 %v3012_v40, %v3011_v41  ;;  %v2516_v34 = vld [vmem:[#allocation2 + $0x38] sm:$0xff] }
 0x162   : > { %v2173_v18 = vpop.f32.mrf.mxu0  ;;  %v3013_v41 = vld [vmem:[#allocation2 + $0x32] sm:$0xff]  ;;  %v3014_v40 = vld [vmem:[#allocation2 + $0x3a] sm:$0xff] }
 0x163   : > { %v5428_v38 = vadd.f32 %v2171_v19, %v1997_v25 }
 0x166   : > { %v1675_v15 = vpop.f32.mrf.mxu2 }
 0x167   : > { %v1733_v27 = vadd.f32 %v1675_v15, %v1379_v50  ;;  %v1940_v45 = vpop.f32.mrf.mxu3  ;;  %v2515_v50 = vld [vmem:[#allocation2 + $0x30] sm:$0xff] }
 0x168   : > { %v1381_v47 = vpop.f32.mrf.mxu1 }
 0x169   : > { %v1998_v29 = vadd.f32 %v1940_v45, %v1733_v27  ;;  %v1382_v19 = vadd.f32 %v1381_v47, %v5042_v58  ;;  %v3964_v58 = vpack.c.bf16 %v2516_v34, %v2515_v50  ;;  %v2518_v34 = vld [vmem:[#allocation2 + $0x48] sm:$0xff] }
 0x16a   : > { %v2176_v12 = vpop.f32.mrf.mxu0 }
 0x16b   : > { %3882 = vmatmul.msk.bf16.vlgmr.msra.gmra.mxu1 %vm4919_vm4, %v3881_v55  ;;  %3962 = vmatmul.msk.bf16.vlgmr.msra.gmra.mxu2 %vm4914_vm3, %v3961_v22  ;;  %v5435_v14 = vadd.f32 %v2173_v18, %v1998_v29  ;;  %v2781_v18 = vld [vmem:[#allocation2 + $0x39] sm:$0xff]  ;;  %v4076_v55 = vpack.c.bf16 %v3014_v40, %v3013_v41  ;;  %vm5795_vm3 = vnez %v5729_v60 }
 0x16c   : > { %2898 = vmatmul.bf16.vlgmr.msra.gmra.mxu3 %v2810_v59  ;;  %v2811_v45 = vpack.c.bf16 %v2781_v18, %v2780_v51  ;;  %v2783_v51 = vld [vmem:[#allocation2 + $0x49] sm:$0xff] }
 0x16d   : > { %4074 = vmatmul.msk.bf16.vlgmr.msra.gmra.mxu0 %vm4919_vm4, %v4073_v48  ;;  %v3016_v18 = vld [vmem:[#allocation2 + $0x4a] sm:$0xff]  ;;  %vm5796_vm4 = vnez %v5727_v33 }
 0x16e   : > { %v1678_v54 = vpop.f32.mrf.mxu2  ;;  %v2792_v33 = vld [vmem:[#allocation2 + $0x91] sm:$0xff] }
 0x16f   : > { %v1734_v25 = vadd.f32 %v1678_v54, %v1382_v19  ;;  %v1943_v16 = vpop.f32.mrf.mxu3 }
 0x170   : > { %v1383_v43 = vpop.f32.mrf.mxu1 }
 0x171   : > { %v1999_v32 = vadd.f32 %v1943_v16, %v1734_v25  ;;  %v1384_v29 = vadd.f32 %v1383_v43, %v5056_v7 }
 0x172   : > { %v2178_v44 = vpop.f32.mrf.mxu0 }
 0x173   : > { %v5440_v5 = vadd.f32 %v2176_v12, %v1999_v32 }
 0x176   : > { %v1680_v57 = vpop.f32.mrf.mxu2 }
 0x177   : > { %v1735_v15 = vadd.f32 %v1680_v57, %v1384_v29  ;;  %v1945_v27 = vpop.f32.mrf.mxu3  ;;  %v3015_v29 = vld [vmem:[#allocation2 + $0x42] sm:$0xff] }
 0x178   : > { %v1386_v47 = vpop.f32.mrf.mxu1 }
 0x179   : > { %v2000_v22 = vadd.f32 %v1945_v27, %v1735_v15  ;;  %v1387_v7 = vadd.f32 %v1386_v47, %v5083_v39  ;;  %v2812_v15 = vpack.c.bf16 %v2783_v51, %v2782_v23  ;;  %v4079_v27 = vpack.c.bf16 %v3016_v18, %v3015_v29  ;;  %v3018_v23 = vld [vmem:[#allocation2 + $0x5a] sm:$0xff] }
 0x17a   : > { %v2181_v59 = vpop.f32.mrf.mxu0 }
 0x17b   : > { %3885 = vmatmul.msk.bf16.gmra.mxu1 %vm4950_vm8, %v4073_v48  ;;  %3965 = vmatmul.msk.bf16.gmra.mxu2 %vm4945_vm7, %v3964_v58  ;;  %v5447_v12 = vadd.f32 %v2178_v44, %v2000_v22  ;;  %v2517_v48 = vld [vmem:[#allocation2 + $0x40] sm:$0xff] }
 0x17c   : > { %2903 = vmatmul.bf16.gmra.mxu3 %v2811_v45  ;;  %v3967_v39 = vpack.c.bf16 %v2518_v34, %v2517_v48  ;;  %v2785_v48 = vld [vmem:[#allocation2 + $0x59] sm:$0xff] }
 0x17d   : > { %4077 = vmatmul.msk.bf16.gmra.mxu0 %vm4950_vm8, %v4076_v55  ;;  %v3017_v34 = vld [vmem:[#allocation2 + $0x52] sm:$0xff]  ;;  %v2813_v18 = vpack.c.bf16 %v2785_v48, %v2784_v17 }
 0x17e   : > { %v1683_v19 = vpop.f32.mrf.mxu2 }
 0x17f   : > { %v1736_v54 = vadd.f32 %v1683_v19, %v1387_v7  ;;  %v1948_v25 = vpop.f32.mrf.mxu3 }
 0x180   : > { %v1388_v16 = vpop.f32.mrf.mxu1 }
 0x181   : > { %v2001_v43 = vadd.f32 %v1948_v25, %v1736_v54  ;;  %v1389_v44 = vadd.f32 %v1388_v16, %v5091_v21 }
 0x182   : > { %v2183_v32 = vpop.f32.mrf.mxu0 }
 0x183   : > { %v5452_v50 = vadd.f32 %v2181_v59, %v2001_v43  ;;  %v2520_v43 = vld [vmem:[#allocation2 + $0x58] sm:$0xff] }
 0x186   : > { %v1685_v53 = vpop.f32.mrf.mxu2 }
 0x187   : > { %v1737_v41 = vadd.f32 %v1685_v53, %v1389_v44  ;;  %v1950_v40 = vpop.f32.mrf.mxu3  ;;  %v4082_v53 = vpack.c.bf16 %v3018_v23, %v3017_v34 }
 0x188   : > { %v1391_v57 = vpop.f32.mrf.mxu1 }
 0x189   : > { %v2002_v58 = vadd.f32 %v1950_v40, %v1737_v41  ;;  %v1392_v21 = vadd.f32 %v1391_v57, %v5124_v0 }
 0x18a   : > { %v2186_v47 = vpop.f32.mrf.mxu0 }
 0x18b   : > { %3888 = vmatmul.msk.bf16.gmra.mxu1 %vm4969_vm12, %v4076_v55  ;;  %3968 = vmatmul.msk.bf16.gmra.mxu2 %vm4964_vm11, %v3967_v39  ;;  %v5459_v45 = vadd.f32 %v2183_v32, %v2002_v58  ;;  %v2519_v55 = vld [vmem:[#allocation2 + $0x50] sm:$0xff] }
 0x18c   : > { %2908 = vmatmul.bf16.gmra.mxu3 %v2812_v15  ;;  %v3970_v0 = vpack.c.bf16 %v2520_v43, %v2519_v55  ;;  %v3020_v55 = vld [vmem:[#allocation2 + $0x6a] sm:$0xff] }
 0x18d   : > { %4080 = vmatmul.msk.bf16.gmra.mxu0 %vm4969_vm12, %v4079_v27 }
 0x18e   : > { %v1688_v22 = vpop.f32.mrf.mxu2 }
 0x18f   : > { %v1738_v59 = vadd.f32 %v1688_v22, %v1392_v21  ;;  %v1953_v7 = vpop.f32.mrf.mxu3 }
 0x190   : > { %v1393_v19 = vpop.f32.mrf.mxu1 }
 0x191   : > { %v2003_v54 = vadd.f32 %v1953_v7, %v1738_v59  ;;  %v1394_v32 = vadd.f32 %v1393_v19, %v5138_v11  ;;  %v2522_v7 = vld [vmem:[#allocation2 + $0x68] sm:$0xff] }
 0x192   : > { %v2188_v25 = vpop.f32.mrf.mxu0 }
 0x193   : > { %v5464_v16 = vadd.f32 %v2186_v47, %v2003_v54  ;;  %v2787_v54 = vld [vmem:[#allocation2 + $0x69] sm:$0xff] }
 0x194   : > { %v2814_v48 = vpack.c.bf16 %v2787_v54, %v2786_v30 }
 0x196   : > { %v1690_v26 = vpop.f32.mrf.mxu2 }
 0x197   : > { %v1739_v44 = vadd.f32 %v1690_v26, %v1394_v32  ;;  %v1955_v51 = vpop.f32.mrf.mxu3 }
 0x198   : > { %v1396_v29 = vpop.f32.mrf.mxu1 }
 0x199   : > { %v2004_v41 = vadd.f32 %v1955_v51, %v1739_v44  ;;  %v1397_v11 = vadd.f32 %v1396_v29, %v5164_v63 }
 0x19a   : > { %v2191_v40 = vpop.f32.mrf.mxu0 }
 0x19b   : > { %3891 = vmatmul.msk.bf16.gmra.mxu1 %vm5000_vm0, %v4079_v27  ;;  %3971 = vmatmul.msk.bf16.gmra.mxu2 %vm4995_vm15, %v3970_v0  ;;  %v5471_v39 = vadd.f32 %v2188_v25, %v2004_v41  ;;  %v2521_v27 = vld [vmem:[#allocation2 + $0x60] sm:$0xff] }
 0x19c   : > { %2913 = vmatmul.bf16.gmra.mxu3 %v2813_v18  ;;  %v3019_v25 = vld [vmem:[#allocation2 + $0x62] sm:$0xff]  ;;  %v3973_v63 = vpack.c.bf16 %v2522_v7, %v2521_v27 }
 0x19d   : > { %4083 = vmatmul.msk.bf16.gmra.mxu0 %vm5000_vm0, %v4082_v53  ;;  %v4085_v34 = vpack.c.bf16 %v3020_v55, %v3019_v25 }
 0x19e   : > { %v1693_v57 = vpop.f32.mrf.mxu2 }
 0x19f   : > { %v1740_v15 = vadd.f32 %v1693_v57, %v1397_v11  ;;  %v1958_v58 = vpop.f32.mrf.mxu3  ;;  %v2524_v57 = vld [vmem:[#allocation2 + $0x78] sm:$0xff] }
 0x1a0   : > { %v1398_v47 = vpop.f32.mrf.mxu1 }
 0x1a1   : > { %v2005_v21 = vadd.f32 %v1958_v58, %v1740_v15  ;;  %v1399_v19 = vadd.f32 %v1398_v47, %v5172_v4  ;;  %v2789_v58 = vld [vmem:[#allocation2 + $0x79] sm:$0xff] }
 0x1a2   : > { %v2193_v22 = vpop.f32.mrf.mxu0  ;;  %v3021_v47 = vld [vmem:[#allocation2 + $0x72] sm:$0xff]  ;;  %v2815_v30 = vpack.c.bf16 %v2789_v58, %v2788_v49 }
 0x1a3   : > { %v5476_v59 = vadd.f32 %v2191_v40, %v2005_v21  ;;  %v3022_v21 = vld [vmem:[#allocation2 + $0x7a] sm:$0xff] }
 0x1a6   : > { %v1695_v28 = vpop.f32.mrf.mxu2 }
 0x1a7   : > { %v1741_v43 = vadd.f32 %v1695_v28, %v1399_v19  ;;  %v1960_v17 = vpop.f32.mrf.mxu3  ;;  %v4088_v19 = vpack.c.bf16 %v3022_v21, %v3021_v47 }
 0x1a8   : > { %v1401_v32 = vpop.f32.mrf.mxu1 }
 0x1a9   : > { %v2006_v23 = vadd.f32 %v1960_v17, %v1741_v43  ;;  %v1402_v4 = vadd.f32 %v1401_v32, %v5044_v13 }
 0x1aa   : > { %v2196_v26 = vpop.f32.mrf.mxu0 }
 0x1ab   : > { %3894 = vmatmul.msk.bf16.gmra.mxu1 %vm5021_vm9, %v4082_v53  ;;  %3974 = vmatmul.msk.bf16.gmra.mxu2 %vm5014_vm6, %v3973_v63  ;;  %v5483_v44 = vadd.f32 %v2193_v22, %v2006_v23  ;;  %v2523_v53 = vld [vmem:[#allocation2 + $0x70] sm:$0xff]  ;;  %vm5814_vm6 = vnez %v5756_v20 }
 0x1ac   : > { %2918 = vmatmul.bf16.gmra.mxu3 %v2814_v48  ;;  %v3976_v13 = vpack.c.bf16 %v2524_v57, %v2523_v53  ;;  %v5816_v20 = vld [vmem:[#allocation16_spill] sm:$0xff] }
 0x1ad   : > { %4086 = vmatmul.msk.bf16.gmra.mxu0 %vm5021_vm9, %v4085_v34  ;;  %vm5815_vm9 = vnez %v5754_v52  ;;  %v2535_v52 = vld [vmem:[#allocation2 + $0xd0] sm:$0xff] }
 0x1ae   : > { %v1698_v51 = vpop.f32.mrf.mxu2 }
 0x1af   : > { %v1742_v0 = vadd.f32 %v1698_v51, %v1402_v4  ;;  %v1963_v29 = vpop.f32.mrf.mxu3  ;;  %v2791_v51 = vld [vmem:[#allocation2 + $0x89] sm:$0xff] }
 0x1b0   : > { %v1403_v18 = vpop.f32.mrf.mxu1  ;;  %v2816_v53 = vpack.c.bf16 %v2791_v51, %v2790_v9  ;;  %v5800_v51 = vld [vmem:[#allocation4_spill] sm:$0xff] }
 0x1b1   : > { %v2007_v41 = vadd.f32 %v1963_v29, %v1742_v0  ;;  %v1404_v15 = vadd.f32 %v1403_v18, %v5058_v8  ;;  %v3023_v0 = vld [vmem:[#allocation2 + $0x82] sm:$0xff]  ;;  %v3024_v29 = vld [vmem:[#allocation2 + $0x8a] sm:$0xff]  ;;  %vm5801_vm8 = vnez %v5800_v51 }
 0x1b2   : > { %v2198_v40 = vpop.f32.mrf.mxu0  ;;  %v4091_v57 = vpack.c.bf16 %v3024_v29, %v3023_v0  ;;  %v5802_v29 = vld [vmem:[#allocation6_spill] sm:$0xff] }
 0x1b3   : > { %v5488_v11 = vadd.f32 %v2196_v26, %v2007_v41  ;;  %v2526_v26 = vld [vmem:[#allocation2 + $0x88] sm:$0xff] }
 0x1b6   : > { %v1700_v35 = vpop.f32.mrf.mxu2 }
 0x1b7   : > { %v1743_v22 = vadd.f32 %v1700_v35, %v1404_v15  ;;  %v1965_v27 = vpop.f32.mrf.mxu3 }
 0x1b8   : > { %v1406_v7 = vpop.f32.mrf.mxu1 }
 0x1b9   : > { %v2008_v54 = vadd.f32 %v1965_v27, %v1743_v22  ;;  %v1407_v8 = vadd.f32 %v1406_v7, %v5085_v42 }
 0x1ba   : > { %v2201_v25 = vpop.f32.mrf.mxu0 }
 0x1bb   : > { %3897 = vmatmul.msk.bf16.gmra.mxu1 %vm5068_vm1, %v4085_v34  ;;  %3977 = vmatmul.msk.bf16.gmra.mxu2 %vm5794_vm2, %v3976_v13  ;;  %v5495_v55 = vadd.f32 %v2198_v40, %v2008_v54  ;;  %v2525_v34 = vld [vmem:[#allocation2 + $0x80] sm:$0xff]  ;;  %v5797_v54 = vld [vmem:[#allocation3_spill] sm:$0xff] }
 0x1bc   : > { %2923 = vmatmul.bf16.gmra.mxu3 %v2815_v30  ;;  %v3979_v42 = vpack.c.bf16 %v2526_v26, %v2525_v34  ;;  %v2527_v30 = vld [vmem:[#allocation2 + $0x90] sm:$0xff] }
 0x1bd   : > { %4089 = vmatmul.msk.bf16.gmra.mxu0 %vm5068_vm1, %v4088_v19 }
 0x1be   : > { %v1703_v28 = vpop.f32.mrf.mxu2 }
 0x1bf   : > { %v1744_v43 = vadd.f32 %v1703_v28, %v1407_v8  ;;  %v1968_v17 = vpop.f32.mrf.mxu3  ;;  %v2793_v8 = vld [vmem:[#allocation2 + $0x99] sm:$0xff] }
 0x1c0   : > { %v1408_v63 = vpop.f32.mrf.mxu1  ;;  %v3025_v28 = vld [vmem:[#allocation2 + $0x92] sm:$0xff] }
 0x1c1   : > { %v2009_v32 = vadd.f32 %v1968_v17, %v1744_v43  ;;  %v1409_v4 = vadd.f32 %v1408_v63, %v5093_v36  ;;  %v3026_v43 = vld [vmem:[#allocation2 + $0x9a] sm:$0xff] }
 0x1c2   : > { %v2203_v48 = vpop.f32.mrf.mxu0  ;;  %v4094_v34 = vpack.c.bf16 %v3026_v43, %v3025_v28 }
 0x1c3   : > { %v5500_v23 = vadd.f32 %v2201_v25, %v2009_v32 }
 0x1c6   : > { %v1705_v10 = vpop.f32.mrf.mxu2 }
 0x1c7   : > { %v1745_v18 = vadd.f32 %v1705_v10, %v1409_v4  ;;  %v1970_v41 = vpop.f32.mrf.mxu3  ;;  %v5798_v4 = vld [vmem:[#allocation5_spill] sm:$0xff] }
 0x1c8   : > { %v1411_v40 = vpop.f32.mrf.mxu1  ;;  %vm5799_vm7 = vnez %v5798_v4 }
 0x1c9   : > { %v2010_v49 = vadd.f32 %v1970_v41, %v1745_v18  ;;  %v1412_v36 = vadd.f32 %v1411_v40, %v5126_v6 }
 0x1ca   : > { %v2206_v15 = vpop.f32.mrf.mxu0 }
 0x1cb   : > { %3900 = vmatmul.msk.bf16.gmra.mxu1 %vm5795_vm3, %v4088_v19  ;;  %3980 = vmatmul.msk.bf16.gmra.mxu2 %vm5796_vm4, %v3979_v42  ;;  %v5507_v58 = vadd.f32 %v2203_v48, %v2010_v49  ;;  %v2528_v19 = vld [vmem:[#allocation2 + $0x98] sm:$0xff]  ;;  %v2817_v48 = vpack.c.bf16 %v2793_v8, %v2792_v33 }
 0x1cc   : > { %2928 = vmatmul.bf16.gmra.mxu3 %v2816_v53  ;;  %v3982_v6 = vpack.c.bf16 %v2528_v19, %v2527_v30 }
 0x1cd   : > { %4092 = vmatmul.msk.bf16.gmra.mxu0 %vm5795_vm3, %v4091_v57 }
 0x1ce   : > { %v1708_v47 = vpop.f32.mrf.mxu2 }
 0x1cf   : > { %v1746_v21 = vadd.f32 %v1708_v47, %v1412_v36  ;;  %v1973_v35 = vpop.f32.mrf.mxu3  ;;  %v2530_v36 = vld [vmem:[#allocation2 + $0xa8] sm:$0xff] }
 0x1d0   : > { %v1413_v22 = vpop.f32.mrf.mxu1  ;;  %v2794_v47 = vld [vmem:[#allocation2 + $0xa1] sm:$0xff] }
 0x1d1   : > { %v2011_v27 = vadd.f32 %v1973_v35, %v1746_v21  ;;  %v1414_v25 = vadd.f32 %v1413_v22, %v5797_v54  ;;  %v5803_v21 = vld [vmem:[#allocation7_spill] sm:$0xff] }
 0x1d2   : > { %v2208_v13 = vpop.f32.mrf.mxu0  ;;  %v2795_v22 = vld [vmem:[#allocation2 + $0xa9] sm:$0xff] }
 0x1d3   : > { %v5512_v7 = vadd.f32 %v2206_v15, %v2011_v27  ;;  %v3027_v27 = vld [vmem:[#allocation2 + $0xa2] sm:$0xff]  ;;  %v2818_v8 = vpack.c.bf16 %v2795_v22, %v2794_v47 }
 0x1d6   : > { %v1710_v60 = vpop.f32.mrf.mxu2 }
 0x1d7   : > { %v1747_v17 = vadd.f32 %v1710_v60, %v1414_v25  ;;  %v1975_v63 = vpop.f32.mrf.mxu3 }
 0x1d8   : > { %v1416_v32 = vpop.f32.mrf.mxu1 }
 0x1d9   : > { %v2012_v26 = vadd.f32 %v1975_v63, %v1747_v17  ;;  %v1417_v10 = vadd.f32 %v1416_v32, %v5802_v29  ;;  %v5804_v17 = vld [vmem:[#allocation9_spill] sm:$0xff]  ;;  %v5806_v63 = vld [vmem:[#allocation8_spill] sm:$0xff]  ;;  %v5808_v32 = vld [vmem:[#allocation10_spill] sm:$0xff] }
 0x1da   : > { %v2211_v9 = vpop.f32.mrf.mxu0  ;;  %vm5805_vm11 = vnez %v5804_v17  ;;  %vm5807_vm12 = vnez %v5806_v63 }
 0x1db   : > { %3903 = vmatmul.msk.bf16.gmra.mxu1 %vm5799_vm7, %v4091_v57  ;;  %3983 = vmatmul.msk.bf16.gmra.mxu2 %vm5801_vm8, %v3982_v6  ;;  %v5519_v0 = vadd.f32 %v2208_v13, %v2012_v26  ;;  %v2529_v57 = vld [vmem:[#allocation2 + $0xa0] sm:$0xff]  ;;  %v3028_v13 = vld [vmem:[#allocation2 + $0xaa] sm:$0xff] }
 0x1dc   : > { %2933 = vmatmul.bf16.gmra.mxu3 %v2817_v48  ;;  %v3985_v54 = vpack.c.bf16 %v2530_v36, %v2529_v57  ;;  %v4097_v28 = vpack.c.bf16 %v3028_v13, %v3027_v27  ;;  %v3030_v57 = vld [vmem:[#allocation2 + $0xba] sm:$0xff] }
 0x1dd   : > { %4095 = vmatmul.msk.bf16.gmra.mxu0 %vm5799_vm7, %v4094_v34 }
 0x1de   : > { %v1713_v18 = vpop.f32.mrf.mxu2 }
 0x1df   : > { %v1748_v41 = vadd.f32 %v1713_v18, %v1417_v10  ;;  %v1978_v42 = vpop.f32.mrf.mxu3  ;;  %v2531_v18 = vld [vmem:[#allocation2 + $0xb0] sm:$0xff] }
 0x1e0   : > { %v1418_v40 = vpop.f32.mrf.mxu1 }
 0x1e1   : > { %v2013_v53 = vadd.f32 %v1978_v42, %v1748_v41  ;;  %v1419_v35 = vadd.f32 %v1418_v40, %v5803_v21  ;;  %v2532_v41 = vld [vmem:[#allocation2 + $0xb8] sm:$0xff] }
 0x1e2   : > { %v2213_v49 = vpop.f32.mrf.mxu0  ;;  %v5809_v42 = vld [vmem:[#allocation13_spill] sm:$0xff] }
 0x1e3   : > { %v5524_v15 = vadd.f32 %v2211_v9, %v2013_v53  ;;  %v2797_v53 = vld [vmem:[#allocation2 + $0xb9] sm:$0xff] }
 0x1e6   : > { %v1715_v30 = vpop.f32.mrf.mxu2 }
 0x1e7   : > { %v1749_v19 = vadd.f32 %v1715_v30, %v1419_v35  ;;  %v1980_v33 = vpop.f32.mrf.mxu3  ;;  %v3988_v35 = vpack.c.bf16 %v2532_v41, %v2531_v18  ;;  %v2533_v18 = vld [vmem:[#allocation2 + $0xc0] sm:$0xff]  ;;  %v2534_v41 = vld [vmem:[#allocation2 + $0xc8] sm:$0xff] }
 0x1e8   : > { %v2401_v25 = vpop.f32.mrf.mxu1 }
 0x1e9   : > { %v2014_v43 = vadd.f32 %v1980_v33, %v1749_v19  ;;  %v2481_v48 = vadd.f32 %v2401_v25, %v5808_v32  ;;  %v5810_v25 = vld [vmem:[#allocation12_spill] sm:$0xff] }
 0x1ea   : > { %v3164_v60 = vpop.f32.mrf.mxu0  ;;  %vm5811_vm15 = vnez %v5810_v25 }
 0x1eb   : > { %3906 = vmatmul.msk.bf16.gmra.mxu1 %vm5805_vm11, %v4094_v34  ;;  %3986 = vmatmul.msk.bf16.gmra.mxu2 %vm5807_vm12, %v3985_v54  ;;  %v5531_v6 = vadd.f32 %v2213_v49, %v2014_v43  ;;  %v2796_v34 = vld [vmem:[#allocation2 + $0xb1] sm:$0xff] }
 0x1ec   : > { %2938 = vmatmul.bf16.gmra.mxu3 %v2818_v8  ;;  %v3029_v49 = vld [vmem:[#allocation2 + $0xb2] sm:$0xff]  ;;  %v2819_v13 = vpack.c.bf16 %v2797_v53, %v2796_v34  ;;  %v5812_v8 = vld [vmem:[#allocation11_spill] sm:$0xff] }
 0x1ed   : > { %4098 = vmatmul.msk.bf16.gmra.mxu0 %vm5805_vm11, %v4097_v28  ;;  %v4100_v30 = vpack.c.bf16 %v3030_v57, %v3029_v49  ;;  %vm5813_vm0 = vnez %v5812_v8  ;;  %v2798_v34 = vld [vmem:[#allocation2 + $0xc1] sm:$0xff]  ;;  %v2799_v49 = vld [vmem:[#allocation2 + $0xc9] sm:$0xff] }
 0x1ee   : > { %v2666_v26 = vpop.f32.mrf.mxu2  ;;  %v3031_v57 = vld [vmem:[#allocation2 + $0xc2] sm:$0xff] }
 0x1ef   : > { %v2899_v9 = vpop.f32.mrf.mxu3  ;;  %v2746_v4 = vadd.f32 %v2666_v26, %v2481_v48 }
 0x1f0   : > { %v2403_v51 = vpop.f32.mrf.mxu1 }
 0x1f1   : > { %v2979_v10 = vadd.f32 %v2899_v9, %v2746_v4  ;;  %v2482_v40 = vadd.f32 %v2403_v51, %v5809_v42 }
 0x1f2   : > { %v3166_v29 = vpop.f32.mrf.mxu0 }
 0x1f3   : > { %v3244_v22 = vadd.f32 %v3164_v60, %v2979_v10 }
 0x1f5   : > { %v3378_v43 = vmul.f32 %v3244_v22, %v3244_v22 }
 0x1f6   : > { %v2668_v36 = vpop.f32.mrf.mxu2 }
 0x1f7   : > { %v2747_v47 = vadd.f32 %v2668_v36, %v2482_v40  ;;  %v2901_v21 = vpop.f32.mrf.mxu3  ;;  %v3032_v36 = vld [vmem:[#allocation2 + $0xca] sm:$0xff] }
 0x1f8   : > { %v2406_v27 = vpop.f32.mrf.mxu1 }
 0x1f9   : > { %v2980_v19 = vadd.f32 %v2901_v21, %v2747_v47 }
 0x1fa   : > { %v3169_v33 = vpop.f32.mrf.mxu0 }
 0x1fb   : > { %v3245_v54 = vadd.f32 %v3166_v29, %v2980_v19  ;;  %3909 = vmatmul.msk.bf16.gmra.mxu1 %vm5811_vm15, %v4097_v28  ;;  %3989 = vmatmul.msk.bf16.gmra.mxu2 %vm5813_vm0, %v3988_v35  ;;  %v2483_v28 = vadd.f32 %v2406_v27, %v5232_v2  ;;  %v4103_v19 = vpack.c.bf16 %v3032_v36, %v3031_v57 }
 0x1fc   : > { %2943 = vmatmul.bf16.gmra.mxu3 %v2819_v13  ;;  %v2820_v13 = vpack.c.bf16 %v2799_v49, %v2798_v34 }
 0x1fd   : > { %4101 = vmatmul.msk.bf16.gmra.mxu0 %vm5811_vm15, %v4100_v30  ;;  %v4263_v60 = vpack.c.bf16 %v3245_v54, %v3244_v22  ;;  %v3340_v17 = vadd.f32 %v3245_v54, %v3244_v22  ;;  %v3379_v63 = vmul.f32 %v3245_v54, %v3245_v54  ;;  %v3991_v22 = vpack.c.bf16 %v2534_v41, %v2533_v18  ;;  %v2801_v41 = vld [vmem:[#allocation2 + $0xd9] sm:$0xff] }
 0x1fe   : > { %v2671_v32 = vpop.f32.mrf.mxu2 }
 0x1ff   : > { %4264 = vst [vmem:[%s5546_s30] sm:$0xff] %v4263_v60   ;;  %v3410_v48 = vadd.f32 %v3379_v63, %v3378_v43  ;;  %v2748_v26 = vadd.f32 %v2671_v32, %v2483_v28  ;;  %v2904_v9 = vpop.f32.mrf.mxu3 }
 0x200   : > { %v2408_v4 = vpop.f32.mrf.mxu1 }
 0x201   : > { %v2981_v51 = vadd.f32 %v2904_v9, %v2748_v26  ;;  %v2484_v53 = vadd.f32 %v2408_v4, %v5249_v46  ;;  %v2536_v4 = vld [vmem:[#allocation2 + $0xd8] sm:$0xff] }
 0x202   : > { %v3171_v29 = vpop.f32.mrf.mxu0 }
 0x203   : > { %v3246_v10 = vadd.f32 %v3169_v33, %v2981_v51 }
 0x205   : > { %v3341_v42 = vadd.f32 %v3340_v17, %v3246_v10  ;;  %v3380_v40 = vmul.f32 %v3246_v10, %v3246_v10 }
 0x206   : > { %v2673_v2 = vpop.f32.mrf.mxu2 }
 0x207   : > { %v3411_v47 = vadd.f32 %v3410_v48, %v3380_v40  ;;  %v2749_v21 = vadd.f32 %v2673_v2, %v2484_v53  ;;  %v2906_v35 = vpop.f32.mrf.mxu3  ;;  %v3994_v53 = vpack.c.bf16 %v2536_v4, %v2535_v52  ;;  %v2802_v52 = vld [vmem:[#allocation2 + $0xe1] sm:$0xff]  ;;  %v2803_v4 = vld [vmem:[#allocation2 + $0xe9] sm:$0xff] }
 0x208   : > { %v2411_v27 = vpop.f32.mrf.mxu1 }
 0x209   : > { %v2982_v33 = vadd.f32 %v2906_v35, %v2749_v21  ;;  %v2485_v60 = vadd.f32 %v2411_v27, %v5269_v61  ;;  %v5817_v21 = vld [vmem:[#allocation15_spill] sm:$0xff]  ;;  %v5819_v35 = vld [vmem:[#allocation14_spill] sm:$0xff] }
 0x20a   : > { %v3174_v54 = vpop.f32.mrf.mxu0  ;;  %vm5818_vm1 = vnez %v5817_v21  ;;  %vm5820_vm5 = vnez %v5819_v35 }
 0x20b   : > { %v3247_v25 = vadd.f32 %v3171_v29, %v2982_v33  ;;  %3912 = vmatmul.msk.bf16.gmra.mxu1 %vm5814_vm6, %v4100_v30  ;;  %3992 = vmatmul.msk.bf16.gmra.mxu2 %vm5815_vm9, %v3991_v22 }
 0x20c   : > { %2948 = vmatmul.bf16.gmra.mxu3 %v2820_v13 }
 0x20d   : > { %4104 = vmatmul.msk.bf16.gmra.mxu0 %vm5814_vm6, %v4103_v19  ;;  %v4268_v46 = vpack.c.bf16 %v3247_v25, %v3246_v10  ;;  %v3342_v8 = vadd.f32 %v3341_v42, %v3247_v25  ;;  %v3381_v43 = vmul.f32 %v3247_v25, %v3247_v25  ;;  %v2800_v10 = vld [vmem:[#allocation2 + $0xd1] sm:$0xff] }
 0x20e   : > { %v2676_v17 = vpop.f32.mrf.mxu2  ;;  %v2821_v57 = vpack.c.bf16 %v2801_v41, %v2800_v10 }
 0x20f   : > { %4355 = vst [vmem:[%s5546_s30 + $0x8] sm:$0xff] %v4268_v46   ;;  %v3412_v63 = vadd.f32 %v3411_v47, %v3381_v43  ;;  %v2750_v28 = vadd.f32 %v2676_v17, %v2485_v60  ;;  %v2909_v32 = vpop.f32.mrf.mxu3 }
 0x210   : > { %v2413_v48 = vpop.f32.mrf.mxu1 }
 0x211   : > { %v2983_v26 = vadd.f32 %v2909_v32, %v2750_v28  ;;  %v2486_v18 = vadd.f32 %v2413_v48, %v5816_v20  ;;  %v2273_v28 = vld [vmem:[#allocation2 + $0xda] sm:$0xff]  ;;  %v2538_v48 = vld [vmem:[#allocation2 + $0xe8] sm:$0xff] }
 0x212   : > { %v3176_v30 = vpop.f32.mrf.mxu0  ;;  %v2537_v32 = vld [vmem:[#allocation2 + $0xe0] sm:$0xff] }
 0x213   : > { %v3248_v9 = vadd.f32 %v3174_v54, %v2983_v26  ;;  %v3997_v10 = vpack.c.bf16 %v2538_v48, %v2537_v32  ;;  %v2804_v32 = vld [vmem:[#allocation2 + $0xf1] sm:$0xff]  ;;  %v2805_v48 = vld [vmem:[#allocation2 + $0xf9] sm:$0xff] }
 0x215   : > { %v3343_v51 = vadd.f32 %v3342_v8, %v3248_v9  ;;  %v3382_v29 = vmul.f32 %v3248_v9, %v3248_v9 }
 0x216   : > { %v2678_v34 = vpop.f32.mrf.mxu2 }
 0x217   : > { %v3413_v42 = vadd.f32 %v3412_v63, %v3382_v29  ;;  %v2751_v61 = vadd.f32 %v2678_v34, %v2486_v18  ;;  %v2911_v40 = vpop.f32.mrf.mxu3  ;;  %v2272_v63 = vld [vmem:[#allocation2 + $0xd2] sm:$0xff]  ;;  %v2822_v34 = vpack.c.bf16 %v2803_v4, %v2802_v52 }
 0x218   : > { %v2416_v49 = vpop.f32.mrf.mxu1  ;;  %v3917_v18 = vpack.c.bf16 %v2273_v28, %v2272_v63 }
 0x219   : > { %v2984_v36 = vadd.f32 %v2911_v40, %v2751_v61  ;;  %v2487_v33 = vadd.f32 %v2416_v49, %v5293_v1  ;;  %v5824_v49 = vld [vmem:[#allocation17_spill] sm:$0xff] }
 0x21a   : > { %v3179_v2 = vpop.f32.mrf.mxu0  ;;  %vm5825_vm2 = vnez %v5824_v49 }
 0x21b   : > { %v3249_v47 = vadd.f32 %v3176_v30, %v2984_v36  ;;  %3915 = vmatmul.msk.bf16.gmra.mxu1 %vm5818_vm1, %v4103_v19  ;;  %3995 = vmatmul.msk.bf16.gmra.mxu2 %vm5820_vm5, %v3994_v53  ;;  %v5821_v30 = vld [vmem:[#allocation19_spill] sm:$0xff]  ;;  %v5822_v53 = vld [vmem:[#allocation18_spill] sm:$0xff] }
 0x21c   : > { %2953 = vmatmul.bf16.gmra.mxu3 %v2821_v57  ;;  %vm5823_vm10 = vnez %v5822_v53 }
 0x21d   : > { %4107 = vmatmul.msk.bf16.gmra.mxu0 %vm5818_vm1, %v5353_v62  ;;  %v4273_v22 = vpack.c.bf16 %v3249_v47, %v3248_v9  ;;  %v3344_v27 = vadd.f32 %v3343_v51, %v3249_v47  ;;  %v3383_v13 = vmul.f32 %v3249_v47, %v3249_v47  ;;  %v5826_v47 = vld [vmem:[#allocation20_spill] sm:$0xff] }
 0x21e   : > { %v2681_v54 = vpop.f32.mrf.mxu2 }
 0x21f   : > { %4356 = vst [vmem:[%s5546_s30 + $0x10] sm:$0xff] %v4273_v22   ;;  %v3414_v25 = vadd.f32 %v3413_v42, %v3383_v13  ;;  %v2752_v46 = vadd.f32 %v2681_v54, %v2487_v33  ;;  %v2914_v8 = vpop.f32.mrf.mxu3 }
 0x220   : > { %v2418_v43 = vpop.f32.mrf.mxu1 }
 0x221   : > { %v2985_v19 = vadd.f32 %v2914_v8, %v2752_v46  ;;  %v2488_v9 = vadd.f32 %v2418_v43, %v5821_v30  ;;  %v2274_v8 = vld [vmem:[#allocation2 + $0xe2] sm:$0xff]  ;;  %v2275_v43 = vld [vmem:[#allocation2 + $0xea] sm:$0xff] }
 0x222   : > { %v3181_v60 = vpop.f32.mrf.mxu0  ;;  %v3920_v52 = vpack.c.bf16 %v2275_v43, %v2274_v8  ;;  %v2807_v8 = vld [vmem:[#allocation2 + $0x109] sm:$0xff] }
 0x223   : > { %v3250_v17 = vadd.f32 %v3179_v2, %v2985_v19  ;;  %v2539_v19 = vld [vmem:[#allocation2 + $0xf0] sm:$0xff] }
 0x224   : > { %v3040_v43 = vld [vmem:[#allocation2 + $0x10a] sm:$0xff] }
 0x225   : > { %v3345_v26 = vadd.f32 %v3344_v27, %v3250_v17  ;;  %v3384_v62 = vmul.f32 %v3250_v17, %v3250_v17 }
 0x226   : > { %v2683_v1 = vpop.f32.mrf.mxu2 }
 0x227   : > { %v3415_v51 = vadd.f32 %v3414_v25, %v3384_v62  ;;  %v2753_v29 = vadd.f32 %v2683_v1, %v2488_v9  ;;  %v2916_v20 = vpop.f32.mrf.mxu3 }
 0x228   : > { %v2421_v41 = vpop.f32.mrf.mxu1 }
 0x229   : > { %v2986_v42 = vadd.f32 %v2916_v20, %v2753_v29  ;;  %v2489_v21 = vadd.f32 %v2421_v41, %v5826_v47  ;;  %v5830_v41 = vld [vmem:[#allocation21_spill] sm:$0xff] }
 0x22a   : > { %v3184_v61 = vpop.f32.mrf.mxu0  ;;  %vm5831_vm4 = vnez %v5830_v41 }
 0x22b   : > { %v3251_v40 = vadd.f32 %v3181_v60, %v2986_v42  ;;  %3918 = vmatmul.msk.bf16.gmra.mxu1 %vm5823_vm10, %v3917_v18  ;;  %3998 = vmatmul.msk.bf16.gmra.mxu2 %vm5825_vm2, %v3997_v10  ;;  %v2540_v60 = vld [vmem:[#allocation2 + $0xf8] sm:$0xff]  ;;  %v5828_v10 = vld [vmem:[#allocation22_spill] sm:$0xff] }
 0x22c   : > { %2958 = vmatmul.bf16.gmra.mxu3 %v2822_v34  ;;  %v4000_v4 = vpack.c.bf16 %v2540_v60, %v2539_v19  ;;  %vm5829_vm3 = vnez %v5828_v10 }
 0x22d   : > { %4110 = vmatmul.msk.bf16.gmra.mxu0 %vm5823_vm10, %v5380_v24  ;;  %v4278_v57 = vpack.c.bf16 %v3251_v40, %v3250_v17  ;;  %v3346_v36 = vadd.f32 %v3345_v26, %v3251_v40  ;;  %v3385_v2 = vmul.f32 %v3251_v40, %v3251_v40  ;;  %v5827_v17 = vld [vmem:[#allocation23_spill] sm:$0xff] }
 0x22e   : > { %v2686_v35 = vpop.f32.mrf.mxu2 }
 0x22f   : > { %4357 = vst [vmem:[%s5546_s30 + $0x18] sm:$0xff] %v4278_v57   ;;  %v3416_v22 = vadd.f32 %v3415_v51, %v3385_v2  ;;  %v2754_v27 = vadd.f32 %v2686_v35, %v2489_v21  ;;  %v2919_v13 = vpop.f32.mrf.mxu3  ;;  %v2823_v51 = vpack.c.bf16 %v2805_v48, %v2804_v32 }
 0x230   : > { %v2423_v33 = vpop.f32.mrf.mxu1 }
 0x231   : > { %v2987_v54 = vadd.f32 %v2919_v13, %v2754_v27  ;;  %v2490_v28 = vadd.f32 %v2423_v33, %v5827_v17  ;;  %v2277_v27 = vld [vmem:[#allocation2 + $0xfa] sm:$0xff]  ;;  %v2542_v33 = vld [vmem:[#allocation2 + $0x108] sm:$0xff] }
 0x232   : > { %v3186_v25 = vpop.f32.mrf.mxu0  ;;  %v2541_v13 = vld [vmem:[#allocation2 + $0x100] sm:$0xff] }
 0x233   : > { %v3252_v46 = vadd.f32 %v3184_v61, %v2987_v54  ;;  %v2806_v54 = vld [vmem:[#allocation2 + $0x101] sm:$0xff] }
 0x234   : > { %v2824_v48 = vpack.c.bf16 %v2807_v8, %v2806_v54 }
 0x235   : > { %v3347_v63 = vadd.f32 %v3346_v36, %v3252_v46  ;;  %v3386_v24 = vmul.f32 %v3252_v46, %v3252_v46 }
 0x236   : > { %v2688_v26 = vpop.f32.mrf.mxu2 }
 0x237   : > { %v3417_v62 = vadd.f32 %v3416_v22, %v3386_v24  ;;  %v2755_v30 = vadd.f32 %v2688_v26, %v2490_v28  ;;  %v2921_v9 = vpop.f32.mrf.mxu3  ;;  %v2276_v22 = vld [vmem:[#allocation2 + $0xf2] sm:$0xff]  ;;  %v4003_v28 = vpack.c.bf16 %v2542_v33, %v2541_v13 }
 0x238   : > { %v2426_v1 = vpop.f32.mrf.mxu1  ;;  %v3923_v17 = vpack.c.bf16 %v2277_v27, %v2276_v22 }
 0x239   : > { %v2988_v29 = vadd.f32 %v2921_v9, %v2755_v30  ;;  %v2491_v40 = vadd.f32 %v2426_v1, %v5372_v3  ;;  %v3039_v3 = vld [vmem:[#allocation2 + $0x102] sm:$0xff] }
 0x23a   : > { %v3189_v20 = vpop.f32.mrf.mxu0  ;;  %v4115_v26 = vpack.c.bf16 %v3040_v43, %v3039_v3 }
 0x23b   : > { %v3253_v18 = vadd.f32 %v3186_v25, %v2988_v29  ;;  %3921 = vmatmul.msk.bf16.gmra.mxu1 %vm5829_vm3, %v3920_v52  ;;  %4001 = vmatmul.msk.bf16.gmra.mxu2 %vm5831_vm4, %v4000_v4  ;;  %v5832_v52 = vld [vmem:[#allocation25_spill] sm:$0xff] }
 0x23c   : > { %2963 = vmatmul.bf16.gmra.mxu3 %v2823_v51  ;;  %vm5833_vm7 = vnez %v5832_v52 }
 0x23d   : > { %4113 = vmatmul.msk.bf16.gmra.mxu0 %vm5829_vm3, %v5407_v37  ;;  %v4283_v34 = vpack.c.bf16 %v3253_v18, %v3252_v46  ;;  %v3348_v42 = vadd.f32 %v3347_v63, %v3253_v18  ;;  %v3387_v61 = vmul.f32 %v3253_v18, %v3253_v18 }
 0x23e   : > { %v2691_v53 = vpop.f32.mrf.mxu2 }
 0x23f   : > { %4358 = vst [vmem:[%s5546_s30 + $0x20] sm:$0xff] %v4283_v34   ;;  %v3418_v49 = vadd.f32 %v3417_v62, %v3387_v61  ;;  %v2756_v57 = vadd.f32 %v2691_v53, %v2491_v40  ;;  %v2924_v36 = vpop.f32.mrf.mxu3  ;;  %v2543_v53 = vld [vmem:[#allocation2 + $0x110] sm:$0xff] }
 0x240   : > { %v2428_v2 = vpop.f32.mrf.mxu1 }
 0x241   : > { %v2989_v47 = vadd.f32 %v2924_v36, %v2756_v57  ;;  %v2492_v46 = vadd.f32 %v2428_v2, %v5392_v31  ;;  %v5834_v31 = vld [vmem:[#allocation24_spill] sm:$0xff] }
 0x242   : > { %v3191_v21 = vpop.f32.mrf.mxu0  ;;  %vm5835_vm8 = vnez %v5834_v31  ;;  %v5836_v2 = vld [vmem:[#allocation28_spill] sm:$0xff] }
 0x243   : > { %v3254_v35 = vadd.f32 %v3189_v20, %v2989_v47 }
 0x245   : > { %v3349_v37 = vadd.f32 %v3348_v42, %v3254_v35  ;;  %v3388_v25 = vmul.f32 %v3254_v35, %v3254_v35 }
 0x246   : > { %v2693_v19 = vpop.f32.mrf.mxu2 }
 0x247   : > { %v3419_v60 = vadd.f32 %v3418_v49, %v3388_v25  ;;  %v2757_v63 = vadd.f32 %v2693_v19, %v2492_v46  ;;  %v2926_v24 = vpop.f32.mrf.mxu3  ;;  %v2544_v49 = vld [vmem:[#allocation2 + $0x118] sm:$0xff] }
 0x248   : > { %v2431_v32 = vpop.f32.mrf.mxu1  ;;  %v4006_v33 = vpack.c.bf16 %v2544_v49, %v2543_v53 }
 0x249   : > { %v2990_v62 = vadd.f32 %v2926_v24, %v2757_v63  ;;  %v2493_v29 = vadd.f32 %v2431_v32, %v5399_v56 }
 0x24a   : > { %v3194_v30 = vpop.f32.mrf.mxu0 }
 0x24b   : > { %v3255_v9 = vadd.f32 %v3191_v21, %v2990_v62  ;;  %3924 = vmatmul.msk.bf16.gmra.mxu1 %vm5833_vm7, %v3923_v17  ;;  %4004 = vmatmul.msk.bf16.gmra.mxu2 %vm5835_vm8, %v4003_v28  ;;  %v3041_v21 = vld [vmem:[#allocation2 + $0x112] sm:$0xff] }
 0x24c   : > { %2968 = vmatmul.bf16.gmra.mxu3 %v2824_v48 }
 0x24d   : > { %4116 = vmatmul.msk.bf16.gmra.mxu0 %vm5833_vm7, %v4115_v26  ;;  %v4288_v4 = vpack.c.bf16 %v3255_v9, %v3254_v35  ;;  %v3350_v1 = vadd.f32 %v3349_v37, %v3255_v9  ;;  %v3389_v51 = vmul.f32 %v3255_v9, %v3255_v9  ;;  %v3042_v35 = vld [vmem:[#allocation2 + $0x11a] sm:$0xff] }
 0x24e   : > { %v2696_v20 = vpop.f32.mrf.mxu2  ;;  %v4408_v37 = vld [vmem:[#allocation2] sm:$0xff]  ;;  %v4118_v46 = vpack.c.bf16 %v3042_v35, %v3041_v21 }
 0x24f   : > { %4359 = vst [vmem:[%s5546_s30 + $0x28] sm:$0xff] %v4288_v4   ;;  %v3420_v18 = vadd.f32 %v3419_v60, %v3389_v51  ;;  %v2758_v10 = vadd.f32 %v2696_v20, %v2493_v29  ;;  %v2929_v41 = vpop.f32.mrf.mxu3  ;;  %v2825_v25 = vpack.c.bf16 %v4408_v37, %v4408_v37 }
 0x250   : > { %v2433_v34 = vpop.f32.mrf.mxu1 }
 0x251   : > { %v2991_v42 = vadd.f32 %v2929_v41, %v2758_v10  ;;  %v2494_v47 = vadd.f32 %v2433_v34, %v5836_v2 }
 0x252   : > { %v3196_v61 = vpop.f32.mrf.mxu0 }
 0x253   : > { %v3256_v40 = vadd.f32 %v3194_v30, %v2991_v42 }
 0x255   : > { %v3351_v57 = vadd.f32 %v3350_v1, %v3256_v40  ;;  %v3390_v36 = vmul.f32 %v3256_v40, %v3256_v40 }
 0x256   : > { %v2698_v22 = vpop.f32.mrf.mxu2 }
 0x257   : > { %v3421_v27 = vadd.f32 %v3420_v18, %v3390_v36  ;;  %v2759_v56 = vadd.f32 %v2698_v22, %v2494_v47  ;;  %v2931_v13 = vpop.f32.mrf.mxu3 }
 0x258   : > { %v2436_v54 = vpop.f32.mrf.mxu1 }
 0x259   : > { %v2992_v8 = vadd.f32 %v2931_v13, %v2759_v56  ;;  %v2495_v28 = vadd.f32 %v2436_v54, %v5428_v38 }
 0x25a   : > { %v3199_v3 = vpop.f32.mrf.mxu0 }
 0x25b   : > { %v3257_v43 = vadd.f32 %v3196_v61, %v2992_v8  ;;  %3927 = vmatmul.msk.bf16.gmra.mxu1 %vm5410_vm14, %v4115_v26  ;;  %4007 = vmatmul.msk.bf16.gmra.mxu2 %vm5403_vm13, %v4006_v33 }
 0x25c   : > { %2973 = vmatmul.bf16.gmra.mxu3 %v2825_v25 }
 0x25d   : > { %4119 = vmatmul.msk.bf16.gmra.mxu0 %vm5410_vm14, %v4118_v46  ;;  %v4293_v63 = vpack.c.bf16 %v3257_v43, %v3256_v40  ;;  %v3352_v24 = vadd.f32 %v3351_v57, %v3257_v43  ;;  %v3391_v17 = vmul.f32 %v3257_v43, %v3257_v43 }
 0x25e   : > { %v2701_v32 = vpop.f32.mrf.mxu2 }
 0x25f   : > { %4360 = vst [vmem:[%s5546_s30 + $0x30] sm:$0xff] %v4293_v63   ;;  %v3422_v48 = vadd.f32 %v3421_v27, %v3391_v17  ;;  %v2760_v62 = vadd.f32 %v2701_v32, %v2495_v28  ;;  %v2934_v30 = vpop.f32.mrf.mxu3 }
 0x260   : > { %v2438_v9 = vpop.f32.mrf.mxu1 }
 0x261   : > { %v2993_v52 = vadd.f32 %v2934_v30, %v2760_v62  ;;  %v2496_v51 = vadd.f32 %v2438_v9, %v5435_v14 }
 0x262   : > { %v3201_v26 = vpop.f32.mrf.mxu0 }
 0x263   : > { %v3258_v31 = vadd.f32 %v3199_v3, %v2993_v52 }
 0x265   : > { %v3353_v4 = vadd.f32 %v3352_v24, %v3258_v31  ;;  %v3392_v1 = vmul.f32 %v3258_v31, %v3258_v31 }
 0x266   : > { %v2703_v29 = vpop.f32.mrf.mxu2 }
 0x267   : > { %v3423_v20 = vadd.f32 %v3422_v48, %v3392_v1  ;;  %v2761_v18 = vadd.f32 %v2703_v29, %v2496_v51  ;;  %v2936_v10 = vpop.f32.mrf.mxu3 }
 0x268   : > { %v2441_v41 = vpop.f32.mrf.mxu1 }
 0x269   : > { %v2994_v38 = vadd.f32 %v2936_v10, %v2761_v18  ;;  %v2497_v49 = vadd.f32 %v2441_v41, %v5440_v5 }
 0x26a   : > { %v3204_v34 = vpop.f32.mrf.mxu0 }
 0x26b   : > { %v3259_v42 = vadd.f32 %v3201_v26, %v2994_v38 }
 0x26d   : > { %v4298_v61 = vpack.c.bf16 %v3259_v42, %v3258_v31  ;;  %v3354_v40 = vadd.f32 %v3353_v4, %v3259_v42  ;;  %v3393_v53 = vmul.f32 %v3259_v42, %v3259_v42 }
 0x26e   : > { %v2706_v57 = vpop.f32.mrf.mxu2 }
 0x26f   : > { %4361 = vst [vmem:[%s5546_s30 + $0x38] sm:$0xff] %v4298_v61   ;;  %v3424_v36 = vadd.f32 %v3423_v20, %v3393_v53  ;;  %v2762_v2 = vadd.f32 %v2706_v57, %v2497_v49  ;;  %v2939_v47 = vpop.f32.mrf.mxu3 }
 0x270   : > { %v2443_v21 = vpop.f32.mrf.mxu1 }
 0x271   : > { %v2995_v14 = vadd.f32 %v2939_v47, %v2762_v2  ;;  %v2498_v13 = vadd.f32 %v2443_v21, %v5447_v12 }
 0x272   : > { %v3206_v35 = vpop.f32.mrf.mxu0 }
 0x273   : > { %v3260_v22 = vadd.f32 %v3204_v34, %v2995_v14 }
 0x275   : > { %v3355_v27 = vadd.f32 %v3354_v40, %v3260_v22  ;;  %v3394_v56 = vmul.f32 %v3260_v22, %v3260_v22 }
 0x276   : > { %v2708_v33 = vpop.f32.mrf.mxu2 }
 0x277   : > { %v3425_v54 = vadd.f32 %v3424_v36, %v3394_v56  ;;  %v2763_v37 = vadd.f32 %v2708_v33, %v2498_v13  ;;  %v2941_v25 = vpop.f32.mrf.mxu3 }
 0x278   : > { %v2446_v46 = vpop.f32.mrf.mxu1 }
 0x279   : > { %v2996_v5 = vadd.f32 %v2941_v25, %v2763_v37  ;;  %v2499_v63 = vadd.f32 %v2446_v46, %v5452_v50 }
 0x27a   : > { %v3209_v8 = vpop.f32.mrf.mxu0 }
 0x27b   : > { %v3261_v3 = vadd.f32 %v3206_v35, %v2996_v5 }
 0x27d   : > { %v4303_v43 = vpack.c.bf16 %v3261_v3, %v3260_v22  ;;  %v3356_v19 = vadd.f32 %v3355_v27, %v3261_v3  ;;  %v3395_v60 = vmul.f32 %v3261_v3, %v3261_v3 }
 0x27e   : > { %v2711_v24 = vpop.f32.mrf.mxu2 }
 0x27f   : > { %4362 = vst [vmem:[%s5546_s30 + $0x40] sm:$0xff] %v4303_v43   ;;  %v3426_v17 = vadd.f32 %v3425_v54, %v3395_v60  ;;  %v2764_v28 = vadd.f32 %v2711_v24, %v2499_v63  ;;  %v2944_v32 = vpop.f32.mrf.mxu3 }
 0x280   : > { %v2448_v48 = vpop.f32.mrf.mxu1 }
 0x281   : > { %v2997_v12 = vadd.f32 %v2944_v32, %v2764_v28  ;;  %v2500_v26 = vadd.f32 %v2448_v48, %v5459_v45 }
 0x282   : > { %v3211_v62 = vpop.f32.mrf.mxu0 }
 0x283   : > { %v3262_v30 = vadd.f32 %v3209_v8, %v2997_v12 }
 0x285   : > { %v3357_v9 = vadd.f32 %v3356_v19, %v3262_v30  ;;  %v3396_v52 = vmul.f32 %v3262_v30, %v3262_v30 }
 0x286   : > { %v2713_v31 = vpop.f32.mrf.mxu2 }
 0x287   : > { %v3427_v4 = vadd.f32 %v3426_v17, %v3396_v52  ;;  %v2765_v1 = vadd.f32 %v2713_v31, %v2500_v26  ;;  %v2946_v51 = vpop.f32.mrf.mxu3 }
 0x288   : > { %v2451_v29 = vpop.f32.mrf.mxu1 }
 0x289   : > { %v2998_v50 = vadd.f32 %v2946_v51, %v2765_v1  ;;  %v2501_v34 = vadd.f32 %v2451_v29, %v5464_v16 }
 0x28a   : > { %v3214_v20 = vpop.f32.mrf.mxu0 }
 0x28b   : > { %v3263_v18 = vadd.f32 %v3211_v62, %v2998_v50 }
 0x28d   : > { %v4308_v10 = vpack.c.bf16 %v3263_v18, %v3262_v30  ;;  %v3358_v41 = vadd.f32 %v3357_v9, %v3263_v18  ;;  %v3397_v38 = vmul.f32 %v3263_v18, %v3263_v18 }
 0x28e   : > { %v2716_v42 = vpop.f32.mrf.mxu2 }
 0x28f   : > { %4363 = vst [vmem:[%s5546_s30 + $0x48] sm:$0xff] %v4308_v10   ;;  %v3428_v61 = vadd.f32 %v3427_v4, %v3397_v38  ;;  %v2766_v40 = vadd.f32 %v2716_v42, %v2501_v34  ;;  %v2949_v53 = vpop.f32.mrf.mxu3 }
 0x290   : > { %v2453_v49 = vpop.f32.mrf.mxu1 }
 0x291   : > { %v2999_v45 = vadd.f32 %v2949_v53, %v2766_v40  ;;  %v2502_v21 = vadd.f32 %v2453_v49, %v5471_v39 }
 0x292   : > { %v3216_v57 = vpop.f32.mrf.mxu0 }
 0x293   : > { %v3264_v36 = vadd.f32 %v3214_v20, %v2999_v45 }
 0x295   : > { %v3359_v2 = vadd.f32 %v3358_v41, %v3264_v36  ;;  %v3398_v47 = vmul.f32 %v3264_v36, %v3264_v36 }
 0x296   : > { %v2718_v14 = vpop.f32.mrf.mxu2 }
 0x297   : > { %v3429_v35 = vadd.f32 %v3428_v61, %v3398_v47  ;;  %v2767_v22 = vadd.f32 %v2718_v14, %v2502_v21  ;;  %v2951_v27 = vpop.f32.mrf.mxu3 }
 0x298   : > { %v2456_v56 = vpop.f32.mrf.mxu1 }
 0x299   : > { %v3000_v16 = vadd.f32 %v2951_v27, %v2767_v22  ;;  %v2503_v46 = vadd.f32 %v2456_v56, %v5476_v59 }
 0x29a   : > { %v3219_v13 = vpop.f32.mrf.mxu0 }
 0x29b   : > { %v3265_v33 = vadd.f32 %v3216_v57, %v3000_v16 }
 0x29d   : > { %v4313_v54 = vpack.c.bf16 %v3265_v33, %v3264_v36  ;;  %v3360_v37 = vadd.f32 %v3359_v2, %v3265_v33  ;;  %v3399_v25 = vmul.f32 %v3265_v33, %v3265_v33 }
 0x29e   : > { %v2721_v5 = vpop.f32.mrf.mxu2 }
 0x29f   : > { %4364 = vst [vmem:[%s5546_s30 + $0x50] sm:$0xff] %v4313_v54   ;;  %v3430_v8 = vadd.f32 %v3429_v35, %v3399_v25  ;;  %v2768_v3 = vadd.f32 %v2721_v5, %v2503_v46  ;;  %v2954_v43 = vpop.f32.mrf.mxu3 }
 0x2a0   : > { %v2458_v19 = vpop.f32.mrf.mxu1 }
 0x2a1   : > { %v3001_v39 = vadd.f32 %v2954_v43, %v2768_v3  ;;  %v2504_v28 = vadd.f32 %v2458_v19, %v5483_v44 }
 0x2a2   : > { %v3221_v60 = vpop.f32.mrf.mxu0 }
 0x2a3   : > { %v3266_v63 = vadd.f32 %v3219_v13, %v3001_v39 }
 0x2a5   : > { %v3361_v24 = vadd.f32 %v3360_v37, %v3266_v63  ;;  %v3400_v17 = vmul.f32 %v3266_v63, %v3266_v63 }
 0x2a6   : > { %v2723_v32 = vpop.f32.mrf.mxu2 }
 0x2a7   : > { %v3431_v48 = vadd.f32 %v3430_v8, %v3400_v17  ;;  %v2769_v12 = vadd.f32 %v2723_v32, %v2504_v28  ;;  %v2956_v62 = vpop.f32.mrf.mxu3 }
 0x2a8   : > { %v2461_v30 = vpop.f32.mrf.mxu1 }
 0x2a9   : > { %v3002_v59 = vadd.f32 %v2956_v62, %v2769_v12  ;;  %v2505_v1 = vadd.f32 %v2461_v30, %v5488_v11 }
 0x2aa   : > { %v3224_v9 = vpop.f32.mrf.mxu0 }
 0x2ab   : > { %v3267_v52 = vadd.f32 %v3221_v60, %v3002_v59 }
 0x2ad   : > { %v4318_v26 = vpack.c.bf16 %v3267_v52, %v3266_v63  ;;  %v3362_v31 = vadd.f32 %v3361_v24, %v3267_v52  ;;  %v3401_v4 = vmul.f32 %v3267_v52, %v3267_v52 }
 0x2ae   : > { %v2726_v51 = vpop.f32.mrf.mxu2 }
 0x2af   : > { %4365 = vst [vmem:[%s5546_s30 + $0x58] sm:$0xff] %v4318_v26   ;;  %v3432_v29 = vadd.f32 %v3431_v48, %v3401_v4  ;;  %v2770_v50 = vadd.f32 %v2726_v51, %v2505_v1  ;;  %v2959_v20 = vpop.f32.mrf.mxu3 }
 0x2b0   : > { %v2463_v18 = vpop.f32.mrf.mxu1 }
 0x2b1   : > { %v3003_v44 = vadd.f32 %v2959_v20, %v2770_v50  ;;  %v2506_v42 = vadd.f32 %v2463_v18, %v5495_v55 }
 0x2b2   : > { %v3226_v10 = vpop.f32.mrf.mxu0 }
 0x2b3   : > { %v3268_v41 = vadd.f32 %v3224_v9, %v3003_v44 }
 0x2b5   : > { %v3363_v38 = vadd.f32 %v3362_v31, %v3268_v41  ;;  %v3402_v34 = vmul.f32 %v3268_v41, %v3268_v41 }
 0x2b6   : > { %v2728_v61 = vpop.f32.mrf.mxu2 }
 0x2b7   : > { %v3433_v40 = vadd.f32 %v3432_v29, %v3402_v34  ;;  %v2771_v53 = vadd.f32 %v2728_v61, %v2506_v42  ;;  %v2961_v49 = vpop.f32.mrf.mxu3 }
 0x2b8   : > { %v2466_v45 = vpop.f32.mrf.mxu1 }
 0x2b9   : > { %v3004_v11 = vadd.f32 %v2961_v49, %v2771_v53  ;;  %v2507_v14 = vadd.f32 %v2466_v45, %v5500_v23 }
 0x2ba   : > { %v3229_v57 = vpop.f32.mrf.mxu0 }
 0x2bb   : > { %v3269_v36 = vadd.f32 %v3226_v10, %v3004_v11 }
 0x2bd   : > { %v4323_v2 = vpack.c.bf16 %v3269_v36, %v3268_v41  ;;  %v3364_v47 = vadd.f32 %v3363_v38, %v3269_v36  ;;  %v3403_v21 = vmul.f32 %v3269_v36, %v3269_v36 }
 0x2be   : > { %v2731_v35 = vpop.f32.mrf.mxu2 }
 0x2bf   : > { %4366 = vst [vmem:[%s5546_s30 + $0x60] sm:$0xff] %v4323_v2   ;;  %v3434_v22 = vadd.f32 %v3433_v40, %v3403_v21  ;;  %v2772_v27 = vadd.f32 %v2731_v35, %v2507_v14  ;;  %v2964_v56 = vpop.f32.mrf.mxu3 }
 0x2c0   : > { %v2468_v16 = vpop.f32.mrf.mxu1 }
 0x2c1   : > { %v3005_v55 = vadd.f32 %v2964_v56, %v2772_v27  ;;  %v2508_v25 = vadd.f32 %v2468_v16, %v5507_v58 }
 0x2c2   : > { %v3231_v13 = vpop.f32.mrf.mxu0 }
 0x2c3   : > { %v3270_v33 = vadd.f32 %v3229_v57, %v3005_v55 }
 0x2c5   : > { %v3365_v54 = vadd.f32 %v3364_v47, %v3270_v33  ;;  %v3404_v37 = vmul.f32 %v3270_v33, %v3270_v33 }
 0x2c6   : > { %v2733_v46 = vpop.f32.mrf.mxu2 }
 0x2c7   : > { %v3435_v5 = vadd.f32 %v3434_v22, %v3404_v37  ;;  %v2773_v8 = vadd.f32 %v2733_v46, %v2508_v25  ;;  %v2966_v3 = vpop.f32.mrf.mxu3 }
 0x2c8   : > { %v2471_v43 = vpop.f32.mrf.mxu1 }
 0x2c9   : > { %v3006_v23 = vadd.f32 %v2966_v3, %v2773_v8  ;;  %v2509_v17 = vadd.f32 %v2471_v43, %v5512_v7 }
 0x2ca   : > { %v3234_v39 = vpop.f32.mrf.mxu0 }
 0x2cb   : > { %v3271_v19 = vadd.f32 %v3231_v13, %v3006_v23 }
 0x2cd   : > { %v4328_v60 = vpack.c.bf16 %v3271_v19, %v3270_v33  ;;  %v3366_v63 = vadd.f32 %v3365_v54, %v3271_v19  ;;  %v3405_v24 = vmul.f32 %v3271_v19, %v3271_v19 }
 0x2ce   : > { %v2736_v28 = vpop.f32.mrf.mxu2 }
 0x2cf   : > { %4367 = vst [vmem:[%s5546_s30 + $0x68] sm:$0xff] %v4328_v60   ;;  %v3436_v32 = vadd.f32 %v3435_v5, %v3405_v24  ;;  %v2774_v48 = vadd.f32 %v2736_v28, %v2509_v17  ;;  %v2969_v12 = vpop.f32.mrf.mxu3 }
 0x2d0   : > { %v2473_v62 = vpop.f32.mrf.mxu1 }
 0x2d1   : > { %v3007_v58 = vadd.f32 %v2969_v12, %v2774_v48  ;;  %v2510_v52 = vadd.f32 %v2473_v62, %v5519_v0 }
 0x2d2   : > { %v3236_v26 = vpop.f32.mrf.mxu0 }
 0x2d3   : > { %v3272_v30 = vadd.f32 %v3234_v39, %v3007_v58 }
 0x2d5   : > { %v3367_v59 = vadd.f32 %v3366_v63, %v3272_v30  ;;  %v3406_v9 = vmul.f32 %v3272_v30, %v3272_v30 }
 0x2d6   : > { %v2738_v31 = vpop.f32.mrf.mxu2 }
 0x2d7   : > { %v3437_v4 = vadd.f32 %v3436_v32, %v3406_v9  ;;  %v2775_v1 = vadd.f32 %v2738_v31, %v2510_v52  ;;  %v2971_v51 = vpop.f32.mrf.mxu3 }
 0x2d8   : > { %v2476_v29 = vpop.f32.mrf.mxu1 }
 0x2d9   : > { %v3008_v7 = vadd.f32 %v2971_v51, %v2775_v1  ;;  %v2511_v10 = vadd.f32 %v2476_v29, %v5524_v15 }
 0x2da   : > { %v3239_v61 = vpop.f32.mrf.mxu0 }
 0x2db   : > { %v3273_v50 = vadd.f32 %v3236_v26, %v3008_v7 }
 0x2dd   : > { %v4333_v20 = vpack.c.bf16 %v3273_v50, %v3272_v30  ;;  %v3368_v18 = vadd.f32 %v3367_v59, %v3273_v50  ;;  %v3407_v44 = vmul.f32 %v3273_v50, %v3273_v50 }
 0x2de   : > { %v2741_v41 = vpop.f32.mrf.mxu2 }
 0x2df   : > { %4368 = vst [vmem:[%s5546_s30 + $0x70] sm:$0xff] %v4333_v20   ;;  %v3438_v38 = vadd.f32 %v3437_v4, %v3407_v44  ;;  %v2776_v34 = vadd.f32 %v2741_v41, %v2511_v10  ;;  %v2974_v42 = vpop.f32.mrf.mxu3 }
 0x2e0   : > { %v2478_v40 = vpop.f32.mrf.mxu1 }
 0x2e1   : > { %v3009_v0 = vadd.f32 %v2974_v42, %v2776_v34  ;;  %v2512_v11 = vadd.f32 %v2478_v40, %v5531_v6 }
 0x2e2   : > { %v3241_v21 = vpop.f32.mrf.mxu0 }
 0x2e3   : > { %v3274_v53 = vadd.f32 %v3239_v61, %v3009_v0 }
 0x2e5   : > { %v3369_v49 = vadd.f32 %v3368_v18, %v3274_v53  ;;  %v3408_v45 = vmul.f32 %v3274_v53, %v3274_v53 }
 0x2e6   : > { %v2743_v57 = vpop.f32.mrf.mxu2 }
 0x2e7   : > { %v3439_v36 = vadd.f32 %v3438_v38, %v3408_v45  ;;  %v2777_v2 = vadd.f32 %v2743_v57, %v2512_v11  ;;  %v2976_v47 = vpop.f32.mrf.mxu3 }
 0x2e9   : > { %v3010_v15 = vadd.f32 %v2976_v47, %v2777_v2 }
 0x2eb   : > { %v3275_v14 = vadd.f32 %v3241_v21, %v3010_v15 }
 0x2ed   : > { %v4338_v35 = vpack.c.bf16 %v3275_v14, %v3274_v53  ;;  %v3370_v22 = vadd.f32 %v3369_v49, %v3275_v14  ;;  %v3409_v27 = vmul.f32 %v3275_v14, %v3275_v14 }
 0x2ef   : > { %4369 = vst [vmem:[%s5546_s30 + $0x78] sm:$0xff] %v4338_v35   ;;  %v3371_v56 = vrot.slane %v3370_v22, 4  ;;  %v3440_v16 = vadd.f32 %v3439_v36, %v3409_v27 }
 0x2f1   : > { %v3372_v55 = vadd.f32 %v3371_v56, %v3370_v22  ;;  %v3441_v13 = vrot.slane %v3440_v16, 4 }
 0x2f3   : > { %v3373_v33 = vrot.slane %v3372_v55, 2  ;;  %v3442_v54 = vadd.f32 %v3441_v13, %v3440_v16 }
 0x2f5   : > { %v3374_v6 = vadd.f32 %v3373_v33, %v3372_v55  ;;  %v3443_v37 = vrot.slane %v3442_v54, 2 }
 0x2f7   : > { %v3375_v25 = vrot.slane %v3374_v6, 1  ;;  %v3444_v46 = vadd.f32 %v3443_v37, %v3442_v54 }
 0x2f9   : > { %v3376_v5 = vadd.f32 %v3375_v25, %v3374_v6  ;;  %v3445_v8 = vrot.slane %v3444_v46, 1 }
 0x2fb   : > { %3377 = vst [vmem:[%s235_s8] sm:$0x1] %v3376_v5  ;;  %v3446_v3 = vadd.f32 %v3445_v8, %v3444_v46 }
 0x2fd   : > { %3447 = vst [vmem:[%s235_s8 + $0x1] sm:$0x1] %v3446_v3 }
 0x2fe PF: > { %s16_s18 = sadd.s32 1, %s4415_s18  }
 0x2ff   : > { %p13_p4 = scmp.ge.s32.totalorder %s16_s18, 4  }
 0x301   :  { %15 = sbr.rel (!%p13_p4) target bundleno = 1 (0x1), region = 78 }

// kernel: up_forward.3
= control target key start
LH: loop header
LB: loop body
LE: loop exit
PB: predicated region body
PF: predicated region fallthrough
CT: control target
= control target key end

     0   :  { %s4201_s18 = smov 0   ;;  %s5980_s0 = inlined_call_operand.vmem [shape: bf16[2,8,64], index: 0, kind: input, shape index: {}]   ;;  %s5981_s1 = inlined_call_operand.vmem [shape: bf16[16,8], index: 1, kind: input, shape index: {}, may-alias: {1,2}]   ;;  %s5982_s2 = inlined_call_operand.vmem [shape: bf16[16,8], index: 2, kind: input, shape index: {}, may-alias: {1,2}]   ;;  %s5983_s3 = inlined_call_operand.vmem [shape: bf16[72,128], index: 3, kind: input, shape index: {}]   ;;  %s5984_s4 = inlined_call_operand.vmem [shape: bf16[2,256,128], index: 4, kind: output, shape index: {0}]   ;;  %s5985_s5 = inlined_call_operand.vmem [shape: f32[2,2,128], index: 5, kind: output, shape index: {1}]  }
   0x1 LB: > { %s3854_s19 = sadd.s32 4294967295, %s4159_s18   ;;  %p3858_p0 = scmp.ge.s32.totalorder %s4159_s18, 1  ;;  %s4159_s18 = sphi %s4201_s18, %s16_s18  }
   0x2   : > { %p189_p1 = scmp.lt.s32.totalorder %s4159_s18, 3 }
   0x4   : > { %p190_p2 = pnand %p3858_p0, %p189_p1 }
   0x6   : > { %193 = sbr.rel (%p190_p2) target bundleno = 1259 (0x4eb), region = 36 }
   0xb   : > { %p220_p3 = scmp.lt.s32.totalorder %s3854_s19, 1  ;;  %vm5986_vm0 = vcmask 1043456   ;;  %v4035_v2 = vld [vmem:[%s5981_s1] sm:$0xff]  ;;  %vm5987_vm1 = vcmask 64512   ;;  %s4161_s26 = smov 120   ;;  %vm316_vm2 = vcmask 1047556  }
   0xc   : > { %s4162_s27 = smov 88   ;;  %s4163_s28 = smov 72   ;;  %v4168_v9 = vmov 1983009808   ;;  %v4169_v25 = vmov 1934713408  }
   0xd   : > { %s6586_s19 = smov (!%p220_p3, %s3854_s19), 1  ;;  %s4164_s29 = smov 112   ;;  %v321_v10 = vunpack.c.l.s4 %v4168_v9  ;;  %v369_v26 = vunpack.c.l.s4 %v4169_v25  ;;  %vm237_vm3 = vcmask 57344  }
   0xe   : > { %s3859_s20 = sshll.u32 %s6586_s19, 2  ;;  %s4165_s30 = smov 80  }
   0xf   : > { %s223_s23 = scalar_lea.vmem %s5980_s0, %s3859_s20  ;;  %s4166_s6 = smov 104   ;;  %v4229_v14 = vunpack.c.0.s8 %v321_v10  ;;  %v4242_v36 = vunpack.c.0.s8 %v369_v26 }
  0x10   : > { %v242_v0 = vld [vmem:[%s223_s23] sm:$0xf]  ;;  %s4167_s7 = smov 96   ;;  %s3862_s9 = sshll.u32 %s6586_s19, 1 }
  0x11   : > { %v255_v1 = vsel %vm5986_vm0, %v242_v0, 0  ;;  %s232_s12 = scalar_lea.vmem %s5985_s5, %s3862_s9 }
  0x12   : > { %264 = vmatpush.bf16.msra.mxu0 %v255_v1 }
  0x15   : > { %3867 = vmatmul.msk.bf16.vlgmr.msra.gmra.mxu0 %vm5987_vm1, %v4035_v2 }
  0x92   : > { %v266_v3 = vpop.f32.mrf.mxu0 }
  0x93   : > { %273 = vrot.lane.b32.xlu2 %v266_v3, %s4161_s26  ;;  %297 = vrot.lane.b32.xlu1 %v266_v3, %s4162_s27  ;;  %v318_v12 = vrot.slane %v266_v3, 4 }
  0x94   : > { %309 = vrot.lane.b32.xlu0 %v266_v3, %s4163_s28 }
  0x9a   : > { %v4220_v4 = vpop.f32.mrf.mxu0 }
  0x9b   : > { %279 = vrot.lane.b32.xlu2 %v266_v3, %s4164_s29  ;;  %303 = vrot.lane.b32.xlu1 %v266_v3, %s4165_s30  ;;  %v430_v37 = vrot.slane %v4220_v4, 4 }
  0x9c   : > { %285 = vrot.lane.b32.xlu0 %v266_v3, %s4166_s6 }
  0xa3   : > { %275 = vrot.lane.b32.xlu2 %v4220_v4, %s4161_s26  ;;  %287 = vrot.lane.b32.xlu1 %v4220_v4, %s4166_s6 }
  0xa4   : > { %291 = vrot.lane.b32.xlu0 %v266_v3, %s4167_s7 }
  0xab   : > { %299 = vrot.lane.b32.xlu2 %v4220_v4, %s4162_s27  ;;  %311 = vrot.lane.b32.xlu1 %v4220_v4, %s4163_s28 }
  0xac   : > { %281 = vrot.lane.b32.xlu0 %v4220_v4, %s4164_s29 }
  0xb3   : > { %293 = vrot.lane.b32.xlu1 %v4220_v4, %s4167_s7 }
  0xb4   : > { %305 = vrot.lane.b32.xlu0 %v4220_v4, %s4165_s30  ;;  %s4034_s30 = sshll.u32 %s6586_s19, 7 }
  0xb5   : > { %s5749_s8 = scalar_lea.vmem %s5984_s4, %s4034_s30 }
  0xed   : > { %v274_v5 = vpop.permute.xlu2 %273 }
  0xee   : > { %v330_v13 = vrot.slane %v274_v5, 4 }
  0xf5   : > { %v280_v6 = vpop.permute.xlu2 %279 }
  0xf6   : > { %v315_v11 = vrot.slane %v280_v6, 4  ;;  %v319_v17 = vsel %vm316_vm2, %v280_v6, %v318_v12 }
  0xf7   : > { %v327_v27 = vperm.slane %v319_v17, %v4229_v14 }
  0xf8   : > { %v317_v21 = vsel %vm316_vm2, %v315_v11, %v266_v3 }
  0xf9   : > { %v323_v30 = vperm.slane %v317_v21, %v4229_v14  ;;  %v378_v44 = vrot.slane %v327_v27, 4 }
  0xfb   : > { %v366_v43 = vrot.slane %v323_v30, 4 }
  0xfd   : > { %v276_v18 = vpop.permute.xlu2 %275 }
  0xfe   : > { %v442_v38 = vrot.slane %v276_v18, 4 }
 0x105   : > { %v298_v7 = vpop.permute.xlu1 %297  ;;  %v300_v53 = vpop.permute.xlu2 %299 }
 0x106   : > { %v310_v8 = vpop.permute.xlu0 %309  ;;  %v354_v19 = vrot.slane %v298_v7, 4  ;;  %v466_v1 = vrot.slane %v300_v53, 4 }
 0x107   : > { %v352_v15 = vrot.slane %v310_v8, 4 }
 0x108   : > { %v355_v31 = vsel %vm316_vm2, %v310_v8, %v354_v19 }
 0x109   : > { %v353_v28 = vsel %vm316_vm2, %v352_v15, %v298_v7  ;;  %v363_v39 = vperm.slane %v355_v31, %v4229_v14 }
 0x10a   : > { %v359_v34 = vperm.slane %v353_v28, %v4229_v14 }
 0x10b   : > { %v400_v57 = vrot.slane %v363_v39, 4 }
 0x10c   : > { %v388_v52 = vrot.slane %v359_v34, 4 }
 0x10d   : > { %v304_v16 = vpop.permute.xlu1 %303 }
 0x10e   : > { %v286_v20 = vpop.permute.xlu0 %285  ;;  %v340_v40 = vrot.slane %v304_v16, 4 }
 0x10f   : > { %v328_v22 = vrot.slane %v286_v20, 4  ;;  %v331_v23 = vsel %vm316_vm2, %v286_v20, %v330_v13 }
 0x110   : > { %v339_v24 = vperm.slane %v331_v23, %v4229_v14 }
 0x111   : > { %v329_v29 = vsel %vm316_vm2, %v328_v22, %v274_v5 }
 0x112   : > { %v335_v32 = vperm.slane %v329_v29, %v4229_v14  ;;  %v376_v33 = vrot.slane %v339_v24, 4  ;;  %v379_v54 = vsel %vm316_vm2, %v339_v24, %v378_v44 }
 0x113   : > { %v4264_v5 = vperm.slane %v379_v54, %v4242_v36 }
 0x114   : > { %v364_v35 = vrot.slane %v335_v32, 4  ;;  %v377_v41 = vsel %vm316_vm2, %v376_v33, %v327_v27  ;;  %v367_v60 = vsel %vm316_vm2, %v335_v32, %v366_v43 }
 0x115   : > { %v288_v42 = vpop.permute.xlu1 %287  ;;  %v383_v56 = vperm.slane %v377_v41, %v4242_v36  ;;  %v4271_v9 = vperm.slane %v367_v60, %v4242_v36 }
 0x116   : > { %v292_v45 = vpop.permute.xlu0 %291  ;;  %v440_v46 = vrot.slane %v288_v42, 4  ;;  %v365_v47 = vsel %vm316_vm2, %v364_v35, %v323_v30  ;;  %v443_v50 = vsel %vm316_vm2, %v288_v42, %v442_v38 }
 0x117   : > { %v341_v48 = vsel %vm316_vm2, %v340_v40, %v292_v45  ;;  %v342_v49 = vrot.slane %v292_v45, 4  ;;  %v371_v51 = vperm.slane %v365_v47, %v4242_v36  ;;  %v4260_v0 = vperm.slane %v443_v50, %v4229_v14 }
 0x118   : > { %v347_v55 = vperm.slane %v341_v48, %v4229_v14  ;;  %v441_v59 = vsel %vm316_vm2, %v440_v46, %v276_v18  ;;  %v422_v8 = vrot.slane %v383_v56, 4  ;;  %v418_v42 = vrot.slane %v4271_v9, 4 }
 0x119   : > { %v343_v58 = vsel %vm316_vm2, %v304_v16, %v342_v49  ;;  %v414_v3 = vrot.slane %v371_v51, 4  ;;  %v4267_v6 = vperm.slane %v441_v59, %v4229_v14  ;;  %v488_v17 = vrot.slane %v4260_v0, 4 }
 0x11a   : > { %v351_v61 = vperm.slane %v343_v58, %v4229_v14  ;;  %v389_v62 = vsel %vm316_vm2, %v388_v52, %v347_v55  ;;  %v390_v63 = vrot.slane %v347_v55, 4 }
 0x11b   : > { %v395_v2 = vperm.slane %v389_v62, %v4242_v36 }
 0x11c   : > { %v401_v7 = vsel %vm316_vm2, %v400_v57, %v351_v61  ;;  %v391_v10 = vsel %vm316_vm2, %v359_v34, %v390_v63  ;;  %v402_v16 = vrot.slane %v351_v61, 4 }
 0x11d   : > { %v312_v11 = vpop.permute.xlu1 %311  ;;  %v412_v12 = vrot.slane %v395_v2, 4  ;;  %v407_v13 = vperm.slane %v401_v7, %v4242_v36  ;;  %v415_v15 = vsel %vm316_vm2, %v395_v2, %v414_v3  ;;  %v399_v25 = vperm.slane %v391_v10, %v4242_v36 }
 0x11e   : > { %v282_v18 = vpop.permute.xlu0 %281  ;;  %v464_v19 = vrot.slane %v312_v11, 4  ;;  %v467_v20 = vsel %vm316_vm2, %v312_v11, %v466_v1  ;;  %v541_v24 = vpack.c.bf16 %v415_v15, %v415_v15  ;;  %v403_v38 = vsel %vm316_vm2, %v363_v39, %v402_v16 }
 0x11f   : > { %v428_v21 = vrot.slane %v282_v18, 4  ;;  %v431_v22 = vsel %vm316_vm2, %v282_v18, %v430_v37  ;;  %v413_v23 = vsel %vm316_vm2, %v412_v12, %v371_v51  ;;  %v423_v28 = vsel %vm316_vm2, %v407_v13, %v422_v8  ;;  %v4293_v37 = vld [vmem:[%s5982_s2] sm:$0xff] }
 0x120   : > { %v439_v26 = vperm.slane %v431_v22, %v4229_v14  ;;  %v540_v27 = vpack.c.bf16 %v413_v23, %v413_v23  ;;  %v465_v30 = vsel %vm316_vm2, %v464_v19, %v300_v53  ;;  %v475_v31 = vperm.slane %v467_v20, %v4229_v14 }
 0x121   : > { %v429_v29 = vsel %vm316_vm2, %v428_v21, %v4220_v4  ;;  %v545_v32 = vpack.c.bf16 %v423_v28, %v423_v28  ;;  %v476_v4 = vrot.slane %v4267_v6, 4  ;;  %v584_v41 = vsel %vm5986_vm0, %v541_v24, 0 }
 0x122   : > { %v435_v33 = vperm.slane %v429_v29, %v4229_v14  ;;  %v489_v34 = vsel %vm316_vm2, %v488_v17, %v439_v26  ;;  %v567_v35 = vsel %vm5986_vm0, %v540_v27, 0  ;;  %v490_v43 = vrot.slane %v439_v26, 4 }
 0x123   : > { %576 = vmatpush.bf16.msrb.mxu0 %v567_v35  ;;  %v652_v40 = vsel %vm5986_vm0, %v545_v32, 0  ;;  %v471_v44 = vperm.slane %v465_v30, %v4229_v14  ;;  %v420_v45 = vrot.slane %v407_v13, 4  ;;  %v416_v46 = vrot.slane %v399_v25, 4 }
 0x124   : > { %661 = vmatpush.bf16.msra.mxu2 %v652_v40  ;;  %v495_v47 = vperm.slane %v489_v34, %v4242_v36  ;;  %v512_v48 = vrot.slane %v475_v31, 4  ;;  %v4303_v49 = vperm.slane %v403_v38, %v4242_v36  ;;  %v477_v50 = vsel %vm316_vm2, %v476_v4, %v435_v33 }
 0x125   : > { %v294_v39 = vpop.permute.xlu1 %293  ;;  %v478_v51 = vrot.slane %v435_v33, 4  ;;  %v421_v52 = vsel %vm316_vm2, %v420_v45, %v383_v56  ;;  %v417_v55 = vsel %vm316_vm2, %v416_v46, %v4271_v9  ;;  %v491_v61 = vsel %vm316_vm2, %v4260_v0, %v490_v43 }
 0x126   : > { %3872 = vmatmul.msk.bf16.vlgmr.msrb.gmra.mxu0 %vm5987_vm1, %v4293_v37  ;;  %v306_v53 = vpop.permute.xlu0 %305  ;;  %v454_v54 = vrot.slane %v294_v39, 4  ;;  %v544_v57 = vpack.c.bf16 %v421_v52, %v421_v52  ;;  %v542_v59 = vpack.c.bf16 %v417_v55, %v417_v55  ;;  %v424_v60 = vrot.slane %v4303_v49, 4 }
 0x127   : > { %593 = vmatpush.bf16.msra.mxu0 %v584_v41  ;;  %v452_v58 = vrot.slane %v306_v53, 4  ;;  %3877 = vmatmul.msk.bf16.vlgmr.msra.gmra.mxu2 %vm5987_vm1, %v4293_v37  ;;  %v500_v56 = vrot.slane %v471_v44, 4  ;;  %v483_v63 = vperm.slane %v477_v50, %v4242_v36  ;;  %v534_v9 = vrot.slane %v495_v47, 4 }
 0x128   : > { %v455_v62 = vsel %vm316_vm2, %v306_v53, %v454_v54  ;;  %v635_v1 = vsel %vm5986_vm0, %v544_v57, 0  ;;  %v601_v7 = vsel %vm5986_vm0, %v542_v59, 0  ;;  %v425_v0 = vsel %vm316_vm2, %v424_v60, %v4264_v5 }
 0x129   : > { %v453_v2 = vsel %vm316_vm2, %v452_v58, %v294_v39  ;;  %v463_v3 = vperm.slane %v455_v62, %v4229_v14  ;;  %644 = vmatpush.bf16.msra.mxu1 %v635_v1  ;;  %v479_v10 = vsel %vm316_vm2, %v4267_v6, %v478_v51  ;;  %v546_v13 = vpack.c.bf16 %v425_v0, %v425_v0 }
 0x12a   : > { %v459_v8 = vperm.slane %v453_v2, %v4229_v14  ;;  %v419_v15 = vsel %vm316_vm2, %v399_v25, %v418_v42  ;;  %v526_v18 = vrot.slane %v483_v63, 4  ;;  %v487_v21 = vperm.slane %v479_v10, %v4242_v36 }
 0x12b   : > { %610 = vmatpush.bf16.msrb.mxu0 %v601_v7  ;;  %v513_v11 = vsel %vm316_vm2, %v512_v48, %v463_v3  ;;  %v514_v12 = vrot.slane %v463_v3, 4  ;;  %v669_v20 = vsel %vm5986_vm0, %v546_v13, 0  ;;  %v499_v32 = vperm.slane %v491_v61, %v4242_v36  ;;  %v2222_v7 = vld [vmem:[%s5983_s3 + $0xc] sm:$0xf] }
 0x12c   : > { %v501_v16 = vsel %vm316_vm2, %v500_v56, %v459_v8  ;;  %v502_v17 = vrot.slane %v459_v8, 4  ;;  %v519_v14 = vperm.slane %v513_v11, %v4242_v36  ;;  %3876 = vmatmul.msk.bf16.vlgmr.msra.gmra.mxu1 %vm5987_vm1, %v4293_v37  ;;  %678 = vmatpush.bf16.msra.mxu3 %v669_v20  ;;  %v543_v42 = vpack.c.bf16 %v419_v15, %v419_v15  ;;  %v1544_v56 = vld [vmem:[%s5983_s3 + $0x4] sm:$0xf] }
 0x12d   : > { %v515_v19 = vsel %vm316_vm2, %v475_v31, %v514_v12  ;;  %v507_v6 = vperm.slane %v501_v16, %v4242_v36  ;;  %v426_v51 = vrot.slane %v4264_v5, 4  ;;  %v530_v5 = vrot.slane %v487_v21, 4 }
 0x12e   : > { %v503_v22 = vsel %vm316_vm2, %v471_v44, %v502_v17  ;;  %v535_v23 = vsel %vm316_vm2, %v519_v14, %v534_v9  ;;  %v532_v24 = vrot.slane %v519_v14, 4  ;;  %v523_v25 = vperm.slane %v515_v19, %v4242_v36 }
 0x12f   : > { %v527_v26 = vsel %vm316_vm2, %v507_v6, %v526_v18  ;;  %v553_v27 = vpack.c.bf16 %v535_v23, %v535_v23  ;;  %v524_v28 = vrot.slane %v507_v6, 4  ;;  %v511_v29 = vperm.slane %v503_v22, %v4242_v36  ;;  %3878 = vmatmul.msk.bf16.vlgmr.msra.gmra.mxu3 %vm5987_vm1, %v4293_v37 }
 0x130   : > { %v549_v30 = vpack.c.bf16 %v527_v26, %v527_v26  ;;  %v533_v31 = vsel %vm316_vm2, %v532_v24, %v495_v47  ;;  %v536_v33 = vrot.slane %v523_v25, 4  ;;  %v618_v39 = vsel %vm5986_vm0, %v543_v42, 0 }
 0x131   : > { %v788_v34 = vsel %vm5986_vm0, %v553_v27, 0  ;;  %v525_v35 = vsel %vm316_vm2, %v524_v28, %v483_v63  ;;  %v552_v38 = vpack.c.bf16 %v533_v31, %v533_v31  ;;  %v528_v4 = vrot.slane %v511_v29, 4 }
 0x132   : > { %v720_v40 = vsel %vm5986_vm0, %v549_v30, 0  ;;  %v548_v41 = vpack.c.bf16 %v525_v35, %v525_v35  ;;  %v537_v43 = vsel %vm316_vm2, %v536_v33, %v499_v32  ;;  %v427_v52 = vsel %vm316_vm2, %v4303_v49, %v426_v51 }
 0x133   : > { %729 = vmatpush.bf16.msrb.mxu2 %v720_v40  ;;  %v771_v44 = vsel %vm5986_vm0, %v552_v38, 0  ;;  %v529_v36 = vsel %vm316_vm2, %v528_v4, %v487_v21  ;;  %v554_v45 = vpack.c.bf16 %v537_v43, %v537_v43  ;;  %v547_v53 = vpack.c.bf16 %v427_v52, %v427_v52 }
 0x134   : > { %v703_v46 = vsel %vm5986_vm0, %v548_v41, 0  ;;  %v550_v47 = vpack.c.bf16 %v529_v36, %v529_v36  ;;  %v531_v55 = vsel %vm316_vm2, %v511_v29, %v530_v5  ;;  %v538_v58 = vrot.slane %v499_v32, 4 }
 0x135   : > { %712 = vmatpush.bf16.msrb.mxu1 %v703_v46  ;;  %v805_v48 = vsel %vm5986_vm0, %v554_v45, 0  ;;  %v686_v54 = vsel %vm5986_vm0, %v547_v53, 0  ;;  %v551_v49 = vpack.c.bf16 %v531_v55, %v531_v55  ;;  %v1594_v62 = vsel %vm5986_vm0, %v1544_v56, 0 }
 0x136   : > { %3873 = vmatmul.msk.bf16.vlgmr.msra.gmra.mxu0 %vm5987_vm1, %v4293_v37  ;;  %v737_v50 = vsel %vm5986_vm0, %v550_v47, 0  ;;  %v539_v59 = vsel %vm316_vm2, %v523_v25, %v538_v58  ;;  %v4170_v63 = vmov 0.0   ;;  %v870_v8 = vlaneseq }
 0x137   : > { %797 = vmatpush.bf16.msra.mxu2 %v788_v34  ;;  %627 = vmatpush.bf16.msra.mxu0 %v618_v39  ;;  %v754_v57 = vsel %vm5986_vm0, %v551_v49, 0  ;;  %v555_v60 = vpack.c.bf16 %v539_v59, %v539_v59  ;;  %235 = vst.msk [vmem:[#allocation2] sm:$0xff] %vm5987_vm1, %v4170_v63  ;;  %v6061_v12 = vmov 0  ;;  %v6064_v19 = vmov 0 }
 0x138   : > { %746 = vmatpush.bf16.msrb.mxu3 %v737_v50  ;;  %3881 = vmatmul.msk.bf16.vlgmr.msrb.gmra.mxu2 %vm5987_vm1, %v4293_v37  ;;  %236 = vst.msk [vmem:[#allocation2 + $0x8] sm:$0xff] %vm5987_vm1, %v4170_v63  ;;  %v4401_v0 = vshrl.u32 %v870_v8, 7  ;;  %v6066_v43 = vmov 0  ;;  %v6075_v56 = vmov 0  ;;  %v6082_v8 = vmov 0 }
 0x139   : > { %780 = vmatpush.bf16.msra.mxu1 %v771_v44  ;;  %v822_v61 = vsel %vm5986_vm0, %v555_v60, 0  ;;  %238 = vst.msk [vmem:[#allocation2 + $0x10] sm:$0x1] %vm237_vm3, %v4170_v63 }
 0x13a   : > { %239 = vst.msk [vmem:[#allocation2 + $0x111] sm:$0xff] %vm5987_vm1, %v4170_v63  ;;  %v873_v9 = vadd.s32 16, %v4401_v0  ;;  %v907_v18 = vand.u32 15, %v4401_v0  ;;  %v875_v20 = vadd.s32 32, %v4401_v0  ;;  %v872_v30 = vadd.s32 8, %v4401_v0 }
 0x13b   : > { %4132 = vmatpush.bf16.msrb.mxu2 %v1594_v62  ;;  %240 = vst.msk [vmem:[#allocation2 + $0x119] sm:$0xff] %vm5987_vm1, %v4170_v63  ;;  %v883_v32 = vadd.s32 96, %v4401_v0  ;;  %v885_v34 = vadd.s32 112, %v4401_v0  ;;  %v878_v35 = vadd.s32 56, %v4401_v0  ;;  %v880_v40 = vadd.s32 72, %v4401_v0 }
 0x13c   : > { %814 = vmatpush.bf16.msra.mxu3 %v805_v48  ;;  %3880 = vmatmul.msk.bf16.vlgmr.msrb.gmra.mxu1 %vm5987_vm1, %v4293_v37  ;;  %241 = vst.msk [vmem:[#allocation2 + $0x121] sm:$0x1] %vm237_vm3, %v4170_v63  ;;  %v921_v11 = vand.u32 15, %v873_v9  ;;  %vm4415_vm5 = vcmp.ne.s32.totalorder %v907_v18, 0  ;;  %v935_v31 = vand.u32 15, %v875_v20  ;;  %v914_v42 = vand.u32 15, %v872_v30 }
 0x13d   : > { %1603 = vmatpush.bf16.msrb.mxu1 %v1594_v62  ;;  %v6065_v19 = vsel %vm4415_vm5, 4294967295, %v6064_v19  ;;  %v991_v38 = vand.u32 15, %v883_v32  ;;  %v1005_v4 = vand.u32 15, %v885_v34  ;;  %v956_v36 = vand.u32 15, %v878_v35 }
 0x13e   : > { %vm4405_vm4 = vcmp.ne.s32.totalorder %v921_v11, 0  ;;  %vm4438_vm6 = vcmp.ne.s32.totalorder %v935_v31, 0  ;;  %v6071_v48 = vmov 0  ;;  %v970_v5 = vand.u32 15, %v880_v40 }
 0x13f   : > { %3882 = vmatmul.msk.bf16.vlgmr.msrb.gmra.mxu3 %vm5987_vm1, %v4293_v37  ;;  %v1496_v1 = vld [vmem:[#allocation2 + $0x1] sm:$0xff]  ;;  %v6062_v12 = vsel %vm4405_vm4, 4294967295, %v6061_v12  ;;  %v6067_v43 = vsel %vm4438_vm6, 4294967295, %v6066_v43  ;;  %vm4442_vm7 = vcmp.ne.s32.totalorder %v991_v38, 0  ;;  %vm4448_vm8 = vcmp.ne.s32.totalorder %v1005_v4, 0 }
 0x140   : > { %4133 = vmatpush.bf16.msrb.mxu3 %v1594_v62  ;;  %v1497_v2 = vld [vmem:[#allocation2 + $0x9] sm:$0xff]  ;;  %6063 = vst [vmem:[#allocation3_spill] sm:$0xff] %v6062_v12  ;;  %v6072_v48 = vsel %vm4448_vm8, 4294967295, %v6071_v48  ;;  %v882_v55 = vadd.s32 88, %v4401_v0  ;;  %vm4466_vm9 = vcmp.ne.s32.totalorder %v914_v42, 15  ;;  %vm4478_vm10 = vcmp.ne.s32.totalorder %v956_v36, 15 }
 0x141   : > { %v1528_v3 = vpack.c.bf16 %v1497_v2, %v1496_v1  ;;  %6068 = vst [vmem:[#allocation4_spill] sm:$0xff] %v6067_v43  ;;  %v6076_v56 = vsel %vm4478_vm10, 4294967295, %v6075_v56  ;;  %vm4499_vm11 = vcmp.ne.s32.totalorder %v970_v5, 15  ;;  %v891_v4 = vadd.s32 160, %v4401_v0 }
 0x142   : > { %v6083_v8 = vsel %vm4499_vm11, 4294967295, %v6082_v8  ;;  %v984_v9 = vand.u32 15, %v882_v55  ;;  %v893_v40 = vadd.s32 176, %v4401_v0  ;;  %v874_v36 = vadd.s32 24, %v4401_v0 }
 0x143   : > { %6084 = vst [vmem:[#allocation10_spill] sm:$0xff] %v6083_v8  ;;  %v6094_v5 = vmov 0  ;;  %v6097_v55 = vmov 0 }
 0x144   : > { %vm4516_vm12 = vcmp.ne.s32.totalorder %v984_v9, 15 }
 0x146   : > { %3874 = vmatmul.msk.bf16.vlgmr.msrb.gmra.mxu0 %vm5987_vm1, %v4293_v37 }
 0x147   : > { %695 = vmatpush.bf16.msrb.mxu0 %v686_v54 }
 0x148   : > { %3885 = vmatmul.msk.bf16.vlgmr.msra.gmra.mxu2 %vm5987_vm1, %v4293_v37 }
 0x14c   : > { %3884 = vmatmul.msk.bf16.vlgmr.msra.gmra.mxu1 %vm5987_vm1, %v4293_v37 }
 0x14f   : > { %3886 = vmatmul.msk.bf16.vlgmr.msra.gmra.mxu3 %vm5987_vm1, %v4293_v37 }
 0x156   : > { %3875 = vmatmul.msk.bf16.vlgmr.msra.gmra.mxu0 %vm5987_vm1, %v4293_v37 }
 0x157   : > { %763 = vmatpush.bf16.msra.mxu0 %v754_v57 }
 0x15c   : > { %3888 = vmatmul.msk.bf16.vlgmr.msrb.gmra.mxu1 %vm5987_vm1, %v1528_v3 }
 0x166   : > { %3879 = vmatmul.msk.bf16.vlgmr.msrb.gmra.mxu0 %vm5987_vm1, %v4293_v37 }
 0x167   : > { %831 = vmatpush.bf16.msrb.mxu0 %v822_v61 }
 0x176   : > { %3883 = vmatmul.msk.bf16.vlgmr.msra.gmra.mxu0 %vm5987_vm1, %v4293_v37 }
 0x186   : > { %3887 = vmatmul.msk.bf16.vlgmr.msrb.gmra.mxu0 %vm5987_vm1, %v4293_v37  ;;  %v2272_v37 = vsel %vm5986_vm0, %v2222_v7, 0 }
 0x187   : > { %2281 = vmatpush.bf16.msra.mxu0 %v2272_v37 }
 0x1a3   : > { %v578_v10 = vpop.f32.mrf.mxu0 }
 0x1a4   : > { %838 = vst.msk [vmem:[#allocation2 + $0x11] sm:$0xff] %vm5987_vm1, %v578_v10 }
 0x1a9   : > { %v646_v13 = vpop.f32.mrf.mxu1 }
 0x1aa   : > { %v663_v15 = vpop.f32.mrf.mxu2  ;;  %846 = vst.msk [vmem:[#allocation2 + $0x51] sm:$0xff] %vm5987_vm1, %v646_v13 }
 0x1ab   : > { %v580_v16 = vpop.f32.mrf.mxu0  ;;  %v2142_v17 = vld [vmem:[#allocation2 + $0x10] sm:$0xff]  ;;  %848 = vst.msk [vmem:[#allocation2 + $0x61] sm:$0xff] %vm5987_vm1, %v663_v15 }
 0x1ac   : > { %839 = vst.msk [vmem:[#allocation2 + $0x19] sm:$0xff] %vm5987_vm1, %v580_v16  ;;  %v1449_v14 = vsel %vm4405_vm4, %v2142_v17, 0.0  ;;  %v1498_v23 = vld [vmem:[#allocation2 + $0x11] sm:$0xff]  ;;  %v2174_v26 = vsel %vm4415_vm5, %v2142_v17, 0.0  ;;  %v877_v16 = vadd.s32 48, %v4401_v0  ;;  %v6086_v17 = vmov 0 }
 0x1ad   : > { %v6087_v17 = vsel %vm4516_vm12, 4294967295, %v6086_v17 }
 0x1ae   : > { %6088 = vst [vmem:[#allocation12_spill] sm:$0xff] %v6087_v17  ;;  %v949_v35 = vand.u32 15, %v877_v16 }
 0x1b0   : > { %vm4560_vm13 = vcmp.ne.s32.totalorder %v949_v35, 0 }
 0x1b1   : > { %v648_v6 = vpop.f32.mrf.mxu1  ;;  %v1506_v41 = vld [vmem:[#allocation2 + $0x51] sm:$0xff]  ;;  %v6095_v5 = vsel %vm4560_vm13, 4294967295, %v6094_v5 }
 0x1b2   : > { %v665_v21 = vpop.f32.mrf.mxu2  ;;  %847 = vst.msk [vmem:[#allocation2 + $0x59] sm:$0xff] %vm5987_vm1, %v648_v6  ;;  %v680_v29 = vpop.f32.mrf.mxu3 }
 0x1b3   : > { %v595_v22 = vpop.f32.mrf.mxu0  ;;  %v1499_v24 = vld [vmem:[#allocation2 + $0x19] sm:$0xff]  ;;  %849 = vst.msk [vmem:[#allocation2 + $0x69] sm:$0xff] %vm5987_vm1, %v665_v21 }
 0x1b4   : > { %v2143_v25 = vld [vmem:[#allocation2 + $0x18] sm:$0xff]  ;;  %840 = vst.msk [vmem:[#allocation2 + $0x21] sm:$0xff] %vm5987_vm1, %v595_v22  ;;  %v4424_v27 = vpack.c.bf16 %v1499_v24, %v1498_v23 }
 0x1b5   : > { %v2206_v28 = vpack.c.bf16 %v2143_v25, %v2174_v26  ;;  %v4429_v33 = vpack.c.bf16 %v2143_v25, %v1449_v14  ;;  %850 = vst.msk [vmem:[#allocation2 + $0x71] sm:$0xff] %vm5987_vm1, %v680_v29  ;;  %v4497_v37 = vld [vmem:[#allocation2 + $0x12] sm:$0xff] }
 0x1b6   : > { %3889 = vmatmul.msk.bf16.gmra.mxu1 %vm5987_vm1, %v4424_v27  ;;  %6096 = vst [vmem:[#allocation18_spill] sm:$0xff] %v6095_v5  ;;  %v884_v5 = vadd.s32 104, %v4401_v0 }
 0x1b7   : > { %3936 = vmatmul.msk.bf16.vlgmr.msra.gmra.mxu0 %vm5987_vm1, %v2206_v28 }
 0x1b9   : > { %v1507_v45 = vld [vmem:[#allocation2 + $0x59] sm:$0xff]  ;;  %v714_v46 = vpop.f32.mrf.mxu1 }
 0x1ba   : > { %v4446_v47 = vld [vmem:[#allocation2 + $0x60] sm:$0xff]  ;;  %v4452_v51 = vpack.c.bf16 %v1507_v45, %v1506_v41  ;;  %854 = vst.msk [vmem:[#allocation2 + $0x91] sm:$0xff] %vm5987_vm1, %v714_v46  ;;  %v682_v49 = vpop.f32.mrf.mxu3  ;;  %v4462_v57 = vld [vmem:[#allocation2 + $0x68] sm:$0xff]  ;;  %v4491_v2 = vld [vmem:[#allocation2 + $0x52] sm:$0xff]  ;;  %v1047_v45 = vand.u32 15, %v891_v4  ;;  %v1061_v46 = vand.u32 15, %v893_v40 }
 0x1bb   : > { %v2869_v39 = vld [vmem:[#allocation2 + $0x20] sm:$0xff]  ;;  %v597_v50 = vpop.f32.mrf.mxu0  ;;  %v731_v52 = vpop.f32.mrf.mxu2  ;;  %v1459_v54 = vsel %vm4442_vm7, %v4446_v47, 0.0  ;;  %851 = vst.msk [vmem:[#allocation2 + $0x79] sm:$0xff] %vm5987_vm1, %v682_v49  ;;  %v1509_v42 = vld [vmem:[#allocation2 + $0x69] sm:$0xff] }
 0x1bc   : > { %v4455_v53 = vld [vmem:[#allocation2 + $0x1a] sm:$0xff]  ;;  %841 = vst.msk [vmem:[#allocation2 + $0x29] sm:$0xff] %vm5987_vm1, %v597_v50  ;;  %v1451_v58 = vsel %vm4438_vm6, %v2869_v39, 0.0  ;;  %3893 = vmatmul.msk.bf16.vlgmr.msrb.gmra.mxu2 %vm5987_vm1, %v4452_v51  ;;  %v4473_v60 = vld [vmem:[#allocation2 + $0x70] sm:$0xff]  ;;  %v4486_v63 = vpack.c.bf16 %v4462_v57, %v1459_v54  ;;  %v4493_v3 = vld [vmem:[#allocation2 + $0x62] sm:$0xff]  ;;  %v2176_v26 = vsel %vm4405_vm4, %v2869_v39, 0.0 }
 0x1bd   : > { %856 = vst.msk [vmem:[#allocation2 + $0xa1] sm:$0xff] %vm5987_vm1, %v731_v52  ;;  %v2649_v61 = vsel %vm4466_vm9, %v4455_v53, 0.0  ;;  %v4482_v62 = vld [vmem:[#allocation2 + $0x5a] sm:$0xff]  ;;  %v1461_v1 = vsel %vm4448_vm8, %v4473_v60, 0.0  ;;  %v4495_v7 = vld [vmem:[#allocation2 + $0x6a] sm:$0xff]  ;;  %v886_v50 = vadd.s32 120, %v4401_v0 }
 0x1be   : > { %6077 = vst [vmem:[#allocation5_spill] sm:$0xff] %v4482_v62  ;;  %v4504_v10 = vpack.c.bf16 %v2649_v61, %v4497_v37  ;;  %v3382_v11 = vsel %vm4478_vm10, %v4482_v62, 0.0  ;;  %v3384_v13 = vsel %vm4499_vm11, %v4495_v7, 0.0  ;;  %v2657_v15 = vsel %vm4499_vm11, %v4482_v62, 0.0  ;;  %v1500_v23 = vld [vmem:[#allocation2 + $0x21] sm:$0xff] }
 0x1bf   : > { %6078 = vst [vmem:[#allocation6_spill] sm:$0xff] %v4486_v63  ;;  %v4521_v18 = vpack.c.bf16 %v3382_v11, %v4491_v2  ;;  %v4524_v14 = vpack.c.bf16 %v3384_v13, %v4493_v3  ;;  %v4527_v6 = vpack.c.bf16 %v2657_v15, %v4491_v2  ;;  %v2659_v21 = vsel %vm4516_vm12, %v4495_v7, 0.0  ;;  %v1508_v41 = vld [vmem:[#allocation2 + $0x61] sm:$0xff] }
 0x1c0   : > { %6079 = vst [vmem:[#allocation7_spill] sm:$0xff] %v4491_v2  ;;  %v4536_v29 = vpack.c.bf16 %v2659_v21, %v4493_v3  ;;  %v888_v52 = vadd.s32 136, %v4401_v0  ;;  %v4558_v54 = vpack.c.bf16 %v1509_v42, %v1508_v41  ;;  %vm4564_vm14 = vcmp.ne.s32.totalorder %v1047_v45, 0 }
 0x1c1   : > { %6080 = vst [vmem:[#allocation8_spill] sm:$0xff] %v4493_v3  ;;  %v716_v20 = vpop.f32.mrf.mxu1  ;;  %v6098_v55 = vsel %vm4564_vm14, 4294967295, %v6097_v55  ;;  %v928_v61 = vand.u32 15, %v874_v36  ;;  %vm4570_vm15 = vcmp.ne.s32.totalorder %v1061_v46, 0  ;;  %v1012_v16 = vand.u32 15, %v886_v50 }
 0x1c2   : > { %6081 = vst [vmem:[#allocation9_spill] sm:$0xff] %v4495_v7  ;;  %v748_v32 = vpop.f32.mrf.mxu3  ;;  %v4544_v38 = vld [vmem:[#allocation2 + $0x78] sm:$0xff]  ;;  %v890_v21 = vadd.s32 152, %v4401_v0  ;;  %v6107_v41 = vmov 0  ;;  %v6110_v42 = vmov 0  ;;  %vm6126_vm4 = vcmask 1043456  }
 0x1c3   : > { %6085 = vst [vmem:[#allocation11_spill] sm:$0xff] %v4504_v10  ;;  %v612_v22 = vpop.f32.mrf.mxu0  ;;  %v1501_v24 = vld [vmem:[#allocation2 + $0x29] sm:$0xff]  ;;  %v733_v28 = vpop.f32.mrf.mxu2  ;;  %v4554_v39 = vpack.c.bf16 %v4544_v38, %v1461_v1  ;;  %v6100_v1 = vmov 0  ;;  %vm4598_vm2 = vcmp.ne.s32.totalorder %v928_v61, 15  ;;  %vm4609_vm3 = vcmp.ne.s32.totalorder %v1012_v16, 15 }
 0x1c4   : > { %6089 = vst [vmem:[#allocation13_spill] sm:$0xff] %v4521_v18  ;;  %v2145_v25 = vld [vmem:[#allocation2 + $0x28] sm:$0xff]  ;;  %v4539_v30 = vpack.c.bf16 %v1501_v24, %v1500_v23  ;;  %v6101_v1 = vsel %vm4570_vm15, 4294967295, %v6100_v1  ;;  %v6108_v41 = vsel %vm4609_vm3, 4294967295, %v6107_v41  ;;  %v1040_v36 = vand.u32 15, %v890_v21 }
 0x1c5   : > { %6090 = vst [vmem:[#allocation14_spill] sm:$0xff] %v4524_v14  ;;  %v2207_v31 = vpack.c.bf16 %v2145_v25, %v2176_v26  ;;  %v4541_v34 = vpack.c.bf16 %v2145_v25, %v1451_v58  ;;  %v1516_v49 = vld [vmem:[#allocation2 + $0xa1] sm:$0xff]  ;;  %v894_v62 = vadd.s32 184, %v4401_v0 }
 0x1c6   : > { %6091 = vst [vmem:[#allocation15_spill] sm:$0xff] %v4527_v6  ;;  %3890 = vmatmul.msk.bf16.gmra.mxu1 %vm5987_vm1, %v4539_v30  ;;  %v4602_v4 = vld [vmem:[#allocation2 + $0x22] sm:$0xff] }
 0x1c7   : > { %855 = vst.msk [vmem:[#allocation2 + $0x99] sm:$0xff] %vm5987_vm1, %v716_v20  ;;  %3937 = vmatmul.msk.bf16.gmra.mxu0 %vm5987_vm1, %v2207_v31  ;;  %v1026_v20 = vand.u32 15, %v888_v52 }
 0x1c8   : > { %6092 = vst [vmem:[#allocation16_spill] sm:$0xff] %v4536_v29  ;;  %v6119_v29 = vmov 0 }
 0x1c9   : > { %842 = vst.msk [vmem:[#allocation2 + $0x31] sm:$0xff] %vm5987_vm1, %v612_v22  ;;  %vm4613_vm0 = vcmp.ne.s32.totalorder %v1026_v20, 15 }
 0x1ca   : > { %857 = vst.msk [vmem:[#allocation2 + $0xa9] sm:$0xff] %vm5987_vm1, %v733_v28  ;;  %v750_v22 = vpop.f32.mrf.mxu3  ;;  %v6111_v42 = vsel %vm4613_vm0, 4294967295, %v6110_v42 }
 0x1cb   : > { %858 = vst.msk [vmem:[#allocation2 + $0xb1] sm:$0xff] %vm5987_vm1, %v748_v32  ;;  %v614_v9 = vpop.f32.mrf.mxu0 }
 0x1cc   : > { %6093 = vst [vmem:[#allocation17_spill] sm:$0xff] %v4554_v39  ;;  %3894 = vmatmul.msk.bf16.gmra.mxu2 %vm5987_vm1, %v4558_v54 }
 0x1cd   : > { %6099 = vst [vmem:[#allocation19_spill] sm:$0xff] %v6098_v55 }
 0x1ce   : > { %v4568_v58 = vld [vmem:[#allocation2 + $0xa0] sm:$0xff]  ;;  %6102 = vst [vmem:[#allocation20_spill] sm:$0xff] %v6101_v1  ;;  %v4624_v52 = vld [vmem:[#allocation2 + $0x92] sm:$0xff] }
 0x1cf   : > { %v1467_v15 = vsel %vm4564_vm14, %v4568_v58, 0.0  ;;  %843 = vst.msk [vmem:[#allocation2 + $0x39] sm:$0xff] %vm5987_vm1, %v614_v9  ;;  %v4617_v45 = vld [vmem:[#allocation2 + $0x9a] sm:$0xff] }
 0x1d0   : > { %v2146_v11 = vld [vmem:[#allocation2 + $0x30] sm:$0xff]  ;;  %859 = vst.msk [vmem:[#allocation2 + $0xb9] sm:$0xff] %vm5987_vm1, %v750_v22  ;;  %v3390_v16 = vsel %vm4609_vm3, %v4617_v45, 0.0  ;;  %v2665_v21 = vsel %vm4613_vm0, %v4617_v45, 0.0 }
 0x1d1   : > { %v4574_v13 = vld [vmem:[#allocation2 + $0x2a] sm:$0xff]  ;;  %v1453_v24 = vsel %vm4560_vm13, %v2146_v11, 0.0  ;;  %6109 = vst [vmem:[#allocation23_spill] sm:$0xff] %v6108_v41  ;;  %v4656_v6 = vpack.c.bf16 %v2665_v21, %v4624_v52  ;;  %v897_v41 = vadd.s32 208, %v4401_v0 }
 0x1d2   : > { %v1517_v23 = vld [vmem:[#allocation2 + $0xa9] sm:$0xff]  ;;  %v3376_v25 = vsel %vm4466_vm9, %v4574_v13, 0.0  ;;  %6112 = vst [vmem:[#allocation24_spill] sm:$0xff] %v6111_v42  ;;  %v2651_v61 = vsel %vm4598_vm2, %v4574_v13, 0.0 }
 0x1d3   : > { %v4586_v26 = vld [vmem:[#allocation2 + $0xa8] sm:$0xff]  ;;  %v4591_v28 = vpack.c.bf16 %v1517_v23, %v1516_v49  ;;  %v4593_v31 = vld [vmem:[#allocation2 + $0xb0] sm:$0xff]  ;;  %6113 = vst [vmem:[#allocation25_spill] sm:$0xff] %v4617_v45  ;;  %v4622_v50 = vpack.c.bf16 %v3376_v25, %v4602_v4  ;;  %v4632_v9 = vpack.c.bf16 %v2651_v61, %v4602_v4  ;;  %v629_v22 = vpop.f32.mrf.mxu0 }
 0x1d4   : > { %v4596_v32 = vpack.c.bf16 %v4586_v26, %v1467_v15  ;;  %v1469_v40 = vsel %vm4570_vm15, %v4593_v31, 0.0  ;;  %v4619_v46 = vld [vmem:[#allocation2 + $0xaa] sm:$0xff]  ;;  %6116 = vst [vmem:[#allocation28_spill] sm:$0xff] %v4624_v52  ;;  %v4626_v49 = vld [vmem:[#allocation2 + $0xa2] sm:$0xff]  ;;  %v2178_v15 = vsel %vm4438_vm6, %v2146_v11, 0.0  ;;  %v4650_v11 = vpack.c.bf16 %v3390_v16, %v4624_v52 }
 0x1d5   : > { %6103 = vst [vmem:[#allocation21_spill] sm:$0xff] %v4591_v28  ;;  %3898 = vmatmul.msk.bf16.vlgmr.msrb.gmra.mxu3 %vm5987_vm1, %v4591_v28  ;;  %v3392_v20 = vsel %vm4613_vm0, %v4619_v46, 0.0  ;;  %v1502_v23 = vld [vmem:[#allocation2 + $0x31] sm:$0xff]  ;;  %vm4645_vm1 = vcmp.ne.s32.totalorder %v1040_v36, 15  ;;  %vm6125_vm6 = vcmask 64512   ;;  %vm6127_vm0 = vmmov %vm6126_vm4 }
 0x1d6   : > { %6104 = vst [vmem:[#allocation22_spill] sm:$0xff] %v4596_v32  ;;  %v1503_v25 = vld [vmem:[#allocation2 + $0x39] sm:$0xff]  ;;  %v6120_v29 = vsel %vm4645_vm1, 4294967295, %v6119_v29  ;;  %v4653_v43 = vpack.c.bf16 %v3392_v20, %v4626_v49  ;;  %v1969_v36 = vld [vmem:[%s5983_s3 + $0x8] sm:$0xf]  ;;  %vm6128_vm11 = vmmov %vm6125_vm6  ;;  %v887_v32 = vadd.s32 128, %v4401_v0 }
 0x1d7   : > { %6114 = vst [vmem:[#allocation26_spill] sm:$0xff] %v4619_v46  ;;  %v2147_v61 = vld [vmem:[#allocation2 + $0x38] sm:$0xff]  ;;  %v4659_v12 = vpack.c.bf16 %v1503_v25, %v1502_v23  ;;  %v2443_v16 = vld [vmem:[%s5983_s3 + $0x10] sm:$0xf]  ;;  %v2019_v21 = vsel %vm6126_vm4, %v1969_v36, 0 }
 0x1d8   : > { %6115 = vst [vmem:[#allocation27_spill] sm:$0xff] %v4622_v50  ;;  %v2208_v14 = vpack.c.bf16 %v2147_v61, %v2178_v15  ;;  %v4668_v20 = vpack.c.bf16 %v2147_v61, %v1453_v24  ;;  %v876_v15 = vadd.s32 40, %v4401_v0  ;;  %v1510_v23 = vld [vmem:[#allocation2 + $0x71] sm:$0xff]  ;;  %v1511_v25 = vld [vmem:[#allocation2 + $0x79] sm:$0xff]  ;;  %v2667_v24 = vsel %vm4645_vm1, %v4619_v46, 0.0  ;;  %2028 = vmatpush.bf16.msra.mxu3 %v2019_v21  ;;  %v782_v61 = vpop.f32.mrf.mxu1 }
 0x1d9   : > { %6117 = vst [vmem:[#allocation29_spill] sm:$0xff] %v4626_v49  ;;  %3891 = vmatmul.msk.bf16.gmra.mxu1 %vm6125_vm6, %v4659_v12  ;;  %v4685_v36 = vpack.c.bf16 %v2667_v24, %v4626_v49  ;;  %v1519_v18 = vld [vmem:[#allocation2 + $0xb9] sm:$0xff]  ;;  %v881_v21 = vadd.s32 80, %v4401_v0 }
 0x1da   : > { %6118 = vst [vmem:[#allocation30_spill] sm:$0xff] %v4632_v9  ;;  %3938 = vmatmul.msk.bf16.gmra.mxu0 %vm6128_vm11, %v2208_v14  ;;  %v4688_v14 = vpack.c.bf16 %v1511_v25, %v1510_v23  ;;  %v942_v10 = vand.u32 15, %v876_v15  ;;  %v6139_v23 = vmov 0 }
 0x1db   : > { %6121 = vst [vmem:[#allocation31_spill] sm:$0xff] %v6120_v29  ;;  %v898_v29 = vadd.s32 216, %v4401_v0 }
 0x1dc   : > { %6122 = vst [vmem:[#allocation32_spill] sm:$0xff] %v4650_v11  ;;  %v879_v11 = vadd.s32 64, %v4401_v0  ;;  %vm4708_vm15 = vcmp.ne.s32.totalorder %v942_v10, 15 }
 0x1dd   : > { %6123 = vst [vmem:[#allocation33_spill] sm:$0xff] %v4653_v43  ;;  %v6140_v23 = vsel %vm4708_vm15, 4294967295, %v6139_v23 }
 0x1de   : > { %6124 = vst [vmem:[#allocation34_spill] sm:$0xff] %v4656_v6  ;;  %v2493_v6 = vsel %vm6127_vm0, %v2443_v16, 0  ;;  %v1518_v16 = vld [vmem:[#allocation2 + $0xb1] sm:$0xff]  ;;  %v963_v9 = vand.u32 15, %v879_v11  ;;  %vm6131_vm0 = vmmov %vm6125_vm6  ;;  %v1495_v11 = vld [vmem:[%s5983_s3] sm:$0xf] }
 0x1df   : > { %844 = vst.msk [vmem:[#allocation2 + $0x41] sm:$0xff] %vm6125_vm6, %v629_v22  ;;  %v4672_v22 = vld [vmem:[#allocation2 + $0xb8] sm:$0xff]  ;;  %2502 = vmatpush.bf16.msra.mxu1 %v2493_v6  ;;  %v4690_v52 = vpack.c.bf16 %v1519_v18, %v1518_v16  ;;  %vm6133_vm4 = vmmov %vm6131_vm0  ;;  %v6134_v6 = vmov 0 }
 0x1e0   : > { %v4679_v43 = vpack.c.bf16 %v4672_v22, %v1469_v40  ;;  %6130 = vst [vmem:[#allocation36_spill] sm:$0xff] %v4685_v36  ;;  %v631_v40 = vpop.f32.mrf.mxu0  ;;  %vm4695_vm11 = vcmp.ne.s32.totalorder %v963_v9, 0  ;;  %vm6137_vm6 = vmmov %vm6131_vm0  ;;  %v4712_v9 = vld [vmem:[#allocation2 + $0x32] sm:$0xff] }
 0x1e1   : > { %862 = vst.msk [vmem:[#allocation2 + $0xd1] sm:$0xff] %vm6131_vm0, %v782_v61  ;;  %v6135_v6 = vsel %vm4695_vm11, 4294967295, %v6134_v6  ;;  %3895 = vmatmul.msk.bf16.gmra.mxu2 %vm6137_vm6, %v4688_v14  ;;  %vm6138_vm0 = vcmask 1043456   ;;  %v784_v61 = vpop.f32.mrf.mxu1  ;;  %vm6144_vm6 = vmmov %vm6133_vm4 }
 0x1e2   : > { %6129 = vst [vmem:[#allocation35_spill] sm:$0xff] %v4679_v43  ;;  %v1734_v18 = vsel %vm6138_vm0, %v1495_v11, 0  ;;  %vm6145_vm0 = vmmov %vm6133_vm4 }
 0x1e3   : > { %6132 = vst [vmem:[#allocation37_spill] sm:$0xff] %v4690_v52  ;;  %1743 = vmatpush.bf16.msra.mxu2 %v1734_v18  ;;  %v2151_v18 = vld [vmem:[#allocation2 + $0x58] sm:$0xff] }
 0x1e4   : > { %845 = vst.msk [vmem:[#allocation2 + $0x49] sm:$0xff] %vm6133_vm4, %v631_v40  ;;  %v977_v40 = vand.u32 15, %v881_v21 }
 0x1e5   : > { %6136 = vst [vmem:[#allocation38_spill] sm:$0xff] %v6135_v6  ;;  %3899 = vmatmul.msk.bf16.gmra.mxu3 %vm6133_vm4, %v4690_v52 }
 0x1e6   : > { %v2148_v50 = vld [vmem:[#allocation2 + $0x40] sm:$0xff]  ;;  %6141 = vst [vmem:[#allocation39_spill] sm:$0xff] %v4712_v9  ;;  %vm4735_vm4 = vcmp.ne.s32.totalorder %v977_v40, 0 }
 0x1e7   : > { %v4692_v45 = vld [vmem:[#allocation2 + $0x3a] sm:$0xff]  ;;  %v1455_v15 = vsel %vm4695_vm11, %v2148_v50, 0.0  ;;  %863 = vst.msk [vmem:[#allocation2 + $0xd9] sm:$0xff] %vm6144_vm6, %v784_v61  ;;  %v2180_v43 = vsel %vm4560_vm13, %v2148_v50, 0.0  ;;  %vm6151_vm6 = vmmov %vm6145_vm0 }
 0x1e8   : > { %v3378_v25 = vsel %vm4598_vm2, %v4692_v45, 0.0  ;;  %v2653_v24 = vsel %vm4708_vm15, %v4692_v45, 0.0  ;;  %v1504_v11 = vld [vmem:[#allocation2 + $0x41] sm:$0xff]  ;;  %v697_v36 = vpop.f32.mrf.mxu0  ;;  %vm6153_vm13 = vmmov %vm6145_vm0 }
 0x1e9   : > { %v4723_v10 = vpack.c.bf16 %v3378_v25, %v4712_v9  ;;  %v4726_v16 = vpack.c.bf16 %v2653_v24, %v4712_v9  ;;  %852 = vst.msk [vmem:[#allocation2 + $0x81] sm:$0xff] %vm6145_vm0, %v697_v36  ;;  %v1019_v36 = vand.u32 15, %v887_v32  ;;  %v889_v32 = vadd.s32 144, %v4401_v0 }
 0x1ea   : > { %v901_v9 = vadd.s32 240, %v4401_v0 }
 0x1eb   : > { %6142 = vst [vmem:[#allocation40_spill] sm:$0xff] %v4723_v10  ;;  %v1505_v49 = vld [vmem:[#allocation2 + $0x49] sm:$0xff]  ;;  %v1033_v52 = vand.u32 15, %v889_v32 }
 0x1ec   : > { %6143 = vst [vmem:[#allocation41_spill] sm:$0xff] %v4726_v16  ;;  %v2149_v46 = vld [vmem:[#allocation2 + $0x48] sm:$0xff]  ;;  %v2150_v42 = vld [vmem:[#allocation2 + $0x50] sm:$0xff]  ;;  %v4733_v25 = vpack.c.bf16 %v1505_v49, %v1504_v11  ;;  %v6146_v16 = vmov 0  ;;  %v799_v49 = vpop.f32.mrf.mxu2 }
 0x1ed   : > { %v2209_v24 = vpack.c.bf16 %v2149_v46, %v2180_v43  ;;  %v6147_v16 = vsel %vm4735_vm4, 4294967295, %v6146_v16  ;;  %v4739_v21 = vpack.c.bf16 %v2149_v46, %v1455_v15  ;;  %v4741_v61 = vld [vmem:[#allocation2 + $0x42] sm:$0xff]  ;;  %v4743_v10 = vld [vmem:[#allocation2 + $0x4a] sm:$0xff]  ;;  %v1457_v50 = vsel %vm4735_vm4, %v2150_v42, 0.0  ;;  %864 = vst.msk [vmem:[#allocation2 + $0xe1] sm:$0xff] %vm6153_vm13, %v799_v49 }
 0x1ee   : > { %6148 = vst [vmem:[#allocation42_spill] sm:$0xff] %v6147_v16  ;;  %3892 = vmatmul.msk.bf16.gmra.mxu1 %vm6151_vm6, %v4733_v25  ;;  %v4751_v43 = vpack.c.bf16 %v2151_v18, %v1457_v50  ;;  %v3380_v46 = vsel %vm4708_vm15, %v4743_v10, 0.0  ;;  %v2655_v40 = vsel %vm4478_vm10, %v4743_v10, 0.0  ;;  %vm4768_vm6 = vcmp.ne.s32.totalorder %v1019_v36, 0  ;;  %vm6172_vm10 = vmmov %vm6145_vm0 }
 0x1ef   : > { %6149 = vst [vmem:[#allocation43_spill] sm:$0xff] %v4741_v61  ;;  %3939 = vmatmul.msk.bf16.gmra.mxu0 %vm6145_vm0, %v2209_v24  ;;  %v4757_v15 = vpack.c.bf16 %v3380_v46, %v4741_v61  ;;  %v4764_v11 = vpack.c.bf16 %v2655_v40, %v4741_v61  ;;  %v998_v24 = vand.u32 15, %v884_v5  ;;  %v4779_v40 = vld [vmem:[#allocation2 + $0x72] sm:$0xff]  ;;  %v6159_v36 = vmov 0  ;;  %vm6173_vm15 = vmmov %vm6145_vm0 }
 0x1f0   : > { %6150 = vst [vmem:[#allocation44_spill] sm:$0xff] %v4743_v10  ;;  %v699_v50 = vpop.f32.mrf.mxu0  ;;  %v4766_v3 = vld [vmem:[#allocation2 + $0x80] sm:$0xff]  ;;  %v2182_v17 = vsel %vm4695_vm11, %v2150_v42, 0.0  ;;  %v892_v42 = vadd.s32 168, %v4401_v0  ;;  %v896_v10 = vadd.s32 200, %v4401_v0  ;;  %vm6170_vm11 = vmmov %vm6145_vm0 }
 0x1f1   : > { %6152 = vst [vmem:[#allocation45_spill] sm:$0xff] %v4757_v15  ;;  %v4773_v46 = vld [vmem:[#allocation2 + $0x7a] sm:$0xff]  ;;  %v1463_v49 = vsel %vm4768_vm6, %v4766_v3, 0.0  ;;  %vm4784_vm13 = vcmp.ne.s32.totalorder %v998_v24, 15  ;;  %v895_v24 = vadd.s32 192, %v4401_v0 }
 0x1f2   : > { %6154 = vst [vmem:[#allocation46_spill] sm:$0xff] %v4764_v11  ;;  %v3386_v5 = vsel %vm4516_vm12, %v4773_v46, 0.0  ;;  %v6160_v36 = vsel %vm4784_vm13, 4294967295, %v6159_v36  ;;  %vm4808_vm12 = vcmp.ne.s32.totalorder %v1033_v52, 0 }
 0x1f3   : > { %6157 = vst [vmem:[#allocation47_spill] sm:$0xff] %v4773_v46  ;;  %v4789_v11 = vpack.c.bf16 %v3386_v5, %v4779_v40  ;;  %v1512_v5 = vld [vmem:[#allocation2 + $0x81] sm:$0xff]  ;;  %v1075_v6 = vand.u32 15, %v895_v24 }
 0x1f4   : > { %853 = vst.msk [vmem:[#allocation2 + $0x89] sm:$0xff] %vm6145_vm0, %v699_v50  ;;  %v2661_v50 = vsel %vm4784_vm13, %v4773_v46, 0.0  ;;  %v801_v15 = vpop.f32.mrf.mxu2  ;;  %v2210_v46 = vpack.c.bf16 %v2151_v18, %v2182_v17  ;;  %v1068_v17 = vand.u32 15, %v894_v62  ;;  %v899_v18 = vadd.s32 224, %v4401_v0  ;;  %v816_v62 = vpop.f32.mrf.mxu3 }
 0x1f5   : > { %6158 = vst [vmem:[#allocation48_spill] sm:$0xff] %v4779_v40  ;;  %v4795_v2 = vpack.c.bf16 %v2661_v50, %v4779_v40  ;;  %v6164_v50 = vmov 0 }
 0x1f6   : > { %6161 = vst [vmem:[#allocation49_spill] sm:$0xff] %v6160_v36  ;;  %v6165_v50 = vsel %vm4808_vm12, 4294967295, %v6164_v50 }
 0x1f7   : > { %6162 = vst [vmem:[#allocation50_spill] sm:$0xff] %v4789_v11  ;;  %v4802_v11 = vld [vmem:[#allocation2 + $0x98] sm:$0xff] }
 0x1f8   : > { %6163 = vst [vmem:[#allocation51_spill] sm:$0xff] %v4795_v2  ;;  %v765_v28 = vpop.f32.mrf.mxu0 }
 0x1f9   : > { %865 = vst.msk [vmem:[#allocation2 + $0xe9] sm:$0xff] %vm6145_vm0, %v801_v15 }
 0x1fa   : > { %6166 = vst [vmem:[#allocation52_spill] sm:$0xff] %v6165_v50 }
 0x1fb   : > { %v1513_v39 = vld [vmem:[#allocation2 + $0x89] sm:$0xff]  ;;  %860 = vst.msk [vmem:[#allocation2 + $0xc1] sm:$0xff] %vm6145_vm0, %v765_v28  ;;  %v1103_v28 = vand.u32 15, %v899_v18 }
 0x1fc   : > { %v4804_v61 = vld [vmem:[#allocation2 + $0x88] sm:$0xff]  ;;  %v4806_v32 = vld [vmem:[#allocation2 + $0x90] sm:$0xff]  ;;  %v4814_v15 = vpack.c.bf16 %v1513_v39, %v1512_v5  ;;  %866 = vst.msk [vmem:[#allocation2 + $0xf1] sm:$0xff] %vm6173_vm15, %v816_v62  ;;  %v1054_v5 = vand.u32 15, %v892_v42 }
 0x1fd   : > { %v4817_v2 = vpack.c.bf16 %v4804_v61, %v1463_v49  ;;  %v4819_v40 = vld [vmem:[#allocation2 + $0x8a] sm:$0xff]  ;;  %v1465_v52 = vsel %vm4808_vm12, %v4806_v32, 0.0  ;;  %v4825_v8 = vld [vmem:[#allocation2 + $0x82] sm:$0xff]  ;;  %v4862_v62 = vld [vmem:[#allocation2 + $0xd2] sm:$0xff] }
 0x1fe   : > { %6168 = vst [vmem:[#allocation54_spill] sm:$0xff] %v4819_v40  ;;  %3896 = vmatmul.msk.bf16.gmra.mxu2 %vm6145_vm0, %v4814_v15  ;;  %v4832_v39 = vpack.c.bf16 %v4802_v11, %v1465_v52  ;;  %3952 = vmatmul.msk.bf16.vlgmr.msra.gmra.mxu1 %vm6172_vm10, %v4424_v27  ;;  %v3388_v49 = vsel %vm4784_vm13, %v4819_v40, 0.0  ;;  %v2663_v24 = vsel %vm4609_vm3, %v4819_v40, 0.0  ;;  %vm4843_vm0 = vcmp.ne.s32.totalorder %v1075_v6, 0  ;;  %v4851_v27 = vld [vmem:[#allocation2 + $0xda] sm:$0xff] }
 0x1ff   : > { %6167 = vst [vmem:[#allocation53_spill] sm:$0xff] %v4817_v2  ;;  %3940 = vmatmul.msk.bf16.gmra.mxu0 %vm6170_vm11, %v2210_v46  ;;  %v6174_v46 = vmov 0  ;;  %vm4847_vm11 = vcmp.ne.s32.totalorder %v1068_v17, 15  ;;  %v6177_v52 = vmov 0  ;;  %v4854_v18 = vpack.c.bf16 %v3388_v49, %v4825_v8 }
 0x200   : > { %6169 = vst [vmem:[#allocation55_spill] sm:$0xff] %v4825_v8  ;;  %v6175_v46 = vsel %vm4843_vm0, 4294967295, %v6174_v46  ;;  %v6178_v52 = vsel %vm4847_vm11, 4294967295, %v6177_v52  ;;  %vm4858_vm10 = vcmp.ne.s32.totalorder %v1103_v28, 0  ;;  %v6183_v40 = vmov 0  ;;  %v4871_v49 = vld [vmem:[#allocation2 + $0xe8] sm:$0xff] }
 0x201   : > { %6171 = vst [vmem:[#allocation56_spill] sm:$0xff] %v4832_v39  ;;  %v4856_v39 = vld [vmem:[#allocation2 + $0xe0] sm:$0xff]  ;;  %v6184_v40 = vsel %vm4858_vm10, 4294967295, %v6183_v40  ;;  %v1082_v6 = vand.u32 15, %v896_v10  ;;  %v4865_v42 = vpack.c.bf16 %v2663_v24, %v4825_v8  ;;  %v3398_v17 = vsel %vm4847_vm11, %v4851_v27, 0.0  ;;  %v767_v10 = vpop.f32.mrf.mxu0 }
 0x202   : > { %6176 = vst [vmem:[#allocation57_spill] sm:$0xff] %v6175_v46  ;;  %v1475_v28 = vsel %vm4858_vm10, %v4856_v39, 0.0  ;;  %v4879_v36 = vld [vmem:[#allocation2 + $0xc0] sm:$0xff]  ;;  %vm4890_vm3 = vcmp.ne.s32.totalorder %v1054_v5, 15  ;;  %v6192_v2 = vmov 0 }
 0x203   : > { %6179 = vst [vmem:[#allocation58_spill] sm:$0xff] %v6178_v52  ;;  %v4882_v24 = vpack.c.bf16 %v4871_v49, %v1475_v28  ;;  %v1471_v8 = vsel %vm4843_vm0, %v4879_v36, 0.0  ;;  %v6193_v2 = vsel %vm4890_vm3, 4294967295, %v6192_v2  ;;  %vm4896_vm13 = vcmp.ne.s32.totalorder %v1082_v6, 15  ;;  %v1520_v63 = vld [vmem:[#allocation2 + $0xc1] sm:$0xff] }
 0x204   : > { %6180 = vst [vmem:[#allocation59_spill] sm:$0xff] %v4851_v27  ;;  %v2673_v6 = vsel %vm4896_vm13, %v4851_v27, 0.0 }
 0x205   : > { %6181 = vst [vmem:[#allocation60_spill] sm:$0xff] %v4854_v18  ;;  %v4877_v18 = vpack.c.bf16 %v3398_v17, %v4862_v62  ;;  %v4894_v17 = vld [vmem:[#allocation2 + $0xb2] sm:$0xff] }
 0x206   : > { %6182 = vst [vmem:[#allocation61_spill] sm:$0xff] %v4856_v39  ;;  %v4916_v39 = vpack.c.bf16 %v2673_v6, %v4862_v62 }
 0x207   : > { %6185 = vst [vmem:[#allocation62_spill] sm:$0xff] %v6184_v40 }
 0x208   : > { %6186 = vst [vmem:[#allocation63_spill] sm:$0xff] %v4862_v62 }
 0x209   : > { %6187 = vst [vmem:[#allocation64_spill] sm:$0xff] %v4865_v42  ;;  %v4884_v42 = vld [vmem:[#allocation2 + $0xba] sm:$0xff]  ;;  %v833_v6 = vpop.f32.mrf.mxu0 }
 0x20a   : > { %6188 = vst [vmem:[#allocation65_spill] sm:$0xff] %v4871_v49  ;;  %v3394_v28 = vsel %vm4645_vm1, %v4884_v42, 0.0  ;;  %v818_v49 = vpop.f32.mrf.mxu3 }
 0x20b   : > { %6189 = vst [vmem:[#allocation66_spill] sm:$0xff] %v4877_v18  ;;  %v6196_v18 = vmov 0  ;;  %v4907_v5 = vpack.c.bf16 %v3394_v28, %v4894_v17  ;;  %v2184_v28 = vsel %vm4735_vm4, %v4446_v47, 0.0  ;;  %vm6208_vm4 = vmmov %vm6173_vm15 }
 0x20c   : > { %6190 = vst [vmem:[#allocation67_spill] sm:$0xff] %v4882_v24  ;;  %v6197_v18 = vsel %vm4896_vm13, 4294967295, %v6196_v18  ;;  %v1089_v24 = vand.u32 15, %v897_v41  ;;  %v1515_v41 = vld [vmem:[#allocation2 + $0x99] sm:$0xff]  ;;  %vm6211_vm10 = vmmov %vm6208_vm4 }
 0x20d   : > { %6191 = vst [vmem:[#allocation68_spill] sm:$0xff] %v4884_v42  ;;  %vm6212_vm0 = vmmov %vm6208_vm4 }
 0x20e   : > { %861 = vst.msk [vmem:[#allocation2 + $0xc9] sm:$0xff] %vm6173_vm15, %v767_v10  ;;  %v2669_v10 = vsel %vm4890_vm3, %v4884_v42, 0.0  ;;  %v1514_v42 = vld [vmem:[#allocation2 + $0x91] sm:$0xff]  ;;  %vm4925_vm1 = vcmp.ne.s32.totalorder %v1089_v24, 0  ;;  %v1096_v24 = vand.u32 15, %v898_v29  ;;  %3953 = vmatmul.msk.bf16.gmra.mxu1 %vm6212_vm0, %v4539_v30 }
 0x20f   : > { %6194 = vst [vmem:[#allocation69_spill] sm:$0xff] %v6193_v2  ;;  %v4910_v40 = vpack.c.bf16 %v2669_v10, %v4894_v17  ;;  %v4923_v10 = vld [vmem:[#allocation2 + $0xd8] sm:$0xff]  ;;  %v4933_v62 = vpack.c.bf16 %v1515_v41, %v1514_v42 }
 0x210   : > { %6195 = vst [vmem:[#allocation70_spill] sm:$0xff] %v4894_v17  ;;  %v2211_v17 = vpack.c.bf16 %v4462_v57, %v2184_v28  ;;  %v1117_v57 = vand.u32 15, %v901_v9  ;;  %v4978_v9 = vld [vmem:[#allocation2 + $0xf0] sm:$0xff]  ;;  %v6218_v28 = vmov 0 }
 0x211   : > { %6198 = vst [vmem:[#allocation71_spill] sm:$0xff] %v6197_v18  ;;  %3897 = vmatmul.msk.bf16.gmra.mxu2 %vm6208_vm4, %v4933_v62  ;;  %v1522_v2 = vld [vmem:[#allocation2 + $0xd1] sm:$0xff] }
 0x212   : > { %6199 = vst [vmem:[#allocation72_spill] sm:$0xff] %v4907_v5  ;;  %3941 = vmatmul.msk.bf16.gmra.mxu0 %vm6211_vm10, %v2211_v17  ;;  %vm4980_vm0 = vcmp.ne.s32.totalorder %v1117_v57, 0 }
 0x213   : > { %6200 = vst [vmem:[#allocation73_spill] sm:$0xff] %v4910_v40  ;;  %v6202_v40 = vmov 0  ;;  %v6219_v28 = vsel %vm4980_vm0, 4294967295, %v6218_v28 }
 0x214   : > { %6201 = vst [vmem:[#allocation74_spill] sm:$0xff] %v4916_v39  ;;  %v6203_v40 = vsel %vm4925_vm1, 4294967295, %v6202_v40 }
 0x215   : > { %867 = vst.msk [vmem:[#allocation2 + $0xf9] sm:$0xff] %vm6173_vm15, %v818_v49  ;;  %v1521_v5 = vld [vmem:[#allocation2 + $0xc9] sm:$0xff] }
 0x216   : > { %6204 = vst [vmem:[#allocation75_spill] sm:$0xff] %v6203_v40  ;;  %v4929_v39 = vld [vmem:[#allocation2 + $0xc8] sm:$0xff]  ;;  %v4931_v49 = vld [vmem:[#allocation2 + $0xd0] sm:$0xff]  ;;  %v4935_v27 = vpack.c.bf16 %v1521_v5, %v1520_v63 }
 0x217   : > { %868 = vst.msk [vmem:[#allocation2 + $0x101] sm:$0xff] %vm6173_vm15, %v833_v6  ;;  %v4939_v47 = vpack.c.bf16 %v4929_v39, %v1471_v8  ;;  %v4941_v16 = vld [vmem:[#allocation2 + $0xca] sm:$0xff]  ;;  %v1473_v46 = vsel %vm4925_vm1, %v4931_v49, 0.0  ;;  %v4948_v42 = vld [vmem:[#allocation2 + $0xc2] sm:$0xff]  ;;  %vm6209_vm15 = vmmov %vm6208_vm4  ;;  %vm4966_vm4 = vcmp.ne.s32.totalorder %v1096_v24, 15 }
 0x218   : > { %6206 = vst [vmem:[#allocation77_spill] sm:$0xff] %v4941_v16  ;;  %3900 = vmatmul.msk.bf16.gmra.mxu3 %vm6209_vm15, %v4935_v27  ;;  %v4955_v63 = vpack.c.bf16 %v4923_v10, %v1473_v46  ;;  %v3396_v8 = vsel %vm4890_vm3, %v4941_v16, 0.0  ;;  %v2671_v29 = vsel %vm4847_vm11, %v4941_v16, 0.0  ;;  %v4970_v46 = vld [vmem:[#allocation2 + $0xea] sm:$0xff]  ;;  %v4984_v6 = vld [vmem:[#allocation2 + $0xe2] sm:$0xff]  ;;  %vm6224_vm15 = vmmov %vm6211_vm10 }
 0x219   : > { %6205 = vst [vmem:[#allocation76_spill] sm:$0xff] %v4939_v47  ;;  %v4973_v17 = vpack.c.bf16 %v3396_v8, %v4948_v42  ;;  %v4976_v41 = vpack.c.bf16 %v2671_v29, %v4948_v42  ;;  %v3400_v24 = vsel %vm4896_vm13, %v4970_v46, 0.0  ;;  %v2675_v8 = vsel %vm4966_vm4, %v4970_v46, 0.0  ;;  %v1351_v16 = vld [vmem:[#allocation2] sm:$0xff] }
 0x21a   : > { %6207 = vst [vmem:[#allocation78_spill] sm:$0xff] %v4948_v42  ;;  %v1477_v29 = vsel %vm4980_vm0, %v4978_v9, 0.0  ;;  %v4998_v57 = vpack.c.bf16 %v3400_v24, %v4984_v6  ;;  %v5005_v18 = vpack.c.bf16 %v2675_v8, %v4984_v6  ;;  %v1447_v52 = vsel %vm4415_vm5, %v1351_v16, 0.0  ;;  %v1523_v47 = vld [vmem:[#allocation2 + $0xd9] sm:$0xff]  ;;  %vm6225_vm5 = vmmov %vm6211_vm10  ;;  %v1525_v8 = vld [vmem:[#allocation2 + $0xe9] sm:$0xff] }
 0x21b   : > { %6210 = vst [vmem:[#allocation79_spill] sm:$0xff] %v4955_v63  ;;  %v900_v63 = vadd.s32 232, %v4401_v0  ;;  %vm6226_vm13 = vmmov %vm6225_vm5 }
 0x21c   : > { %6215 = vst [vmem:[#allocation80_spill] sm:$0xff] %v4970_v46  ;;  %v1352_v46 = vld [vmem:[#allocation2 + $0x8] sm:$0xff] }
 0x21d   : > { %6216 = vst [vmem:[#allocation81_spill] sm:$0xff] %v4973_v17  ;;  %v4992_v17 = vld [vmem:[#allocation2 + $0xf8] sm:$0xff]  ;;  %v1479_v24 = vpack.c.bf16 %v1352_v46, %v1447_v52  ;;  %v1524_v46 = vld [vmem:[#allocation2 + $0xe1] sm:$0xff] }
 0x21e   : > { %6217 = vst [vmem:[#allocation82_spill] sm:$0xff] %v4976_v41  ;;  %v835_v41 = vpop.f32.mrf.mxu0  ;;  %v5001_v42 = vpack.c.bf16 %v4992_v17, %v1477_v29  ;;  %v2186_v29 = vsel %vm4442_vm7, %v4473_v60, 0.0  ;;  %3954 = vmatmul.msk.bf16.gmra.mxu1 %vm6226_vm13, %v4659_v12  ;;  %v5026_v60 = vld [vmem:[#allocation2 + $0xfa] sm:$0xff]  ;;  %vm6231_vm13 = vmmov %vm6225_vm5 }
 0x21f   : > { %6220 = vst [vmem:[#allocation83_spill] sm:$0xff] %v6219_v28 }
 0x220   : > { %6221 = vst [vmem:[#allocation84_spill] sm:$0xff] %v4998_v57  ;;  %v5013_v57 = vpack.c.bf16 %v1523_v47, %v1522_v2  ;;  %v5028_v2 = vld [vmem:[#allocation2 + $0xf2] sm:$0xff] }
 0x221   : > { %6222 = vst [vmem:[#allocation85_spill] sm:$0xff] %v5001_v42  ;;  %v1110_v42 = vand.u32 15, %v900_v63  ;;  %3904 = vmatmul.msk.bf16.vlgmr.msra.gmra.mxu2 %vm6211_vm10, %v1479_v24  ;;  %v5042_v63 = vpop.f32.mrf.mxu1  ;;  %v5044_v24 = vpack.c.bf16 %v1525_v8, %v1524_v46  ;;  %v1527_v46 = vld [vmem:[#allocation2 + $0xf9] sm:$0xff] }
 0x222   : > { %869 = vst.msk [vmem:[#allocation2 + $0x109] sm:$0xff] %vm6211_vm10, %v835_v41  ;;  %v2212_v41 = vpack.c.bf16 %v4544_v38, %v2186_v29  ;;  %v3402_v38 = vsel %vm4966_vm4, %v5026_v60, 0.0  ;;  %v2188_v29 = vsel %vm4448_vm8, %v4766_v3, 0.0  ;;  %vm6233_vm10 = vmmov %vm6225_vm5  ;;  %vm6234_vm8 = vcmask 1043456  }
 0x223   : > { %6223 = vst [vmem:[#allocation86_spill] sm:$0xff] %v5005_v18  ;;  %vm5022_vm11 = vcmp.ne.s32.totalorder %v1110_v42, 15  ;;  %v5037_v47 = vpack.c.bf16 %v3402_v38, %v5028_v2 }
 0x224   : > { %3942 = vmatmul.msk.bf16.gmra.mxu0 %vm6225_vm5, %v2212_v41  ;;  %v2677_v52 = vsel %vm5022_vm11, %v5026_v60, 0.0  ;;  %v2213_v41 = vpack.c.bf16 %v4804_v61, %v2188_v29  ;;  %v1526_v61 = vld [vmem:[#allocation2 + $0xf1] sm:$0xff] }
 0x225   : > { %6229 = vst [vmem:[#allocation87_spill] sm:$0xff] %v5037_v47  ;;  %v5040_v42 = vpack.c.bf16 %v2677_v52, %v5028_v2  ;;  %v2696_v52 = vld [vmem:[%s5983_s3 + $0x14] sm:$0xf] }
 0x226   : > { %v2746_v3 = vsel %vm6234_vm8, %v2696_v52, 0 }
 0x227   : > { %6230 = vst [vmem:[#allocation88_spill] sm:$0xff] %v5040_v42  ;;  %2755 = vmatpush.bf16.msrb.mxu2 %v2746_v3  ;;  %v5073_v42 = vpack.c.bf16 %v1527_v46, %v1526_v61  ;;  %v1826_v46 = vld [vmem:[#allocation2 + $0xa] sm:$0xff] }
 0x228   : > { %3901 = vmatmul.msk.bf16.gmra.mxu3 %vm6224_vm15, %v5013_v57  ;;  %vm6232_vm15 = vmmov %vm6225_vm5 }
 0x229   : > { %v5057_v38 = vpop.f32.mrf.mxu1 }
 0x22e   : > { %3955 = vmatmul.msk.bf16.gmra.mxu1 %vm6233_vm10, %v4733_v25 }
 0x231   : > { %3905 = vmatmul.msk.bf16.gmra.mxu2 %vm6231_vm13, %v4429_v33  ;;  %v2190_v33 = vsel %vm4768_vm6, %v4806_v32, 0.0 }
 0x232   : > { %v2214_v52 = vpack.c.bf16 %v4802_v11, %v2190_v33  ;;  %v3170_v11 = vld [vmem:[%s5983_s3 + $0x1c] sm:$0xf]  ;;  %v1825_v33 = vld [vmem:[#allocation2 + $0x2] sm:$0xff] }
 0x233   : > { %v5066_v8 = vpop.f32.mrf.mxu1 }
 0x234   : > { %3943 = vmatmul.msk.bf16.gmra.mxu0 %vm6232_vm15, %v2213_v41  ;;  %v5068_v29 = vpop.f32.mrf.mxu0  ;;  %v2949_v41 = vld [vmem:[%s5983_s3 + $0x18] sm:$0xf] }
 0x235   : > { %6235 = vst [vmem:[#allocation89_spill] sm:$0xff] %v5068_v29 }
 0x238   : > { %3902 = vmatmul.msk.bf16.gmra.mxu3 %vm6225_vm5, %v5044_v24  ;;  %vm6236_vm5 = vmmov %vm6234_vm8 }
 0x239   : > { %v2999_v18 = vsel %vm6236_vm5, %v2949_v41, 0  ;;  %vm6237_vm8 = vmmov %vm6233_vm10  ;;  %v3220_v61 = vsel %vm6236_vm5, %v3170_v11, 0  ;;  %v1922_v41 = vsel %vm4466_vm9, %v1826_v46, 0.0 }
 0x23a   : > { %3008 = vmatpush.bf16.msrb.mxu3 %v2999_v18  ;;  %vm6238_vm13 = vmmov %vm6237_vm8  ;;  %v3423_v18 = vld [vmem:[%s5983_s3 + $0x20] sm:$0xf]  ;;  %3229 = vmatpush.bf16.msrb.mxu0 %v3220_v61  ;;  %v1953_v11 = vpack.c.bf16 %v1922_v41, %v1825_v33 }
 0x23b   : > { %vm6239_vm15 = vmmov %vm6237_vm8  ;;  %v5084_v32 = vpop.f32.mrf.mxu1 }
 0x23c   : > { %vm6240_vm10 = vmmov %vm6237_vm8  ;;  %v5086_v3 = vpop.f32.mrf.mxu0 }
 0x23d   : > { %6241 = vst [vmem:[#allocation90_spill] sm:$0xff] %v5086_v3  ;;  %vm6246_vm9 = vmmov %vm6240_vm10 }
 0x23e   : > { %3956 = vmatmul.msk.bf16.gmra.mxu1 %vm6240_vm10, %v4452_v51 }
 0x23f   : > { %v5096_v51 = vpop.f32.mrf.mxu2 }
 0x241   : > { %3906 = vmatmul.msk.bf16.gmra.mxu2 %vm6238_vm13, %v4541_v34  ;;  %vm6244_vm13 = vmmov %vm6240_vm10 }
 0x243   : > { %v5103_v3 = vpop.f32.mrf.mxu1 }
 0x244   : > { %3944 = vmatmul.msk.bf16.gmra.mxu0 %vm6239_vm15, %v2214_v52  ;;  %v2192_v52 = vsel %vm4808_vm12, %v4568_v58, 0.0  ;;  %v5105_v47 = vpop.f32.mrf.mxu0  ;;  %vm6245_vm15 = vmmov %vm6240_vm10 }
 0x245   : > { %6243 = vst [vmem:[#allocation91_spill] sm:$0xff] %v5105_v47  ;;  %v6330_v47 = vld [vmem:[#allocation55_spill] sm:$0xff] }
 0x247   : > { %v5114_v59 = vpop.f32.mrf.mxu2 }
 0x248   : > { %3903 = vmatmul.msk.bf16.gmra.mxu3 %vm6237_vm8, %v5073_v42  ;;  %vm6242_vm8 = vmmov %vm6236_vm5 }
 0x249   : > { %v3473_v34 = vsel %vm6242_vm8, %v3423_v18, 0  ;;  %v2215_v18 = vpack.c.bf16 %v4586_v26, %v2192_v52  ;;  %v1924_v26 = vsel %vm4598_vm2, %v4455_v53, 0.0  ;;  %vm6249_vm5 = vmmov %vm6246_vm9 }
 0x24a   : > { %3482 = vmatpush.bf16.msrb.mxu1 %v3473_v34  ;;  %vm6250_vm8 = vmmov %vm6249_vm5 }
 0x24b   : > { %v5116_v58 = vpop.f32.mrf.mxu1  ;;  %vm6251_vm2 = vmmov %vm6249_vm5 }
 0x24c   : > { %v5118_v61 = vpop.f32.mrf.mxu0 }
 0x24d   : > { %6247 = vst [vmem:[#allocation92_spill] sm:$0xff] %v5118_v61  ;;  %v6306_v61 = vld [vmem:[#allocation8_spill] sm:$0xff] }
 0x24e   : > { %3957 = vmatmul.msk.bf16.gmra.mxu1 %vm6246_vm9, %v4558_v54  ;;  %v1954_v54 = vpack.c.bf16 %v1924_v26, %v4497_v37  ;;  %vm6257_vm9 = vmmov %vm6251_vm2 }
 0x24f   : > { %v5123_v34 = vpop.f32.mrf.mxu2 }
 0x251   : > { %3907 = vmatmul.msk.bf16.gmra.mxu2 %vm6244_vm13, %v4668_v20  ;;  %v2194_v20 = vsel %vm4564_vm14, %v4593_v31, 0.0  ;;  %vm6252_vm13 = vmmov %vm6251_vm2 }
 0x252   : > { %v2216_v41 = vpack.c.bf16 %v4672_v22, %v2194_v20 }
 0x254   : > { %3945 = vmatmul.msk.bf16.gmra.mxu0 %vm6240_vm10, %v2215_v18  ;;  %vm6256_vm10 = vnez %v6101_v1  ;;  %v6280_v1 = vld [vmem:[#allocation17_spill] sm:$0xff] }
 0x256   : > { %v5128_v46 = vpop.f32.mrf.mxu1 }
 0x257   : > { %v5130_v33 = vpop.f32.mrf.mxu0  ;;  %v5144_v35 = vpop.f32.mrf.mxu2 }
 0x258   : > { %3920 = vmatmul.msk.bf16.vlgmr.msra.gmra.mxu3 %vm6245_vm15, %v1953_v11  ;;  %6248 = vst [vmem:[#allocation93_spill] sm:$0xff] %v5130_v33  ;;  %vm6254_vm15 = vnez %v6140_v23  ;;  %v5149_v22 = vpop.f32.mrf.mxu3 }
 0x259   : > { %v1926_v37 = vsel %vm6254_vm15, %v4574_v13, 0.0 }
 0x25a   : > { %v1955_v11 = vpack.c.bf16 %v1926_v37, %v4602_v4 }
 0x25e   : > { %3958 = vmatmul.msk.bf16.gmra.mxu1 %vm6252_vm13, %v4688_v14  ;;  %v5140_v53 = vpop.f32.mrf.mxu1  ;;  %v2196_v14 = vsel %vm6256_vm10, %v4879_v36, 0.0  ;;  %vm6261_vm13 = vnez %v6076_v56 }
 0x25f   : > { %v5142_v31 = vpop.f32.mrf.mxu0  ;;  %v2217_v18 = vpack.c.bf16 %v4929_v39, %v2196_v14  ;;  %v6262_v39 = vld [vmem:[#allocation57_spill] sm:$0xff]  ;;  %v6267_v14 = vld [vmem:[#allocation6_spill] sm:$0xff] }
 0x260   : > { %6253 = vst [vmem:[#allocation94_spill] sm:$0xff] %v5142_v31  ;;  %v5172_v26 = vpop.f32.mrf.mxu3  ;;  %vm6263_vm15 = vnez %v6262_v39  ;;  %v6294_v31 = vld [vmem:[#allocation7_spill] sm:$0xff] }
 0x261   : > { %3908 = vmatmul.msk.bf16.gmra.mxu2 %vm6249_vm5, %v4739_v21  ;;  %vm6258_vm5 = vmmov %vm6251_vm2  ;;  %v2198_v20 = vsel %vm6263_vm15, %v4931_v49, 0.0 }
 0x264   : > { %3946 = vmatmul.msk.bf16.gmra.mxu0 %vm6251_vm2, %v2216_v41  ;;  %v5163_v13 = vpop.f32.mrf.mxu2 }
 0x268   : > { %3921 = vmatmul.msk.bf16.gmra.mxu3 %vm6250_vm8, %v1954_v54  ;;  %vm6259_vm8 = vmmov %vm6251_vm2 }
 0x26b   : > { %v5151_v21 = vpop.f32.mrf.mxu1 }
 0x26c   : > { %v5153_v52 = vpop.f32.mrf.mxu0  ;;  %v5174_v36 = vpop.f32.mrf.mxu2 }
 0x26d   : > { %6255 = vst [vmem:[#allocation95_spill] sm:$0xff] %v5153_v52 }
 0x26e   : > { %3959 = vmatmul.msk.bf16.gmra.mxu1 %vm6251_vm2, %v4814_v15  ;;  %v6266_v15 = vld [vmem:[#allocation39_spill] sm:$0xff] }
 0x271   : > { %3909 = vmatmul.msk.bf16.gmra.mxu2 %vm6257_vm9, %v4751_v43  ;;  %v1928_v43 = vsel %vm6261_vm13, %v4692_v45, 0.0  ;;  %vm6268_vm9 = vmmov %vm6251_vm2 }
 0x272   : > { %v1956_v37 = vpack.c.bf16 %v1928_v43, %v6266_v15  ;;  %v6274_v15 = vld [vmem:[#allocation10_spill] sm:$0xff] }
 0x273   : > { %v5168_v23 = vpop.f32.mrf.mxu1  ;;  %vm6275_vm13 = vnez %v6274_v15 }
 0x274   : > { %3947 = vmatmul.msk.bf16.gmra.mxu0 %vm6259_vm8, %v2217_v18  ;;  %v5170_v4 = vpop.f32.mrf.mxu0  ;;  %v5191_v18 = vpop.f32.mrf.mxu3  ;;  %vm6270_vm8 = vmmov %vm6251_vm2 }
 0x275   : > { %6260 = vst [vmem:[#allocation96_spill] sm:$0xff] %v5170_v4  ;;  %v6279_v4 = vld [vmem:[#allocation65_spill] sm:$0xff] }
 0x278   : > { %3922 = vmatmul.msk.bf16.gmra.mxu3 %vm6258_vm5, %v1955_v11  ;;  %v2218_v11 = vpack.c.bf16 %v4923_v10, %v2198_v20  ;;  %vm6269_vm5 = vmmov %vm6251_vm2  ;;  %v6273_v20 = vld [vmem:[#allocation44_spill] sm:$0xff] }
 0x27b   : > { %v5184_v41 = vpop.f32.mrf.mxu1 }
 0x27c   : > { %v5182_v54 = vpop.f32.mrf.mxu0  ;;  %6265 = vst [vmem:[#allocation98_spill] sm:$0xff] %v5184_v41  ;;  %v5202_v43 = vpop.f32.mrf.mxu3  ;;  %v6338_v41 = vld [vmem:[#allocation31_spill] sm:$0xff] }
 0x27d   : > { %6264 = vst [vmem:[#allocation97_spill] sm:$0xff] %v5182_v54 }
 0x27e   : > { %3960 = vmatmul.msk.bf16.gmra.mxu1 %vm6251_vm2, %v4933_v62  ;;  %v6278_v62 = vld [vmem:[#allocation43_spill] sm:$0xff] }
 0x281   : > { %3910 = vmatmul.msk.bf16.gmra.mxu2 %vm6268_vm9, %v6267_v14  ;;  %v5196_v56 = vpop.f32.mrf.mxu2  ;;  %v6276_v14 = vld [vmem:[#allocation61_spill] sm:$0xff]  ;;  %vm6281_vm9 = vmmov %vm6251_vm2 }
 0x283   : > { %v5198_v45 = vpop.f32.mrf.mxu1 }
 0x284   : > { %3948 = vmatmul.msk.bf16.gmra.mxu0 %vm6270_vm8, %v2218_v11  ;;  %6271 = vst [vmem:[#allocation39_spill] sm:$0xff] %v5198_v45  ;;  %v5200_v49 = vpop.f32.mrf.mxu0  ;;  %v2200_v11 = vsel %vm4925_vm1, %v6276_v14, 0.0  ;;  %vm6283_vm8 = vmmov %vm6251_vm2  ;;  %v6331_v45 = vld [vmem:[#allocation35_spill] sm:$0xff] }
 0x285   : > { %6272 = vst [vmem:[#allocation6_spill] sm:$0xff] %v5200_v49  ;;  %v2219_v52 = vpack.c.bf16 %v6279_v4, %v2200_v11  ;;  %v6284_v49 = vld [vmem:[#allocation21_spill] sm:$0xff]  ;;  %v6288_v11 = vld [vmem:[#allocation12_spill] sm:$0xff] }
 0x288   : > { %3923 = vmatmul.msk.bf16.gmra.mxu3 %vm6269_vm5, %v1956_v37  ;;  %v1930_v37 = vsel %vm6275_vm13, %v6273_v20, 0.0  ;;  %vm6282_vm5 = vmmov %vm6251_vm2  ;;  %vm6289_vm13 = vnez %v6288_v11 }
 0x289   : > { %v5204_v10 = vpop.f32.mrf.mxu2  ;;  %v1957_v39 = vpack.c.bf16 %v1930_v37, %v6278_v62 }
 0x28b   : > { %v5212_v54 = vpop.f32.mrf.mxu1 }
 0x28c   : > { %6277 = vst [vmem:[#allocation44_spill] sm:$0xff] %v5212_v54 }
 0x28e   : > { %3961 = vmatmul.msk.bf16.gmra.mxu1 %vm6251_vm2, %v6284_v49  ;;  %v6291_v49 = vld [vmem:[#allocation62_spill] sm:$0xff] }
 0x28f   : > { %v5222_v20 = vpop.f32.mrf.mxu0 }
 0x290   : > { %6285 = vst [vmem:[#allocation10_spill] sm:$0xff] %v5222_v20 }
 0x291   : > { %3911 = vmatmul.msk.bf16.gmra.mxu2 %vm6281_vm9, %v6280_v1  ;;  %v6287_v1 = vld [vmem:[#allocation5_spill] sm:$0xff]  ;;  %vm6292_vm9 = vnez %v6291_v49 }
 0x292   : > { %v2202_v62 = vsel %vm6292_vm9, %v4978_v9, 0.0 }
 0x293   : > { %v5228_v40 = vpop.f32.mrf.mxu1  ;;  %v2220_v33 = vpack.c.bf16 %v4992_v17, %v2202_v62  ;;  %v6302_v62 = vld [vmem:[#allocation9_spill] sm:$0xff] }
 0x294   : > { %3949 = vmatmul.msk.bf16.gmra.mxu0 %vm6283_vm8, %v2219_v52  ;;  %v5224_v15 = vpop.f32.mrf.mxu2  ;;  %6286 = vst [vmem:[#allocation61_spill] sm:$0xff] %v5228_v40  ;;  %v6295_v40 = vld [vmem:[#allocation53_spill] sm:$0xff]  ;;  %vm6297_vm8 = vmmov %vm6251_vm2 }
 0x297   : > { %v5237_v52 = vpop.f32.mrf.mxu0 }
 0x298   : > { %3924 = vmatmul.msk.bf16.gmra.mxu3 %vm6282_vm5, %v1957_v39  ;;  %v1932_v39 = vsel %vm6289_vm13, %v6287_v1, 0.0  ;;  %6290 = vst [vmem:[#allocation43_spill] sm:$0xff] %v5237_v52  ;;  %vm6296_vm5 = vmmov %vm6251_vm2  ;;  %v6298_v1 = vld [vmem:[#allocation37_spill] sm:$0xff] }
 0x299   : > { %v1958_v55 = vpack.c.bf16 %v1932_v39, %v6294_v31  ;;  %vm6299_vm13 = vmmov %vm6251_vm2  ;;  %v2172_v31 = vld [vmem:[#allocation2 + $0x100] sm:$0xff] }
 0x29b   : > { %v5226_v14 = vpop.f32.mrf.mxu3  ;;  %v5242_v20 = vpop.f32.mrf.mxu1 }
 0x29c   : > { %v5230_v37 = vpop.f32.mrf.mxu2  ;;  %6293 = vst [vmem:[#allocation65_spill] sm:$0xff] %v5242_v20  ;;  %v2173_v20 = vld [vmem:[#allocation2 + $0x108] sm:$0xff] }
 0x29e   : > { %3962 = vmatmul.msk.bf16.gmra.mxu1 %vm6299_vm13, %v6298_v1  ;;  %vm6310_vm13 = vmmov %vm6251_vm2 }
 0x2a1   : > { %3912 = vmatmul.msk.bf16.gmra.mxu2 %vm6296_vm5, %v6295_v40  ;;  %v5254_v9 = vpop.f32.mrf.mxu0  ;;  %v6303_v40 = vld [vmem:[#allocation49_spill] sm:$0xff] }
 0x2a2   : > { %6300 = vst [vmem:[#allocation17_spill] sm:$0xff] %v5254_v9  ;;  %vm6304_vm5 = vnez %v6303_v40 }
 0x2a3   : > { %v5232_v4 = vpop.f32.mrf.mxu3  ;;  %v5256_v52 = vpop.f32.mrf.mxu1 }
 0x2a4   : > { %3950 = vmatmul.msk.bf16.gmra.mxu0 %vm6251_vm2, %v2220_v33  ;;  %v1745_v49 = vpop.f32.mrf.mxu2  ;;  %6301 = vst [vmem:[#allocation21_spill] sm:$0xff] %v5256_v52  ;;  %v2204_v33 = vsel %vm4980_vm0, %v2172_v31, 0.0  ;;  %v6308_v52 = vld [vmem:[#allocation56_spill] sm:$0xff]  ;;  %vm6322_vm0 = vmmov %vm6251_vm2 }
 0x2a5   : > { %v2221_v50 = vpack.c.bf16 %v2173_v20, %v2204_v33  ;;  %v6315_v33 = vld [vmem:[#allocation23_spill] sm:$0xff] }
 0x2a8   : > { %3925 = vmatmul.msk.bf16.gmra.mxu3 %vm6297_vm8, %v1958_v55  ;;  %v1934_v55 = vsel %vm6304_vm5, %v6302_v62, 0.0  ;;  %vm6309_vm8 = vmmov %vm6251_vm2 }
 0x2a9   : > { %v1959_v54 = vpack.c.bf16 %v1934_v55, %v6306_v61  ;;  %v5268_v9 = vpop.f32.mrf.mxu0  ;;  %vm6311_vm5 = vmmov %vm6251_vm2  ;;  %v6314_v55 = vld [vmem:[#allocation47_spill] sm:$0xff] }
 0x2aa   : > { %6307 = vst [vmem:[#allocation12_spill] sm:$0xff] %v5268_v9 }
 0x2ab   : > { %v5252_v11 = vpop.f32.mrf.mxu3  ;;  %v5265_v1 = vpop.f32.mrf.mxu1 }
 0x2ac   : > { %v1747_v17 = vpop.f32.mrf.mxu2  ;;  %6305 = vst [vmem:[#allocation5_spill] sm:$0xff] %v5265_v1  ;;  %v6319_v1 = vld [vmem:[#allocation22_spill] sm:$0xff] }
 0x2ae   : > { %3963 = vmatmul.msk.bf16.gmra.mxu1 %vm6311_vm5, %v4935_v27  ;;  %vm6321_vm5 = vmmov %vm6251_vm2 }
 0x2b1   : > { %3913 = vmatmul.msk.bf16.gmra.mxu2 %vm6309_vm8, %v6308_v52  ;;  %v5280_v28 = vpop.f32.mrf.mxu0  ;;  %vm6316_vm8 = vnez %v6315_v33 }
 0x2b2   : > { %6313 = vst [vmem:[#allocation53_spill] sm:$0xff] %v5280_v28  ;;  %v1936_v52 = vsel %vm6316_vm8, %v6314_v55, 0.0 }
 0x2b3   : > { %v5258_v39 = vpop.f32.mrf.mxu3  ;;  %v5278_v40 = vpop.f32.mrf.mxu1 }
 0x2b4   : > { %3951 = vmatmul.msk.bf16.gmra.mxu0 %vm6310_vm13, %v2221_v50  ;;  %v1750_v31 = vpop.f32.mrf.mxu2  ;;  %6312 = vst [vmem:[#allocation7_spill] sm:$0xff] %v5278_v40  ;;  %v6318_v50 = vld [vmem:[#allocation48_spill] sm:$0xff]  ;;  %vm6320_vm13 = vmmov %vm6251_vm2 }
 0x2b5   : > { %v1960_v9 = vpack.c.bf16 %v1936_v52, %v6318_v50  ;;  %v6325_v50 = vld [vmem:[#allocation54_spill] sm:$0xff] }
 0x2b8   : > { %3926 = vmatmul.msk.bf16.gmra.mxu3 %vm6251_vm2, %v1959_v54 }
 0x2b9   : > { %v5299_v33 = vpop.f32.mrf.mxu0 }
 0x2ba   : > { %6323 = vst [vmem:[#allocation9_spill] sm:$0xff] %v5299_v33 }
 0x2bb   : > { %v5276_v62 = vpop.f32.mrf.mxu3  ;;  %v5287_v54 = vpop.f32.mrf.mxu1 }
 0x2bc   : > { %v1752_v20 = vpop.f32.mrf.mxu2  ;;  %6317 = vst [vmem:[#allocation37_spill] sm:$0xff] %v5287_v54 }
 0x2be   : > { %3964 = vmatmul.msk.bf16.gmra.mxu1 %vm6321_vm5, %v5013_v57  ;;  %vm6334_vm5 = vmmov %vm6322_vm0 }
 0x2c1   : > { %3914 = vmatmul.msk.bf16.gmra.mxu2 %vm6251_vm2, %v6319_v1  ;;  %v6326_v1 = vld [vmem:[#allocation24_spill] sm:$0xff]  ;;  %v5308_v40 = vpop.f32.mrf.mxu0  ;;  %vm6332_vm2 = vmmov %vm6322_vm0 }
 0x2c2   : > { %vm6327_vm8 = vnez %v6326_v1  ;;  %6328 = vst [vmem:[#allocation8_spill] sm:$0xff] %v5308_v40  ;;  %v1746_v1 = vadd.f32 %v1745_v49, %v5042_v63  ;;  %v6341_v63 = vld [vmem:[#allocation28_spill] sm:$0xff] }
 0x2c3   : > { %v5282_v61 = vpop.f32.mrf.mxu3  ;;  %v5301_v55 = vpop.f32.mrf.mxu1 }
 0x2c4   : > { %4000 = vmatmul.msk.bf16.vlgmr.msrb.gmra.mxu0 %vm6322_vm0, %v4539_v30  ;;  %v1755_v28 = vpop.f32.mrf.mxu2  ;;  %6324 = vst [vmem:[#allocation49_spill] sm:$0xff] %v5301_v55  ;;  %v6337_v55 = vld [vmem:[#allocation25_spill] sm:$0xff] }
 0x2c8   : > { %3927 = vmatmul.msk.bf16.gmra.mxu3 %vm6320_vm13, %v1960_v9  ;;  %v1938_v9 = vsel %vm6327_vm8, %v6325_v50, 0.0  ;;  %vm6333_vm13 = vmmov %vm6322_vm0  ;;  %vm6339_vm8 = vnez %v6338_v41 }
 0x2c9   : > { %v1961_v30 = vpack.c.bf16 %v1938_v9, %v6330_v47  ;;  %v5325_v47 = vpop.f32.mrf.mxu0 }
 0x2ca   : > { %6336 = vst [vmem:[#allocation23_spill] sm:$0xff] %v5325_v47  ;;  %v2426_v47 = vld [vmem:[#allocation2 + $0x109] sm:$0xff] }
 0x2cb   : > { %v5297_v27 = vpop.f32.mrf.mxu3  ;;  %v5310_v57 = vpop.f32.mrf.mxu1 }
 0x2cc   : > { %v1757_v52 = vpop.f32.mrf.mxu2  ;;  %6329 = vst [vmem:[#allocation56_spill] sm:$0xff] %v5310_v57 }
 0x2ce   : > { %3965 = vmatmul.msk.bf16.gmra.mxu1 %vm6333_vm13, %v5044_v24  ;;  %v1940_v24 = vsel %vm6339_vm8, %v6337_v55, 0.0  ;;  %vm6344_vm13 = vmmov %vm6322_vm0 }
 0x2cf   : > { %v1962_v49 = vpack.c.bf16 %v1940_v24, %v6341_v63  ;;  %vm6354_vm8 = vmmov %vm6322_vm0 }
 0x2d1   : > { %3915 = vmatmul.msk.bf16.gmra.mxu2 %vm6322_vm0, %v6331_v45  ;;  %v1748_v45 = vadd.f32 %v1747_v17, %v5057_v38  ;;  %v1751_v38 = vadd.f32 %v1750_v31, %v5066_v8  ;;  %v5344_v41 = vpop.f32.mrf.mxu0 }
 0x2d2   : > { %6346 = vst [vmem:[#allocation22_spill] sm:$0xff] %v5344_v41  ;;  %v2425_v41 = vld [vmem:[#allocation2 + $0x101] sm:$0xff] }
 0x2d3   : > { %v5303_v54 = vpop.f32.mrf.mxu3  ;;  %v5323_v57 = vpop.f32.mrf.mxu1 }
 0x2d4   : > { %4001 = vmatmul.msk.bf16.gmra.mxu0 %vm6334_vm5, %v4659_v12  ;;  %v1760_v50 = vpop.f32.mrf.mxu2  ;;  %6335 = vst [vmem:[#allocation47_spill] sm:$0xff] %v5323_v57  ;;  %vm6345_vm5 = vmmov %vm6322_vm0  ;;  %v6353_v57 = vld [vmem:[#allocation79_spill] sm:$0xff] }
 0x2d8   : > { %3928 = vmatmul.msk.bf16.gmra.mxu3 %vm6332_vm2, %v1961_v30  ;;  %vm6343_vm2 = vmmov %vm6322_vm0 }
 0x2d9   : > { %v5358_v8 = vpop.f32.mrf.mxu0 }
 0x2da   : > { %6350 = vst [vmem:[#allocation24_spill] sm:$0xff] %v5358_v8 }
 0x2db   : > { %v2030_v33 = vpop.f32.mrf.mxu3  ;;  %v5333_v12 = vpop.f32.mrf.mxu1 }
 0x2dc   : > { %v5321_v40 = vadd.f32 %v2030_v33, %v1746_v1  ;;  %v1762_v9 = vpop.f32.mrf.mxu2  ;;  %6340 = vst [vmem:[#allocation48_spill] sm:$0xff] %v5333_v12  ;;  %v6342_v33 = vld [vmem:[#allocation76_spill] sm:$0xff] }
 0x2de   : > { %3966 = vmatmul.msk.bf16.gmra.mxu1 %vm6344_vm13, %v5073_v42  ;;  %v6348_v42 = vld [vmem:[#allocation26_spill] sm:$0xff] }
 0x2e1   : > { %3916 = vmatmul.msk.bf16.gmra.mxu2 %vm6322_vm0, %v6342_v33  ;;  %v3128_v33 = vld [vmem:[#allocation2 + $0x51] sm:$0xff] }
 0x2e3   : > { %v2032_v30 = vpop.f32.mrf.mxu3 }
 0x2e4   : > { %v5331_v29 = vadd.f32 %v2032_v30, %v1748_v45  ;;  %4002 = vmatmul.msk.bf16.gmra.mxu0 %vm6345_vm5, %v4733_v25  ;;  %v5346_v17 = vpop.f32.mrf.mxu2  ;;  %v5350_v45 = vpop.f32.mrf.mxu1  ;;  %v1753_v30 = vadd.f32 %v1752_v20, %v5084_v32  ;;  %v1942_v25 = vsel %vm4890_vm3, %v6348_v42, 0.0  ;;  %v5365_v32 = vpack.c.bf16 %v2426_v47, %v2425_v41  ;;  %vm6355_vm3 = vmmov %vm6322_vm0 }
 0x2e5   : > { %6347 = vst [vmem:[#allocation54_spill] sm:$0xff] %v5350_v45  ;;  %v6352_v45 = vld [vmem:[#allocation29_spill] sm:$0xff]  ;;  %v1758_v41 = vadd.f32 %v1757_v52, %v5116_v58  ;;  %vm6366_vm5 = vmmov %vm6322_vm0  ;;  %v6368_v58 = vld [vmem:[#allocation27_spill] sm:$0xff]  ;;  %v1761_v52 = vadd.f32 %v1760_v50, %v5128_v46 }
 0x2e6   : > { %v1963_v12 = vpack.c.bf16 %v1942_v25, %v6352_v45  ;;  %v5376_v45 = vpop.f32.mrf.mxu0  ;;  %v3133_v46 = vld [vmem:[#allocation2 + $0x79] sm:$0xff] }
 0x2e7   : > { %6357 = vst [vmem:[#allocation35_spill] sm:$0xff] %v5376_v45 }
 0x2e8   : > { %3929 = vmatmul.msk.bf16.gmra.mxu3 %vm6343_vm2, %v1962_v49  ;;  %vm6356_vm2 = vmmov %vm6322_vm0 }
 0x2eb   : > { %v2035_v55 = vpop.f32.mrf.mxu3 }
 0x2ec   : > { %v5348_v1 = vadd.f32 %v2035_v55, %v1751_v38  ;;  %v5353_v24 = vpop.f32.mrf.mxu2  ;;  %v3129_v38 = vld [vmem:[#allocation2 + $0x59] sm:$0xff]  ;;  %v5362_v55 = vpop.f32.mrf.mxu1 }
 0x2ed   : > { %6351 = vst [vmem:[#allocation55_spill] sm:$0xff] %v5362_v55  ;;  %v3157_v20 = vpack.c.bf16 %v3129_v38, %v3128_v33  ;;  %v6360_v33 = vld [vmem:[#allocation58_spill] sm:$0xff] }
 0x2ee   : > { %3967 = vmatmul.msk.bf16.gmra.mxu1 %vm6355_vm3, %v5365_v32  ;;  %vm6361_vm13 = vnez %v6360_v33  ;;  %v5389_v45 = vpop.f32.mrf.mxu0  ;;  %vm6369_vm3 = vmmov %vm6322_vm0 }
 0x2ef   : > { %6364 = vst [vmem:[#allocation28_spill] sm:$0xff] %v5389_v45 }
 0x2f1   : > { %3917 = vmatmul.msk.bf16.gmra.mxu2 %vm6354_vm8, %v6353_v57  ;;  %vm6367_vm8 = vmmov %vm6322_vm0 }
 0x2f3   : > { %v2037_v63 = vpop.f32.mrf.mxu3 }
 0x2f4   : > { %v5360_v31 = vadd.f32 %v2037_v63, %v1753_v30  ;;  %4003 = vmatmul.msk.bf16.gmra.mxu0 %vm6356_vm2, %v3157_v20  ;;  %v1756_v30 = vadd.f32 %v1755_v28, %v5103_v3  ;;  %v1770_v63 = vpop.f32.mrf.mxu2  ;;  %v5378_v47 = vpop.f32.mrf.mxu1  ;;  %v3130_v20 = vld [vmem:[#allocation2 + $0x61] sm:$0xff]  ;;  %v3131_v28 = vld [vmem:[#allocation2 + $0x69] sm:$0xff] }
 0x2f5   : > { %6358 = vst [vmem:[#allocation25_spill] sm:$0xff] %v5378_v47  ;;  %v3158_v55 = vpack.c.bf16 %v3131_v28, %v3130_v20  ;;  %v6365_v47 = vld [vmem:[#allocation67_spill] sm:$0xff]  ;;  %v1771_v5 = vadd.f32 %v1770_v63, %v5096_v51  ;;  %v3136_v63 = vld [vmem:[#allocation2 + $0x91] sm:$0xff] }
 0x2f6   : > { %v5403_v20 = vpop.f32.mrf.mxu0 }
 0x2f7   : > { %6371 = vst [vmem:[#allocation26_spill] sm:$0xff] %v5403_v20  ;;  %v6386_v20 = vld [vmem:[#allocation11_spill] sm:$0xff] }
 0x2f8   : > { %3930 = vmatmul.msk.bf16.gmra.mxu3 %vm6322_vm0, %v1963_v12  ;;  %v6359_v12 = vld [vmem:[#allocation68_spill] sm:$0xff] }
 0x2f9   : > { %v1944_v38 = vsel %vm6361_vm13, %v6359_v12, 0.0  ;;  %vm6377_vm13 = vmmov %vm6322_vm0 }
 0x2fb   : > { %v2040_v42 = vpop.f32.mrf.mxu3 }
 0x2fc   : > { %v5374_v49 = vadd.f32 %v2040_v42, %v1756_v30  ;;  %v1772_v57 = vpop.f32.mrf.mxu2  ;;  %v5386_v3 = vpop.f32.mrf.mxu1  ;;  %v6363_v30 = vld [vmem:[#allocation70_spill] sm:$0xff] }
 0x2fd   : > { %6362 = vst [vmem:[#allocation31_spill] sm:$0xff] %v5386_v3  ;;  %v1964_v42 = vpack.c.bf16 %v1944_v38, %v6363_v30  ;;  %v1763_v38 = vadd.f32 %v1762_v9, %v5140_v53  ;;  %v6372_v30 = vld [vmem:[#allocation77_spill] sm:$0xff]  ;;  %v6380_v53 = vld [vmem:[#allocation40_spill] sm:$0xff]  ;;  %v1766_v9 = vadd.f32 %v5346_v17, %v5151_v21 }
 0x2fe   : > { %4016 = vmatmul.msk.bf16.vlgmr.msrb.gmra.mxu1 %vm6369_vm3, %v6368_v58  ;;  %v3132_v58 = vld [vmem:[#allocation2 + $0x71] sm:$0xff]  ;;  %v3135_v21 = vld [vmem:[#allocation2 + $0x89] sm:$0xff]  ;;  %vm6385_vm3 = vmmov %vm6322_vm0 }
 0x2ff   : > { %v3159_v3 = vpack.c.bf16 %v3133_v46, %v3132_v58  ;;  %v6382_v46 = vld [vmem:[#allocation59_spill] sm:$0xff] }
 0x301   : > { %3918 = vmatmul.msk.bf16.gmra.mxu2 %vm6366_vm5, %v6365_v47  ;;  %vm6378_vm5 = vmmov %vm6322_vm0 }
 0x303   : > { %v2042_v25 = vpop.f32.mrf.mxu3 }
 0x304   : > { %v5384_v8 = vadd.f32 %v2042_v25, %v1758_v41  ;;  %4004 = vmatmul.msk.bf16.gmra.mxu0 %vm6322_vm0, %v3158_v55  ;;  %v1775_v41 = vpop.f32.mrf.mxu2  ;;  %v5400_v33 = vpop.f32.mrf.mxu1 }
 0x305   : > { %6370 = vst [vmem:[#allocation76_spill] sm:$0xff] %v5400_v33  ;;  %v6376_v33 = vld [vmem:[#allocation85_spill] sm:$0xff] }
 0x308   : > { %3931 = vmatmul.msk.bf16.gmra.mxu3 %vm6367_vm8, %v1964_v42  ;;  %v6373_v42 = vld [vmem:[#allocation71_spill] sm:$0xff]  ;;  %vm6379_vm8 = vmmov %vm6322_vm0 }
 0x309   : > { %vm6374_vm2 = vnez %v6373_v42 }
 0x30a   : > { %v1946_v55 = vsel %vm6374_vm2, %v6372_v30, 0.0  ;;  %v5423_v30 = vpop.f32.mrf.mxu0  ;;  %vm6387_vm2 = vmmov %vm6322_vm0 }
 0x30b   : > { %v2045_v25 = vpop.f32.mrf.mxu3  ;;  %6381 = vst [vmem:[#allocation69_spill] sm:$0xff] %v5423_v30 }
 0x30c   : > { %v5398_v12 = vadd.f32 %v2045_v25, %v1761_v52  ;;  %v1777_v47 = vpop.f32.mrf.mxu2  ;;  %v5410_v50 = vpop.f32.mrf.mxu1  ;;  %v6375_v52 = vld [vmem:[#allocation78_spill] sm:$0xff] }
 0x30d   : > { %v1965_v25 = vpack.c.bf16 %v1946_v55, %v6375_v52  ;;  %v1948_v52 = vsel %vm4966_vm4, %v6382_v46, 0.0  ;;  %vm6394_vm4 = vmmov %vm6322_vm0 }
 0x30e   : > { %4017 = vmatmul.msk.bf16.gmra.mxu1 %vm6322_vm0, %v6380_v53  ;;  %v6384_v53 = vld [vmem:[#allocation63_spill] sm:$0xff] }
 0x30f   : > { %v1966_v30 = vpack.c.bf16 %v1948_v52, %v6384_v53  ;;  %v6392_v53 = vld [vmem:[#allocation80_spill] sm:$0xff] }
 0x311   : > { %3919 = vmatmul.msk.bf16.gmra.mxu2 %vm6377_vm13, %v6376_v33  ;;  %v1768_v33 = vadd.f32 %v5353_v24, %v5168_v23  ;;  %vm6388_vm13 = vmmov %vm6322_vm0  ;;  %v6389_v23 = vld [vmem:[#allocation45_spill] sm:$0xff] }
 0x312   : > { %v5436_v17 = vpop.f32.mrf.mxu0 }
 0x313   : > { %v2047_v28 = vpop.f32.mrf.mxu3  ;;  %6383 = vst [vmem:[#allocation29_spill] sm:$0xff] %v5436_v17  ;;  %v3141_v17 = vld [vmem:[#allocation2 + $0xb9] sm:$0xff] }
 0x314   : > { %v5408_v45 = vadd.f32 %v2047_v28, %v1763_v38  ;;  %4005 = vmatmul.msk.bf16.gmra.mxu0 %vm6379_vm8, %v3159_v3  ;;  %v5421_v38 = vpop.f32.mrf.mxu2  ;;  %v5427_v55 = vpop.f32.mrf.mxu1  ;;  %vm6396_vm8 = vmmov %vm6322_vm0 }
 0x318   : > { %3932 = vmatmul.msk.bf16.gmra.mxu3 %vm6378_vm5, %v1965_v25  ;;  %vm6390_vm5 = vmmov %vm6322_vm0 }
 0x31a   : > { %v5452_v52 = vpop.f32.mrf.mxu0 }
 0x31b   : > { %v2050_v28 = vpop.f32.mrf.mxu3  ;;  %6391 = vst [vmem:[#allocation79_spill] sm:$0xff] %v5452_v52  ;;  %v6395_v52 = vld [vmem:[#allocation30_spill] sm:$0xff] }
 0x31c   : > { %v5425_v42 = vadd.f32 %v2050_v28, %v1766_v9  ;;  %v1782_v58 = vpop.f32.mrf.mxu2  ;;  %v3134_v9 = vld [vmem:[#allocation2 + $0x81] sm:$0xff]  ;;  %v5446_v24 = vpop.f32.mrf.mxu1 }
 0x31d   : > { %v3160_v28 = vpack.c.bf16 %v3135_v21, %v3134_v9  ;;  %v1950_v9 = vsel %vm5022_vm11, %v6392_v53, 0.0 }
 0x31e   : > { %4018 = vmatmul.msk.bf16.gmra.mxu1 %vm6390_vm5, %v6389_v23  ;;  %v3137_v23 = vld [vmem:[#allocation2 + $0x99] sm:$0xff]  ;;  %vm6407_vm5 = vmmov %vm6322_vm0 }
 0x321   : > { %3968 = vmatmul.msk.bf16.vlgmr.msrb.gmra.mxu2 %vm6387_vm2, %v6386_v20 }
 0x323   : > { %v2052_v3 = vpop.f32.mrf.mxu3 }
 0x324   : > { %v5434_v25 = vadd.f32 %v2052_v3, %v1768_v33  ;;  %4006 = vmatmul.msk.bf16.gmra.mxu0 %vm6388_vm13, %v3160_v28  ;;  %v5448_v33 = vpop.f32.mrf.mxu2  ;;  %v5460_v28 = vpop.f32.mrf.mxu1  ;;  %vm6405_vm13 = vmmov %vm6322_vm0 }
 0x325   : > { %6393 = vst [vmem:[#allocation68_spill] sm:$0xff] %v5460_v28  ;;  %v3148_v28 = vld [vmem:[#allocation2 + $0xf1] sm:$0xff] }
 0x328   : > { %3933 = vmatmul.msk.bf16.gmra.mxu3 %vm6385_vm3, %v1966_v30  ;;  %v1773_v30 = vadd.f32 %v1772_v57, %v5114_v59  ;;  %v902_v59 = vadd.s32 248, %v4401_v0  ;;  %v6397_v57 = vld [vmem:[#allocation13_spill] sm:$0xff]  ;;  %vm6398_vm3 = vmmov %vm6322_vm0  ;;  %v1778_v0 = vadd.f32 %v1777_v47, %v5144_v35  ;;  %v6409_v47 = vld [vmem:[#allocation14_spill] sm:$0xff] }
 0x329   : > { %v6406_v35 = vld [vmem:[#allocation41_spill] sm:$0xff] }
 0x32b   : > { %v2055_v3 = vpop.f32.mrf.mxu3 }
 0x32c   : > { %v5450_v46 = vadd.f32 %v2055_v3, %v1771_v5  ;;  %v5455_v21 = vpop.f32.mrf.mxu2  ;;  %v1967_v5 = vpack.c.bf16 %v1950_v9, %v4984_v6  ;;  %v3161_v3 = vpack.c.bf16 %v3137_v23, %v3136_v63  ;;  %v1124_v63 = vand.u32 15, %v902_v59  ;;  %v5479_v23 = vpop.f32.mrf.mxu1  ;;  %v3138_v59 = vld [vmem:[#allocation2 + $0xa1] sm:$0xff] }
 0x32d   : > { %6400 = vst [vmem:[#allocation70_spill] sm:$0xff] %v5479_v23  ;;  %v6444_v23 = vld [vmem:[#allocation51_spill] sm:$0xff] }
 0x32e   : > { %4019 = vmatmul.msk.bf16.gmra.mxu1 %vm6398_vm3, %v6397_v57  ;;  %vm5481_vm2 = vcmp.ne.s32.totalorder %v1124_v63, 15 }
 0x331   : > { %3969 = vmatmul.msk.bf16.gmra.mxu2 %vm6396_vm8, %v6395_v52  ;;  %vm6410_vm8 = vmmov %vm6322_vm0 }
 0x333   : > { %v2057_v20 = vpop.f32.mrf.mxu3 }
 0x334   : > { %v5462_v51 = vadd.f32 %v2057_v20, %v1773_v30  ;;  %4007 = vmatmul.msk.bf16.gmra.mxu0 %vm6322_vm0, %v3161_v3  ;;  %v1776_v30 = vadd.f32 %v1775_v41, %v5123_v34  ;;  %v5473_v20 = vpop.f32.mrf.mxu0  ;;  %v5475_v53 = vpop.f32.mrf.mxu2  ;;  %v1952_v34 = vsel %vm5481_vm2, %v5026_v60, 0.0  ;;  %v1781_v60 = vadd.f32 %v5421_v38, %v5163_v13  ;;  %v4152_v13 = vld [vmem:[#allocation2 + $0x20] sm:$0xff] }
 0x335   : > { %6399 = vst [vmem:[#allocation58_spill] sm:$0xff] %v5473_v20  ;;  %v5496_v20 = vpop.f32.mrf.mxu1 }
 0x336   : > { %6404 = vst [vmem:[#allocation27_spill] sm:$0xff] %v5496_v20 }
 0x338   : > { %3934 = vmatmul.msk.bf16.gmra.mxu3 %vm6394_vm4, %v1967_v5  ;;  %vm6408_vm4 = vmmov %vm6322_vm0  ;;  %vm6413_vm0 = vnez %v6065_v19 }
 0x339   : > { %v2901_v38 = vsel %vm6413_vm0, %v4152_v13, 0.0  ;;  %vm6426_vm0 = vmmov %vm6398_vm3 }
 0x33b   : > { %v2060_v6 = vpop.f32.mrf.mxu3 }
 0x33c   : > { %v5477_v9 = vadd.f32 %v2060_v6, %v1776_v30  ;;  %v5486_v5 = vpop.f32.mrf.mxu2  ;;  %v5491_v41 = vpop.f32.mrf.mxu0  ;;  %v3139_v30 = vld [vmem:[#allocation2 + $0xa9] sm:$0xff]  ;;  %v1968_v6 = vpack.c.bf16 %v1952_v34, %v5028_v2 }
 0x33d   : > { %6403 = vst [vmem:[#allocation67_spill] sm:$0xff] %v5491_v41  ;;  %v3162_v63 = vpack.c.bf16 %v3139_v30, %v3138_v59  ;;  %v1783_v59 = vadd.f32 %v1782_v58, %v5174_v36  ;;  %v5513_v30 = vpop.f32.mrf.mxu1  ;;  %v6418_v36 = vld [vmem:[#allocation50_spill] sm:$0xff]  ;;  %v1786_v58 = vadd.f32 %v5448_v33, %v5196_v56  ;;  %v3143_v56 = vld [vmem:[#allocation2 + $0xc9] sm:$0xff] }
 0x33e   : > { %4020 = vmatmul.msk.bf16.gmra.mxu1 %vm6410_vm8, %v6409_v47  ;;  %6412 = vst [vmem:[#allocation71_spill] sm:$0xff] %v5513_v30  ;;  %v3140_v47 = vld [vmem:[#allocation2 + $0xb1] sm:$0xff]  ;;  %v6422_v33 = vld [vmem:[#allocation3_spill] sm:$0xff] }
 0x33f   : > { %vm6423_vm8 = vnez %v6422_v33  ;;  %v6425_v30 = vld [vmem:[#allocation15_spill] sm:$0xff]  ;;  %v2873_v33 = vld [vmem:[#allocation2 + $0x40] sm:$0xff] }
 0x341   : > { %3970 = vmatmul.msk.bf16.gmra.mxu2 %vm6407_vm5, %v6406_v35  ;;  %v2870_v35 = vld [vmem:[#allocation2 + $0x28] sm:$0xff]  ;;  %vm6417_vm5 = vmmov %vm6398_vm3 }
 0x343   : > { %v2062_v3 = vpop.f32.mrf.mxu3 }
 0x344   : > { %v5493_v57 = vadd.f32 %v2062_v3, %v1778_v0  ;;  %4008 = vmatmul.msk.bf16.gmra.mxu0 %vm6408_vm4, %v3162_v63  ;;  %v5506_v0 = vpop.f32.mrf.mxu2  ;;  %v5510_v34 = vpop.f32.mrf.mxu0  ;;  %vm6419_vm4 = vmmov %vm6398_vm3 }
 0x345   : > { %6411 = vst [vmem:[#allocation77_spill] sm:$0xff] %v5510_v34  ;;  %v6415_v34 = vld [vmem:[#allocation46_spill] sm:$0xff] }
 0x348   : > { %3935 = vmatmul.msk.bf16.gmra.mxu3 %vm6405_vm13, %v1968_v6  ;;  %vm6416_vm13 = vmmov %vm6398_vm3 }
 0x34b   : > { %v2065_v3 = vpop.f32.mrf.mxu3 }
 0x34c   : > { %v5508_v2 = vadd.f32 %v2065_v3, %v1781_v60  ;;  %v5515_v6 = vpop.f32.mrf.mxu2  ;;  %v2933_v60 = vpack.c.bf16 %v2870_v35, %v2901_v38  ;;  %v3163_v3 = vpack.c.bf16 %v3141_v17, %v3140_v47  ;;  %v5521_v20 = vpop.f32.mrf.mxu0  ;;  %v2871_v47 = vld [vmem:[#allocation2 + $0x30] sm:$0xff] }
 0x34d   : > { %6414 = vst [vmem:[#allocation78_spill] sm:$0xff] %v5521_v20 }
 0x34e   : > { %4021 = vmatmul.msk.bf16.gmra.mxu1 %vm6419_vm4, %v6418_v36  ;;  %v2903_v36 = vsel %vm6423_vm8, %v2871_v47, 0.0  ;;  %vm6436_vm8 = vmmov %vm6426_vm0 }
 0x351   : > { %3971 = vmatmul.msk.bf16.gmra.mxu2 %vm6398_vm3, %v6415_v34  ;;  %v1788_v34 = vadd.f32 %v5455_v21, %v5204_v10  ;;  %vm6427_vm3 = vmmov %vm6426_vm0  ;;  %v6429_v10 = vld [vmem:[#allocation60_spill] sm:$0xff]  ;;  %v1791_v21 = vadd.f32 %v5475_v53, %v5224_v15  ;;  %v3145_v53 = vld [vmem:[#allocation2 + $0xd9] sm:$0xff] }
 0x352   : > { %v3144_v15 = vld [vmem:[#allocation2 + $0xd1] sm:$0xff] }
 0x353   : > { %v2067_v63 = vpop.f32.mrf.mxu3 }
 0x354   : > { %v5517_v41 = vadd.f32 %v2067_v63, %v1783_v59  ;;  %4009 = vmatmul.msk.bf16.gmra.mxu0 %vm6417_vm5, %v3163_v3  ;;  %v5531_v59 = vpop.f32.mrf.mxu2  ;;  %v5533_v63 = vpop.f32.mrf.mxu1  ;;  %vm6430_vm5 = vmmov %vm6426_vm0 }
 0x355   : > { %6420 = vst [vmem:[#allocation85_spill] sm:$0xff] %v5533_v63  ;;  %v5539_v35 = vpop.f32.mrf.mxu0 }
 0x356   : > { %6421 = vst [vmem:[#allocation40_spill] sm:$0xff] %v5539_v35 }
 0x358   : > { %3984 = vmatmul.msk.bf16.vlgmr.msrb.gmra.mxu3 %vm6416_vm13, %v2933_v60  ;;  %v2872_v60 = vld [vmem:[#allocation2 + $0x38] sm:$0xff]  ;;  %vm6428_vm13 = vmmov %vm6426_vm0 }
 0x35b   : > { %v2070_v19 = vpop.f32.mrf.mxu3 }
 0x35c   : > { %v5535_v17 = vadd.f32 %v2070_v19, %v1786_v58  ;;  %v5541_v13 = vpop.f32.mrf.mxu2  ;;  %v5547_v20 = vpop.f32.mrf.mxu1  ;;  %v2934_v58 = vpack.c.bf16 %v2872_v60, %v2903_v36  ;;  %v3142_v19 = vld [vmem:[#allocation2 + $0xc1] sm:$0xff] }
 0x35d   : > { %6424 = vst [vmem:[#allocation59_spill] sm:$0xff] %v5547_v20  ;;  %v3164_v63 = vpack.c.bf16 %v3143_v56, %v3142_v19 }
 0x35e   : > { %4022 = vmatmul.msk.bf16.gmra.mxu1 %vm6430_vm5, %v6429_v10  ;;  %v6433_v10 = vld [vmem:[#allocation4_spill] sm:$0xff] }
 0x35f   : > { %vm6434_vm4 = vnez %v6433_v10 }
 0x360   : > { %v2905_v35 = vsel %vm6434_vm4, %v2873_v33, 0.0  ;;  %vm6445_vm4 = vmmov %vm6426_vm0 }
 0x361   : > { %3972 = vmatmul.msk.bf16.gmra.mxu2 %vm6426_vm0, %v6425_v30  ;;  %v1793_v30 = vadd.f32 %v5486_v5, %v5230_v37  ;;  %v6438_v37 = vld [vmem:[#allocation32_spill] sm:$0xff]  ;;  %v1796_v5 = vadd.f32 %v5506_v0, %v5149_v22  ;;  %v3146_v0 = vld [vmem:[#allocation2 + $0xe1] sm:$0xff] }
 0x363   : > { %v2072_v38 = vpop.f32.mrf.mxu3 }
 0x364   : > { %v5543_v3 = vadd.f32 %v2072_v38, %v1788_v34  ;;  %4010 = vmatmul.msk.bf16.gmra.mxu0 %vm6428_vm13, %v3164_v63  ;;  %v5557_v34 = vpop.f32.mrf.mxu2  ;;  %v5559_v38 = vpop.f32.mrf.mxu0  ;;  %vm6439_vm13 = vmmov %vm6426_vm0 }
 0x365   : > { %6431 = vst [vmem:[#allocation63_spill] sm:$0xff] %v5559_v38  ;;  %v5563_v56 = vpop.f32.mrf.mxu1 }
 0x366   : > { %6432 = vst [vmem:[#allocation11_spill] sm:$0xff] %v5563_v56  ;;  %v6435_v56 = vld [vmem:[#allocation16_spill] sm:$0xff] }
 0x368   : > { %3985 = vmatmul.msk.bf16.gmra.mxu3 %vm6427_vm3, %v2934_v58  ;;  %v2874_v58 = vld [vmem:[#allocation2 + $0x48] sm:$0xff]  ;;  %vm6437_vm3 = vmmov %vm6426_vm0 }
 0x36b   : > { %v2075_v47 = vpop.f32.mrf.mxu3 }
 0x36c   : > { %v5561_v60 = vadd.f32 %v2075_v47, %v1791_v21  ;;  %v5567_v63 = vpop.f32.mrf.mxu2  ;;  %v5573_v38 = vpop.f32.mrf.mxu0  ;;  %v2935_v21 = vpack.c.bf16 %v2874_v58, %v2905_v35  ;;  %v3165_v47 = vpack.c.bf16 %v3145_v53, %v3144_v15  ;;  %v2875_v58 = vld [vmem:[#allocation2 + $0x50] sm:$0xff] }
 0x36e   : > { %4023 = vmatmul.msk.bf16.gmra.mxu1 %vm6439_vm13, %v6438_v37 }
 0x371   : > { %3973 = vmatmul.msk.bf16.gmra.mxu2 %vm6436_vm8, %v6435_v56  ;;  %v1798_v56 = vadd.f32 %v5515_v6, %v5172_v26  ;;  %vm6446_vm8 = vmmov %vm6426_vm0  ;;  %v6447_v26 = vld [vmem:[#allocation33_spill] sm:$0xff] }
 0x373   : > { %v2077_v36 = vpop.f32.mrf.mxu3 }
 0x374   : > { %v5569_v19 = vadd.f32 %v2077_v36, %v1793_v30  ;;  %4011 = vmatmul.msk.bf16.gmra.mxu0 %vm6437_vm3, %v3165_v47  ;;  %v5583_v30 = vpop.f32.mrf.mxu1  ;;  %v1810_v33 = vpop.f32.mrf.mxu2  ;;  %v6441_v47 = vld [vmem:[#allocation18_spill] sm:$0xff]  ;;  %vm6448_vm3 = vmmov %vm6426_vm0 }
 0x375   : > { %6440 = vst [vmem:[#allocation45_spill] sm:$0xff] %v5583_v30  ;;  %v5587_v35 = vpop.f32.mrf.mxu0  ;;  %vm6442_vm5 = vnez %v6441_v47  ;;  %v3147_v30 = vld [vmem:[#allocation2 + $0xe9] sm:$0xff] }
 0x376   : > { %v2907_v37 = vsel %vm6442_vm5, %v2875_v58, 0.0  ;;  %v1801_v58 = vadd.f32 %v5531_v59, %v5191_v18  ;;  %v3149_v18 = vld [vmem:[#allocation2 + $0xf9] sm:$0xff]  ;;  %vm6456_vm5 = vmmov %vm6426_vm0 }
 0x378   : > { %3986 = vmatmul.msk.bf16.gmra.mxu3 %vm6426_vm0, %v2935_v21  ;;  %v2876_v21 = vld [vmem:[#allocation2 + $0x58] sm:$0xff] }
 0x37b   : > { %v2080_v36 = vpop.f32.mrf.mxu3 }
 0x37c   : > { %v5585_v10 = vadd.f32 %v2080_v36, %v1796_v5  ;;  %v1812_v15 = vpop.f32.mrf.mxu2  ;;  %v5593_v20 = vpop.f32.mrf.mxu1  ;;  %v2936_v5 = vpack.c.bf16 %v2876_v21, %v2907_v37  ;;  %v3166_v36 = vpack.c.bf16 %v3147_v30, %v3146_v0  ;;  %v2877_v21 = vld [vmem:[#allocation2 + $0x60] sm:$0xff] }
 0x37d   : > { %6443 = vst [vmem:[#allocation80_spill] sm:$0xff] %v5593_v20  ;;  %v5603_v6 = vpop.f32.mrf.mxu0 }
 0x37e   : > { %4024 = vmatmul.msk.bf16.gmra.mxu1 %vm6448_vm3, %v6447_v26 }
 0x381   : > { %3974 = vmatmul.msk.bf16.gmra.mxu2 %vm6445_vm4, %v6444_v23  ;;  %v1803_v23 = vadd.f32 %v5541_v13, %v5202_v43  ;;  %vm6457_vm4 = vmmov %vm6426_vm0  ;;  %v6459_v43 = vld [vmem:[#allocation72_spill] sm:$0xff]  ;;  %v1806_v13 = vadd.f32 %v5557_v34, %v5226_v14  ;;  %v6464_v34 = vld [vmem:[#allocation34_spill] sm:$0xff] }
 0x383   : > { %v2082_v53 = vpop.f32.mrf.mxu3 }
 0x384   : > { %v5595_v22 = vadd.f32 %v2082_v53, %v1798_v56  ;;  %4012 = vmatmul.msk.bf16.gmra.mxu0 %vm6426_vm0, %v3166_v36  ;;  %v1815_v56 = vpop.f32.mrf.mxu2  ;;  %v5609_v30 = vpop.f32.mrf.mxu1  ;;  %v6451_v36 = vld [vmem:[#allocation38_spill] sm:$0xff] }
 0x385   : > { %6450 = vst [vmem:[#allocation13_spill] sm:$0xff] %v5609_v30  ;;  %vm6452_vm13 = vnez %v6451_v36  ;;  %v5617_v59 = vpop.f32.mrf.mxu0  ;;  %v6455_v30 = vld [vmem:[#allocation64_spill] sm:$0xff] }
 0x386   : > { %v2909_v26 = vsel %vm6452_vm13, %v2877_v21, 0.0  ;;  %vm6465_vm13 = vmmov %vm6426_vm0 }
 0x388   : > { %3987 = vmatmul.msk.bf16.gmra.mxu3 %vm6446_vm8, %v2936_v5  ;;  %v2878_v5 = vld [vmem:[#allocation2 + $0x68] sm:$0xff]  ;;  %vm6458_vm8 = vmmov %vm6426_vm0 }
 0x38b   : > { %v2085_v53 = vpop.f32.mrf.mxu3 }
 0x38c   : > { %v5607_v47 = vadd.f32 %v2085_v53, %v1801_v58  ;;  %v1817_v37 = vpop.f32.mrf.mxu2  ;;  %v2937_v58 = vpack.c.bf16 %v2878_v5, %v2909_v26  ;;  %v3167_v53 = vpack.c.bf16 %v3149_v18, %v3148_v28  ;;  %v2879_v5 = vld [vmem:[#allocation2 + $0x70] sm:$0xff] }
 0x38d   : > { %v5631_v28 = vpop.f32.mrf.mxu0 }
 0x38e   : > { %6449 = vst [vmem:[#allocation30_spill] sm:$0xff] %v5607_v47  ;;  %v5619_v47 = vpop.f32.mrf.mxu1  ;;  %4025 = vmatmul.msk.bf16.gmra.mxu1 %vm6426_vm0, %v6459_v43 }
 0x38f   : > { %6454 = vst [vmem:[#allocation14_spill] sm:$0xff] %v5619_v47 }
 0x391   : > { %3975 = vmatmul.msk.bf16.gmra.mxu2 %vm6456_vm5, %v6455_v30  ;;  %v1808_v30 = vadd.f32 %v5567_v63, %v5232_v4  ;;  %vm6466_vm5 = vmmov %vm6426_vm0  ;;  %v6468_v4 = vld [vmem:[#allocation81_spill] sm:$0xff]  ;;  %v1811_v63 = vadd.f32 %v1810_v33, %v5252_v11  ;;  %v6472_v33 = vld [vmem:[#allocation36_spill] sm:$0xff] }
 0x393   : > { %v2087_v0 = vpop.f32.mrf.mxu3 }
 0x394   : > { %v5615_v20 = vadd.f32 %v2087_v0, %v1803_v23  ;;  %4013 = vmatmul.msk.bf16.gmra.mxu0 %vm6458_vm8, %v3167_v53  ;;  %v1820_v21 = vpop.f32.mrf.mxu2  ;;  %v6461_v53 = vld [vmem:[#allocation42_spill] sm:$0xff]  ;;  %vm6469_vm8 = vmmov %vm6426_vm0 }
 0x395   : > { %vm6462_vm3 = vnez %v6461_v53  ;;  %v2881_v53 = vld [vmem:[#allocation2 + $0x80] sm:$0xff] }
 0x396   : > { %6453 = vst [vmem:[#allocation41_spill] sm:$0xff] %v5615_v20  ;;  %v5635_v36 = vpop.f32.mrf.mxu1  ;;  %v2911_v43 = vsel %vm6462_vm3, %v2879_v5, 0.0  ;;  %vm6473_vm3 = vmmov %vm6426_vm0 }
 0x398   : > { %3988 = vmatmul.msk.bf16.gmra.mxu3 %vm6457_vm4, %v2937_v58  ;;  %v2880_v58 = vld [vmem:[#allocation2 + $0x78] sm:$0xff]  ;;  %vm6467_vm4 = vmmov %vm6426_vm0 }
 0x399   : > { %v2938_v14 = vpack.c.bf16 %v2880_v58, %v2911_v43  ;;  %v1813_v58 = vadd.f32 %v1812_v15, %v5258_v39  ;;  %v1816_v39 = vadd.f32 %v1815_v56, %v5276_v62  ;;  %v6479_v56 = vld [vmem:[#allocation73_spill] sm:$0xff] }
 0x39b   : > { %v2090_v23 = vpop.f32.mrf.mxu3 }
 0x39c   : > { %v5629_v0 = vadd.f32 %v2090_v23, %v1806_v13  ;;  %v1822_v26 = vpop.f32.mrf.mxu2  ;;  %v5644_v13 = vpop.f32.mrf.mxu0 }
 0x39e   : > { %6460 = vst [vmem:[#allocation46_spill] sm:$0xff] %v5629_v0  ;;  %4026 = vmatmul.msk.bf16.gmra.mxu1 %vm6469_vm8, %v6468_v4  ;;  %vm6483_vm8 = vmmov %vm6426_vm0 }
 0x3a1   : > { %3976 = vmatmul.msk.bf16.gmra.mxu2 %vm6465_vm13, %v6464_v34  ;;  %v2882_v34 = vld [vmem:[#allocation2 + $0x88] sm:$0xff]  ;;  %vm6475_vm13 = vmmov %vm6426_vm0 }
 0x3a3   : > { %v2092_v18 = vpop.f32.mrf.mxu3 }
 0x3a4   : > { %v5639_v47 = vadd.f32 %v2092_v18, %v1808_v30  ;;  %4014 = vmatmul.msk.bf16.gmra.mxu0 %vm6467_vm4, %v5365_v32  ;;  %v2757_v5 = vpop.f32.mrf.mxu2  ;;  %v5651_v30 = vpop.f32.mrf.mxu1  ;;  %v2913_v32 = vsel %vm4442_vm7, %v2881_v53, 0.0  ;;  %v2883_v53 = vld [vmem:[#allocation2 + $0x90] sm:$0xff]  ;;  %vm6477_vm7 = vnez %v6072_v48  ;;  %vm6481_vm4 = vmmov %vm6426_vm0 }
 0x3a5   : > { %v2939_v11 = vpack.c.bf16 %v2882_v34, %v2913_v32 }
 0x3a6   : > { %6463 = vst [vmem:[#allocation50_spill] sm:$0xff] %v5639_v47 }
 0x3a8   : > { %3989 = vmatmul.msk.bf16.gmra.mxu3 %vm6466_vm5, %v2938_v14  ;;  %vm6480_vm5 = vmmov %vm6426_vm0 }
 0x3ab   : > { %v2095_v23 = vpop.f32.mrf.mxu3 }
 0x3ac   : > { %v5653_v18 = vadd.f32 %v2095_v23, %v1811_v63  ;;  %v2759_v14 = vpop.f32.mrf.mxu2  ;;  %v5660_v4 = vpop.f32.mrf.mxu1  ;;  %v6474_v63 = vld [vmem:[#allocation66_spill] sm:$0xff] }
 0x3ae   : > { %6470 = vst [vmem:[#allocation3_spill] sm:$0xff] %v5653_v18  ;;  %4027 = vmatmul.msk.bf16.gmra.mxu1 %vm6475_vm13, %v6474_v63  ;;  %vm6490_vm13 = vmmov %vm6426_vm0 }
 0x3b1   : > { %3977 = vmatmul.msk.bf16.gmra.mxu2 %vm6426_vm0, %v6472_v33  ;;  %v2884_v33 = vld [vmem:[#allocation2 + $0x98] sm:$0xff] }
 0x3b3   : > { %v2097_v43 = vpop.f32.mrf.mxu3 }
 0x3b4   : > { %v5656_v47 = vadd.f32 %v2097_v43, %v1813_v58  ;;  %v5668_v23 = vpop.f32.mrf.mxu2  ;;  %v5672_v44 = vpop.f32.mrf.mxu1  ;;  %v1818_v43 = vadd.f32 %v1817_v37, %v5282_v61  ;;  %v1821_v61 = vadd.f32 %v1820_v21, %v5297_v27  ;;  %v6486_v21 = vld [vmem:[#allocation89_spill] sm:$0xff] }
 0x3b6   : > { %6471 = vst [vmem:[#allocation15_spill] sm:$0xff] %v5656_v47 }
 0x3b8   : > { %3990 = vmatmul.msk.bf16.gmra.mxu3 %vm6473_vm3, %v2939_v11  ;;  %v2915_v11 = vsel %vm6477_vm7, %v2883_v53, 0.0  ;;  %v2885_v53 = vld [vmem:[#allocation2 + $0xa0] sm:$0xff]  ;;  %vm6488_vm3 = vmmov %vm6426_vm0 }
 0x3b9   : > { %v2940_v62 = vpack.c.bf16 %v2884_v33, %v2915_v11  ;;  %v2886_v11 = vld [vmem:[#allocation2 + $0xa8] sm:$0xff]  ;;  %vm6507_vm7 = vmmov %vm6426_vm0 }
 0x3bb   : > { %v2100_v15 = vpop.f32.mrf.mxu3 }
 0x3bc   : > { %v5670_v58 = vadd.f32 %v2100_v15, %v1816_v39  ;;  %v5675_v32 = vpop.f32.mrf.mxu2  ;;  %v6482_v39 = vld [vmem:[#allocation84_spill] sm:$0xff]  ;;  %v5687_v37 = vpop.f32.mrf.mxu1 }
 0x3be   : > { %6476 = vst [vmem:[#allocation60_spill] sm:$0xff] %v5670_v58  ;;  %4028 = vmatmul.msk.bf16.gmra.mxu1 %vm6483_vm8, %v6482_v39  ;;  %v2363_v39 = vadd.f32 %v6486_v21, %v5321_v40  ;;  %v2887_v21 = vld [vmem:[#allocation2 + $0xb0] sm:$0xff]  ;;  %vm6523_vm8 = vmmov %vm6426_vm0 }
 0x3c1   : > { %3978 = vmatmul.msk.bf16.gmra.mxu2 %vm6480_vm5, %v6479_v56  ;;  %vm6508_vm5 = vmmov %vm6426_vm0 }
 0x3c3   : > { %v2102_v34 = vpop.f32.mrf.mxu3 }
 0x3c4   : > { %v5679_v63 = vadd.f32 %v2102_v34, %v1818_v43  ;;  %v5689_v58 = vpop.f32.mrf.mxu2  ;;  %v1823_v43 = vadd.f32 %v1822_v26, %v5303_v54  ;;  %v5698_v56 = vpop.f32.mrf.mxu1  ;;  %v6489_v54 = vld [vmem:[#allocation87_spill] sm:$0xff]  ;;  %v6491_v26 = vld [vmem:[#allocation98_spill] sm:$0xff] }
 0x3c6   : > { %6478 = vst [vmem:[#allocation4_spill] sm:$0xff] %v5679_v63 }
 0x3c8   : > { %3991 = vmatmul.msk.bf16.gmra.mxu3 %vm6481_vm4, %v2940_v62  ;;  %v2917_v62 = vsel %vm4768_vm6, %v2885_v53, 0.0  ;;  %vm6499_vm6 = vmmov %vm6426_vm0 }
 0x3c9   : > { %v2941_v63 = vpack.c.bf16 %v2886_v11, %v2917_v62  ;;  %v6493_v62 = vld [vmem:[#allocation39_spill] sm:$0xff]  ;;  %vm6522_vm4 = vmmov %vm6426_vm0 }
 0x3cb   : > { %v2105_v15 = vpop.f32.mrf.mxu3 }
 0x3cc   : > { %v5691_v48 = vadd.f32 %v2105_v15, %v1821_v61  ;;  %v5694_v33 = vpop.f32.mrf.mxu2  ;;  %v6487_v61 = vld [vmem:[#allocation82_spill] sm:$0xff]  ;;  %v2584_v15 = vadd.f32 %v6491_v26, %v2363_v39  ;;  %v5716_v40 = vpop.f32.mrf.mxu1  ;;  %v6494_v26 = vld [vmem:[#allocation91_spill] sm:$0xff] }
 0x3cd   : > { %v2365_v47 = vadd.f32 %v6494_v26, %v5348_v1  ;;  %v6497_v26 = vld [vmem:[#allocation74_spill] sm:$0xff] }
 0x3ce   : > { %6484 = vst [vmem:[#allocation16_spill] sm:$0xff] %v5691_v48  ;;  %4029 = vmatmul.msk.bf16.gmra.mxu1 %vm6490_vm13, %v6489_v54  ;;  %v5714_v48 = vpop.f32.mrf.mxu0 }
 0x3d1   : > { %3979 = vmatmul.msk.bf16.gmra.mxu2 %vm6426_vm0, %v6487_v61  ;;  %v5719_v61 = vld [vmem:[#allocation2 + $0x10a] sm:$0xff] }
 0x3d3   : > { %v2107_v34 = vpop.f32.mrf.mxu3 }
 0x3d4   : > { %v5700_v27 = vadd.f32 %v2107_v34, %v1823_v43  ;;  %v5710_v7 = vpop.f32.mrf.mxu2  ;;  %v6492_v43 = vld [vmem:[#allocation90_spill] sm:$0xff] }
 0x3d5   : > { %v2364_v34 = vadd.f32 %v6492_v43, %v5331_v29  ;;  %v2919_v43 = vsel %vm4808_vm12, %v2887_v21, 0.0  ;;  %v5740_v21 = vpop.f32.mrf.mxu1  ;;  %vm6498_vm12 = vmmov %vm6426_vm0 }
 0x3d6   : > { %6485 = vst [vmem:[#allocation32_spill] sm:$0xff] %v5700_v27  ;;  %v2837_v27 = vadd.f32 %v2757_v5, %v2584_v15  ;;  %v2888_v5 = vld [vmem:[#allocation2 + $0xb8] sm:$0xff] }
 0x3d7   : > { %v2942_v1 = vpack.c.bf16 %v2888_v5, %v2919_v43 }
 0x3d8   : > { %3992 = vmatmul.msk.bf16.gmra.mxu3 %vm6488_vm3, %v2941_v63  ;;  %v2585_v63 = vadd.f32 %v6493_v62, %v2364_v34  ;;  %v5736_v34 = vpop.f32.mrf.mxu0  ;;  %vm6543_vm3 = vmmov %vm6426_vm0 }
 0x3da   : > { %v2838_v54 = vadd.f32 %v2759_v14, %v2585_v63 }
 0x3db   : > { %v3010_v53 = vpop.f32.mrf.mxu3 }
 0x3dc   : > { %v3090_v11 = vadd.f32 %v3010_v53, %v2837_v27  ;;  %v5724_v18 = vpop.f32.mrf.mxu2  ;;  %v5728_v27 = vld [vmem:[#allocation2 + $0x102] sm:$0xff]  ;;  %v3404_v53 = vsel %vm5022_vm11, %v5719_v61, 0.0  ;;  %vm6500_vm11 = vmmov %vm6426_vm0 }
 0x3dd   : > { %v3421_v63 = vpack.c.bf16 %v3404_v53, %v5728_v27 }
 0x3de   : > { %v3311_v39 = vadd.f32 %v5573_v38, %v3090_v11  ;;  %v6496_v11 = vld [vmem:[#allocation44_spill] sm:$0xff] }
 0x3df   : > { %v2586_v62 = vadd.f32 %v6496_v11, %v2365_v47  ;;  %4030 = vmatmul.msk.bf16.gmra.mxu1 %vm6500_vm11, %v3421_v63 }
 0x3e0   : > { %v3564_v38 = vadd.f32 %v5635_v36, %v3311_v39  ;;  %v5761_v11 = vpop.f32.mrf.mxu0 }
 0x3e1   : > { %3980 = vmatmul.msk.bf16.gmra.mxu2 %vm6498_vm12, %v6497_v26  ;;  %v2839_v16 = vadd.f32 %v5668_v23, %v2586_v62  ;;  %v5764_v62 = vpop.f32.mrf.mxu1  ;;  %v2889_v26 = vld [vmem:[#allocation2 + $0xc0] sm:$0xff] }
 0x3e3   : > { %v3012_v29 = vpop.f32.mrf.mxu3 }
 0x3e4   : > { %v3091_v0 = vadd.f32 %v3012_v29, %v2838_v54  ;;  %v6501_v29 = vld [vmem:[#allocation92_spill] sm:$0xff] }
 0x3e5   : > { %v2366_v5 = vadd.f32 %v6501_v29, %v5360_v31 }
 0x3e6   : > { %v3312_v14 = vadd.f32 %v5587_v35, %v3091_v0  ;;  %v3698_v35 = vmul.f32 %v3564_v38, %v3564_v38 }
 0x3e8   : > { %v3565_v54 = vadd.f32 %v5651_v30, %v3312_v14  ;;  %3993 = vmatmul.msk.bf16.gmra.mxu3 %vm6499_vm6, %v2942_v1  ;;  %v5753_v30 = vpop.f32.mrf.mxu2  ;;  %v6502_v14 = vld [vmem:[#allocation61_spill] sm:$0xff] }
 0x3e9   : > { %v2587_v1 = vadd.f32 %v6502_v14, %v2366_v5  ;;  %v6505_v5 = vld [vmem:[#allocation65_spill] sm:$0xff] }
 0x3ea   : > { %v4040_v47 = vpack.c.bf16 %v3565_v54, %v3564_v38  ;;  %v3660_v0 = vadd.f32 %v3565_v54, %v3564_v38  ;;  %v3699_v36 = vmul.f32 %v3565_v54, %v3565_v54 }
 0x3eb   : > { %v3015_v39 = vpop.f32.mrf.mxu3  ;;  %v2840_v38 = vadd.f32 %v5675_v32, %v2587_v1 }
 0x3ec   : > { %4041 = vst [vmem:[%s5749_s8] sm:$0xff] %v4040_v47   ;;  %v3730_v15 = vadd.f32 %v3699_v36, %v3698_v35  ;;  %v3092_v43 = vadd.f32 %v3015_v39, %v2839_v16  ;;  %v2890_v35 = vld [vmem:[#allocation2 + $0xc8] sm:$0xff]  ;;  %v6503_v16 = vld [vmem:[#allocation93_spill] sm:$0xff] }
 0x3ee   : > { %v3313_v53 = vadd.f32 %v5603_v6, %v3092_v43  ;;  %v2367_v6 = vadd.f32 %v6503_v16, %v5374_v49 }
 0x3f0   : > { %v3566_v23 = vadd.f32 %v5660_v4, %v3313_v53  ;;  %v5766_v20 = vpop.f32.mrf.mxu2  ;;  %v2921_v4 = vsel %vm4564_vm14, %v2889_v26, 0.0  ;;  %v6506_v53 = vld [vmem:[#allocation86_spill] sm:$0xff]  ;;  %vm6515_vm14 = vmmov %vm6426_vm0 }
 0x3f1   : > { %v2943_v29 = vpack.c.bf16 %v2890_v35, %v2921_v4  ;;  %3981 = vmatmul.msk.bf16.gmra.mxu2 %vm6507_vm7, %v6506_v53 }
 0x3f2   : > { %v3661_v63 = vadd.f32 %v3660_v0, %v3566_v23  ;;  %v3700_v54 = vmul.f32 %v3566_v23, %v3566_v23  ;;  %v2588_v0 = vadd.f32 %v6505_v5, %v2367_v6 }
 0x3f3   : > { %v3017_v31 = vpop.f32.mrf.mxu3 }
 0x3f4   : > { %v3731_v47 = vadd.f32 %v3730_v15, %v3700_v54  ;;  %v3093_v36 = vadd.f32 %v3017_v31, %v2840_v38  ;;  %v2841_v49 = vadd.f32 %v5689_v58, %v2588_v0  ;;  %v5779_v38 = vpop.f32.mrf.mxu0  ;;  %v5783_v31 = vpop.f32.mrf.mxu1 }
 0x3f6   : > { %v3314_v32 = vadd.f32 %v5617_v59, %v3093_v36  ;;  %v6509_v59 = vld [vmem:[#allocation94_spill] sm:$0xff]  ;;  %v6510_v36 = vld [vmem:[#allocation21_spill] sm:$0xff] }
 0x3f7   : > { %v2368_v26 = vadd.f32 %v6509_v59, %v5384_v8  ;;  %v2892_v8 = vld [vmem:[#allocation2 + $0xd8] sm:$0xff] }
 0x3f8   : > { %v3567_v43 = vadd.f32 %v5672_v44, %v3314_v32  ;;  %3994 = vmatmul.msk.bf16.gmra.mxu3 %vm6508_vm5, %v2943_v29  ;;  %v5786_v16 = vpop.f32.mrf.mxu2 }
 0x3f9   : > { %v2589_v58 = vadd.f32 %v6510_v36, %v2368_v26  ;;  %v6514_v26 = vld [vmem:[#allocation88_spill] sm:$0xff] }
 0x3fa   : > { %v4045_v15 = vpack.c.bf16 %v3567_v43, %v3566_v23  ;;  %v3662_v14 = vadd.f32 %v3661_v63, %v3567_v43  ;;  %v3701_v1 = vmul.f32 %v3567_v43, %v3567_v43  ;;  %v2891_v63 = vld [vmem:[#allocation2 + $0xd0] sm:$0xff] }
 0x3fb   : > { %v3020_v54 = vpop.f32.mrf.mxu3  ;;  %v2842_v39 = vadd.f32 %v5694_v33, %v2589_v58  ;;  %v2923_v0 = vsel %vm6256_vm10, %v2891_v63, 0.0  ;;  %vm6516_vm10 = vmmov %vm6426_vm0 }
 0x3fc   : > { %4117 = vst [vmem:[%s5749_s8 + $0x8] sm:$0xff] %v4045_v15   ;;  %v3732_v44 = vadd.f32 %v3731_v47, %v3701_v1  ;;  %v3094_v35 = vadd.f32 %v3020_v54, %v2841_v49  ;;  %v6512_v47 = vld [vmem:[#allocation95_spill] sm:$0xff]  ;;  %v5798_v15 = vpop.f32.mrf.mxu1  ;;  %v2944_v33 = vpack.c.bf16 %v2892_v8, %v2923_v0  ;;  %v6513_v1 = vld [vmem:[#allocation5_spill] sm:$0xff] }
 0x3fd   : > { %v2369_v43 = vadd.f32 %v6512_v47, %v5398_v12  ;;  %v6518_v8 = vld [vmem:[#allocation7_spill] sm:$0xff] }
 0x3fe   : > { %v3315_v6 = vadd.f32 %v5631_v28, %v3094_v35  ;;  %v5796_v28 = vpop.f32.mrf.mxu0 }
 0x3ff   : > { %v2590_v54 = vadd.f32 %v6513_v1, %v2369_v43 }
 0x400   : > { %v3568_v23 = vadd.f32 %v5687_v37, %v3315_v6 }
 0x401   : > { %3982 = vmatmul.msk.bf16.gmra.mxu2 %vm6515_vm14, %v6514_v26  ;;  %v2843_v12 = vadd.f32 %v5710_v7, %v2590_v54 }
 0x402   : > { %v3663_v4 = vadd.f32 %v3662_v14, %v3568_v23  ;;  %v3702_v32 = vmul.f32 %v3568_v23, %v3568_v23  ;;  %v5801_v14 = vpop.f32.mrf.mxu2 }
 0x403   : > { %v3022_v29 = vpop.f32.mrf.mxu3 }
 0x404   : > { %v3733_v53 = vadd.f32 %v3732_v44, %v3702_v32  ;;  %v3095_v49 = vadd.f32 %v3022_v29, %v2842_v39  ;;  %v5815_v29 = vpop.f32.mrf.mxu1 }
 0x406   : > { %v3316_v37 = vadd.f32 %v5644_v13, %v3095_v49  ;;  %v6517_v13 = vld [vmem:[#allocation96_spill] sm:$0xff] }
 0x407   : > { %v2370_v58 = vadd.f32 %v6517_v13, %v5408_v45 }
 0x408   : > { %v3569_v59 = vadd.f32 %v5698_v56, %v3316_v37  ;;  %3995 = vmatmul.msk.bf16.gmra.mxu3 %vm6516_vm10, %v2944_v33  ;;  %v5813_v56 = vpop.f32.mrf.mxu0  ;;  %v6520_v33 = vld [vmem:[#allocation97_spill] sm:$0xff] }
 0x409   : > { %v2591_v5 = vadd.f32 %v6518_v8, %v2370_v58  ;;  %v2371_v1 = vadd.f32 %v6520_v33, %v5425_v42 }
 0x40a   : > { %v4050_v44 = vpack.c.bf16 %v3569_v59, %v3568_v23  ;;  %v3664_v35 = vadd.f32 %v3663_v4, %v3569_v59  ;;  %v3703_v6 = vmul.f32 %v3569_v59, %v3569_v59  ;;  %v2893_v23 = vld [vmem:[#allocation2 + $0xe0] sm:$0xff]  ;;  %v5819_v4 = vpop.f32.mrf.mxu2 }
 0x40b   : > { %v3025_v36 = vpop.f32.mrf.mxu3  ;;  %v2844_v0 = vadd.f32 %v5724_v18, %v2591_v5  ;;  %v2925_v37 = vsel %vm6263_vm15, %v2893_v23, 0.0  ;;  %v6525_v5 = vld [vmem:[#allocation49_spill] sm:$0xff]  ;;  %vm6529_vm15 = vmmov %vm6426_vm0 }
 0x40c   : > { %4118 = vst [vmem:[%s5749_s8 + $0x10] sm:$0xff] %v4050_v44   ;;  %v3734_v63 = vadd.f32 %v3733_v53, %v3703_v6  ;;  %v3096_v39 = vadd.f32 %v3025_v36, %v2843_v12  ;;  %v2894_v53 = vld [vmem:[#allocation2 + $0xe8] sm:$0xff]  ;;  %v6521_v12 = vld [vmem:[#allocation37_spill] sm:$0xff]  ;;  %v5837_v6 = vpop.f32.mrf.mxu1 }
 0x40d   : > { %v2945_v26 = vpack.c.bf16 %v2894_v53, %v2925_v37  ;;  %v2592_v44 = vadd.f32 %v6521_v12, %v2371_v1  ;;  %v2896_v53 = vld [vmem:[#allocation2 + $0xf8] sm:$0xff]  ;;  %v6527_v37 = vld [vmem:[#allocation10_spill] sm:$0xff] }
 0x40e   : > { %v3317_v32 = vadd.f32 %v5714_v48, %v3096_v39  ;;  %v2679_v48 = vsel %vm5481_vm2, %v5719_v61, 0.0  ;;  %v2373_v33 = vadd.f32 %v6527_v37, %v5450_v46 }
 0x40f   : > { %v2695_v18 = vpack.c.bf16 %v2679_v48, %v5728_v27  ;;  %v2845_v42 = vadd.f32 %v5753_v30, %v2592_v44 }
 0x410   : > { %v3570_v7 = vadd.f32 %v5716_v40, %v3317_v32  ;;  %v5835_v61 = vpop.f32.mrf.mxu0 }
 0x411   : > { %3983 = vmatmul.msk.bf16.gmra.mxu2 %vm6522_vm4, %v2695_v18 }
 0x412   : > { %v3665_v47 = vadd.f32 %v3664_v35, %v3570_v7  ;;  %v3704_v45 = vmul.f32 %v3570_v7, %v3570_v7  ;;  %v5840_v58 = vpop.f32.mrf.mxu2 }
 0x413   : > { %v3027_v43 = vpop.f32.mrf.mxu3 }
 0x414   : > { %v3735_v40 = vadd.f32 %v3734_v63, %v3704_v45  ;;  %v3097_v54 = vadd.f32 %v3027_v43, %v2844_v0  ;;  %v6524_v63 = vld [vmem:[#allocation6_spill] sm:$0xff]  ;;  %v2895_v45 = vld [vmem:[#allocation2 + $0xf0] sm:$0xff] }
 0x415   : > { %v2372_v39 = vadd.f32 %v6524_v63, %v5434_v25  ;;  %v2927_v25 = vsel %vm4925_vm1, %v2895_v45, 0.0  ;;  %v2898_v45 = vld [vmem:[#allocation2 + $0x108] sm:$0xff]  ;;  %vm6534_vm1 = vmmov %vm6426_vm0 }
 0x416   : > { %v3318_v59 = vadd.f32 %v5736_v34, %v3097_v54  ;;  %v2946_v54 = vpack.c.bf16 %v2896_v53, %v2927_v25 }
 0x417   : > { %v2593_v23 = vadd.f32 %v6525_v5, %v2372_v39 }
 0x418   : > { %v3571_v35 = vadd.f32 %v5740_v21, %v3318_v59  ;;  %3996 = vmatmul.msk.bf16.gmra.mxu3 %vm6523_vm8, %v2945_v26  ;;  %v5849_v43 = vpop.f32.mrf.mxu0  ;;  %v6528_v59 = vld [vmem:[#allocation56_spill] sm:$0xff] }
 0x419   : > { %v2846_v30 = vadd.f32 %v5766_v20, %v2593_v23  ;;  %v2594_v18 = vadd.f32 %v6528_v59, %v2373_v33  ;;  %v3373_v33 = vld [vmem:[#allocation2 + $0x112] sm:$0xff] }
 0x41a   : > { %v4055_v36 = vpack.c.bf16 %v3571_v35, %v3570_v7  ;;  %v3666_v34 = vadd.f32 %v3665_v47, %v3571_v35  ;;  %v3705_v13 = vmul.f32 %v3571_v35, %v3571_v35 }
 0x41b   : > { %v3030_v27 = vpop.f32.mrf.mxu3  ;;  %v2847_v12 = vadd.f32 %v5786_v16, %v2594_v18  ;;  %v6535_v18 = vld [vmem:[#allocation48_spill] sm:$0xff] }
 0x41c   : > { %4119 = vst [vmem:[%s5749_s8 + $0x18] sm:$0xff] %v4055_v36   ;;  %v3736_v21 = vadd.f32 %v3735_v40, %v3705_v13  ;;  %v3098_v32 = vadd.f32 %v3030_v27, %v2845_v42  ;;  %v5857_v40 = vpop.f32.mrf.mxu2  ;;  %v6530_v36 = vld [vmem:[#allocation43_spill] sm:$0xff] }
 0x41e   : > { %v3319_v8 = vadd.f32 %v5761_v11, %v3098_v32  ;;  %v5855_v11 = vpop.f32.mrf.mxu1 }
 0x420   : > { %v3572_v0 = vadd.f32 %v5764_v62, %v3319_v8  ;;  %v2897_v8 = vld [vmem:[#allocation2 + $0x100] sm:$0xff] }
 0x422   : > { %v3667_v7 = vadd.f32 %v3666_v34, %v3572_v0  ;;  %v3706_v47 = vmul.f32 %v3572_v0, %v3572_v0  ;;  %v2374_v34 = vadd.f32 %v6530_v36, %v5462_v51 }
 0x423   : > { %v3032_v48 = vpop.f32.mrf.mxu3 }
 0x424   : > { %v3737_v1 = vadd.f32 %v3736_v21, %v3706_v47  ;;  %v3099_v62 = vadd.f32 %v3032_v48, %v2846_v30  ;;  %v5872_v39 = vpop.f32.mrf.mxu2  ;;  %v6531_v21 = vld [vmem:[#allocation47_spill] sm:$0xff]  ;;  %v3152_v47 = vld [vmem:[#allocation2 + $0x111] sm:$0xff]  ;;  %v3153_v48 = vld [vmem:[#allocation2 + $0x119] sm:$0xff] }
 0x425   : > { %v2595_v16 = vadd.f32 %v6531_v21, %v2374_v34  ;;  %v3169_v37 = vpack.c.bf16 %v3153_v48, %v3152_v47 }
 0x426   : > { %v3320_v20 = vadd.f32 %v5779_v38, %v3099_v62  ;;  %v5867_v38 = vpop.f32.mrf.mxu0  ;;  %v5869_v63 = vpop.f32.mrf.mxu1 }
 0x427   : > { %v2848_v5 = vadd.f32 %v5801_v14, %v2595_v16  ;;  %4015 = vmatmul.msk.bf16.gmra.mxu0 %vm6534_vm1, %v3169_v37  ;;  %v2899_v16 = vld [vmem:[#allocation2 + $0x110] sm:$0xff] }
 0x428   : > { %v3573_v26 = vadd.f32 %v5783_v31, %v3320_v20  ;;  %3997 = vmatmul.msk.bf16.gmra.mxu3 %vm6529_vm15, %v2946_v54 }
 0x42a   : > { %v4060_v44 = vpack.c.bf16 %v3573_v26, %v3572_v0  ;;  %v3668_v46 = vadd.f32 %v3667_v7, %v3573_v26  ;;  %v3707_v35 = vmul.f32 %v3573_v26, %v3573_v26  ;;  %v2929_v7 = vsel %vm6292_vm9, %v2897_v8, 0.0  ;;  %vm6536_vm9 = vmmov %vm6426_vm0 }
 0x42b   : > { %v3035_v42 = vpop.f32.mrf.mxu3  ;;  %v2947_v62 = vpack.c.bf16 %v2898_v45, %v2929_v7  ;;  %v2900_v45 = vld [vmem:[#allocation2 + $0x118] sm:$0xff] }
 0x42c   : > { %4120 = vst [vmem:[%s5749_s8 + $0x20] sm:$0xff] %v4060_v44   ;;  %v3738_v13 = vadd.f32 %v3737_v1, %v3707_v35  ;;  %v3100_v27 = vadd.f32 %v3035_v42, %v2847_v12  ;;  %v2797_v52 = vpop.f32.mrf.mxu2  ;;  %v6537_v42 = vld [vmem:[#allocation12_spill] sm:$0xff]  ;;  %v6541_v7 = vld [vmem:[#allocation53_spill] sm:$0xff] }
 0x42d   : > { %v2376_v36 = vadd.f32 %v6537_v42, %v5493_v57  ;;  %v6539_v57 = vld [vmem:[#allocation83_spill] sm:$0xff]  ;;  %v6546_v42 = vld [vmem:[#allocation8_spill] sm:$0xff] }
 0x42e   : > { %v3321_v31 = vadd.f32 %v5796_v28, %v3100_v27  ;;  %v6533_v28 = vld [vmem:[#allocation17_spill] sm:$0xff]  ;;  %v3268_v54 = vpop.f32.mrf.mxu0  ;;  %v5885_v59 = vpop.f32.mrf.mxu1 }
 0x42f   : > { %v2375_v53 = vadd.f32 %v6533_v28, %v5477_v9 }
 0x430   : > { %v3574_v32 = vadd.f32 %v5798_v15, %v3321_v31  ;;  %v3374_v15 = vld [vmem:[#allocation2 + $0x11a] sm:$0xff] }
 0x431   : > { %v3406_v14 = vsel %vm5481_vm2, %v3374_v15, 0.0  ;;  %v2596_v9 = vadd.f32 %v6535_v18, %v2375_v53  ;;  %vm6540_vm2 = vnez %v6539_v57  ;;  %v6542_v53 = vld [vmem:[#allocation55_spill] sm:$0xff] }
 0x432   : > { %v3669_v23 = vadd.f32 %v3668_v46, %v3574_v32  ;;  %v3708_v51 = vmul.f32 %v3574_v32, %v3574_v32  ;;  %v3422_v20 = vpack.c.bf16 %v3406_v14, %v3373_v33  ;;  %v2931_v30 = vsel %vm6540_vm2, %v2899_v16, 0.0 }
 0x433   : > { %v3037_v0 = vpop.f32.mrf.mxu3  ;;  %v2849_v12 = vadd.f32 %v5819_v4, %v2596_v9  ;;  %v2948_v28 = vpack.c.bf16 %v2900_v45, %v2931_v30 }
 0x434   : > { %v3739_v49 = vadd.f32 %v3738_v13, %v3708_v51  ;;  %v3101_v25 = vadd.f32 %v3037_v0, %v2848_v5  ;;  %4031 = vmatmul.msk.bf16.gmra.mxu1 %vm6426_vm0, %v3422_v20  ;;  %v2799_v51 = vpop.f32.mrf.mxu2 }
 0x436   : > { %v3322_v1 = vadd.f32 %v5813_v56, %v3101_v25  ;;  %v3271_v8 = vpop.f32.mrf.mxu0  ;;  %v3524_v5 = vpop.f32.mrf.mxu1 }
 0x438   : > { %v3575_v26 = vadd.f32 %v5815_v29, %v3322_v1  ;;  %3998 = vmatmul.msk.bf16.gmra.mxu3 %vm6536_vm9, %v2947_v62  ;;  %v6538_v29 = vld [vmem:[#allocation54_spill] sm:$0xff] }
 0x439   : > { %v2597_v31 = vadd.f32 %v6538_v29, %v2376_v36 }
 0x43a   : > { %v4065_v56 = vpack.c.bf16 %v3575_v26, %v3574_v32  ;;  %v3670_v44 = vadd.f32 %v3669_v23, %v3575_v26  ;;  %v3709_v46 = vmul.f32 %v3575_v26, %v3575_v26 }
 0x43b   : > { %v3040_v35 = vpop.f32.mrf.mxu3  ;;  %v2850_v4 = vadd.f32 %v5840_v58, %v2597_v31 }
 0x43c   : > { %4121 = vst [vmem:[%s5749_s8 + $0x28] sm:$0xff] %v4065_v56   ;;  %v3740_v34 = vadd.f32 %v3739_v49, %v3709_v46  ;;  %v3102_v13 = vadd.f32 %v3040_v35, %v2849_v12  ;;  %v2802_v9 = vpop.f32.mrf.mxu2 }
 0x43e   : > { %v3323_v27 = vadd.f32 %v5835_v61, %v3102_v13  ;;  %v2377_v61 = vadd.f32 %v6541_v7, %v5508_v2  ;;  %v3273_v14 = vpop.f32.mrf.mxu0  ;;  %v6544_v2 = vld [vmem:[#allocation9_spill] sm:$0xff]  ;;  %v3526_v20 = vpop.f32.mrf.mxu1 }
 0x43f   : > { %v2378_v62 = vadd.f32 %v6544_v2, %v5517_v41  ;;  %v2379_v41 = vadd.f32 %v6546_v42, %v5535_v17 }
 0x440   : > { %v3576_v21 = vadd.f32 %v5837_v6, %v3323_v27  ;;  %v2598_v49 = vadd.f32 %v6542_v53, %v2377_v61 }
 0x442   : > { %v3671_v32 = vadd.f32 %v3670_v44, %v3576_v21  ;;  %v3710_v23 = vmul.f32 %v3576_v21, %v3576_v21  ;;  %v2851_v25 = vadd.f32 %v5857_v40, %v2598_v49  ;;  %v6550_v49 = vld [vmem:[#allocation22_spill] sm:$0xff] }
 0x443   : > { %v3042_v0 = vpop.f32.mrf.mxu3 }
 0x444   : > { %v3741_v47 = vadd.f32 %v3740_v34, %v3710_v23  ;;  %v3103_v48 = vadd.f32 %v3042_v0, %v2850_v4  ;;  %v2804_v31 = vpop.f32.mrf.mxu2  ;;  %v6548_v0 = vld [vmem:[#allocation23_spill] sm:$0xff] }
 0x445   : > { %v2380_v45 = vadd.f32 %v6548_v0, %v5543_v3 }
 0x446   : > { %v3324_v6 = vadd.f32 %v5849_v43, %v3103_v48  ;;  %v3276_v13 = vpop.f32.mrf.mxu0  ;;  %v3529_v27 = vpop.f32.mrf.mxu1 }
 0x448   : > { %v3577_v58 = vadd.f32 %v5855_v11, %v3324_v6  ;;  %3999 = vmatmul.msk.bf16.gmra.mxu3 %vm6543_vm3, %v2948_v28  ;;  %v6545_v11 = vld [vmem:[#allocation25_spill] sm:$0xff] }
 0x449   : > { %v2599_v12 = vadd.f32 %v6545_v11, %v2378_v62 }
 0x44a   : > { %v4070_v37 = vpack.c.bf16 %v3577_v58, %v3576_v21  ;;  %v3672_v33 = vadd.f32 %v3671_v32, %v3577_v58  ;;  %v3711_v15 = vmul.f32 %v3577_v58, %v3577_v58  ;;  %v2381_v58 = vadd.f32 %v6550_v49, %v5561_v60  ;;  %v6557_v49 = vld [vmem:[#allocation70_spill] sm:$0xff] }
 0x44b   : > { %v3045_v1 = vpop.f32.mrf.mxu3  ;;  %v2852_v40 = vadd.f32 %v5872_v39, %v2599_v12 }
 0x44c   : > { %4122 = vst [vmem:[%s5749_s8 + $0x30] sm:$0xff] %v4070_v37   ;;  %v3742_v43 = vadd.f32 %v3741_v47, %v3711_v15  ;;  %v3104_v18 = vadd.f32 %v3045_v1, %v2851_v25  ;;  %v2807_v6 = vpop.f32.mrf.mxu2 }
 0x44e   : > { %v3325_v26 = vadd.f32 %v5867_v38, %v3104_v18  ;;  %v6547_v38 = vld [vmem:[#allocation31_spill] sm:$0xff]  ;;  %v3278_v7 = vpop.f32.mrf.mxu0  ;;  %v3531_v61 = vpop.f32.mrf.mxu1 }
 0x44f   : > { %v2600_v21 = vadd.f32 %v6547_v38, %v2379_v41 }
 0x450   : > { %v3578_v56 = vadd.f32 %v5869_v63, %v3325_v26  ;;  %v6551_v26 = vld [vmem:[#allocation24_spill] sm:$0xff] }
 0x451   : > { %v2853_v63 = vadd.f32 %v2797_v52, %v2600_v21  ;;  %v2382_v11 = vadd.f32 %v6551_v26, %v5569_v19  ;;  %v6560_v26 = vld [vmem:[#allocation27_spill] sm:$0xff] }
 0x452   : > { %v3673_v44 = vadd.f32 %v3672_v33, %v3578_v56  ;;  %v3712_v46 = vmul.f32 %v3578_v56, %v3578_v56  ;;  %v2602_v33 = vadd.f32 %v5410_v50, %v2381_v58 }
 0x453   : > { %v3047_v35 = vpop.f32.mrf.mxu3 }
 0x454   : > { %v3743_v36 = vadd.f32 %v3742_v43, %v3712_v46  ;;  %v3105_v34 = vadd.f32 %v3047_v35, %v2852_v40  ;;  %v2855_v2 = vadd.f32 %v2802_v9, %v2602_v33  ;;  %v6552_v35 = vld [vmem:[#allocation35_spill] sm:$0xff] }
 0x455   : > { %v2383_v42 = vadd.f32 %v6552_v35, %v5585_v10 }
 0x456   : > { %v3326_v29 = vadd.f32 %v3268_v54, %v3105_v34  ;;  %v6549_v54 = vld [vmem:[#allocation76_spill] sm:$0xff]  ;;  %v3281_v15 = vpop.f32.mrf.mxu0  ;;  %v3534_v1 = vpop.f32.mrf.mxu1 }
 0x457   : > { %v2601_v47 = vadd.f32 %v6549_v54, %v2380_v45  ;;  %v2604_v38 = vadd.f32 %v5446_v24, %v2383_v42 }
 0x458   : > { %v3579_v16 = vadd.f32 %v5885_v59, %v3326_v29 }
 0x459   : > { %v2854_v28 = vadd.f32 %v2799_v51, %v2601_v47  ;;  %v2809_v51 = vpop.f32.mrf.mxu2  ;;  %v2857_v21 = vadd.f32 %v2807_v6, %v2604_v38  ;;  %v6555_v47 = vld [vmem:[#allocation30_spill] sm:$0xff] }
 0x45a   : > { %v4075_v4 = vpack.c.bf16 %v3579_v16, %v3578_v56  ;;  %v3674_v39 = vadd.f32 %v3673_v44, %v3579_v16  ;;  %v3713_v32 = vmul.f32 %v3579_v16, %v3579_v16 }
 0x45b   : > { %v3050_v23 = vpop.f32.mrf.mxu3 }
 0x45c   : > { %4123 = vst [vmem:[%s5749_s8 + $0x38] sm:$0xff] %v4075_v4   ;;  %v3744_v17 = vadd.f32 %v3743_v36, %v3713_v32  ;;  %v3106_v57 = vadd.f32 %v3050_v23, %v2853_v63  ;;  %v6553_v63 = vld [vmem:[#allocation28_spill] sm:$0xff] }
 0x45d   : > { %v2384_v4 = vadd.f32 %v6553_v63, %v5595_v22  ;;  %v6565_v63 = vld [vmem:[#allocation79_spill] sm:$0xff] }
 0x45e   : > { %v3327_v30 = vadd.f32 %v3271_v8, %v3106_v57  ;;  %v3283_v46 = vpop.f32.mrf.mxu0  ;;  %v3536_v41 = vpop.f32.mrf.mxu1 }
 0x460   : > { %v3580_v48 = vadd.f32 %v3524_v5, %v3327_v30 }
 0x461   : > { %v2812_v19 = vpop.f32.mrf.mxu2 }
 0x462   : > { %v3675_v59 = vadd.f32 %v3674_v39, %v3580_v48  ;;  %v3714_v52 = vmul.f32 %v3580_v48, %v3580_v48 }
 0x463   : > { %v3052_v53 = vpop.f32.mrf.mxu3 }
 0x464   : > { %v3745_v25 = vadd.f32 %v3744_v17, %v3714_v52  ;;  %v3107_v3 = vadd.f32 %v3052_v53, %v2854_v28  ;;  %v6554_v17 = vld [vmem:[#allocation68_spill] sm:$0xff] }
 0x465   : > { %v2605_v57 = vadd.f32 %v6554_v17, %v2384_v4 }
 0x466   : > { %v3328_v37 = vadd.f32 %v3273_v14, %v3107_v3  ;;  %v2603_v14 = vadd.f32 %v5427_v55, %v2382_v11  ;;  %v3286_v10 = vpop.f32.mrf.mxu0  ;;  %v3539_v23 = vpop.f32.mrf.mxu1 }
 0x467   : > { %v2858_v24 = vadd.f32 %v2809_v51, %v2605_v57 }
 0x468   : > { %v3581_v8 = vadd.f32 %v3526_v20, %v3328_v37  ;;  %v2856_v50 = vadd.f32 %v2804_v31, %v2603_v14 }
 0x469   : > { %v2814_v45 = vpop.f32.mrf.mxu2 }
 0x46a   : > { %v4080_v62 = vpack.c.bf16 %v3581_v8, %v3580_v48  ;;  %v3676_v5 = vadd.f32 %v3675_v59, %v3581_v8  ;;  %v3715_v43 = vmul.f32 %v3581_v8, %v3581_v8  ;;  %v6556_v48 = vld [vmem:[#allocation26_spill] sm:$0xff] }
 0x46b   : > { %v3055_v18 = vpop.f32.mrf.mxu3  ;;  %v2385_v6 = vadd.f32 %v6556_v48, %v6555_v47  ;;  %v6568_v47 = vld [vmem:[#allocation58_spill] sm:$0xff] }
 0x46c   : > { %4124 = vst [vmem:[%s5749_s8 + $0x40] sm:$0xff] %v4080_v62   ;;  %v3746_v12 = vadd.f32 %v3745_v25, %v3715_v43  ;;  %v3108_v60 = vadd.f32 %v3055_v18, %v2855_v2  ;;  %v6558_v2 = vld [vmem:[#allocation41_spill] sm:$0xff] }
 0x46d   : > { %v2606_v58 = vadd.f32 %v6557_v49, %v2385_v6  ;;  %v6559_v62 = vld [vmem:[#allocation69_spill] sm:$0xff]  ;;  %v6569_v49 = vld [vmem:[#allocation59_spill] sm:$0xff] }
 0x46e   : > { %v3329_v56 = vadd.f32 %v3276_v13, %v3108_v60  ;;  %v3288_v52 = vpop.f32.mrf.mxu0  ;;  %v3541_v53 = vpop.f32.mrf.mxu1 }
 0x46f   : > { %v2859_v37 = vadd.f32 %v2812_v19, %v2606_v58 }
 0x470   : > { %v3582_v40 = vadd.f32 %v3529_v27, %v3329_v56 }
 0x471   : > { %v2817_v3 = vpop.f32.mrf.mxu2 }
 0x472   : > { %v3677_v20 = vadd.f32 %v3676_v5, %v3582_v40  ;;  %v3716_v44 = vmul.f32 %v3582_v40, %v3582_v40  ;;  %v2386_v5 = vadd.f32 %v6559_v62, %v6558_v2  ;;  %v6571_v2 = vld [vmem:[#allocation67_spill] sm:$0xff] }
 0x473   : > { %v3057_v9 = vpop.f32.mrf.mxu3 }
 0x474   : > { %v3747_v36 = vadd.f32 %v3746_v12, %v3716_v44  ;;  %v3109_v34 = vadd.f32 %v3057_v9, %v2856_v50  ;;  %v2607_v11 = vadd.f32 %v6560_v26, %v2386_v5  ;;  %v6562_v9 = vld [vmem:[#allocation29_spill] sm:$0xff] }
 0x476   : > { %v3330_v29 = vadd.f32 %v3278_v7, %v3109_v34  ;;  %v3291_v60 = vpop.f32.mrf.mxu0  ;;  %v3544_v56 = vpop.f32.mrf.mxu1  ;;  %v2860_v14 = vadd.f32 %v2814_v45, %v2607_v11  ;;  %v6563_v34 = vld [vmem:[#allocation71_spill] sm:$0xff]  ;;  %v6566_v45 = vld [vmem:[#allocation85_spill] sm:$0xff] }
 0x477   : > { %v6572_v11 = vld [vmem:[#allocation11_spill] sm:$0xff] }
 0x478   : > { %v3583_v13 = vadd.f32 %v3531_v61, %v3330_v29 }
 0x47a   : > { %v4085_v55 = vpack.c.bf16 %v3583_v13, %v3582_v40  ;;  %v3678_v27 = vadd.f32 %v3677_v20, %v3583_v13  ;;  %v3717_v31 = vmul.f32 %v3583_v13, %v3583_v13  ;;  %v2819_v20 = vpop.f32.mrf.mxu2 }
 0x47b   : > { %v3060_v16 = vpop.f32.mrf.mxu3 }
 0x47c   : > { %4125 = vst [vmem:[%s5749_s8 + $0x48] sm:$0xff] %v4085_v55   ;;  %v3748_v39 = vadd.f32 %v3747_v36, %v3717_v31  ;;  %v3110_v32 = vadd.f32 %v3060_v16, %v2857_v21  ;;  %v6564_v16 = vld [vmem:[#allocation50_spill] sm:$0xff] }
 0x47d   : > { %v2388_v4 = vadd.f32 %v6565_v63, %v6564_v16  ;;  %v6576_v63 = vld [vmem:[#allocation4_spill] sm:$0xff] }
 0x47e   : > { %v3331_v0 = vadd.f32 %v3281_v15, %v3110_v32 }
 0x47f   : > { %v2609_v17 = vadd.f32 %v6566_v45, %v2388_v4  ;;  %v6577_v4 = vld [vmem:[#allocation78_spill] sm:$0xff] }
 0x480   : > { %v3584_v30 = vadd.f32 %v3534_v1, %v3331_v0 }
 0x482   : > { %v3679_v7 = vadd.f32 %v3678_v27, %v3584_v30  ;;  %v3718_v61 = vmul.f32 %v3584_v30, %v3584_v30  ;;  %v3293_v27 = vpop.f32.mrf.mxu0 }
 0x483   : > { %v3062_v54 = vpop.f32.mrf.mxu3 }
 0x484   : > { %v3749_v28 = vadd.f32 %v3748_v39, %v3718_v61  ;;  %v3111_v22 = vadd.f32 %v3062_v54, %v2858_v24  ;;  %v3546_v39 = vpop.f32.mrf.mxu1  ;;  %v6567_v54 = vld [vmem:[#allocation3_spill] sm:$0xff] }
 0x485   : > { %v2389_v48 = vadd.f32 %v6568_v47, %v6567_v54  ;;  %v6579_v54 = vld [vmem:[#allocation16_spill] sm:$0xff] }
 0x486   : > { %v3332_v59 = vadd.f32 %v3283_v46, %v3111_v22  ;;  %v6561_v46 = vld [vmem:[#allocation46_spill] sm:$0xff]  ;;  %v6580_v47 = vld [vmem:[#allocation40_spill] sm:$0xff] }
 0x487   : > { %v2387_v35 = vadd.f32 %v6562_v9, %v6561_v46  ;;  %v2610_v58 = vadd.f32 %v6569_v49, %v2389_v48  ;;  %v6574_v46 = vld [vmem:[#allocation77_spill] sm:$0xff]  ;;  %v2393_v48 = vadd.f32 %v6580_v47, %v6579_v54 }
 0x488   : > { %v3585_v25 = vadd.f32 %v3536_v41, %v3332_v59 }
 0x489   : > { %v2608_v19 = vadd.f32 %v6563_v34, %v2387_v35 }
 0x48a   : > { %v4090_v33 = vpack.c.bf16 %v3585_v25, %v3584_v30  ;;  %v3680_v8 = vadd.f32 %v3679_v7, %v3585_v25  ;;  %v3719_v15 = vmul.f32 %v3585_v25, %v3585_v25  ;;  %v2862_v30 = vadd.f32 %v2819_v20, %v2609_v17  ;;  %v3296_v22 = vpop.f32.mrf.mxu0 }
 0x48b   : > { %v3065_v1 = vpop.f32.mrf.mxu3  ;;  %v2861_v38 = vadd.f32 %v2817_v3, %v2608_v19 }
 0x48c   : > { %4126 = vst [vmem:[%s5749_s8 + $0x50] sm:$0xff] %v4090_v33   ;;  %v3750_v43 = vadd.f32 %v3749_v28, %v3719_v15  ;;  %v3112_v51 = vadd.f32 %v3065_v1, %v2859_v37  ;;  %v3549_v59 = vpop.f32.mrf.mxu1  ;;  %v6570_v1 = vld [vmem:[#allocation15_spill] sm:$0xff] }
 0x48d   : > { %v2390_v62 = vadd.f32 %v6571_v2, %v6570_v1  ;;  %v6582_v1 = vld [vmem:[#allocation32_spill] sm:$0xff]  ;;  %v6583_v2 = vld [vmem:[#allocation63_spill] sm:$0xff] }
 0x48e   : > { %v3333_v18 = vadd.f32 %v3286_v10, %v3112_v51 }
 0x490   : > { %v3586_v12 = vadd.f32 %v3539_v23, %v3333_v18  ;;  %v2822_v23 = vpop.f32.mrf.mxu2 }
 0x491   : > { %v2863_v3 = vadd.f32 %v2822_v23, %v2610_v58 }
 0x492   : > { %v3681_v40 = vadd.f32 %v3680_v8, %v3586_v12  ;;  %v3720_v50 = vmul.f32 %v3586_v12, %v3586_v12  ;;  %v3298_v18 = vpop.f32.mrf.mxu0 }
 0x493   : > { %v3067_v44 = vpop.f32.mrf.mxu3 }
 0x494   : > { %v3751_v42 = vadd.f32 %v3750_v43, %v3720_v50  ;;  %v3113_v41 = vadd.f32 %v3067_v44, %v2860_v14  ;;  %v3551_v26 = vpop.f32.mrf.mxu1  ;;  %v6573_v44 = vld [vmem:[#allocation60_spill] sm:$0xff] }
 0x495   : > { %v2391_v9 = vadd.f32 %v6574_v46, %v6573_v44 }
 0x496   : > { %v3334_v36 = vadd.f32 %v3288_v52, %v3113_v41 }
 0x498   : > { %v3587_v29 = vadd.f32 %v3541_v53, %v3334_v36  ;;  %v2824_v53 = vpop.f32.mrf.mxu2  ;;  %v6575_v36 = vld [vmem:[#allocation45_spill] sm:$0xff] }
 0x499   : > { %v2612_v34 = vadd.f32 %v6575_v36, %v2391_v9 }
 0x49a   : > { %v4095_v13 = vpack.c.bf16 %v3587_v29, %v3586_v12  ;;  %v3682_v21 = vadd.f32 %v3681_v40, %v3587_v29  ;;  %v3721_v55 = vmul.f32 %v3587_v29, %v3587_v29  ;;  %v2611_v12 = vadd.f32 %v6572_v11, %v2390_v62  ;;  %v3301_v29 = vpop.f32.mrf.mxu0  ;;  %v6584_v11 = vld [vmem:[#allocation14_spill] sm:$0xff] }
 0x49b   : > { %v3070_v31 = vpop.f32.mrf.mxu3  ;;  %v2394_v62 = vadd.f32 %v6583_v2, %v6582_v1 }
 0x49c   : > { %4127 = vst [vmem:[%s5749_s8 + $0x58] sm:$0xff] %v4095_v13   ;;  %v3752_v32 = vadd.f32 %v3751_v42, %v3721_v55  ;;  %v3114_v10 = vadd.f32 %v3070_v31, %v2861_v38  ;;  %v2864_v14 = vadd.f32 %v2824_v53, %v2611_v12  ;;  %v3554_v38 = vpop.f32.mrf.mxu1  ;;  %v6581_v53 = vld [vmem:[#allocation13_spill] sm:$0xff] }
 0x49d   : > { %v2614_v49 = vadd.f32 %v6581_v53, %v2393_v48  ;;  %v2615_v12 = vadd.f32 %v6584_v11, %v2394_v62 }
 0x49e   : > { %v3335_v0 = vadd.f32 %v3291_v60, %v3114_v10 }
 0x4a0   : > { %v3588_v57 = vadd.f32 %v3544_v56, %v3335_v0  ;;  %v2827_v56 = vpop.f32.mrf.mxu2  ;;  %v6578_v0 = vld [vmem:[#allocation80_spill] sm:$0xff] }
 0x4a1   : > { %v2865_v13 = vadd.f32 %v2827_v56, %v2612_v34 }
 0x4a2   : > { %v3683_v24 = vadd.f32 %v3682_v21, %v3588_v57  ;;  %v3722_v7 = vmul.f32 %v3588_v57, %v3588_v57 }
 0x4a3   : > { %v3072_v61 = vpop.f32.mrf.mxu3 }
 0x4a4   : > { %v3753_v6 = vadd.f32 %v3752_v32, %v3722_v7  ;;  %v3115_v28 = vadd.f32 %v3072_v61, %v2862_v30  ;;  %v3303_v7 = vpop.f32.mrf.mxu0 }
 0x4a6   : > { %v3336_v52 = vadd.f32 %v3293_v27, %v3115_v28 }
 0x4a8   : > { %v3589_v25 = vadd.f32 %v3546_v39, %v3336_v52  ;;  %v2829_v31 = vpop.f32.mrf.mxu2  ;;  %v2392_v39 = vadd.f32 %v6577_v4, %v6576_v63 }
 0x4aa   : > { %v4100_v37 = vpack.c.bf16 %v3589_v25, %v3588_v57  ;;  %v3684_v33 = vadd.f32 %v3683_v24, %v3589_v25  ;;  %v3723_v8 = vmul.f32 %v3589_v25, %v3589_v25  ;;  %v2613_v45 = vadd.f32 %v6578_v0, %v2392_v39 }
 0x4ab   : > { %v3075_v15 = vpop.f32.mrf.mxu3 }
 0x4ac   : > { %4128 = vst [vmem:[%s5749_s8 + $0x60] sm:$0xff] %v4100_v37   ;;  %v3754_v5 = vadd.f32 %v3753_v6, %v3723_v8  ;;  %v3116_v43 = vadd.f32 %v3075_v15, %v2863_v3  ;;  %v2866_v57 = vadd.f32 %v2829_v31, %v2613_v45  ;;  %v3306_v15 = vpop.f32.mrf.mxu0 }
 0x4ae   : > { %v3337_v51 = vadd.f32 %v3296_v22, %v3116_v43  ;;  %v3556_v22 = vpop.f32.mrf.mxu1 }
 0x4b0   : > { %v3590_v60 = vadd.f32 %v3549_v59, %v3337_v51  ;;  %v2832_v59 = vpop.f32.mrf.mxu2 }
 0x4b1   : > { %v2867_v25 = vadd.f32 %v2832_v59, %v2614_v49 }
 0x4b2   : > { %v3685_v40 = vadd.f32 %v3684_v33, %v3590_v60  ;;  %v3724_v50 = vmul.f32 %v3590_v60, %v3590_v60 }
 0x4b3   : > { %v3077_v20 = vpop.f32.mrf.mxu3 }
 0x4b4   : > { %v3755_v35 = vadd.f32 %v3754_v5, %v3724_v50  ;;  %v3117_v42 = vadd.f32 %v3077_v20, %v2864_v14  ;;  %v3308_v46 = vpop.f32.mrf.mxu0 }
 0x4b6   : > { %v3338_v41 = vadd.f32 %v3298_v18, %v3117_v42  ;;  %v3559_v51 = vpop.f32.mrf.mxu1 }
 0x4b8   : > { %v3591_v19 = vadd.f32 %v3551_v26, %v3338_v41  ;;  %v2834_v26 = vpop.f32.mrf.mxu2 }
 0x4b9   : > { %v2868_v56 = vadd.f32 %v2834_v26, %v2615_v12 }
 0x4ba   : > { %v4105_v21 = vpack.c.bf16 %v3591_v19, %v3590_v60  ;;  %v3686_v55 = vadd.f32 %v3685_v40, %v3591_v19  ;;  %v3725_v27 = vmul.f32 %v3591_v19, %v3591_v19 }
 0x4bb   : > { %v3080_v16 = vpop.f32.mrf.mxu3 }
 0x4bc   : > { %4129 = vst [vmem:[%s5749_s8 + $0x68] sm:$0xff] %v4105_v21   ;;  %v3756_v32 = vadd.f32 %v3755_v35, %v3725_v27  ;;  %v3118_v10 = vadd.f32 %v3080_v16, %v2865_v13 }
 0x4be   : > { %v3339_v23 = vadd.f32 %v3301_v29, %v3118_v10  ;;  %v3561_v35 = vpop.f32.mrf.mxu1 }
 0x4c0   : > { %v3592_v17 = vadd.f32 %v3554_v38, %v3339_v23 }
 0x4c2   : > { %v3726_v30 = vmul.f32 %v3592_v17, %v3592_v17  ;;  %v3687_v24 = vadd.f32 %v3686_v55, %v3592_v17 }
 0x4c3   : > { %v3082_v61 = vpop.f32.mrf.mxu3 }
 0x4c4   : > { %v3119_v6 = vadd.f32 %v3082_v61, %v2866_v57  ;;  %v3757_v28 = vadd.f32 %v3756_v32, %v3726_v30 }
 0x4c6   : > { %v3340_v52 = vadd.f32 %v3303_v7, %v3119_v6 }
 0x4c8   : > { %v3593_v58 = vadd.f32 %v3556_v22, %v3340_v52 }
 0x4ca   : > { %v4110_v3 = vpack.c.bf16 %v3593_v58, %v3592_v17  ;;  %v3727_v37 = vmul.f32 %v3593_v58, %v3593_v58  ;;  %v3688_v33 = vadd.f32 %v3687_v24, %v3593_v58 }
 0x4cb   : > { %v3085_v8 = vpop.f32.mrf.mxu3 }
 0x4cc   : > { %4130 = vst [vmem:[%s5749_s8 + $0x70] sm:$0xff] %v4110_v3   ;;  %v3120_v5 = vadd.f32 %v3085_v8, %v2867_v25  ;;  %v3758_v43 = vadd.f32 %v3757_v28, %v3727_v37 }
 0x4ce   : > { %v3341_v18 = vadd.f32 %v3306_v15, %v3120_v5 }
 0x4d0   : > { %v3594_v60 = vadd.f32 %v3559_v51, %v3341_v18 }
 0x4d2   : > { %v3689_v14 = vadd.f32 %v3688_v33, %v3594_v60  ;;  %v3728_v40 = vmul.f32 %v3594_v60, %v3594_v60 }
 0x4d3   : > { %v3087_v50 = vpop.f32.mrf.mxu3 }
 0x4d4   : > { %v3759_v20 = vadd.f32 %v3758_v43, %v3728_v40  ;;  %v3121_v44 = vadd.f32 %v3087_v50, %v2868_v56 }
 0x4d6   : > { %v3342_v9 = vadd.f32 %v3308_v46, %v3121_v44 }
 0x4d8   : > { %v3595_v42 = vadd.f32 %v3561_v35, %v3342_v9 }
 0x4da   : > { %v4115_v41 = vpack.c.bf16 %v3595_v42, %v3594_v60  ;;  %v3690_v36 = vadd.f32 %v3689_v14, %v3595_v42  ;;  %v3729_v34 = vmul.f32 %v3595_v42, %v3595_v42 }
 0x4dc   : > { %4131 = vst [vmem:[%s5749_s8 + $0x78] sm:$0xff] %v4115_v41   ;;  %v3691_v19 = vrot.slane %v3690_v36, 4  ;;  %v3760_v29 = vadd.f32 %v3759_v20, %v3729_v34 }
 0x4de   : > { %v3692_v38 = vadd.f32 %v3691_v19, %v3690_v36  ;;  %v3761_v13 = vrot.slane %v3760_v29, 4 }
 0x4e0   : > { %v3693_v21 = vrot.slane %v3692_v38, 2  ;;  %v3762_v55 = vadd.f32 %v3761_v13, %v3760_v29 }
 0x4e2   : > { %v3694_v27 = vadd.f32 %v3693_v21, %v3692_v38  ;;  %v3763_v31 = vrot.slane %v3762_v55, 2 }
 0x4e4   : > { %v3695_v16 = vrot.slane %v3694_v27, 1  ;;  %v3764_v63 = vadd.f32 %v3763_v31, %v3762_v55 }
 0x4e6   : > { %v3696_v4 = vadd.f32 %v3695_v16, %v3694_v27  ;;  %v3765_v39 = vrot.slane %v3764_v63, 1 }
 0x4e8   : > { %3697 = vst [vmem:[%s232_s12] sm:$0x1] %v3696_v4  ;;  %v3766_v32 = vadd.f32 %v3765_v39, %v3764_v63 }
 0x4ea   : > { %3767 = vst [vmem:[%s232_s12 + $0x1] sm:$0x1] %v3766_v32 }
 0x4eb PF: > { %s16_s18 = sadd.s32 1, %s4159_s18  }
 0x4ec   : > { %p13_p4 = scmp.ge.s32.totalorder %s16_s18, 4  }
 0x4ee   :  { %15 = sbr.rel (!%p13_p4) target bundleno = 1 (0x1), region = 78 }

</bundles_post_ra>
